<compile_context>
chip_gen: v5e
topology: v5e:2x2
jax: 0.10.0
libtpu: 0.0.40
codegen_flags: <defaults>
</compile_context>

<pallas_src>
import functools

import jax
import jax.numpy as jnp
from jax.experimental import pallas as pl
from jax.experimental.pallas import tpu as pltpu

EPS = 1e-5  # PyTorch BatchNorm2d default eps


# ----------------------------------------------------------------------------
# helpers
# ----------------------------------------------------------------------------

def _compiler_params():
    # Explicit VMEM budget + 'parallel' 1-D grid (lets v7x's two TensorCores
    # split the row tiles; stats are per-tile partials, not a resident acc).
    return pltpu.CompilerParams(
        dimension_semantics=("parallel",),
        vmem_limit_bytes=64 * 1024 * 1024)


def _row_tile(m, target):
    """Largest multiple of 8 that divides m and is <= target (else m itself)."""
    if m <= target:
        return m
    t = (min(target, m) // 8) * 8
    while t >= 8:
        if m % t == 0:
            return t
        t -= 8
    return m


def _store_stats(st_ref, acc):
    """Per-tile per-channel [sum ; sum_sq] into a (1, 8, C) f32 stats slab."""
    c = acc.shape[-1]
    st_ref[0, 0:1, :] = jnp.sum(acc, axis=0, keepdims=True)
    st_ref[0, 1:2, :] = jnp.sum(acc * acc, axis=0, keepdims=True)
    st_ref[0, 2:8, :] = jnp.zeros((6, c), jnp.float32)


def _bn_scale_shift(stats, gamma, beta, count):
    """Reduce per-tile partials -> per-channel (scale, shift).  Tiny JAX glue."""
    s = jnp.sum(stats[:, 0, :], axis=0)
    q = jnp.sum(stats[:, 1, :], axis=0)
    mean = s / count
    var = q / count - mean * mean
    scale = gamma * jax.lax.rsqrt(var + EPS)
    shift = beta - mean * scale
    return scale, shift


# ----------------------------------------------------------------------------
# Pallas kernels
# ----------------------------------------------------------------------------

def _matmul_stats_kernel(x_ref, w_ref, c_ref, st_ref):
    # 1x1 conv as matmul (f32 MXU accumulation) + BN partial statistics.
    acc = jnp.dot(x_ref[...], w_ref[...], preferred_element_type=jnp.float32)
    c_ref[...] = acc
    _store_stats(st_ref, acc)


def _bn_relu_pad_kernel(c_ref, s_ref, b_ref, o_ref):
    # BN1 apply + ReLU + zero spatial pad (pad=1); output stored in compute dtype.
    _, h, w, _ = c_ref.shape
    a = jnp.maximum(c_ref[...] * s_ref[...] + b_ref[...], 0.0)
    o_ref[...] = jnp.zeros(o_ref.shape, o_ref.dtype)
    o_ref[0, 1:h + 1, 1:w + 1, :] = a[0].astype(o_ref.dtype)


def _conv3x3_stats_kernel(a_ref, w_ref, c_ref, st_ref, *, stride):
    # 3x3 conv (padding already applied) as 9 shifted matmuls + BN partials.
    _, ho, wo, co = c_ref.shape
    ci = a_ref.shape[-1]
    acc = jnp.zeros((ho * wo, co), jnp.float32)
    for kh in range(3):
        for kw in range(3):
            if stride == 1:
                tap = a_ref[0, kh:kh + ho, kw:kw + wo, :]
            else:
                # TODO(synk): strided tap reads (stride > 1) are not exercised
                # by the stride=1 test below.
                tap = a_ref[0, pl.ds(kh, ho, stride), pl.ds(kw, wo, stride), :]
            acc = acc + jnp.dot(tap.reshape(ho * wo, ci), w_ref[kh, kw],
                                preferred_element_type=jnp.float32)
    c_ref[0] = acc.reshape(ho, wo, co)
    _store_stats(st_ref, acc)


def _conv3_sc_kernel(c2_ref, s2_ref, b2_ref, xs_ref, w3_ref, ws_ref,
                     c3_ref, cs_ref, st3_ref, sts_ref):
    # BN2 apply + ReLU fused on the input, then conv3 (1x1) and the shortcut
    # 1x1 conv in the same kernel (both ride the same row DMA traffic).
    a2 = jnp.maximum(c2_ref[...] * s2_ref[...] + b2_ref[...], 0.0)
    a2 = a2.astype(w3_ref.dtype)
    c3 = jnp.dot(a2, w3_ref[...], preferred_element_type=jnp.float32)
    cs = jnp.dot(xs_ref[...], ws_ref[...], preferred_element_type=jnp.float32)
    c3_ref[...] = c3
    cs_ref[...] = cs
    _store_stats(st3_ref, c3)
    _store_stats(sts_ref, cs)


def _conv3_kernel(c2_ref, s2_ref, b2_ref, w3_ref, c3_ref, st3_ref):
    a2 = jnp.maximum(c2_ref[...] * s2_ref[...] + b2_ref[...], 0.0)
    a2 = a2.astype(w3_ref.dtype)
    c3 = jnp.dot(a2, w3_ref[...], preferred_element_type=jnp.float32)
    c3_ref[...] = c3
    _store_stats(st3_ref, c3)


def _bn2_add_relu_kernel(c3_ref, cs_ref, s3_ref, b3_ref, ss_ref, bs_ref, o_ref):
    y3 = c3_ref[...] * s3_ref[...] + b3_ref[...]
    ys = cs_ref[...] * ss_ref[...] + bs_ref[...]
    o_ref[...] = jnp.maximum(y3 + ys, 0.0)


def _bn_add_relu_kernel(c3_ref, r_ref, s3_ref, b3_ref, o_ref):
    y3 = c3_ref[...] * s3_ref[...] + b3_ref[...]
    o_ref[...] = jnp.maximum(y3 + r_ref[...], 0.0)


# ----------------------------------------------------------------------------
# pallas_call wrappers
# ----------------------------------------------------------------------------

def _matmul_stats(x, w, block_rows):
    m, k = x.shape
    c = w.shape[1]
    tm = _row_tile(m, block_rows)
    gm = m // tm
    return pl.pallas_call(
        _matmul_stats_kernel,
        grid=(gm,),
        in_specs=[pl.BlockSpec((tm, k), lambda i: (i, 0)),
                  pl.BlockSpec((k, c), lambda i: (0, 0))],
        out_specs=[pl.BlockSpec((tm, c), lambda i: (i, 0)),
                   pl.BlockSpec((1, 8, c), lambda i: (i, 0, 0))],
        out_shape=[jax.ShapeDtypeStruct((m, c), jnp.float32),
                   jax.ShapeDtypeStruct((gm, 8, c), jnp.float32)],
        compiler_params=_compiler_params(),
    )(x, w)


def _bn_relu_pad(c4d, scale, shift, out_dtype):
    n, h, w, c = c4d.shape
    return pl.pallas_call(
        _bn_relu_pad_kernel,
        grid=(n,),
        in_specs=[pl.BlockSpec((1, h, w, c), lambda i: (i, 0, 0, 0)),
                  pl.BlockSpec((1, 1, 1, c), lambda i: (0, 0, 0, 0)),
                  pl.BlockSpec((1, 1, 1, c), lambda i: (0, 0, 0, 0))],
        out_specs=pl.BlockSpec((1, h + 2, w + 2, c), lambda i: (i, 0, 0, 0)),
        out_shape=jax.ShapeDtypeStruct((n, h + 2, w + 2, c), out_dtype),
        compiler_params=_compiler_params(),
    )(c4d, scale.reshape(1, 1, 1, c), shift.reshape(1, 1, 1, c))


def _conv3x3_stats(a1p, w2, ho, wo, stride):
    n, hp, wp, c = a1p.shape
    kern = functools.partial(_conv3x3_stats_kernel, stride=stride)
    # TODO(synk): for very large images this per-image block should be split
    # into row bands with a halo DMA; fine at ResNet bottleneck sizes.
    return pl.pallas_call(
        kern,
        grid=(n,),
        in_specs=[pl.BlockSpec((1, hp, wp, c), lambda i: (i, 0, 0, 0)),
                  pl.BlockSpec((3, 3, c, c), lambda i: (0, 0, 0, 0))],
        out_specs=[pl.BlockSpec((1, ho, wo, c), lambda i: (i, 0, 0, 0)),
                   pl.BlockSpec((1, 8, c), lambda i: (i, 0, 0))],
        out_shape=[jax.ShapeDtypeStruct((n, ho, wo, c), jnp.float32),
                   jax.ShapeDtypeStruct((n, 8, c), jnp.float32)],
        compiler_params=_compiler_params(),
    )(a1p, w2)


def _conv3_shortcut(c2, s2, b2, xs, w3, ws, block_rows):
    m, cb = c2.shape
    cin = xs.shape[1]
    cout = w3.shape[1]
    tm = _row_tile(m, block_rows)
    gm = m // tm
    return pl.pallas_call(
        _conv3_sc_kernel,
        grid=(gm,),
        in_specs=[pl.BlockSpec((tm, cb), lambda i: (i, 0)),
                  pl.BlockSpec((1, cb), lambda i: (0, 0)),
                  pl.BlockSpec((1, cb), lambda i: (0, 0)),
                  pl.BlockSpec((tm, cin), lambda i: (i, 0)),
                  pl.BlockSpec((cb, cout), lambda i: (0, 0)),
                  pl.BlockSpec((cin, cout), lambda i: (0, 0))],
        out_specs=[pl.BlockSpec((tm, cout), lambda i: (i, 0)),
                   pl.BlockSpec((tm, cout), lambda i: (i, 0)),
                   pl.BlockSpec((1, 8, cout), lambda i: (i, 0, 0)),
                   pl.BlockSpec((1, 8, cout), lambda i: (i, 0, 0))],
        out_shape=[jax.ShapeDtypeStruct((m, cout), jnp.float32),
                   jax.ShapeDtypeStruct((m, cout), jnp.float32),
                   jax.ShapeDtypeStruct((gm, 8, cout), jnp.float32),
                   jax.ShapeDtypeStruct((gm, 8, cout), jnp.float32)],
        compiler_params=_compiler_params(),
    )(c2, s2.reshape(1, cb), b2.reshape(1, cb), xs, w3, ws)


def _conv3(c2, s2, b2, w3, block_rows):
    m, cb = c2.shape
    cout = w3.shape[1]
    tm = _row_tile(m, block_rows)
    gm = m // tm
    return pl.pallas_call(
        _conv3_kernel,
        grid=(gm,),
        in_specs=[pl.BlockSpec((tm, cb), lambda i: (i, 0)),
                  pl.BlockSpec((1, cb), lambda i: (0, 0)),
                  pl.BlockSpec((1, cb), lambda i: (0, 0)),
                  pl.BlockSpec((cb, cout), lambda i: (0, 0))],
        out_specs=[pl.BlockSpec((tm, cout), lambda i: (i, 0)),
                   pl.BlockSpec((1, 8, cout), lambda i: (i, 0, 0))],
        out_shape=[jax.ShapeDtypeStruct((m, cout), jnp.float32),
                   jax.ShapeDtypeStruct((gm, 8, cout), jnp.float32)],
        compiler_params=_compiler_params(),
    )(c2, s2.reshape(1, cb), b2.reshape(1, cb), w3)


def _bn2_add_relu(c3, cs, s3, b3, ss, bs, block_rows):
    m, c = c3.shape
    tm = _row_tile(m, block_rows)
    return pl.pallas_call(
        _bn2_add_relu_kernel,
        grid=(m // tm,),
        in_specs=[pl.BlockSpec((tm, c), lambda i: (i, 0)),
                  pl.BlockSpec((tm, c), lambda i: (i, 0)),
                  pl.BlockSpec((1, c), lambda i: (0, 0)),
                  pl.BlockSpec((1, c), lambda i: (0, 0)),
                  pl.BlockSpec((1, c), lambda i: (0, 0)),
                  pl.BlockSpec((1, c), lambda i: (0, 0))],
        out_specs=pl.BlockSpec((tm, c), lambda i: (i, 0)),
        out_shape=jax.ShapeDtypeStruct((m, c), jnp.float32),
        compiler_params=_compiler_params(),
    )(c3, cs, s3.reshape(1, c), b3.reshape(1, c),
      ss.reshape(1, c), bs.reshape(1, c))


def _bn_add_relu(c3, res, s3, b3, block_rows):
    m, c = c3.shape
    tm = _row_tile(m, block_rows)
    return pl.pallas_call(
        _bn_add_relu_kernel,
        grid=(m // tm,),
        in_specs=[pl.BlockSpec((tm, c), lambda i: (i, 0)),
                  pl.BlockSpec((tm, c), lambda i: (i, 0)),
                  pl.BlockSpec((1, c), lambda i: (0, 0)),
                  pl.BlockSpec((1, c), lambda i: (0, 0))],
        out_specs=pl.BlockSpec((tm, c), lambda i: (i, 0)),
        out_shape=jax.ShapeDtypeStruct((m, c), jnp.float32),
        compiler_params=_compiler_params(),
    )(c3, res, s3.reshape(1, c), b3.reshape(1, c))


# ----------------------------------------------------------------------------
# block forward
# ----------------------------------------------------------------------------

@functools.partial(jax.jit,
                   static_argnames=("stride", "compute_dtype", "block_rows"))
def bottleneck_block(x_nchw, params, stride=1, *,
                     compute_dtype=jnp.bfloat16, block_rows=512):
    """Pallas-backed forward pass.  x_nchw: [N, Cin, H, W] -> [N, Cout, Ho, Wo]."""
    x = jnp.transpose(x_nchw, (0, 2, 3, 1)).astype(jnp.float32)   # NCHW -> NHWC
    n, h, w, cin = x.shape
    cb = params['w1'].shape[1]
    cout = params['w3'].shape[1]
    ho = (h - 1) // stride + 1
    wo = (w - 1) // stride + 1
    m1, m2 = n * h * w, n * ho * wo
    mm = compute_dtype

    x2d = x.reshape(m1, cin)

    # conv1 (1x1) + BN1 partial stats
    c1, st1 = _matmul_stats(x2d.astype(mm), params['w1'].astype(mm), block_rows)
    s1, b1 = _bn_scale_shift(st1, params['g1'], params['b1'], m1)

    # BN1 apply + ReLU + zero pad (pad=1), stored in compute dtype
    a1p = _bn_relu_pad(c1.reshape(n, h, w, cb), s1, b1, mm)

    # conv2 (3x3, stride, pad=1) as 9 shifted matmuls + BN2 partial stats
    c2, st2 = _conv3x3_stats(a1p, params['w2'].astype(mm), ho, wo, stride)
    s2, b2 = _bn_scale_shift(st2, params['g2'], params['b2'], m2)
    c2_2d = c2.reshape(m2, cb)

    if stride != 1 or cin != cout:
        # conv3 (1x1) fused with BN2-apply+ReLU and the shortcut 1x1 conv
        xs = x[:, ::stride, ::stride, :].reshape(m2, cin)
        c3, cs, st3, sts = _conv3_shortcut(
            c2_2d, s2, b2, xs.astype(mm),
            params['w3'].astype(mm), params['ws'].astype(mm), block_rows)
        s3, b3 = _bn_scale_shift(st3, params['g3'], params['b3'], m2)
        ss, bs = _bn_scale_shift(sts, params['gs'], params['bs'], m2)
        y = _bn2_add_relu(c3, cs, s3, b3, ss, bs, block_rows)
    else:
        c3, st3 = _conv3(c2_2d, s2, b2, params['w3'].astype(mm), block_rows)
        s3, b3 = _bn_scale_shift(st3, params['g3'], params['b3'], m2)
        y = _bn_add_relu(c3, x2d, s3, b3, block_rows)   # identity shortcut (f32)

    y = y.reshape(n, ho, wo, cout)
    # TODO(synk): NCHW<->NHWC transposes and sub-128-lane channel tiles are
    # left to XLA glue; a production version would take/return NHWC and pad
    # channels to 128 lanes.
    return jnp.transpose(y, (0, 3, 1, 2))                # NHWC -> NCHW


# ----------------------------------------------------------------------------
# deterministic params
# ----------------------------------------------------------------------------

def init_params(key, in_channels, out_channels, stride):
    cb = out_channels // 4  # expansion = 4
    ks = jax.random.split(key, 12)

    def wgt(k, shape, fan_in):
        return jax.random.normal(k, shape, jnp.float32) / jnp.sqrt(float(fan_in))

    p = {
        'w1': wgt(ks[0], (in_channels, cb), in_channels),          # 1x1: [Cin, Cb]
        'g1': 1.0 + 0.1 * jax.random.normal(ks[1], (cb,), jnp.float32),
        'b1': 0.1 * jax.random.normal(ks[2], (cb,), jnp.float32),
        'w2': wgt(ks[3], (3, 3, cb, cb), 9 * cb),                  # 3x3: HWIO
        'g2': 1.0 + 0.1 * jax.random.normal(ks[4], (cb,), jnp.float32),
        'b2': 0.1 * jax.random.normal(ks[5], (cb,), jnp.float32),
        'w3': wgt(ks[6], (cb, out_channels), cb),                  # 1x1: [Cb, Cout]
        'g3': 1.0 + 0.1 * jax.random.normal(ks[7], (out_channels,), jnp.float32),
        'b3': 0.1 * jax.random.normal(ks[8], (out_channels,), jnp.float32),
    }
    if stride != 1 or in_channels != out_channels:
        p['ws'] = wgt(ks[9], (in_channels, out_channels), in_channels)
        p['gs'] = 1.0 + 0.1 * jax.random.normal(ks[10], (out_channels,), jnp.float32)
        p['bs'] = 0.1 * jax.random.normal(ks[11], (out_channels,), jnp.float32)
    return p


# ----------------------------------------------------------------------------
# pure-JAX reference (same compute dtype for the conv operands)
# ----------------------------------------------------------------------------

def _bn_ref(x, gamma, beta):
    mean = jnp.mean(x, axis=(0, 1, 2), keepdims=True)
    var = jnp.mean((x - mean) ** 2, axis=(0, 1, 2), keepdims=True)
    return (x - mean) * jax.lax.rsqrt(var + EPS) * gamma.reshape(1, 1, 1, -1) \
        + beta.reshape(1, 1, 1, -1)


def _conv_ref(x, w_hwio, stride, padding, dtype):
    return jax.lax.conv_general_dilated(
        x.astype(dtype), w_hwio.astype(dtype), (stride, stride), padding,
        dimension_numbers=('NHWC', 'HWIO', 'NHWC'),
        preferred_element_type=jnp.float32,
        precision=jax.lax.Precision.HIGHEST)


def bottleneck_block_ref(x_nchw, params, stride=1, compute_dtype=jnp.float32):
    x = jnp.transpose(x_nchw, (0, 2, 3, 1)).astype(jnp.float32)
    cin = x.shape[-1]
    cb = params['w1'].shape[1]
    cout = params['w3'].shape[1]
    dt = compute_dtype

    out = jax.nn.relu(_bn_ref(
        _conv_ref(x, params['w1'].reshape(1, 1, cin, cb), 1, 'VALID', dt),
        params['g1'], params['b1']))
    out = jax.nn.relu(_bn_ref(
        _conv_ref(out, params['w2'], stride, [(1, 1), (1, 1)], dt),
        params['g2'], params['b2']))
    out = _bn_ref(
        _conv_ref(out, params['w3'].reshape(1, 1, cb, cout), 1, 'VALID', dt),
        params['g3'], params['b3'])
    if stride != 1 or cin != cout:
        sc = _bn_ref(
            _conv_ref(x, params['ws'].reshape(1, 1, cin, cout), stride, 'VALID', dt),
            params['gs'], params['bs'])
    else:
        sc = x
    y = jax.nn.relu(out + sc)
    return jnp.transpose(y, (0, 3, 1, 2))


# ----------------------------------------------------------------------------
# test
# ----------------------------------------------------------------------------

def _check(y, r, name):
    # Tight aggregate check + loose elementwise check (bf16 double-rounding of
    # intermediates can flip a handful of values by ~1 bf16 ulp, which after
    # BN scaling is ~1e-2 in the worst case).
    rel = float(jnp.linalg.norm(y - r) / (jnp.linalg.norm(r) + 1e-30))
    assert rel < 3e-3, f"{name}: relative Frobenius error {rel:.2e}"
    assert bool(jnp.allclose(y, r, rtol=3e-2, atol=3e-2)), f"{name}: allclose failed"


if __name__ == "__main__":
    key = jax.random.PRNGKey(0)
    kx, kp, kx2, kp2 = jax.random.split(key, 4)

    # --- conv-shortcut path (Cin != Cout) ---------------------------------
    N, Cin, H, W = 2, 4, 16, 16
    Cout, stride = 16, 1
    x = jax.random.normal(kx, (N, Cin, H, W), jnp.float32)
    params = init_params(kp, Cin, Cout, stride)

    y = jax.block_until_ready(
        bottleneck_block(x, params, stride=stride, block_rows=128))
    assert y.shape == (N, Cout, (H - 1) // stride + 1, (W - 1) // stride + 1)
    y_ref = bottleneck_block_ref(x, params, stride=stride,
                                 compute_dtype=jnp.bfloat16)
    _check(y, y_ref, "conv-shortcut path")

    # --- identity-shortcut path (Cin == Cout, stride 1) -------------------
    Cin2 = Cout2 = 16
    x2 = jax.random.normal(kx2, (N, Cin2, H, W), jnp.float32)
    params2 = init_params(kp2, Cin2, Cout2, 1)

    y2 = jax.block_until_ready(
        bottleneck_block(x2, params2, stride=1, block_rows=128))
    y2_ref = bottleneck_block_ref(x2, params2, stride=1,
                                  compute_dtype=jnp.bfloat16)
    _check(y2, y2_ref, "identity-shortcut path")

    print("KERNEL_OK")
</pallas_src>

<mosaic_0001>
module attributes {stable_mosaic.version = 11 : i64} {
  func.func @_matmul_stats_kernel(%arg0: i32, %arg1: memref<128x4xbf16, #tpu.memory_space<vmem>>, %arg2: memref<4x4xbf16, #tpu.memory_space<vmem>>, %arg3: memref<128x4xf32, #tpu.memory_space<vmem>>, %arg4: memref<1x8x4xf32, #tpu.memory_space<vmem>>) attributes {dimension_semantics = [#tpu.dimension_semantics<parallel>], iteration_bounds = array<i64: 4>, scalar_prefetch = 0 : i64, scratch_operands = 0 : i64, tpu.core_type = #tpu.core_type<tc>, window_params = [{transform_indices = @transform_0, window_bounds = array<i64: 128, 4>}, {pipeline_mode = #tpu.pipeline_mode<synchronous>, transform_indices = @transform_1, window_bounds = array<i64: 4, 4>}, {transform_indices = @transform_2, window_bounds = array<i64: 128, 4>}, {transform_indices = @transform_3, window_bounds = array<i64: 1, 8, 4>}]} {
    %c0 = arith.constant 0 : index
    %c0_0 = arith.constant 0 : index
    %0 = vector.load %arg1[%c0, %c0_0] : memref<128x4xbf16, #tpu.memory_space<vmem>>, vector<128x4xbf16>
    %c0_1 = arith.constant 0 : index
    %c0_2 = arith.constant 0 : index
    %1 = vector.load %arg2[%c0_1, %c0_2] : memref<4x4xbf16, #tpu.memory_space<vmem>>, vector<4x4xbf16>
    %cst = arith.constant dense<0.000000e+00> : vector<128x4xf32>
    %2 = tpu.matmul %0, %1, %cst {dimension_numbers = #tpu.dot_dimension_numbers<[1], [0], [0], [1], [0, 0, 1, 1], [], []>} : vector<128x4xbf16>, vector<4x4xbf16>, vector<128x4xf32> -> vector<128x4xf32>
    %c0_3 = arith.constant 0 : index
    %c0_4 = arith.constant 0 : index
    %3 = vector.load %arg3[%c0_3, %c0_4] : memref<128x4xf32, #tpu.memory_space<vmem>>, vector<128x4xf32>
    tpu.vector_store %arg3[%c0_3, %c0_4], %2 {strides = array<i32>} : memref<128x4xf32, #tpu.memory_space<vmem>>, vector<128x4xf32>,
    %cst_5 = arith.constant dense<0.000000e+00> : vector<4xf32>
    %4 = vector.multi_reduction <add>, %2, %cst_5 [0] : vector<128x4xf32> to vector<4xf32>
    %5 = vector.shape_cast %4 : vector<4xf32> to vector<1x4xf32>
    %c0_6 = arith.constant 0 : index
    %c0_7 = arith.constant 0 : index
    %c0_8 = arith.constant 0 : index
    %6 = vector.load %arg4[%c0_6, %c0_7, %c0_8] : memref<1x8x4xf32, #tpu.memory_space<vmem>>, vector<1x1x4xf32>
    %7 = vector.shape_cast %6 : vector<1x1x4xf32> to vector<1x4xf32>
    %8 = vector.shape_cast %5 : vector<1x4xf32> to vector<1x1x4xf32>
    tpu.vector_store %arg4[%c0_6, %c0_7, %c0_8], %8 {strides = array<i32>} : memref<1x8x4xf32, #tpu.memory_space<vmem>>, vector<1x1x4xf32>,
    %9 = arith.mulf %2, %2 : vector<128x4xf32>
    %cst_9 = arith.constant dense<0.000000e+00> : vector<4xf32>
    %10 = vector.multi_reduction <add>, %9, %cst_9 [0] : vector<128x4xf32> to vector<4xf32>
    %11 = vector.shape_cast %10 : vector<4xf32> to vector<1x4xf32>
    %c0_10 = arith.constant 0 : index
    %c1 = arith.constant 1 : index
    %c0_11 = arith.constant 0 : index
    %12 = vector.load %arg4[%c0_10, %c1, %c0_11] : memref<1x8x4xf32, #tpu.memory_space<vmem>>, vector<1x1x4xf32>
    %13 = vector.shape_cast %12 : vector<1x1x4xf32> to vector<1x4xf32>
    %14 = vector.shape_cast %11 : vector<1x4xf32> to vector<1x1x4xf32>
    tpu.vector_store %arg4[%c0_10, %c1, %c0_11], %14 {strides = array<i32>} : memref<1x8x4xf32, #tpu.memory_space<vmem>>, vector<1x1x4xf32>,
    %cst_12 = arith.constant 0.000000e+00 : f32
    %15 = vector.broadcast %cst_12 : f32 to vector<6x4xf32>
    %c0_13 = arith.constant 0 : index
    %c2 = arith.constant 2 : index
    %c0_14 = arith.constant 0 : index
    %16 = vector.load %arg4[%c0_13, %c2, %c0_14] : memref<1x8x4xf32, #tpu.memory_space<vmem>>, vector<1x6x4xf32>
    %17 = vector.shape_cast %16 : vector<1x6x4xf32> to vector<6x4xf32>
    %18 = vector.shape_cast %15 : vector<6x4xf32> to vector<1x6x4xf32>
    tpu.vector_store %arg4[%c0_13, %c2, %c0_14], %18 {strides = array<i32>} : memref<1x8x4xf32, #tpu.memory_space<vmem>>, vector<1x6x4xf32>,
    return
  }
  func.func @transform_0(%arg0: i32) -> (i32, i32) {
    %c0_i32 = arith.constant 0 : i32
    %c0_i32_0 = arith.constant 0 : i32
    return %arg0, %c0_i32 : i32, i32
  }
  func.func @transform_1(%arg0: i32) -> (i32, i32) {
    %c0_i32 = arith.constant 0 : i32
    %c0_i32_0 = arith.constant 0 : i32
    %c0_i32_1 = arith.constant 0 : i32
    return %c0_i32, %c0_i32_0 : i32, i32
  }
  func.func @transform_2(%arg0: i32) -> (i32, i32) {
    %c0_i32 = arith.constant 0 : i32
    %c0_i32_0 = arith.constant 0 : i32
    return %arg0, %c0_i32 : i32, i32
  }
  func.func @transform_3(%arg0: i32) -> (i32, i32, i32) {
    %c0_i32 = arith.constant 0 : i32
    %c0_i32_0 = arith.constant 0 : i32
    %c0_i32_1 = arith.constant 0 : i32
    return %arg0, %c0_i32, %c0_i32_0 : i32, i32, i32
  }
}

module attributes {stable_mosaic.version = 11 : i64} {
  func.func @_bn_relu_pad_kernel(%arg0: i32, %arg1: memref<1x16x16x4xf32, #tpu.memory_space<vmem>>, %arg2: memref<1x1x1x4xf32, #tpu.memory_space<vmem>>, %arg3: memref<1x1x1x4xf32, #tpu.memory_space<vmem>>, %arg4: memref<1x18x18x4xbf16, #tpu.memory_space<vmem>>) attributes {dimension_semantics = [#tpu.dimension_semantics<parallel>], iteration_bounds = array<i64: 2>, scalar_prefetch = 0 : i64, scratch_operands = 0 : i64, tpu.core_type = #tpu.core_type<tc>, window_params = [{transform_indices = @transform_0, window_bounds = array<i64: 1, 16, 16, 4>}, {pipeline_mode = #tpu.pipeline_mode<synchronous>, transform_indices = @transform_1, window_bounds = array<i64: 1, 1, 1, 4>}, {pipeline_mode = #tpu.pipeline_mode<synchronous>, transform_indices = @transform_2, window_bounds = array<i64: 1, 1, 1, 4>}, {transform_indices = @transform_3, window_bounds = array<i64: 1, 18, 18, 4>}]} {
    %c0 = arith.constant 0 : index
    %c0_0 = arith.constant 0 : index
    %c0_1 = arith.constant 0 : index
    %c0_2 = arith.constant 0 : index
    %0 = vector.load %arg1[%c0, %c0_0, %c0_1, %c0_2] : memref<1x16x16x4xf32, #tpu.memory_space<vmem>>, vector<1x16x16x4xf32>
    %c0_3 = arith.constant 0 : index
    %c0_4 = arith.constant 0 : index
    %c0_5 = arith.constant 0 : index
    %c0_6 = arith.constant 0 : index
    %1 = vector.load %arg2[%c0_3, %c0_4, %c0_5, %c0_6] : memref<1x1x1x4xf32, #tpu.memory_space<vmem>>, vector<1x1x1x4xf32>
    %2 = vector.broadcast %1 : vector<1x1x1x4xf32> to vector<1x16x16x4xf32>
    %3 = arith.mulf %0, %2 : vector<1x16x16x4xf32>
    %c0_7 = arith.constant 0 : index
    %c0_8 = arith.constant 0 : index
    %c0_9 = arith.constant 0 : index
    %c0_10 = arith.constant 0 : index
    %4 = vector.load %arg3[%c0_7, %c0_8, %c0_9, %c0_10] : memref<1x1x1x4xf32, #tpu.memory_space<vmem>>, vector<1x1x1x4xf32>
    %5 = vector.broadcast %4 : vector<1x1x1x4xf32> to vector<1x16x16x4xf32>
    %6 = arith.addf %3, %5 : vector<1x16x16x4xf32>
    %cst = arith.constant 0.000000e+00 : f32
    %7 = vector.broadcast %cst : f32 to vector<1x16x16x4xf32>
    %8 = arith.maximumf %6, %7 : vector<1x16x16x4xf32>
    %cst_11 = arith.constant 0.000000e+00 : bf16
    %9 = vector.broadcast %cst_11 : bf16 to vector<1x18x18x4xbf16>
    %c0_12 = arith.constant 0 : index
    %c0_13 = arith.constant 0 : index
    %c0_14 = arith.constant 0 : index
    %c0_15 = arith.constant 0 : index
    %10 = vector.load %arg4[%c0_12, %c0_13, %c0_14, %c0_15] : memref<1x18x18x4xbf16, #tpu.memory_space<vmem>>, vector<1x18x18x4xbf16>
    tpu.vector_store %arg4[%c0_12, %c0_13, %c0_14, %c0_15], %9 {strides = array<i32>} : memref<1x18x18x4xbf16, #tpu.memory_space<vmem>>, vector<1x18x18x4xbf16>,
    %11 = vector.shape_cast %8 : vector<1x16x16x4xf32> to vector<16x16x4xf32>
    %12 = arith.truncf %11 : vector<16x16x4xf32> to vector<16x16x4xbf16>
    %c0_16 = arith.constant 0 : index
    %c1 = arith.constant 1 : index
    %c1_17 = arith.constant 1 : index
    %c0_18 = arith.constant 0 : index
    %13 = vector.load %arg4[%c0_16, %c1, %c1_17, %c0_18] : memref<1x18x18x4xbf16, #tpu.memory_space<vmem>>, vector<1x16x16x4xbf16>
    %14 = vector.shape_cast %13 : vector<1x16x16x4xbf16> to vector<16x16x4xbf16>
    %15 = vector.shape_cast %12 : vector<16x16x4xbf16> to vector<1x16x16x4xbf16>
    tpu.vector_store %arg4[%c0_16, %c1, %c1_17, %c0_18], %15 {strides = array<i32>} : memref<1x18x18x4xbf16, #tpu.memory_space<vmem>>, vector<1x16x16x4xbf16>,
    return
  }
  func.func @transform_0(%arg0: i32) -> (i32, i32, i32, i32) {
    %c0_i32 = arith.constant 0 : i32
    %c0_i32_0 = arith.constant 0 : i32
    %c0_i32_1 = arith.constant 0 : i32
    %c0_i32_2 = arith.constant 0 : i32
    return %arg0, %c0_i32, %c0_i32_0, %c0_i32_1 : i32, i32, i32, i32
  }
  func.func @transform_1(%arg0: i32) -> (i32, i32, i32, i32) {
    %c0_i32 = arith.constant 0 : i32
    %c0_i32_0 = arith.constant 0 : i32
    %c0_i32_1 = arith.constant 0 : i32
    %c0_i32_2 = arith.constant 0 : i32
    %c0_i32_3 = arith.constant 0 : i32
    return %c0_i32, %c0_i32_0, %c0_i32_1, %c0_i32_2 : i32, i32, i32, i32
  }
  func.func @transform_2(%arg0: i32) -> (i32, i32, i32, i32) {
    %c0_i32 = arith.constant 0 : i32
    %c0_i32_0 = arith.constant 0 : i32
    %c0_i32_1 = arith.constant 0 : i32
    %c0_i32_2 = arith.constant 0 : i32
    %c0_i32_3 = arith.constant 0 : i32
    return %c0_i32, %c0_i32_0, %c0_i32_1, %c0_i32_2 : i32, i32, i32, i32
  }
  func.func @transform_3(%arg0: i32) -> (i32, i32, i32, i32) {
    %c0_i32 = arith.constant 0 : i32
    %c0_i32_0 = arith.constant 0 : i32
    %c0_i32_1 = arith.constant 0 : i32
    %c0_i32_2 = arith.constant 0 : i32
    return %arg0, %c0_i32, %c0_i32_0, %c0_i32_1 : i32, i32, i32, i32
  }
}

module attributes {stable_mosaic.version = 11 : i64} {
  func.func @_conv3x3_stats_kernel(%arg0: i32, %arg1: memref<1x18x18x4xbf16, #tpu.memory_space<vmem>>, %arg2: memref<3x3x4x4xbf16, #tpu.memory_space<vmem>>, %arg3: memref<1x16x16x4xf32, #tpu.memory_space<vmem>>, %arg4: memref<1x8x4xf32, #tpu.memory_space<vmem>>) attributes {dimension_semantics = [#tpu.dimension_semantics<parallel>], iteration_bounds = array<i64: 2>, scalar_prefetch = 0 : i64, scratch_operands = 0 : i64, tpu.core_type = #tpu.core_type<tc>, window_params = [{transform_indices = @transform_0, window_bounds = array<i64: 1, 18, 18, 4>}, {pipeline_mode = #tpu.pipeline_mode<synchronous>, transform_indices = @transform_1, window_bounds = array<i64: 3, 3, 4, 4>}, {transform_indices = @transform_2, window_bounds = array<i64: 1, 16, 16, 4>}, {transform_indices = @transform_3, window_bounds = array<i64: 1, 8, 4>}]} {
    %cst = arith.constant 0.000000e+00 : f32
    %0 = vector.broadcast %cst : f32 to vector<256x4xf32>
    %c0 = arith.constant 0 : index
    %c0_0 = arith.constant 0 : index
    %c0_1 = arith.constant 0 : index
    %c0_2 = arith.constant 0 : index
    %1 = vector.load %arg1[%c0, %c0_0, %c0_1, %c0_2] : memref<1x18x18x4xbf16, #tpu.memory_space<vmem>>, vector<1x16x16x4xbf16>
    %2 = vector.shape_cast %1 : vector<1x16x16x4xbf16> to vector<16x16x4xbf16>
    %3 = vector.shape_cast %2 : vector<16x16x4xbf16> to vector<256x4xbf16>
    %c0_3 = arith.constant 0 : index
    %c0_4 = arith.constant 0 : index
    %c0_5 = arith.constant 0 : index
    %c0_6 = arith.constant 0 : index
    %4 = vector.load %arg2[%c0_3, %c0_4, %c0_5, %c0_6] : memref<3x3x4x4xbf16, #tpu.memory_space<vmem>>, vector<1x1x4x4xbf16>
    %5 = vector.shape_cast %4 : vector<1x1x4x4xbf16> to vector<4x4xbf16>
    %cst_7 = arith.constant dense<0.000000e+00> : vector<256x4xf32>
    %6 = tpu.matmul %3, %5, %cst_7 {dimension_numbers = #tpu.dot_dimension_numbers<[1], [0], [0], [1], [0, 0, 1, 1], [], []>} : vector<256x4xbf16>, vector<4x4xbf16>, vector<256x4xf32> -> vector<256x4xf32>
    %7 = arith.addf %0, %6 : vector<256x4xf32>
    %c0_8 = arith.constant 0 : index
    %c0_9 = arith.constant 0 : index
    %c1 = arith.constant 1 : index
    %c0_10 = arith.constant 0 : index
    %8 = vector.load %arg1[%c0_8, %c0_9, %c1, %c0_10] : memref<1x18x18x4xbf16, #tpu.memory_space<vmem>>, vector<1x16x16x4xbf16>
    %9 = vector.shape_cast %8 : vector<1x16x16x4xbf16> to vector<16x16x4xbf16>
    %10 = vector.shape_cast %9 : vector<16x16x4xbf16> to vector<256x4xbf16>
    %c0_11 = arith.constant 0 : index
    %c1_12 = arith.constant 1 : index
    %c0_13 = arith.constant 0 : index
    %c0_14 = arith.constant 0 : index
    %11 = vector.load %arg2[%c0_11, %c1_12, %c0_13, %c0_14] : memref<3x3x4x4xbf16, #tpu.memory_space<vmem>>, vector<1x1x4x4xbf16>
    %12 = vector.shape_cast %11 : vector<1x1x4x4xbf16> to vector<4x4xbf16>
    %cst_15 = arith.constant dense<0.000000e+00> : vector<256x4xf32>
    %13 = tpu.matmul %10, %12, %cst_15 {dimension_numbers = #tpu.dot_dimension_numbers<[1], [0], [0], [1], [0, 0, 1, 1], [], []>} : vector<256x4xbf16>, vector<4x4xbf16>, vector<256x4xf32> -> vector<256x4xf32>
    %14 = arith.addf %7, %13 : vector<256x4xf32>
    %c0_16 = arith.constant 0 : index
    %c0_17 = arith.constant 0 : index
    %c2 = arith.constant 2 : index
    %c0_18 = arith.constant 0 : index
    %15 = vector.load %arg1[%c0_16, %c0_17, %c2, %c0_18] : memref<1x18x18x4xbf16, #tpu.memory_space<vmem>>, vector<1x16x16x4xbf16>
    %16 = vector.shape_cast %15 : vector<1x16x16x4xbf16> to vector<16x16x4xbf16>
    %17 = vector.shape_cast %16 : vector<16x16x4xbf16> to vector<256x4xbf16>
    %c0_19 = arith.constant 0 : index
    %c2_20 = arith.constant 2 : index
    %c0_21 = arith.constant 0 : index
    %c0_22 = arith.constant 0 : index
    %18 = vector.load %arg2[%c0_19, %c2_20, %c0_21, %c0_22] : memref<3x3x4x4xbf16, #tpu.memory_space<vmem>>, vector<1x1x4x4xbf16>
    %19 = vector.shape_cast %18 : vector<1x1x4x4xbf16> to vector<4x4xbf16>
    %cst_23 = arith.constant dense<0.000000e+00> : vector<256x4xf32>
    %20 = tpu.matmul %17, %19, %cst_23 {dimension_numbers = #tpu.dot_dimension_numbers<[1], [0], [0], [1], [0, 0, 1, 1], [], []>} : vector<256x4xbf16>, vector<4x4xbf16>, vector<256x4xf32> -> vector<256x4xf32>
    %21 = arith.addf %14, %20 : vector<256x4xf32>
    %c0_24 = arith.constant 0 : index
    %c1_25 = arith.constant 1 : index
    %c0_26 = arith.constant 0 : index
    %c0_27 = arith.constant 0 : index
    %22 = vector.load %arg1[%c0_24, %c1_25, %c0_26, %c0_27] : memref<1x18x18x4xbf16, #tpu.memory_space<vmem>>, vector<1x16x16x4xbf16>
    %23 = vector.shape_cast %22 : vector<1x16x16x4xbf16> to vector<16x16x4xbf16>
    %24 = vector.shape_cast %23 : vector<16x16x4xbf16> to vector<256x4xbf16>
    %c1_28 = arith.constant 1 : index
    %c0_29 = arith.constant 0 : index
    %c0_30 = arith.constant 0 : index
    %c0_31 = arith.constant 0 : index
    %25 = vector.load %arg2[%c1_28, %c0_29, %c0_30, %c0_31] : memref<3x3x4x4xbf16, #tpu.memory_space<vmem>>, vector<1x1x4x4xbf16>
    %26 = vector.shape_cast %25 : vector<1x1x4x4xbf16> to vector<4x4xbf16>
    %cst_32 = arith.constant dense<0.000000e+00> : vector<256x4xf32>
    %27 = tpu.matmul %24, %26, %cst_32 {dimension_numbers = #tpu.dot_dimension_numbers<[1], [0], [0], [1], [0, 0, 1, 1], [], []>} : vector<256x4xbf16>, vector<4x4xbf16>, vector<256x4xf32> -> vector<256x4xf32>
    %28 = arith.addf %21, %27 : vector<256x4xf32>
    %c0_33 = arith.constant 0 : index
    %c1_34 = arith.constant 1 : index
    %c1_35 = arith.constant 1 : index
    %c0_36 = arith.constant 0 : index
    %29 = vector.load %arg1[%c0_33, %c1_34, %c1_35, %c0_36] : memref<1x18x18x4xbf16, #tpu.memory_space<vmem>>, vector<1x16x16x4xbf16>
    %30 = vector.shape_cast %29 : vector<1x16x16x4xbf16> to vector<16x16x4xbf16>
    %31 = vector.shape_cast %30 : vector<16x16x4xbf16> to vector<256x4xbf16>
    %c1_37 = arith.constant 1 : index
    %c1_38 = arith.constant 1 : index
    %c0_39 = arith.constant 0 : index
    %c0_40 = arith.constant 0 : index
    %32 = vector.load %arg2[%c1_37, %c1_38, %c0_39, %c0_40] : memref<3x3x4x4xbf16, #tpu.memory_space<vmem>>, vector<1x1x4x4xbf16>
    %33 = vector.shape_cast %32 : vector<1x1x4x4xbf16> to vector<4x4xbf16>
    %cst_41 = arith.constant dense<0.000000e+00> : vector<256x4xf32>
    %34 = tpu.matmul %31, %33, %cst_41 {dimension_numbers = #tpu.dot_dimension_numbers<[1], [0], [0], [1], [0, 0, 1, 1], [], []>} : vector<256x4xbf16>, vector<4x4xbf16>, vector<256x4xf32> -> vector<256x4xf32>
    %35 = arith.addf %28, %34 : vector<256x4xf32>
    %c0_42 = arith.constant 0 : index
    %c1_43 = arith.constant 1 : index
    %c2_44 = arith.constant 2 : index
    %c0_45 = arith.constant 0 : index
    %36 = vector.load %arg1[%c0_42, %c1_43, %c2_44, %c0_45] : memref<1x18x18x4xbf16, #tpu.memory_space<vmem>>, vector<1x16x16x4xbf16>
    %37 = vector.shape_cast %36 : vector<1x16x16x4xbf16> to vector<16x16x4xbf16>
    %38 = vector.shape_cast %37 : vector<16x16x4xbf16> to vector<256x4xbf16>
    %c1_46 = arith.constant 1 : index
    %c2_47 = arith.constant 2 : index
    %c0_48 = arith.constant 0 : index
    %c0_49 = arith.constant 0 : index
    %39 = vector.load %arg2[%c1_46, %c2_47, %c0_48, %c0_49] : memref<3x3x4x4xbf16, #tpu.memory_space<vmem>>, vector<1x1x4x4xbf16>
    %40 = vector.shape_cast %39 : vector<1x1x4x4xbf16> to vector<4x4xbf16>
    %cst_50 = arith.constant dense<0.000000e+00> : vector<256x4xf32>
    %41 = tpu.matmul %38, %40, %cst_50 {dimension_numbers = #tpu.dot_dimension_numbers<[1], [0], [0], [1], [0, 0, 1, 1], [], []>} : vector<256x4xbf16>, vector<4x4xbf16>, vector<256x4xf32> -> vector<256x4xf32>
    %42 = arith.addf %35, %41 : vector<256x4xf32>
    %c0_51 = arith.constant 0 : index
    %c2_52 = arith.constant 2 : index
    %c0_53 = arith.constant 0 : index
    %c0_54 = arith.constant 0 : index
    %43 = vector.load %arg1[%c0_51, %c2_52, %c0_53, %c0_54] : memref<1x18x18x4xbf16, #tpu.memory_space<vmem>>, vector<1x16x16x4xbf16>
    %44 = vector.shape_cast %43 : vector<1x16x16x4xbf16> to vector<16x16x4xbf16>
    %45 = vector.shape_cast %44 : vector<16x16x4xbf16> to vector<256x4xbf16>
    %c2_55 = arith.constant 2 : index
    %c0_56 = arith.constant 0 : index
    %c0_57 = arith.constant 0 : index
    %c0_58 = arith.constant 0 : index
    %46 = vector.load %arg2[%c2_55, %c0_56, %c0_57, %c0_58] : memref<3x3x4x4xbf16, #tpu.memory_space<vmem>>, vector<1x1x4x4xbf16>
    %47 = vector.shape_cast %46 : vector<1x1x4x4xbf16> to vector<4x4xbf16>
    %cst_59 = arith.constant dense<0.000000e+00> : vector<256x4xf32>
    %48 = tpu.matmul %45, %47, %cst_59 {dimension_numbers = #tpu.dot_dimension_numbers<[1], [0], [0], [1], [0, 0, 1, 1], [], []>} : vector<256x4xbf16>, vector<4x4xbf16>, vector<256x4xf32> -> vector<256x4xf32>
    %49 = arith.addf %42, %48 : vector<256x4xf32>
    %c0_60 = arith.constant 0 : index
    %c2_61 = arith.constant 2 : index
    %c1_62 = arith.constant 1 : index
    %c0_63 = arith.constant 0 : index
    %50 = vector.load %arg1[%c0_60, %c2_61, %c1_62, %c0_63] : memref<1x18x18x4xbf16, #tpu.memory_space<vmem>>, vector<1x16x16x4xbf16>
    %51 = vector.shape_cast %50 : vector<1x16x16x4xbf16> to vector<16x16x4xbf16>
    %52 = vector.shape_cast %51 : vector<16x16x4xbf16> to vector<256x4xbf16>
    %c2_64 = arith.constant 2 : index
    %c1_65 = arith.constant 1 : index
    %c0_66 = arith.constant 0 : index
    %c0_67 = arith.constant 0 : index
    %53 = vector.load %arg2[%c2_64, %c1_65, %c0_66, %c0_67] : memref<3x3x4x4xbf16, #tpu.memory_space<vmem>>, vector<1x1x4x4xbf16>
    %54 = vector.shape_cast %53 : vector<1x1x4x4xbf16> to vector<4x4xbf16>
    %cst_68 = arith.constant dense<0.000000e+00> : vector<256x4xf32>
    %55 = tpu.matmul %52, %54, %cst_68 {dimension_numbers = #tpu.dot_dimension_numbers<[1], [0], [0], [1], [0, 0, 1, 1], [], []>} : vector<256x4xbf16>, vector<4x4xbf16>, vector<256x4xf32> -> vector<256x4xf32>
    %56 = arith.addf %49, %55 : vector<256x4xf32>
    %c0_69 = arith.constant 0 : index
    %c2_70 = arith.constant 2 : index
    %c2_71 = arith.constant 2 : index
    %c0_72 = arith.constant 0 : index
    %57 = vector.load %arg1[%c0_69, %c2_70, %c2_71, %c0_72] : memref<1x18x18x4xbf16, #tpu.memory_space<vmem>>, vector<1x16x16x4xbf16>
    %58 = vector.shape_cast %57 : vector<1x16x16x4xbf16> to vector<16x16x4xbf16>
    %59 = vector.shape_cast %58 : vector<16x16x4xbf16> to vector<256x4xbf16>
    %c2_73 = arith.constant 2 : index
    %c2_74 = arith.constant 2 : index
    %c0_75 = arith.constant 0 : index
    %c0_76 = arith.constant 0 : index
    %60 = vector.load %arg2[%c2_73, %c2_74, %c0_75, %c0_76] : memref<3x3x4x4xbf16, #tpu.memory_space<vmem>>, vector<1x1x4x4xbf16>
    %61 = vector.shape_cast %60 : vector<1x1x4x4xbf16> to vector<4x4xbf16>
    %cst_77 = arith.constant dense<0.000000e+00> : vector<256x4xf32>
    %62 = tpu.matmul %59, %61, %cst_77 {dimension_numbers = #tpu.dot_dimension_numbers<[1], [0], [0], [1], [0, 0, 1, 1], [], []>} : vector<256x4xbf16>, vector<4x4xbf16>, vector<256x4xf32> -> vector<256x4xf32>
    %63 = arith.addf %56, %62 : vector<256x4xf32>
    %64 = vector.shape_cast %63 : vector<256x4xf32> to vector<16x16x4xf32>
    %c0_78 = arith.constant 0 : index
    %c0_79 = arith.constant 0 : index
    %c0_80 = arith.constant 0 : index
    %c0_81 = arith.constant 0 : index
    %65 = vector.load %arg3[%c0_78, %c0_79, %c0_80, %c0_81] : memref<1x16x16x4xf32, #tpu.memory_space<vmem>>, vector<1x16x16x4xf32>
    %66 = vector.shape_cast %65 : vector<1x16x16x4xf32> to vector<16x16x4xf32>
    %67 = vector.shape_cast %64 : vector<16x16x4xf32> to vector<1x16x16x4xf32>
    tpu.vector_store %arg3[%c0_78, %c0_79, %c0_80, %c0_81], %67 {strides = array<i32>} : memref<1x16x16x4xf32, #tpu.memory_space<vmem>>, vector<1x16x16x4xf32>,
    %cst_82 = arith.constant dense<0.000000e+00> : vector<4xf32>
    %68 = vector.multi_reduction <add>, %63, %cst_82 [0] : vector<256x4xf32> to vector<4xf32>
    %69 = vector.shape_cast %68 : vector<4xf32> to vector<1x4xf32>
    %c0_83 = arith.constant 0 : index
    %c0_84 = arith.constant 0 : index
    %c0_85 = arith.constant 0 : index
    %70 = vector.load %arg4[%c0_83, %c0_84, %c0_85] : memref<1x8x4xf32, #tpu.memory_space<vmem>>, vector<1x1x4xf32>
    %71 = vector.shape_cast %70 : vector<1x1x4xf32> to vector<1x4xf32>
    %72 = vector.shape_cast %69 : vector<1x4xf32> to vector<1x1x4xf32>
    tpu.vector_store %arg4[%c0_83, %c0_84, %c0_85], %72 {strides = array<i32>} : memref<1x8x4xf32, #tpu.memory_space<vmem>>, vector<1x1x4xf32>,
    %73 = arith.mulf %63, %63 : vector<256x4xf32>
    %cst_86 = arith.constant dense<0.000000e+00> : vector<4xf32>
    %74 = vector.multi_reduction <add>, %73, %cst_86 [0] : vector<256x4xf32> to vector<4xf32>
    %75 = vector.shape_cast %74 : vector<4xf32> to vector<1x4xf32>
    %c0_87 = arith.constant 0 : index
    %c1_88 = arith.constant 1 : index
    %c0_89 = arith.constant 0 : index
    %76 = vector.load %arg4[%c0_87, %c1_88, %c0_89] : memref<1x8x4xf32, #tpu.memory_space<vmem>>, vector<1x1x4xf32>
    %77 = vector.shape_cast %76 : vector<1x1x4xf32> to vector<1x4xf32>
    %78 = vector.shape_cast %75 : vector<1x4xf32> to vector<1x1x4xf32>
    tpu.vector_store %arg4[%c0_87, %c1_88, %c0_89], %78 {strides = array<i32>} : memref<1x8x4xf32, #tpu.memory_space<vmem>>, vector<1x1x4xf32>,
    %cst_90 = arith.constant 0.000000e+00 : f32
    %79 = vector.broadcast %cst_90 : f32 to vector<6x4xf32>
    %c0_91 = arith.constant 0 : index
    %c2_92 = arith.constant 2 : index
    %c0_93 = arith.constant 0 : index
    %80 = vector.load %arg4[%c0_91, %c2_92, %c0_93] : memref<1x8x4xf32, #tpu.memory_space<vmem>>, vector<1x6x4xf32>
    %81 = vector.shape_cast %80 : vector<1x6x4xf32> to vector<6x4xf32>
    %82 = vector.shape_cast %79 : vector<6x4xf32> to vector<1x6x4xf32>
    tpu.vector_store %arg4[%c0_91, %c2_92, %c0_93], %82 {strides = array<i32>} : memref<1x8x4xf32, #tpu.memory_space<vmem>>, vector<1x6x4xf32>,
    return
  }
  func.func @transform_0(%arg0: i32) -> (i32, i32, i32, i32) {
    %c0_i32 = arith.constant 0 : i32
    %c0_i32_0 = arith.constant 0 : i32
    %c0_i32_1 = arith.constant 0 : i32
    %c0_i32_2 = arith.constant 0 : i32
    return %arg0, %c0_i32, %c0_i32_0, %c0_i32_1 : i32, i32, i32, i32
  }
  func.func @transform_1(%arg0: i32) -> (i32, i32, i32, i32) {
    %c0_i32 = arith.constant 0 : i32
    %c0_i32_0 = arith.constant 0 : i32
    %c0_i32_1 = arith.constant 0 : i32
    %c0_i32_2 = arith.constant 0 : i32
    %c0_i32_3 = arith.constant 0 : i32
    return %c0_i32, %c0_i32_0, %c0_i32_1, %c0_i32_2 : i32, i32, i32, i32
  }
  func.func @transform_2(%arg0: i32) -> (i32, i32, i32, i32) {
    %c0_i32 = arith.constant 0 : i32
    %c0_i32_0 = arith.constant 0 : i32
    %c0_i32_1 = arith.constant 0 : i32
    %c0_i32_2 = arith.constant 0 : i32
    return %arg0, %c0_i32, %c0_i32_0, %c0_i32_1 : i32, i32, i32, i32
  }
  func.func @transform_3(%arg0: i32) -> (i32, i32, i32) {
    %c0_i32 = arith.constant 0 : i32
    %c0_i32_0 = arith.constant 0 : i32
    %c0_i32_1 = arith.constant 0 : i32
    return %arg0, %c0_i32, %c0_i32_0 : i32, i32, i32
  }
}

module attributes {stable_mosaic.version = 11 : i64} {
  func.func @_conv3_sc_kernel(%arg0: i32, %arg1: memref<128x4xf32, #tpu.memory_space<vmem>>, %arg2: memref<1x4xf32, #tpu.memory_space<vmem>>, %arg3: memref<1x4xf32, #tpu.memory_space<vmem>>, %arg4: memref<128x4xbf16, #tpu.memory_space<vmem>>, %arg5: memref<4x16xbf16, #tpu.memory_space<vmem>>, %arg6: memref<4x16xbf16, #tpu.memory_space<vmem>>, %arg7: memref<128x16xf32, #tpu.memory_space<vmem>>, %arg8: memref<128x16xf32, #tpu.memory_space<vmem>>, %arg9: memref<1x8x16xf32, #tpu.memory_space<vmem>>, %arg10: memref<1x8x16xf32, #tpu.memory_space<vmem>>) attributes {dimension_semantics = [#tpu.dimension_semantics<parallel>], iteration_bounds = array<i64: 4>, scalar_prefetch = 0 : i64, scratch_operands = 0 : i64, tpu.core_type = #tpu.core_type<tc>, window_params = [{transform_indices = @transform_0, window_bounds = array<i64: 128, 4>}, {pipeline_mode = #tpu.pipeline_mode<synchronous>, transform_indices = @transform_1, window_bounds = array<i64: 1, 4>}, {pipeline_mode = #tpu.pipeline_mode<synchronous>, transform_indices = @transform_2, window_bounds = array<i64: 1, 4>}, {transform_indices = @transform_3, window_bounds = array<i64: 128, 4>}, {pipeline_mode = #tpu.pipeline_mode<synchronous>, transform_indices = @transform_4, window_bounds = array<i64: 4, 16>}, {pipeline_mode = #tpu.pipeline_mode<synchronous>, transform_indices = @transform_5, window_bounds = array<i64: 4, 16>}, {transform_indices = @transform_6, window_bounds = array<i64: 128, 16>}, {transform_indices = @transform_7, window_bounds = array<i64: 128, 16>}, {transform_indices = @transform_8, window_bounds = array<i64: 1, 8, 16>}, {transform_indices = @transform_9, window_bounds = array<i64: 1, 8, 16>}]} {
    %c0 = arith.constant 0 : index
    %c0_0 = arith.constant 0 : index
    %0 = vector.load %arg1[%c0, %c0_0] : memref<128x4xf32, #tpu.memory_space<vmem>>, vector<128x4xf32>
    %c0_1 = arith.constant 0 : index
    %c0_2 = arith.constant 0 : index
    %1 = vector.load %arg2[%c0_1, %c0_2] : memref<1x4xf32, #tpu.memory_space<vmem>>, vector<1x4xf32>
    %2 = vector.broadcast %1 : vector<1x4xf32> to vector<128x4xf32>
    %3 = arith.mulf %0, %2 : vector<128x4xf32>
    %c0_3 = arith.constant 0 : index
    %c0_4 = arith.constant 0 : index
    %4 = vector.load %arg3[%c0_3, %c0_4] : memref<1x4xf32, #tpu.memory_space<vmem>>, vector<1x4xf32>
    %5 = vector.broadcast %4 : vector<1x4xf32> to vector<128x4xf32>
    %6 = arith.addf %3, %5 : vector<128x4xf32>
    %cst = arith.constant 0.000000e+00 : f32
    %7 = vector.broadcast %cst : f32 to vector<128x4xf32>
    %8 = arith.maximumf %6, %7 : vector<128x4xf32>
    %9 = arith.truncf %8 : vector<128x4xf32> to vector<128x4xbf16>
    %c0_5 = arith.constant 0 : index
    %c0_6 = arith.constant 0 : index
    %10 = vector.load %arg5[%c0_5, %c0_6] : memref<4x16xbf16, #tpu.memory_space<vmem>>, vector<4x16xbf16>
    %cst_7 = arith.constant dense<0.000000e+00> : vector<128x16xf32>
    %11 = tpu.matmul %9, %10, %cst_7 {dimension_numbers = #tpu.dot_dimension_numbers<[1], [0], [0], [1], [0, 0, 1, 1], [], []>} : vector<128x4xbf16>, vector<4x16xbf16>, vector<128x16xf32> -> vector<128x16xf32>
    %c0_8 = arith.constant 0 : index
    %c0_9 = arith.constant 0 : index
    %12 = vector.load %arg4[%c0_8, %c0_9] : memref<128x4xbf16, #tpu.memory_space<vmem>>, vector<128x4xbf16>
    %c0_10 = arith.constant 0 : index
    %c0_11 = arith.constant 0 : index
    %13 = vector.load %arg6[%c0_10, %c0_11] : memref<4x16xbf16, #tpu.memory_space<vmem>>, vector<4x16xbf16>
    %cst_12 = arith.constant dense<0.000000e+00> : vector<128x16xf32>
    %14 = tpu.matmul %12, %13, %cst_12 {dimension_numbers = #tpu.dot_dimension_numbers<[1], [0], [0], [1], [0, 0, 1, 1], [], []>} : vector<128x4xbf16>, vector<4x16xbf16>, vector<128x16xf32> -> vector<128x16xf32>
    %c0_13 = arith.constant 0 : index
    %c0_14 = arith.constant 0 : index
    %15 = vector.load %arg7[%c0_13, %c0_14] : memref<128x16xf32, #tpu.memory_space<vmem>>, vector<128x16xf32>
    tpu.vector_store %arg7[%c0_13, %c0_14], %11 {strides = array<i32>} : memref<128x16xf32, #tpu.memory_space<vmem>>, vector<128x16xf32>,
    %c0_15 = arith.constant 0 : index
    %c0_16 = arith.constant 0 : index
    %16 = vector.load %arg8[%c0_15, %c0_16] : memref<128x16xf32, #tpu.memory_space<vmem>>, vector<128x16xf32>
    tpu.vector_store %arg8[%c0_15, %c0_16], %14 {strides = array<i32>} : memref<128x16xf32, #tpu.memory_space<vmem>>, vector<128x16xf32>,
    %cst_17 = arith.constant dense<0.000000e+00> : vector<16xf32>
    %17 = vector.multi_reduction <add>, %11, %cst_17 [0] : vector<128x16xf32> to vector<16xf32>
    %18 = vector.shape_cast %17 : vector<16xf32> to vector<1x16xf32>
    %c0_18 = arith.constant 0 : index
    %c0_19 = arith.constant 0 : index
    %c0_20 = arith.constant 0 : index
    %19 = vector.load %arg9[%c0_18, %c0_19, %c0_20] : memref<1x8x16xf32, #tpu.memory_space<vmem>>, vector<1x1x16xf32>
    %20 = vector.shape_cast %19 : vector<1x1x16xf32> to vector<1x16xf32>
    %21 = vector.shape_cast %18 : vector<1x16xf32> to vector<1x1x16xf32>
    tpu.vector_store %arg9[%c0_18, %c0_19, %c0_20], %21 {strides = array<i32>} : memref<1x8x16xf32, #tpu.memory_space<vmem>>, vector<1x1x16xf32>,
    %22 = arith.mulf %11, %11 : vector<128x16xf32>
    %cst_21 = arith.constant dense<0.000000e+00> : vector<16xf32>
    %23 = vector.multi_reduction <add>, %22, %cst_21 [0] : vector<128x16xf32> to vector<16xf32>
    %24 = vector.shape_cast %23 : vector<16xf32> to vector<1x16xf32>
    %c0_22 = arith.constant 0 : index
    %c1 = arith.constant 1 : index
    %c0_23 = arith.constant 0 : index
    %25 = vector.load %arg9[%c0_22, %c1, %c0_23] : memref<1x8x16xf32, #tpu.memory_space<vmem>>, vector<1x1x16xf32>
    %26 = vector.shape_cast %25 : vector<1x1x16xf32> to vector<1x16xf32>
    %27 = vector.shape_cast %24 : vector<1x16xf32> to vector<1x1x16xf32>
    tpu.vector_store %arg9[%c0_22, %c1, %c0_23], %27 {strides = array<i32>} : memref<1x8x16xf32, #tpu.memory_space<vmem>>, vector<1x1x16xf32>,
    %cst_24 = arith.constant 0.000000e+00 : f32
    %28 = vector.broadcast %cst_24 : f32 to vector<6x16xf32>
    %c0_25 = arith.constant 0 : index
    %c2 = arith.constant 2 : index
    %c0_26 = arith.constant 0 : index
    %29 = vector.load %arg9[%c0_25, %c2, %c0_26] : memref<1x8x16xf32, #tpu.memory_space<vmem>>, vector<1x6x16xf32>
    %30 = vector.shape_cast %29 : vector<1x6x16xf32> to vector<6x16xf32>
    %31 = vector.shape_cast %28 : vector<6x16xf32> to vector<1x6x16xf32>
    tpu.vector_store %arg9[%c0_25, %c2, %c0_26], %31 {strides = array<i32>} : memref<1x8x16xf32, #tpu.memory_space<vmem>>, vector<1x6x16xf32>,
    %cst_27 = arith.constant dense<0.000000e+00> : vector<16xf32>
    %32 = vector.multi_reduction <add>, %14, %cst_27 [0] : vector<128x16xf32> to vector<16xf32>
    %33 = vector.shape_cast %32 : vector<16xf32> to vector<1x16xf32>
    %c0_28 = arith.constant 0 : index
    %c0_29 = arith.constant 0 : index
    %c0_30 = arith.constant 0 : index
    %34 = vector.load %arg10[%c0_28, %c0_29, %c0_30] : memref<1x8x16xf32, #tpu.memory_space<vmem>>, vector<1x1x16xf32>
    %35 = vector.shape_cast %34 : vector<1x1x16xf32> to vector<1x16xf32>
    %36 = vector.shape_cast %33 : vector<1x16xf32> to vector<1x1x16xf32>
    tpu.vector_store %arg10[%c0_28, %c0_29, %c0_30], %36 {strides = array<i32>} : memref<1x8x16xf32, #tpu.memory_space<vmem>>, vector<1x1x16xf32>,
    %37 = arith.mulf %14, %14 : vector<128x16xf32>
    %cst_31 = arith.constant dense<0.000000e+00> : vector<16xf32>
    %38 = vector.multi_reduction <add>, %37, %cst_31 [0] : vector<128x16xf32> to vector<16xf32>
    %39 = vector.shape_cast %38 : vector<16xf32> to vector<1x16xf32>
    %c0_32 = arith.constant 0 : index
    %c1_33 = arith.constant 1 : index
    %c0_34 = arith.constant 0 : index
    %40 = vector.load %arg10[%c0_32, %c1_33, %c0_34] : memref<1x8x16xf32, #tpu.memory_space<vmem>>, vector<1x1x16xf32>
    %41 = vector.shape_cast %40 : vector<1x1x16xf32> to vector<1x16xf32>
    %42 = vector.shape_cast %39 : vector<1x16xf32> to vector<1x1x16xf32>
    tpu.vector_store %arg10[%c0_32, %c1_33, %c0_34], %42 {strides = array<i32>} : memref<1x8x16xf32, #tpu.memory_space<vmem>>, vector<1x1x16xf32>,
    %cst_35 = arith.constant 0.000000e+00 : f32
    %43 = vector.broadcast %cst_35 : f32 to vector<6x16xf32>
    %c0_36 = arith.constant 0 : index
    %c2_37 = arith.constant 2 : index
    %c0_38 = arith.constant 0 : index
    %44 = vector.load %arg10[%c0_36, %c2_37, %c0_38] : memref<1x8x16xf32, #tpu.memory_space<vmem>>, vector<1x6x16xf32>
    %45 = vector.shape_cast %44 : vector<1x6x16xf32> to vector<6x16xf32>
    %46 = vector.shape_cast %43 : vector<6x16xf32> to vector<1x6x16xf32>
    tpu.vector_store %arg10[%c0_36, %c2_37, %c0_38], %46 {strides = array<i32>} : memref<1x8x16xf32, #tpu.memory_space<vmem>>, vector<1x6x16xf32>,
    return
  }
  func.func @transform_0(%arg0: i32) -> (i32, i32) {
    %c0_i32 = arith.constant 0 : i32
    %c0_i32_0 = arith.constant 0 : i32
    return %arg0, %c0_i32 : i32, i32
  }
  func.func @transform_1(%arg0: i32) -> (i32, i32) {
    %c0_i32 = arith.constant 0 : i32
    %c0_i32_0 = arith.constant 0 : i32
    %c0_i32_1 = arith.constant 0 : i32
    return %c0_i32, %c0_i32_0 : i32, i32
  }
  func.func @transform_2(%arg0: i32) -> (i32, i32) {
    %c0_i32 = arith.constant 0 : i32
    %c0_i32_0 = arith.constant 0 : i32
    %c0_i32_1 = arith.constant 0 : i32
    return %c0_i32, %c0_i32_0 : i32, i32
  }
  func.func @transform_3(%arg0: i32) -> (i32, i32) {
    %c0_i32 = arith.constant 0 : i32
    %c0_i32_0 = arith.constant 0 : i32
    return %arg0, %c0_i32 : i32, i32
  }
  func.func @transform_4(%arg0: i32) -> (i32, i32) {
    %c0_i32 = arith.constant 0 : i32
    %c0_i32_0 = arith.constant 0 : i32
    %c0_i32_1 = arith.constant 0 : i32
    return %c0_i32, %c0_i32_0 : i32, i32
  }
  func.func @transform_5(%arg0: i32) -> (i32, i32) {
    %c0_i32 = arith.constant 0 : i32
    %c0_i32_0 = arith.constant 0 : i32
    %c0_i32_1 = arith.constant 0 : i32
    return %c0_i32, %c0_i32_0 : i32, i32
  }
  func.func @transform_6(%arg0: i32) -> (i32, i32) {
    %c0_i32 = arith.constant 0 : i32
    %c0_i32_0 = arith.constant 0 : i32
    return %arg0, %c0_i32 : i32, i32
  }
  func.func @transform_7(%arg0: i32) -> (i32, i32) {
    %c0_i32 = arith.constant 0 : i32
    %c0_i32_0 = arith.constant 0 : i32
    return %arg0, %c0_i32 : i32, i32
  }
  func.func @transform_8(%arg0: i32) -> (i32, i32, i32) {
    %c0_i32 = arith.constant 0 : i32
    %c0_i32_0 = arith.constant 0 : i32
    %c0_i32_1 = arith.constant 0 : i32
    return %arg0, %c0_i32, %c0_i32_0 : i32, i32, i32
  }
  func.func @transform_9(%arg0: i32) -> (i32, i32, i32) {
    %c0_i32 = arith.constant 0 : i32
    %c0_i32_0 = arith.constant 0 : i32
    %c0_i32_1 = arith.constant 0 : i32
    return %arg0, %c0_i32, %c0_i32_0 : i32, i32, i32
  }
}

module attributes {stable_mosaic.version = 11 : i64} {
  func.func @_bn2_add_relu_kernel(%arg0: i32, %arg1: memref<128x16xf32, #tpu.memory_space<vmem>>, %arg2: memref<128x16xf32, #tpu.memory_space<vmem>>, %arg3: memref<1x16xf32, #tpu.memory_space<vmem>>, %arg4: memref<1x16xf32, #tpu.memory_space<vmem>>, %arg5: memref<1x16xf32, #tpu.memory_space<vmem>>, %arg6: memref<1x16xf32, #tpu.memory_space<vmem>>, %arg7: memref<128x16xf32, #tpu.memory_space<vmem>>) attributes {dimension_semantics = [#tpu.dimension_semantics<parallel>], iteration_bounds = array<i64: 4>, scalar_prefetch = 0 : i64, scratch_operands = 0 : i64, tpu.core_type = #tpu.core_type<tc>, window_params = [{transform_indices = @transform_0, window_bounds = array<i64: 128, 16>}, {transform_indices = @transform_1, window_bounds = array<i64: 128, 16>}, {pipeline_mode = #tpu.pipeline_mode<synchronous>, transform_indices = @transform_2, window_bounds = array<i64: 1, 16>}, {pipeline_mode = #tpu.pipeline_mode<synchronous>, transform_indices = @transform_3, window_bounds = array<i64: 1, 16>}, {pipeline_mode = #tpu.pipeline_mode<synchronous>, transform_indices = @transform_4, window_bounds = array<i64: 1, 16>}, {pipeline_mode = #tpu.pipeline_mode<synchronous>, transform_indices = @transform_5, window_bounds = array<i64: 1, 16>}, {transform_indices = @transform_6, window_bounds = array<i64: 128, 16>}]} {
    %c0 = arith.constant 0 : index
    %c0_0 = arith.constant 0 : index
    %0 = vector.load %arg1[%c0, %c0_0] : memref<128x16xf32, #tpu.memory_space<vmem>>, vector<128x16xf32>
    %c0_1 = arith.constant 0 : index
    %c0_2 = arith.constant 0 : index
    %1 = vector.load %arg3[%c0_1, %c0_2] : memref<1x16xf32, #tpu.memory_space<vmem>>, vector<1x16xf32>
    %2 = vector.broadcast %1 : vector<1x16xf32> to vector<128x16xf32>
    %3 = arith.mulf %0, %2 : vector<128x16xf32>
    %c0_3 = arith.constant 0 : index
    %c0_4 = arith.constant 0 : index
    %4 = vector.load %arg4[%c0_3, %c0_4] : memref<1x16xf32, #tpu.memory_space<vmem>>, vector<1x16xf32>
    %5 = vector.broadcast %4 : vector<1x16xf32> to vector<128x16xf32>
    %6 = arith.addf %3, %5 : vector<128x16xf32>
    %c0_5 = arith.constant 0 : index
    %c0_6 = arith.constant 0 : index
    %7 = vector.load %arg2[%c0_5, %c0_6] : memref<128x16xf32, #tpu.memory_space<vmem>>, vector<128x16xf32>
    %c0_7 = arith.constant 0 : index
    %c0_8 = arith.constant 0 : index
    %8 = vector.load %arg5[%c0_7, %c0_8] : memref<1x16xf32, #tpu.memory_space<vmem>>, vector<1x16xf32>
    %9 = vector.broadcast %8 : vector<1x16xf32> to vector<128x16xf32>
    %10 = arith.mulf %7, %9 : vector<128x16xf32>
    %c0_9 = arith.constant 0 : index
    %c0_10 = arith.constant 0 : index
    %11 = vector.load %arg6[%c0_9, %c0_10] : memref<1x16xf32, #tpu.memory_space<vmem>>, vector<1x16xf32>
    %12 = vector.broadcast %11 : vector<1x16xf32> to vector<128x16xf32>
    %13 = arith.addf %10, %12 : vector<128x16xf32>
    %14 = arith.addf %6, %13 : vector<128x16xf32>
    %cst = arith.constant 0.000000e+00 : f32
    %15 = vector.broadcast %cst : f32 to vector<128x16xf32>
    %16 = arith.maximumf %14, %15 : vector<128x16xf32>
    %c0_11 = arith.constant 0 : index
    %c0_12 = arith.constant 0 : index
    %17 = vector.load %arg7[%c0_11, %c0_12] : memref<128x16xf32, #tpu.memory_space<vmem>>, vector<128x16xf32>
    tpu.vector_store %arg7[%c0_11, %c0_12], %16 {strides = array<i32>} : memref<128x16xf32, #tpu.memory_space<vmem>>, vector<128x16xf32>,
    return
  }
  func.func @transform_0(%arg0: i32) -> (i32, i32) {
    %c0_i32 = arith.constant 0 : i32
    %c0_i32_0 = arith.constant 0 : i32
    return %arg0, %c0_i32 : i32, i32
  }
  func.func @transform_1(%arg0: i32) -> (i32, i32) {
    %c0_i32 = arith.constant 0 : i32
    %c0_i32_0 = arith.constant 0 : i32
    return %arg0, %c0_i32 : i32, i32
  }
  func.func @transform_2(%arg0: i32) -> (i32, i32) {
    %c0_i32 = arith.constant 0 : i32
    %c0_i32_0 = arith.constant 0 : i32
    %c0_i32_1 = arith.constant 0 : i32
    return %c0_i32, %c0_i32_0 : i32, i32
  }
  func.func @transform_3(%arg0: i32) -> (i32, i32) {
    %c0_i32 = arith.constant 0 : i32
    %c0_i32_0 = arith.constant 0 : i32
    %c0_i32_1 = arith.constant 0 : i32
    return %c0_i32, %c0_i32_0 : i32, i32
  }
  func.func @transform_4(%arg0: i32) -> (i32, i32) {
    %c0_i32 = arith.constant 0 : i32
    %c0_i32_0 = arith.constant 0 : i32
    %c0_i32_1 = arith.constant 0 : i32
    return %c0_i32, %c0_i32_0 : i32, i32
  }
  func.func @transform_5(%arg0: i32) -> (i32, i32) {
    %c0_i32 = arith.constant 0 : i32
    %c0_i32_0 = arith.constant 0 : i32
    %c0_i32_1 = arith.constant 0 : i32
    return %c0_i32, %c0_i32_0 : i32, i32
  }
  func.func @transform_6(%arg0: i32) -> (i32, i32) {
    %c0_i32 = arith.constant 0 : i32
    %c0_i32_0 = arith.constant 0 : i32
    return %arg0, %c0_i32 : i32, i32
  }
}

</mosaic_0001>

<bundles_post_ra>
// kernel: bottleneck_block.5
= control target key start
LH: loop header
LB: loop body
LE: loop exit
PB: predicated region body
PF: predicated region fallthrough
CT: control target
= control target key end

     0   :  { %s620_s12 = smov 0   ;;  %s759_s0 = inlined_call_operand.vmem [shape: bf16[512,4], index: 0, kind: input, shape index: {}]   ;;  %s760_s1 = inlined_call_operand.vmem [shape: bf16[4,4], index: 1, kind: input, shape index: {}]   ;;  %s761_s2 = inlined_call_operand.vmem [shape: f32[512,4], index: 2, kind: output, shape index: {0}]   ;;  %s762_s3 = inlined_call_operand.vmem [shape: f32[4,8,4], index: 3, kind: output, shape index: {1}]  }
   0x1 LB: > { %s626_s13 = sadd.s32 4294967295, %s597_s12   ;;  %p523_p0 = scmp.ge.s32.totalorder %s597_s12, 1  ;;  %s597_s12 = sphi %s620_s12, %s14_s12  }
   0x2   : > { %p141_p1 = scmp.lt.s32.totalorder %s597_s12, 5 }
   0x4   : > { %p142_p2 = pnand %p523_p0, %p141_p1 }
   0x5   : > { %s524_s16 = sshll.u32 (!%p142_p2), %s626_s13, 4  ;;  %p181_p4 = scmp.lt.s32.totalorder (!%p142_p2), %s626_s13, 3 }
   0x6   : > { %145 = sbr.rel (%p142_p2) target bundleno = 208 (0xd0), region = 28  ;;  %p170_p3 = scmp.lt.s32.totalorder (!%p142_p2), %s524_s16, 63 }
   0xb   : > { %v202_v0 = vld [vmem:[%s760_s1] sm:$0x3]  ;;  %vm268_vm0 = vcmask 1041408   ;;  %s764_s16 = smov (!%p170_p3, %s524_s16), 63  ;;  %vm243_vm1 = vcmask 31744   ;;  %s766_s13 = smov (!%p181_p4, %s626_s13), 3 }
   0xc   : > { %v270_v1 = vsel %vm268_vm0, %v202_v0, 0  ;;  %s525_s17 = sshll.u32 %s764_s16, 2  ;;  %s527_s21 = sshll.u32 %s764_s16, 3  ;;  %vm430_vm2 = vcmask 29696   ;;  %vm374_vm3 = vcmask 24576  }
   0xd   : > { %279 = vmatpush.bf16.msra.mxu0 %v270_v1  ;;  %579 = vmatpush.bf16.msra.mxu1 %v270_v1  ;;  %s173_s20 = scalar_lea.vmem %s759_s0, %s525_s17  ;;  %s648_s24 = scalar_lea.vmem %s761_s2, %s527_s21 }
   0xe   : > { %580 = vmatpush.bf16.msra.mxu2 %v270_v1  ;;  %581 = vmatpush.bf16.msra.mxu3 %v270_v1  ;;  %v571_v2 = vld [vmem:[%s173_s20] sm:$0xff]  ;;  %v573_v3 = vld [vmem:[%s173_s20 + $0x10] sm:$0xff]  ;;  %v572_v6 = vld [vmem:[%s173_s20 + $0x8] sm:$0xff]  ;;  %s528_s25 = sshll.u32 %s766_s13, 3 }
   0xf   : > { %v575_v4 = vld [vmem:[%s173_s20 + $0x20] sm:$0xff]  ;;  %v577_v5 = vld [vmem:[%s173_s20 + $0x30] sm:$0xff]  ;;  %v574_v7 = vld [vmem:[%s173_s20 + $0x18] sm:$0xff]  ;;  %s726_s28 = scalar_lea.vmem %s762_s3, %s528_s25 }
  0x10   : > { %561 = vmatmul.msk.bf16.vlgmr.msra.gmra.mxu0 %vm243_vm1, %v571_v2  ;;  %563 = vmatmul.msk.bf16.vlgmr.msra.gmra.mxu1 %vm243_vm1, %v573_v3  ;;  %v576_v8 = vld [vmem:[%s173_s20 + $0x28] sm:$0xff]  ;;  %v578_v9 = vld [vmem:[%s173_s20 + $0x38] sm:$0xff] }
  0x11   : > { %565 = vmatmul.msk.bf16.vlgmr.msra.gmra.mxu2 %vm243_vm1, %v575_v4  ;;  %567 = vmatmul.msk.bf16.vlgmr.msra.gmra.mxu3 %vm243_vm1, %v577_v5  ;;  %v599_v4 = vmov 0.0  }
  0x12   : > { %431 = vst.msk [vmem:[%s726_s28 + $0x2] sm:$0x3f] %vm430_vm2, %v599_v4 }
  0x20   : > { %562 = vmatmul.msk.bf16.gmra.mxu0 %vm243_vm1, %v572_v6  ;;  %564 = vmatmul.msk.bf16.gmra.mxu1 %vm243_vm1, %v574_v7 }
  0x21   : > { %566 = vmatmul.msk.bf16.gmra.mxu2 %vm243_vm1, %v576_v8  ;;  %568 = vmatmul.msk.bf16.gmra.mxu3 %vm243_vm1, %v578_v9 }
  0x8d   : > { %v281_v10 = vpop.f32.mrf.mxu0  ;;  %v291_v11 = vpop.f32.mrf.mxu1 }
  0x8e   : > { %321 = vst.msk [vmem:[%s648_s24] sm:$0xff] %vm243_vm1, %v281_v10  ;;  %v376_v21 = vmul.f32 %v281_v10, %v281_v10  ;;  %v337_v24 = vsel %vm243_vm1, %v281_v10, 0.0  ;;  %v380_v36 = vmul.f32 %v291_v11, %v291_v11  ;;  %v344_v41 = vsel %vm243_vm1, %v291_v11, 0.0 }
  0x8f   : > { %325 = vst.msk [vmem:[%s648_s24 + $0x20] sm:$0xff] %vm243_vm1, %v291_v11 }
  0x90   : > { %v392_v28 = vsel %vm243_vm1, %v376_v21, 0.0  ;;  %v399_v46 = vsel %vm243_vm1, %v380_v36, 0.0 }
  0x94   : > { %v654_v12 = vpop.f32.mrf.mxu2  ;;  %v656_v13 = vpop.f32.mrf.mxu3 }
  0x95   : > { %v283_v14 = vpop.f32.mrf.mxu0  ;;  %v293_v15 = vpop.f32.mrf.mxu1  ;;  %329 = vst.msk [vmem:[%s648_s24 + $0x40] sm:$0xff] %vm243_vm1, %v654_v12  ;;  %v384_v58 = vmul.f32 %v654_v12, %v654_v12  ;;  %v352_v63 = vsel %vm243_vm1, %v654_v12, 0.0 }
  0x96   : > { %322 = vst.msk [vmem:[%s648_s24 + $0x8] sm:$0xff] %vm243_vm1, %v283_v14  ;;  %v377_v20 = vmul.f32 %v283_v14, %v283_v14  ;;  %v338_v22 = vsel %vm243_vm1, %v283_v14, 0.0  ;;  %v381_v42 = vmul.f32 %v293_v15, %v293_v15  ;;  %v346_v47 = vsel %vm243_vm1, %v293_v15, 0.0 }
  0x97   : > { %326 = vst.msk [vmem:[%s648_s24 + $0x28] sm:$0xff] %vm243_vm1, %v293_v15  ;;  %v339_v27 = vadd.f32 %v338_v22, %v337_v24  ;;  %v407_v5 = vsel %vm243_vm1, %v384_v58, 0.0 }
  0x98   : > { %333 = vst.msk [vmem:[%s648_s24 + $0x60] sm:$0xff] %vm243_vm1, %v656_v13  ;;  %v393_v25 = vsel %vm243_vm1, %v377_v20, 0.0  ;;  %v401_v51 = vsel %vm243_vm1, %v381_v42, 0.0 }
  0x99   : > { %v394_v32 = vadd.f32 %v393_v25, %v392_v28 }
  0x9c   : > { %v668_v16 = vpop.f32.mrf.mxu2  ;;  %v670_v17 = vpop.f32.mrf.mxu3 }
  0x9d   : > { %v286_v18 = vpop.f32.mrf.mxu0  ;;  %v296_v19 = vpop.f32.mrf.mxu1  ;;  %330 = vst.msk [vmem:[%s648_s24 + $0x48] sm:$0xff] %vm243_vm1, %v668_v16  ;;  %v385_v0 = vmul.f32 %v668_v16, %v668_v16  ;;  %v354_v6 = vsel %vm243_vm1, %v668_v16, 0.0  ;;  %v360_v16 = vsel %vm243_vm1, %v656_v13, 0.0  ;;  %v362_v28 = vsel %vm243_vm1, %v670_v17, 0.0 }
  0x9e   : > { %323 = vst.msk [vmem:[%s648_s24 + $0x10] sm:$0xff] %vm243_vm1, %v286_v18  ;;  %v378_v23 = vmul.f32 %v286_v18, %v286_v18  ;;  %v340_v26 = vsel %vm243_vm1, %v286_v18, 0.0  ;;  %v382_v48 = vmul.f32 %v296_v19, %v296_v19  ;;  %v348_v52 = vsel %vm243_vm1, %v296_v19, 0.0 }
  0x9f   : > { %327 = vst.msk [vmem:[%s648_s24 + $0x30] sm:$0xff] %vm243_vm1, %v296_v19  ;;  %v341_v33 = vadd.f32 %v340_v26, %v339_v27  ;;  %v409_v10 = vsel %vm243_vm1, %v385_v0, 0.0  ;;  %v388_v18 = vmul.f32 %v656_v13, %v656_v13 }
  0xa0   : > { %334 = vst.msk [vmem:[%s648_s24 + $0x68] sm:$0xff] %vm243_vm1, %v670_v17  ;;  %v395_v29 = vsel %vm243_vm1, %v378_v23, 0.0  ;;  %v403_v59 = vsel %vm243_vm1, %v382_v48, 0.0  ;;  %v389_v23 = vmul.f32 %v670_v17, %v670_v17 }
  0xa1   : > { %v396_v39 = vadd.f32 %v395_v29, %v394_v32  ;;  %v415_v27 = vsel %vm243_vm1, %v388_v18, 0.0 }
  0xa4   : > { %v306_v30 = vpop.f32.mrf.mxu2  ;;  %v688_v31 = vpop.f32.mrf.mxu3 }
  0xa5   : > { %v288_v34 = vpop.f32.mrf.mxu0  ;;  %v298_v35 = vpop.f32.mrf.mxu1  ;;  %331 = vst.msk [vmem:[%s648_s24 + $0x50] sm:$0xff] %vm243_vm1, %v306_v30  ;;  %v386_v7 = vmul.f32 %v306_v30, %v306_v30  ;;  %v356_v11 = vsel %vm243_vm1, %v306_v30, 0.0  ;;  %v390_v29 = vmul.f32 %v688_v31, %v688_v31  ;;  %v364_v13 = vsel %vm243_vm1, %v688_v31, 0.0 }
  0xa6   : > { %324 = vst.msk [vmem:[%s648_s24 + $0x18] sm:$0xff] %vm243_vm1, %v288_v34  ;;  %v342_v37 = vsel %vm243_vm1, %v288_v34, 0.0  ;;  %v379_v38 = vmul.f32 %v288_v34, %v288_v34  ;;  %v383_v53 = vmul.f32 %v298_v35, %v298_v35  ;;  %v350_v60 = vsel %vm243_vm1, %v298_v35, 0.0 }
  0xa7   : > { %v343_v40 = vadd.f32 %v342_v37, %v341_v33  ;;  %328 = vst.msk [vmem:[%s648_s24 + $0x38] sm:$0xff] %vm243_vm1, %v298_v35  ;;  %v411_v19 = vsel %vm243_vm1, %v386_v7, 0.0  ;;  %v417_v33 = vsel %vm243_vm1, %v389_v23, 0.0  ;;  %v419_v37 = vsel %vm243_vm1, %v390_v29, 0.0 }
  0xa8   : > { %v397_v43 = vsel %vm243_vm1, %v379_v38, 0.0  ;;  %335 = vst.msk [vmem:[%s648_s24 + $0x70] sm:$0xff] %vm243_vm1, %v688_v31  ;;  %v405_v1 = vsel %vm243_vm1, %v383_v53, 0.0 }
  0xa9   : > { %v345_v44 = vadd.f32 %v344_v41, %v343_v40  ;;  %v398_v45 = vadd.f32 %v397_v43, %v396_v39 }
  0xab   : > { %v400_v49 = vadd.f32 %v399_v46, %v398_v45  ;;  %v347_v50 = vadd.f32 %v346_v47, %v345_v44 }
  0xac   : > { %v308_v54 = vpop.f32.mrf.mxu2  ;;  %v318_v55 = vpop.f32.mrf.mxu3 }
  0xad   : > { %v349_v56 = vadd.f32 %v348_v52, %v347_v50  ;;  %v402_v57 = vadd.f32 %v401_v51, %v400_v49  ;;  %332 = vst.msk [vmem:[%s648_s24 + $0x58] sm:$0xff] %vm243_vm1, %v308_v54  ;;  %v387_v12 = vmul.f32 %v308_v54, %v308_v54  ;;  %v358_v20 = vsel %vm243_vm1, %v308_v54, 0.0 }
  0xae   : > { %336 = vst.msk [vmem:[%s648_s24 + $0x78] sm:$0xff] %vm243_vm1, %v318_v55  ;;  %v391_v34 = vmul.f32 %v318_v55, %v318_v55  ;;  %v366_v38 = vsel %vm243_vm1, %v318_v55, 0.0 }
  0xaf   : > { %v351_v61 = vadd.f32 %v350_v60, %v349_v56  ;;  %v404_v62 = vadd.f32 %v403_v59, %v402_v57  ;;  %v413_v24 = vsel %vm243_vm1, %v387_v12, 0.0 }
  0xb0   : > { %v421_v40 = vsel %vm243_vm1, %v391_v34, 0.0 }
  0xb1   : > { %v353_v2 = vadd.f32 %v352_v63, %v351_v61  ;;  %v406_v3 = vadd.f32 %v405_v1, %v404_v62 }
  0xb3   : > { %v408_v8 = vadd.f32 %v407_v5, %v406_v3  ;;  %v355_v9 = vadd.f32 %v354_v6, %v353_v2 }
  0xb5   : > { %v357_v14 = vadd.f32 %v356_v11, %v355_v9  ;;  %v410_v15 = vadd.f32 %v409_v10, %v408_v8 }
  0xb7   : > { %v412_v21 = vadd.f32 %v411_v19, %v410_v15  ;;  %v359_v22 = vadd.f32 %v358_v20, %v357_v14 }
  0xb9   : > { %v361_v25 = vadd.f32 %v360_v16, %v359_v22  ;;  %v414_v26 = vadd.f32 %v413_v24, %v412_v21 }
  0xbb   : > { %v416_v30 = vadd.f32 %v415_v27, %v414_v26  ;;  %v363_v32 = vadd.f32 %v362_v28, %v361_v25 }
  0xbd   : > { %v365_v35 = vadd.f32 %v364_v13, %v363_v32  ;;  %v418_v36 = vadd.f32 %v417_v33, %v416_v30 }
  0xbf   : > { %v420_v39 = vadd.f32 %v419_v37, %v418_v36  ;;  %v367_v17 = vadd.f32 %v366_v38, %v365_v35 }
  0xc1   : > { %v368_v41 = vrot.slane %v367_v17, 4  ;;  %v422_v42 = vadd.f32 %v421_v40, %v420_v39 }
  0xc3   : > { %v369_v43 = vadd.f32 %v368_v41, %v367_v17  ;;  %v423_v44 = vrot.slane %v422_v42, 4 }
  0xc5   : > { %v370_v45 = vrot.slane %v369_v43, 2  ;;  %v424_v46 = vadd.f32 %v423_v44, %v422_v42 }
  0xc7   : > { %v371_v31 = vadd.f32 %v370_v45, %v369_v43  ;;  %v425_v47 = vrot.slane %v424_v46, 2 }
  0xc9   : > { %v372_v48 = vrot.slane %v371_v31, 1  ;;  %v426_v49 = vadd.f32 %v425_v47, %v424_v46 }
  0xcb   : > { %v373_v50 = vadd.f32 %v372_v48, %v371_v31  ;;  %v427_v51 = vrot.slane %v426_v49, 1 }
  0xcd   : > { %375 = vst.msk [vmem:[%s726_s28] sm:$0x1] %vm374_vm3, %v373_v50  ;;  %v428_v52 = vadd.f32 %v427_v51, %v426_v49 }
  0xcf   : > { %429 = vst.msk [vmem:[%s726_s28 + $0x1] sm:$0x1] %vm374_vm3, %v428_v52 }
  0xd0 PF: > { %s14_s12 = sadd.s32 1, %s597_s12  }
  0xd1   : > { %p11_p5 = scmp.ge.s32.totalorder %s14_s12, 6  }
  0xd3   :  { %13 = sbr.rel (!%p11_p5) target bundleno = 1 (0x1), region = 70 }

// kernel: bottleneck_block.8
= control target key start
LH: loop header
LB: loop body
LE: loop exit
PB: predicated region body
PF: predicated region fallthrough
CT: control target
= control target key end

     0   :  { %s1215_s30 = smov 0   ;;  %s1611_s0 = inlined_call_operand.vmem [shape: f32[512,4], index: 0, kind: input, shape index: {}]   ;;  %s1612_s1 = inlined_call_operand.vmem [shape: f32[1,4], index: 1, kind: input, shape index: {}]   ;;  %s1613_s2 = inlined_call_operand.vmem [shape: f32[1,4], index: 2, kind: input, shape index: {}]   ;;  %s1614_s3 = inlined_call_operand.vmem [shape: bf16[512,4], index: 3, kind: input, shape index: {}]   ;;  %s1615_s4 = inlined_call_operand.vmem [shape: bf16[4,16], index: 4, kind: input, shape index: {}]   ;;  %s1616_s5 = inlined_call_operand.vmem [shape: bf16[4,16], index: 5, kind: input, shape index: {}]   ;;  %s1617_s6 = inlined_call_operand.vmem [shape: f32[512,16], index: 6, kind: output, shape index: {0}]   ;;  %s1618_s7 = inlined_call_operand.vmem [shape: f32[512,16], index: 7, kind: output, shape index: {1}]   ;;  %s1619_s8 = inlined_call_operand.vmem [shape: f32[4,8,16], index: 8, kind: output, shape index: {2}]   ;;  %s1620_s9 = inlined_call_operand.vmem [shape: f32[4,8,16], index: 9, kind: output, shape index: {3}]  }
   0x1 LB: > { %s1221_s10 = sadd.s32 4294967295, %s1162_s30   ;;  %p1074_p0 = scmp.ge.s32.totalorder %s1162_s30, 1  ;;  %s1162_s30 = sphi %s1215_s30, %s20_s30  }
   0x2   : > { %p306_p1 = scmp.lt.s32.totalorder %s1162_s30, 5 }
   0x4   : > { %p307_p2 = pnand %p1074_p0, %p306_p1 }
   0x5   : > { %s1075_s13 = sshll.u32 (!%p307_p2), %s1221_s10, 4  ;;  %p384_p4 = scmp.lt.s32.totalorder (!%p307_p2), %s1221_s10, 3 }
   0x6   : > { %310 = sbr.rel (%p307_p2) target bundleno = 241 (0xf1), region = 44  ;;  %p361_p3 = scmp.lt.s32.totalorder (!%p307_p2), %s1075_s13, 63 }
   0xb   : > { %vm499_vm0 = vcmask 1041408   ;;  %v568_v0 = vld [vmem:[%s1616_s5] sm:$0x3]  ;;  %s1622_s13 = smov (!%p361_p3, %s1075_s13), 63  ;;  %vm474_vm1 = vcmask 31744   ;;  %vm685_vm2 = vcmask 130048  }
   0xc   : > { %v634_v1 = vsel %vm499_vm0, %v568_v0, 0  ;;  %v473_v2 = vld [vmem:[%s1615_s4] sm:$0x3]  ;;  %s1237_s18 = sshll.u32 %s1622_s13, 3  ;;  %s1078_s19 = sshll.u32 %s1622_s13, 2  ;;  %vm811_vm3 = vcmask 128000  }
   0xd   : > { %643 = vmatpush.bf16.msra.mxu1 %v634_v1  ;;  %v501_v3 = vsel %vm499_vm0, %v473_v2, 0  ;;  %1144 = vmatpush.bf16.msra.mxu3 %v634_v1  ;;  %v1235_v4 = vld [vmem:[%s1612_s1] ss:$0 sm:$0xff]  ;;  %s1242_s22 = scalar_lea.vmem %s1614_s3, %s1078_s19  ;;  %s1248_s25 = scalar_lea.vmem %s1611_s0, %s1237_s18  ;;  %vm755_vm4 = vcmask 122880  }
   0xe   : > { %510 = vmatpush.bf16.msra.mxu0 %v501_v3  ;;  %1143 = vmatpush.bf16.msra.mxu2 %v501_v3  ;;  %v1253_v5 = vld [vmem:[%s1613_s2] ss:$0 sm:$0xff]  ;;  %v394_v8 = vld [vmem:[%s1248_s25 + $0x8] sm:$0xff]  ;;  %v395_v24 = vld [vmem:[%s1248_s25 + $0x10] sm:$0xff]  ;;  %s1331_s11 = scalar_lea.vmem %s1618_s7, %s1237_s18  ;;  %s1339_s14 = scalar_lea.vmem %s1617_s6, %s1237_s18 }
   0xf   : > { %v1135_v6 = vld [vmem:[%s1242_s22] sm:$0xff]  ;;  %v414_v10 = vmul.f32 %v1235_v4, %v394_v8  ;;  %v402_v12 = vld [vmem:[%s1248_s25 + $0x48] sm:$0xff]  ;;  %v396_v25 = vld [vmem:[%s1248_s25 + $0x18] sm:$0xff]  ;;  %v415_v30 = vmul.f32 %v1235_v4, %v395_v24  ;;  %s1624_s10 = smov (!%p384_p4, %s1221_s10), 3 }
  0x10   : > { %v393_v7 = vld [vmem:[%s1248_s25] sm:$0xff]  ;;  %1125 = vmatmul.msk.bf16.vlgmr.msra.gmra.mxu1 %vm474_vm1, %v1135_v6  ;;  %v422_v15 = vmul.f32 %v1235_v4, %v402_v12  ;;  %v403_v27 = vld [vmem:[%s1248_s25 + $0x50] sm:$0xff]  ;;  %v404_v28 = vld [vmem:[%s1248_s25 + $0x58] sm:$0xff]  ;;  %v416_v31 = vmul.f32 %v1235_v4, %v396_v25  ;;  %s1083_s15 = sshll.u32 %s1624_s10, 3 }
  0x11   : > { %v413_v9 = vmul.f32 %v1235_v4, %v393_v7  ;;  %v401_v11 = vld [vmem:[%s1248_s25 + $0x40] sm:$0xff]  ;;  %v434_v17 = vadd.f32 %v1253_v5, %v414_v10  ;;  %v423_v32 = vmul.f32 %v1235_v4, %v403_v27  ;;  %v424_v33 = vmul.f32 %v1235_v4, %v404_v28  ;;  %v1136_v36 = vld [vmem:[%s1242_s22 + $0x8] sm:$0xff]  ;;  %v1137_v56 = vld [vmem:[%s1242_s22 + $0x10] sm:$0xff]  ;;  %s1545_s18 = scalar_lea.vmem %s1619_s8, %s1083_s15  ;;  %s1557_s20 = scalar_lea.vmem %s1620_s9, %s1083_s15 }
  0x12   : > { %v1139_v13 = vld [vmem:[%s1242_s22 + $0x20] sm:$0xff]  ;;  %v421_v14 = vmul.f32 %v1235_v4, %v401_v11  ;;  %v442_v19 = vadd.f32 %v1253_v5, %v422_v15  ;;  %v435_v34 = vadd.f32 %v1253_v5, %v415_v30  ;;  %v436_v35 = vadd.f32 %v1253_v5, %v416_v31  ;;  %v1140_v39 = vld [vmem:[%s1242_s22 + $0x28] sm:$0xff]  ;;  %v1141_v59 = vld [vmem:[%s1242_s22 + $0x30] sm:$0xff] }
  0x13   : > { %v433_v16 = vadd.f32 %v1253_v5, %v413_v9  ;;  %1129 = vmatmul.msk.bf16.vlgmr.msra.gmra.mxu3 %vm474_vm1, %v1139_v13  ;;  %v450_v21 = vmax.f32 %v434_v17, 0.0  ;;  %v443_v37 = vadd.f32 %v1253_v5, %v423_v32  ;;  %v444_v38 = vadd.f32 %v1253_v5, %v424_v33  ;;  %v397_v46 = vld [vmem:[%s1248_s25 + $0x20] sm:$0xff]  ;;  %v398_v47 = vld [vmem:[%s1248_s25 + $0x28] sm:$0xff]  ;;  %v399_v2 = vld [vmem:[%s1248_s25 + $0x30] sm:$0xff] }
  0x14   : > { %v441_v18 = vadd.f32 %v1253_v5, %v421_v14  ;;  %v458_v23 = vmax.f32 %v442_v19, 0.0  ;;  %v451_v40 = vmax.f32 %v435_v34, 0.0  ;;  %v452_v41 = vmax.f32 %v436_v35, 0.0  ;;  %v405_v48 = vld [vmem:[%s1248_s25 + $0x60] sm:$0xff]  ;;  %v406_v49 = vld [vmem:[%s1248_s25 + $0x68] sm:$0xff]  ;;  %v400_v3 = vld [vmem:[%s1248_s25 + $0x38] sm:$0xff] }
  0x15   : > { %v449_v20 = vmax.f32 %v433_v16, 0.0  ;;  %v459_v42 = vmax.f32 %v443_v37, 0.0  ;;  %v460_v43 = vmax.f32 %v444_v38, 0.0  ;;  %v417_v50 = vmul.f32 %v1235_v4, %v397_v46  ;;  %v407_v6 = vld [vmem:[%s1248_s25 + $0x70] sm:$0xff]  ;;  %v408_v7 = vld [vmem:[%s1248_s25 + $0x78] sm:$0xff] }
  0x16   : > { %v457_v22 = vmax.f32 %v441_v18, 0.0  ;;  %v466_v44 = vpack.c.bf16 %v452_v41, %v451_v40  ;;  %v418_v51 = vmul.f32 %v1235_v4, %v398_v47  ;;  %v425_v52 = vmul.f32 %v1235_v4, %v405_v48  ;;  %v1138_v14 = vld [vmem:[%s1242_s22 + $0x18] sm:$0xff] }
  0x17   : > { %v465_v26 = vpack.c.bf16 %v450_v21, %v449_v20  ;;  %v470_v45 = vpack.c.bf16 %v460_v43, %v459_v42  ;;  %v426_v53 = vmul.f32 %v1235_v4, %v406_v49  ;;  %v437_v54 = vadd.f32 %v1253_v5, %v417_v50  ;;  %v1142_v17 = vld [vmem:[%s1242_s22 + $0x38] sm:$0xff] }
  0x18   : > { %v469_v29 = vpack.c.bf16 %v458_v23, %v457_v22  ;;  %v438_v55 = vadd.f32 %v1253_v5, %v418_v51  ;;  %v445_v57 = vadd.f32 %v1253_v5, %v425_v52  ;;  %v419_v8 = vmul.f32 %v1235_v4, %v399_v2 }
  0x19   : > { %1085 = vmatmul.msk.bf16.vlgmr.msra.gmra.mxu0 %vm474_vm1, %v465_v26  ;;  %v446_v58 = vadd.f32 %v1253_v5, %v426_v53  ;;  %v453_v60 = vmax.f32 %v437_v54, 0.0  ;;  %v420_v9 = vmul.f32 %v1235_v4, %v400_v3  ;;  %v427_v10 = vmul.f32 %v1235_v4, %v407_v6 }
  0x1a   : > { %1089 = vmatmul.msk.bf16.vlgmr.msra.gmra.mxu2 %vm474_vm1, %v469_v29  ;;  %v454_v61 = vmax.f32 %v438_v55, 0.0  ;;  %v461_v62 = vmax.f32 %v445_v57, 0.0  ;;  %v428_v11 = vmul.f32 %v1235_v4, %v408_v7  ;;  %v439_v12 = vadd.f32 %v1253_v5, %v419_v8 }
  0x1b   : > { %v462_v63 = vmax.f32 %v446_v58, 0.0  ;;  %v440_v13 = vadd.f32 %v1253_v5, %v420_v9  ;;  %v447_v15 = vadd.f32 %v1253_v5, %v427_v10 }
  0x1c   : > { %v467_v0 = vpack.c.bf16 %v454_v61, %v453_v60  ;;  %v448_v16 = vadd.f32 %v1253_v5, %v428_v11  ;;  %v455_v18 = vmax.f32 %v439_v12, 0.0 }
  0x1d   : > { %v471_v1 = vpack.c.bf16 %v462_v63, %v461_v62  ;;  %v456_v19 = vmax.f32 %v440_v13, 0.0  ;;  %v463_v20 = vmax.f32 %v447_v15, 0.0 }
  0x1e   : > { %v464_v21 = vmax.f32 %v448_v16, 0.0 }
  0x1f   : > { %v468_v4 = vpack.c.bf16 %v456_v19, %v455_v18 }
  0x20   : > { %1126 = vmatmul.msk.bf16.gmra.mxu1 %vm474_vm1, %v1136_v36  ;;  %v472_v22 = vpack.c.bf16 %v464_v21, %v463_v20 }
  0x23   : > { %1130 = vmatmul.msk.bf16.gmra.mxu3 %vm474_vm1, %v1140_v39 }
  0x29   : > { %1086 = vmatmul.msk.bf16.gmra.mxu0 %vm474_vm1, %v466_v44 }
  0x2a   : > { %1090 = vmatmul.msk.bf16.gmra.mxu2 %vm474_vm1, %v470_v45 }
  0x30   : > { %1127 = vmatmul.msk.bf16.gmra.mxu1 %vm474_vm1, %v1137_v56 }
  0x33   : > { %1131 = vmatmul.msk.bf16.gmra.mxu3 %vm474_vm1, %v1141_v59 }
  0x39   : > { %1087 = vmatmul.msk.bf16.gmra.mxu0 %vm474_vm1, %v467_v0 }
  0x3a   : > { %1091 = vmatmul.msk.bf16.gmra.mxu2 %vm474_vm1, %v471_v1 }
  0x40   : > { %1128 = vmatmul.msk.bf16.gmra.mxu1 %vm474_vm1, %v1138_v14 }
  0x43   : > { %1132 = vmatmul.msk.bf16.gmra.mxu3 %vm474_vm1, %v1142_v17 }
  0x49   : > { %1088 = vmatmul.msk.bf16.gmra.mxu0 %vm474_vm1, %v468_v4 }
  0x4a   : > { %1092 = vmatmul.msk.bf16.gmra.mxu2 %vm474_vm1, %v472_v22 }
  0x8d   : > { %v645_v5 = vpop.f32.mrf.mxu1 }
  0x8e   : > { %702 = vst.msk [vmem:[%s1331_s11] sm:$0xff] %vm685_vm2, %v645_v5  ;;  %v851_v38 = vmul.f32 %v645_v5, %v645_v5  ;;  %v813_v46 = vsel %vm685_vm2, %v645_v5, 0.0 }
  0x90   : > { %v867_v50 = vsel %vm685_vm2, %v851_v38, 0.0 }
  0x95   : > { %v647_v25 = vpop.f32.mrf.mxu1 }
  0x96   : > { %v512_v23 = vpop.f32.mrf.mxu0  ;;  %v665_v24 = vpop.f32.mrf.mxu3  ;;  %703 = vst.msk [vmem:[%s1331_s11 + $0x8] sm:$0xff] %vm685_vm2, %v647_v25  ;;  %v852_v39 = vmul.f32 %v647_v25, %v647_v25  ;;  %v814_v47 = vsel %vm685_vm2, %v647_v25, 0.0 }
  0x97   : > { %686 = vst.msk [vmem:[%s1339_s14] sm:$0xff] %vm685_vm2, %v512_v23  ;;  %v757_v43 = vmul.f32 %v512_v23, %v512_v23  ;;  %v859_v44 = vmul.f32 %v665_v24, %v665_v24  ;;  %v718_v53 = vsel %vm685_vm2, %v512_v23, 0.0  ;;  %v1413_v55 = vsel %vm685_vm2, %v665_v24, 0.0 }
  0x98   : > { %710 = vst.msk [vmem:[%s1331_s11 + $0x40] sm:$0xff] %vm685_vm2, %v665_v24  ;;  %v868_v51 = vsel %vm685_vm2, %v852_v39, 0.0  ;;  %v815_v58 = vadd.f32 %v814_v47, %v813_v46 }
  0x99   : > { %v773_v57 = vsel %vm685_vm2, %v757_v43, 0.0  ;;  %v1417_v59 = vsel %vm685_vm2, %v859_v44, 0.0  ;;  %v869_v61 = vadd.f32 %v868_v51, %v867_v50 }
  0x9d   : > { %v532_v26 = vpop.f32.mrf.mxu2  ;;  %v650_v29 = vpop.f32.mrf.mxu1 }
  0x9e   : > { %v514_v27 = vpop.f32.mrf.mxu0  ;;  %694 = vst.msk [vmem:[%s1339_s14 + $0x40] sm:$0xff] %vm685_vm2, %v532_v26  ;;  %v667_v28 = vpop.f32.mrf.mxu3  ;;  %v853_v49 = vmul.f32 %v650_v29, %v650_v29  ;;  %v765_v52 = vmul.f32 %v532_v26, %v532_v26  ;;  %v816_v60 = vsel %vm685_vm2, %v650_v29, 0.0  ;;  %v1423_v2 = vsel %vm685_vm2, %v532_v26, 0.0 }
  0x9f   : > { %687 = vst.msk [vmem:[%s1339_s14 + $0x8] sm:$0xff] %vm685_vm2, %v514_v27  ;;  %v758_v48 = vmul.f32 %v514_v27, %v514_v27  ;;  %v719_v54 = vsel %vm685_vm2, %v514_v27, 0.0  ;;  %v860_v56 = vmul.f32 %v667_v28, %v667_v28  ;;  %v1429_v6 = vsel %vm685_vm2, %v667_v28, 0.0 }
  0xa0   : > { %704 = vst.msk [vmem:[%s1331_s11 + $0x10] sm:$0xff] %vm685_vm2, %v650_v29  ;;  %v870_v63 = vsel %vm685_vm2, %v853_v49, 0.0  ;;  %v720_v1 = vadd.f32 %v719_v54, %v718_v53  ;;  %v1426_v3 = vsel %vm685_vm2, %v765_v52, 0.0  ;;  %v817_v8 = vadd.f32 %v816_v60, %v815_v58 }
  0xa1   : > { %711 = vst.msk [vmem:[%s1331_s11 + $0x48] sm:$0xff] %vm685_vm2, %v667_v28  ;;  %v774_v62 = vsel %vm685_vm2, %v758_v48, 0.0  ;;  %v1434_v9 = vsel %vm685_vm2, %v860_v56, 0.0  ;;  %v871_v15 = vadd.f32 %v870_v63, %v869_v61 }
  0xa2   : > { %v775_v14 = vadd.f32 %v774_v62, %v773_v57 }
  0xa5   : > { %v1355_v30 = vpop.f32.mrf.mxu2  ;;  %v652_v33 = vpop.f32.mrf.mxu1 }
  0xa6   : > { %v1357_v31 = vpop.f32.mrf.mxu0  ;;  %695 = vst.msk [vmem:[%s1339_s14 + $0x48] sm:$0xff] %vm685_vm2, %v1355_v30  ;;  %v1362_v32 = vpop.f32.mrf.mxu3  ;;  %v854_v0 = vmul.f32 %v652_v33, %v652_v33  ;;  %v818_v10 = vsel %vm685_vm2, %v652_v33, 0.0  ;;  %v766_v17 = vmul.f32 %v1355_v30, %v1355_v30  ;;  %v1456_v22 = vsel %vm685_vm2, %v1355_v30, 0.0 }
  0xa7   : > { %688 = vst.msk [vmem:[%s1339_s14 + $0x10] sm:$0xff] %vm685_vm2, %v1357_v31  ;;  %v759_v16 = vmul.f32 %v1357_v31, %v1357_v31  ;;  %v721_v19 = vsel %vm685_vm2, %v1357_v31, 0.0  ;;  %v819_v5 = vadd.f32 %v818_v10, %v817_v8  ;;  %v1460_v23 = vsel %vm685_vm2, %v1362_v32, 0.0 }
  0xa8   : > { %705 = vst.msk [vmem:[%s1331_s11 + $0x18] sm:$0xff] %vm685_vm2, %v652_v33  ;;  %v872_v20 = vsel %vm685_vm2, %v854_v0, 0.0  ;;  %v861_v24 = vmul.f32 %v1362_v32, %v1362_v32  ;;  %v722_v29 = vadd.f32 %v721_v19, %v720_v1 }
  0xa9   : > { %712 = vst.msk [vmem:[%s1331_s11 + $0x50] sm:$0xff] %vm685_vm2, %v1362_v32  ;;  %v776_v30 = vsel %vm685_vm2, %v759_v16, 0.0  ;;  %v873_v31 = vadd.f32 %v872_v20, %v871_v15 }
  0xaa   : > { %v1482_v44 = vsel %vm685_vm2, %v861_v24, 0.0  ;;  %v777_v48 = vadd.f32 %v776_v30, %v775_v14 }
  0xad   : > { %v1372_v34 = vpop.f32.mrf.mxu2  ;;  %v655_v37 = vpop.f32.mrf.mxu1 }
  0xae   : > { %v1374_v35 = vpop.f32.mrf.mxu0  ;;  %696 = vst.msk [vmem:[%s1339_s14 + $0x50] sm:$0xff] %vm685_vm2, %v1372_v34  ;;  %v1379_v36 = vpop.f32.mrf.mxu3  ;;  %v855_v11 = vmul.f32 %v655_v37, %v655_v37  ;;  %v820_v21 = vsel %vm685_vm2, %v655_v37, 0.0  ;;  %v767_v19 = vmul.f32 %v1372_v34, %v1372_v34 }
  0xaf   : > { %689 = vst.msk [vmem:[%s1339_s14 + $0x18] sm:$0xff] %vm685_vm2, %v1374_v35  ;;  %v760_v25 = vmul.f32 %v1374_v35, %v1374_v35  ;;  %v821_v33 = vadd.f32 %v820_v21, %v819_v5  ;;  %v723_v43 = vsel %vm685_vm2, %v1374_v35, 0.0  ;;  %v862_v50 = vmul.f32 %v1379_v36, %v1379_v36 }
  0xb0   : > { %706 = vst.msk [vmem:[%s1331_s11 + $0x20] sm:$0xff] %vm685_vm2, %v655_v37  ;;  %v874_v26 = vsel %vm685_vm2, %v855_v11, 0.0  ;;  %v1473_v37 = vsel %vm685_vm2, %v766_v17, 0.0  ;;  %v724_v60 = vadd.f32 %v723_v43, %v722_v29  ;;  %v737_v11 = vsel %vm685_vm2, %v1372_v34, 0.0 }
  0xb1   : > { %713 = vst.msk [vmem:[%s1331_s11 + $0x58] sm:$0xff] %vm685_vm2, %v1379_v36  ;;  %v778_v49 = vsel %vm685_vm2, %v760_v25, 0.0  ;;  %v834_v21 = vsel %vm685_vm2, %v1379_v36, 0.0  ;;  %v888_v5 = vsel %vm685_vm2, %v862_v50, 0.0 }
  0xb2   : > { %v779_v10 = vadd.f32 %v778_v49, %v777_v48 }
  0xb5   : > { %v1389_v40 = vpop.f32.mrf.mxu2  ;;  %v657_v45 = vpop.f32.mrf.mxu1 }
  0xb6   : > { %v1391_v41 = vpop.f32.mrf.mxu0  ;;  %697 = vst.msk [vmem:[%s1339_s14 + $0x58] sm:$0xff] %vm685_vm2, %v1389_v40  ;;  %v1396_v42 = vpop.f32.mrf.mxu3  ;;  %v856_v4 = vmul.f32 %v657_v45, %v657_v45  ;;  %v822_v27 = vsel %vm685_vm2, %v657_v45, 0.0 }
  0xb7   : > { %690 = vst.msk [vmem:[%s1339_s14 + $0x20] sm:$0xff] %vm685_vm2, %v1391_v41  ;;  %v761_v32 = vmul.f32 %v1391_v41, %v1391_v41  ;;  %v823_v46 = vadd.f32 %v822_v27, %v821_v33  ;;  %v725_v53 = vsel %vm685_vm2, %v1391_v41, 0.0  ;;  %v768_v27 = vmul.f32 %v1389_v40, %v1389_v40 }
  0xb8   : > { %707 = vst.msk [vmem:[%s1331_s11 + $0x28] sm:$0xff] %vm685_vm2, %v657_v45  ;;  %v876_v38 = vsel %vm685_vm2, %v856_v4, 0.0  ;;  %v875_v45 = vadd.f32 %v874_v26, %v873_v31  ;;  %v726_v14 = vadd.f32 %v725_v53, %v724_v60  ;;  %v863_v36 = vmul.f32 %v1396_v42, %v1396_v42 }
  0xb9   : > { %714 = vst.msk [vmem:[%s1331_s11 + $0x60] sm:$0xff] %vm685_vm2, %v1396_v42  ;;  %v780_v61 = vsel %vm685_vm2, %v761_v32, 0.0 }
  0xba   : > { %v877_v54 = vadd.f32 %v876_v38, %v875_v45  ;;  %v781_v20 = vadd.f32 %v780_v61, %v779_v10  ;;  %v1164_v45 = vmov 0.0   ;;  %v890_v50 = vsel %vm685_vm2, %v863_v36, 0.0 }
  0xbb   : > { %812 = vst.msk [vmem:[%s1545_s18 + $0x2] sm:$0x3f] %vm811_vm3, %v1164_v45 }
  0xbc   : > { %905 = vst.msk [vmem:[%s1557_s20 + $0x2] sm:$0x3f] %vm811_vm3, %v1164_v45 }
  0xbd   : > { %v1431_v7 = vpop.f32.mrf.mxu2  ;;  %v660_v18 = vpop.f32.mrf.mxu1 }
  0xbe   : > { %v524_v12 = vpop.f32.mrf.mxu0  ;;  %698 = vst.msk [vmem:[%s1339_s14 + $0x60] sm:$0xff] %vm685_vm2, %v1431_v7  ;;  %v1440_v13 = vpop.f32.mrf.mxu3  ;;  %v857_v28 = vmul.f32 %v660_v18, %v660_v18  ;;  %v824_v39 = vsel %vm685_vm2, %v660_v18, 0.0 }
  0xbf   : > { %691 = vst.msk [vmem:[%s1339_s14 + $0x28] sm:$0xff] %vm685_vm2, %v524_v12  ;;  %v762_v56 = vmul.f32 %v524_v12, %v524_v12  ;;  %v825_v57 = vadd.f32 %v824_v39, %v823_v46  ;;  %v727_v0 = vsel %vm685_vm2, %v524_v12, 0.0  ;;  %v836_v46 = vsel %vm685_vm2, %v1396_v42, 0.0 }
  0xc0   : > { %708 = vst.msk [vmem:[%s1331_s11 + $0x30] sm:$0xff] %vm685_vm2, %v660_v18  ;;  %v878_v51 = vsel %vm685_vm2, %v857_v28, 0.0  ;;  %v728_v4 = vadd.f32 %v727_v0, %v726_v14  ;;  %v794_v14 = vsel %vm685_vm2, %v768_v27, 0.0 }
  0xc1   : > { %715 = vst.msk [vmem:[%s1331_s11 + $0x68] sm:$0xff] %vm685_vm2, %v1440_v13  ;;  %v879_v1 = vadd.f32 %v878_v51, %v877_v54  ;;  %v782_v16 = vsel %vm685_vm2, %v762_v56, 0.0  ;;  %v838_v51 = vsel %vm685_vm2, %v1440_v13, 0.0 }
  0xc2   : > { %v783_v34 = vadd.f32 %v782_v16, %v781_v20 }
  0xc5   : > { %v1484_v47 = vpop.f32.mrf.mxu2  ;;  %v662_v58 = vpop.f32.mrf.mxu1 }
  0xc6   : > { %v527_v52 = vpop.f32.mrf.mxu0  ;;  %699 = vst.msk [vmem:[%s1339_s14 + $0x68] sm:$0xff] %vm685_vm2, %v1484_v47  ;;  %v1493_v35 = vpop.f32.mrf.mxu3  ;;  %v826_v62 = vsel %vm685_vm2, %v662_v58, 0.0  ;;  %v858_v63 = vmul.f32 %v662_v58, %v662_v58 }
  0xc7   : > { %692 = vst.msk [vmem:[%s1339_s14 + $0x30] sm:$0xff] %vm685_vm2, %v527_v52  ;;  %v763_v41 = vmul.f32 %v527_v52, %v527_v52  ;;  %v827_v8 = vadd.f32 %v826_v62, %v825_v57  ;;  %v729_v12 = vsel %vm685_vm2, %v527_v52, 0.0  ;;  %v840_v42 = vsel %vm685_vm2, %v1493_v35, 0.0 }
  0xc8   : > { %709 = vst.msk [vmem:[%s1331_s11 + $0x38] sm:$0xff] %vm685_vm2, %v662_v58  ;;  %v880_v15 = vsel %vm685_vm2, %v858_v63, 0.0  ;;  %v730_v28 = vadd.f32 %v729_v12, %v728_v4  ;;  %v769_v57 = vmul.f32 %v1431_v7, %v1431_v7 }
  0xc9   : > { %716 = vst.msk [vmem:[%s1331_s11 + $0x70] sm:$0xff] %vm685_vm2, %v1493_v35  ;;  %v829_v17 = vadd.f32 %v1413_v55, %v827_v8  ;;  %v881_v18 = vadd.f32 %v880_v15, %v879_v1  ;;  %v784_v24 = vsel %vm685_vm2, %v763_v41, 0.0  ;;  %v770_v8 = vmul.f32 %v1484_v47, %v1484_v47 }
  0xca   : > { %v785_v32 = vadd.f32 %v784_v24, %v783_v34  ;;  %v741_v15 = vsel %vm685_vm2, %v1431_v7, 0.0 }
  0xcb   : > { %v831_v25 = vadd.f32 %v1429_v6, %v829_v17  ;;  %v883_v55 = vadd.f32 %v1417_v59, %v881_v18  ;;  %v796_v17 = vsel %vm685_vm2, %v769_v57, 0.0 }
  0xcd   : > { %v1527_v26 = vpop.f32.mrf.mxu2  ;;  %v833_v6 = vadd.f32 %v1460_v23, %v831_v25  ;;  %v885_v59 = vadd.f32 %v1434_v9, %v883_v55  ;;  %v864_v23 = vmul.f32 %v1440_v13, %v1440_v13 }
  0xce   : > { %v529_v29 = vpop.f32.mrf.mxu0  ;;  %700 = vst.msk [vmem:[%s1339_s14 + $0x70] sm:$0xff] %vm685_vm2, %v1527_v26  ;;  %v682_v30 = vpop.f32.mrf.mxu3  ;;  %v771_v20 = vmul.f32 %v1527_v26, %v1527_v26  ;;  %v745_v7 = vsel %vm685_vm2, %v1527_v26, 0.0 }
  0xcf   : > { %693 = vst.msk [vmem:[%s1339_s14 + $0x38] sm:$0xff] %vm685_vm2, %v529_v29  ;;  %v731_v31 = vsel %vm685_vm2, %v529_v29, 0.0  ;;  %v764_v33 = vmul.f32 %v529_v29, %v529_v29  ;;  %v887_v9 = vadd.f32 %v1482_v44, %v885_v59  ;;  %v835_v43 = vadd.f32 %v834_v21, %v833_v6 }
  0xd0   : > { %v732_v38 = vadd.f32 %v731_v31, %v730_v28  ;;  %717 = vst.msk [vmem:[%s1331_s11 + $0x78] sm:$0xff] %vm685_vm2, %v682_v30  ;;  %v865_v44 = vmul.f32 %v1493_v35, %v1493_v35  ;;  %v892_v58 = vsel %vm685_vm2, %v864_v23, 0.0  ;;  %v739_v35 = vsel %vm685_vm2, %v1389_v40, 0.0 }
  0xd1   : > { %v786_v39 = vsel %vm685_vm2, %v764_v33, 0.0  ;;  %v837_v52 = vadd.f32 %v836_v46, %v835_v43  ;;  %v889_v53 = vadd.f32 %v888_v5, %v887_v9  ;;  %v798_v5 = vsel %vm685_vm2, %v770_v8, 0.0 }
  0xd2   : > { %v734_v48 = vadd.f32 %v1423_v2, %v732_v38  ;;  %v787_v49 = vadd.f32 %v786_v39, %v785_v32  ;;  %v866_v2 = vmul.f32 %v682_v30, %v682_v30  ;;  %v894_v0 = vsel %vm685_vm2, %v865_v44, 0.0 }
  0xd3   : > { %v839_v60 = vadd.f32 %v838_v51, %v837_v52  ;;  %v891_v61 = vadd.f32 %v890_v50, %v889_v53  ;;  %v800_v29 = vsel %vm685_vm2, %v771_v20, 0.0 }
  0xd4   : > { %v736_v54 = vadd.f32 %v1456_v22, %v734_v48  ;;  %v789_v56 = vadd.f32 %v1426_v3, %v787_v49  ;;  %v842_v3 = vsel %vm685_vm2, %v682_v30, 0.0  ;;  %v792_v22 = vsel %vm685_vm2, %v767_v19, 0.0 }
  0xd5   : > { %v549_v62 = vpop.f32.mrf.mxu2  ;;  %v841_v1 = vadd.f32 %v840_v42, %v839_v60  ;;  %v893_v41 = vadd.f32 %v892_v58, %v891_v61  ;;  %v743_v19 = vsel %vm685_vm2, %v1484_v47, 0.0 }
  0xd6   : > { %v738_v63 = vadd.f32 %v737_v11, %v736_v54  ;;  %v791_v13 = vadd.f32 %v1473_v37, %v789_v56  ;;  %701 = vst.msk [vmem:[%s1339_s14 + $0x78] sm:$0xff] %vm685_vm2, %v549_v62  ;;  %v896_v37 = vsel %vm685_vm2, %v866_v2, 0.0  ;;  %v772_v55 = vmul.f32 %v549_v62, %v549_v62 }
  0xd7   : > { %v895_v16 = vadd.f32 %v894_v0, %v893_v41  ;;  %v843_v12 = vadd.f32 %v842_v3, %v841_v1  ;;  %v747_v47 = vsel %vm685_vm2, %v549_v62, 0.0 }
  0xd8   : > { %v793_v10 = vadd.f32 %v792_v22, %v791_v13  ;;  %v740_v11 = vadd.f32 %v739_v35, %v738_v63  ;;  %v802_v33 = vsel %vm685_vm2, %v772_v55, 0.0 }
  0xd9   : > { %v844_v21 = vrot.slane %v843_v12, 4  ;;  %v897_v4 = vadd.f32 %v896_v37, %v895_v16 }
  0xda   : > { %v742_v18 = vadd.f32 %v741_v15, %v740_v11  ;;  %v795_v40 = vadd.f32 %v794_v14, %v793_v10 }
  0xdb   : > { %v845_v27 = vadd.f32 %v844_v21, %v843_v12  ;;  %v898_v34 = vrot.slane %v897_v4, 4 }
  0xdc   : > { %v744_v24 = vadd.f32 %v743_v19, %v742_v18  ;;  %v797_v25 = vadd.f32 %v796_v17, %v795_v40 }
  0xdd   : > { %v846_v30 = vrot.slane %v845_v27, 2  ;;  %v899_v6 = vadd.f32 %v898_v34, %v897_v4 }
  0xde   : > { %v746_v36 = vadd.f32 %v745_v7, %v744_v24  ;;  %v799_v28 = vadd.f32 %v798_v5, %v797_v25 }
  0xdf   : > { %v847_v32 = vadd.f32 %v846_v30, %v845_v27  ;;  %v900_v38 = vrot.slane %v899_v6, 2 }
  0xe0   : > { %v801_v59 = vadd.f32 %v800_v29, %v799_v28  ;;  %v748_v31 = vadd.f32 %v747_v47, %v746_v36 }
  0xe1   : > { %v848_v9 = vrot.slane %v847_v32, 1  ;;  %v901_v39 = vadd.f32 %v900_v38, %v899_v6 }
  0xe2   : > { %v749_v26 = vrot.slane %v748_v31, 4  ;;  %v803_v23 = vadd.f32 %v802_v33, %v801_v59 }
  0xe3   : > { %v849_v46 = vadd.f32 %v848_v9, %v847_v32  ;;  %v902_v48 = vrot.slane %v901_v39, 1 }
  0xe4   : > { %v750_v43 = vadd.f32 %v749_v26, %v748_v31  ;;  %v804_v45 = vrot.slane %v803_v23, 4 }
  0xe5   : > { %850 = vst.msk [vmem:[%s1557_s20] sm:$0x1] %vm755_vm4, %v849_v46  ;;  %v903_v50 = vadd.f32 %v902_v48, %v901_v39 }
  0xe6   : > { %v751_v49 = vrot.slane %v750_v43, 2  ;;  %v805_v44 = vadd.f32 %v804_v45, %v803_v23 }
  0xe7   : > { %904 = vst.msk [vmem:[%s1557_s20 + $0x1] sm:$0x1] %vm755_vm4, %v903_v50 }
  0xe8   : > { %v752_v51 = vadd.f32 %v751_v49, %v750_v43  ;;  %v806_v52 = vrot.slane %v805_v44, 2 }
  0xea   : > { %v753_v53 = vrot.slane %v752_v51, 1  ;;  %v807_v54 = vadd.f32 %v806_v52, %v805_v44 }
  0xec   : > { %v754_v56 = vadd.f32 %v753_v53, %v752_v51  ;;  %v808_v42 = vrot.slane %v807_v54, 1 }
  0xee   : > { %756 = vst.msk [vmem:[%s1545_s18] sm:$0x1] %vm755_vm4, %v754_v56  ;;  %v809_v2 = vadd.f32 %v808_v42, %v807_v54 }
  0xf0   : > { %810 = vst.msk [vmem:[%s1545_s18 + $0x1] sm:$0x1] %vm755_vm4, %v809_v2 }
  0xf1 PF: > { %s20_s30 = sadd.s32 1, %s1162_s30  }
  0xf2   : > { %p17_p5 = scmp.ge.s32.totalorder %s20_s30, 6  }
  0xf4   :  { %19 = sbr.rel (!%p17_p5) target bundleno = 1 (0x1), region = 113 }

// kernel: bottleneck_block.6
= control target key start
LH: loop header
LB: loop body
LE: loop exit
PB: predicated region body
PF: predicated region fallthrough
CT: control target
= control target key end

     0   :  { %s1024_s12 = smov 0   ;;  %s1719_s0 = inlined_call_operand.vmem [shape: f32[2,16,16,4], index: 0, kind: input, shape index: {}]   ;;  %s1720_s1 = inlined_call_operand.vmem [shape: f32[1,1,1,4], index: 1, kind: input, shape index: {}]   ;;  %s1721_s2 = inlined_call_operand.vmem [shape: f32[1,1,1,4], index: 2, kind: input, shape index: {}]   ;;  %s1722_s3 = inlined_call_operand.vmem [shape: bf16[2,18,18,4], index: 3, kind: output, shape index: {}]  }
   0x1 LB: > { %s892_s13 = sadd.s32 4294967295, %s1001_s12   ;;  %p896_p0 = scmp.ge.s32.totalorder %s1001_s12, 1  ;;  %s1001_s12 = sphi %s1024_s12, %s13_s12  }
   0x2   : > { %p137_p1 = scmp.lt.s32.totalorder %s1001_s12, 3 }
   0x4   : > { %p138_p2 = pnand %p896_p0, %p137_p1 }
   0x5   : > { %p161_p3 = scmp.lt.s32.totalorder (!%p138_p2), %s892_s13, 1 }
   0x6   : > { %141 = sbr.rel (%p138_p2) target bundleno = 122 (0x7a), region = 32 }
   0xb   : > { %s1730_s13 = smov (!%p161_p3, %s892_s13), 1  ;;  %vm308_vm0 = vcmask 27648   ;;  %v1003_v0 = vmov 0   ;;  %v1084_v1 = vld [vmem:[%s1720_s1] ss:$0 sm:$0xff]  ;;  %vm311_vm4 = vcmask 24576  }
   0xc   : > { %s983_s14 = smul.u32 216, %s1730_s13  ;;  %s982_s18 = sshll.u32 %s1730_s13, 8  ;;  %v1099_v6 = vld [vmem:[%s1721_s2] ss:$0 sm:$0xff]  ;;  %vm721_vm1 = vsmask.f32 7938 }
   0xd   : > { %s1073_s21 = scalar_lea.vmem %s1719_s0, %s982_s18  ;;  %vm396_vm2 = vsmask.f32 256  ;;  %vm397_vm3 = vsmask.f32 4368  ;;  %vm1168_vm5 = vmand %vm308_vm0, %vm721_vm1 }
   0xe   : > { %s1035_s17 = scalar_lea.vmem %s1722_s3, %s983_s14  ;;  %v172_v2 = vld [vmem:[%s1073_s21] sm:$0xff]  ;;  %v173_v3 = vld [vmem:[%s1073_s21 + $0x8] sm:$0xff]  ;;  %v174_v4 = vld [vmem:[%s1073_s21 + $0x10] sm:$0xff] }
   0xf   : > { %313 = vst.msk [vmem:[%s1035_s17 + $0xc] sm:$0xf] %vm308_vm0, %v1003_v0  ;;  %v208_v5 = vmul.f32 %v1084_v1, %v172_v2  ;;  %v209_v7 = vmul.f32 %v1084_v1, %v173_v3  ;;  %v210_v8 = vmul.f32 %v1084_v1, %v174_v4  ;;  %v175_v9 = vld [vmem:[%s1073_s21 + $0x18] sm:$0xff]  ;;  %v176_v10 = vld [vmem:[%s1073_s21 + $0x20] sm:$0xff]  ;;  %v177_v13 = vld [vmem:[%s1073_s21 + $0x28] sm:$0xff] }
  0x10   : > { %309 = vst.msk [vmem:[%s1035_s17] sm:$0xf] %vm308_vm0, %v1003_v0  ;;  %v211_v11 = vmul.f32 %v1084_v1, %v175_v9  ;;  %v212_v12 = vmul.f32 %v1084_v1, %v176_v10  ;;  %v178_v14 = vld [vmem:[%s1073_s21 + $0x30] sm:$0xff]  ;;  %v179_v15 = vld [vmem:[%s1073_s21 + $0x38] sm:$0xff]  ;;  %v213_v19 = vmul.f32 %v1084_v1, %v177_v13  ;;  %v180_v28 = vld [vmem:[%s1073_s21 + $0x40] sm:$0xff] }
  0x11   : > { %310 = vst.msk [vmem:[%s1035_s17 + $0x4] sm:$0xf] %vm308_vm0, %v1003_v0  ;;  %v244_v16 = vadd.f32 %v1099_v6, %v208_v5  ;;  %v245_v17 = vadd.f32 %v1099_v6, %v209_v7  ;;  %v246_v18 = vadd.f32 %v1099_v6, %v210_v8  ;;  %v214_v22 = vmul.f32 %v1084_v1, %v178_v14  ;;  %v181_v40 = vld [vmem:[%s1073_s21 + $0x48] sm:$0xff]  ;;  %v182_v41 = vld [vmem:[%s1073_s21 + $0x50] sm:$0xff]  ;;  %vm1186_vm6 = vmor %vm396_vm2, %vm397_vm3 }
  0x12   : > { %314 = vst.msk [vmem:[%s1035_s17 + $0x10] sm:$0xf] %vm308_vm0, %v1003_v0  ;;  %v247_v20 = vadd.f32 %v1099_v6, %v211_v11  ;;  %v248_v21 = vadd.f32 %v1099_v6, %v212_v12  ;;  %v215_v23 = vmul.f32 %v1084_v1, %v179_v15  ;;  %v249_v27 = vadd.f32 %v1099_v6, %v213_v19  ;;  %vm1305_vm7 = vmand %vm311_vm4, %vm396_vm2 }
  0x13   : > { %316 = vst.msk [vmem:[%s1035_s17 + $0x18] sm:$0xf] %vm308_vm0, %v1003_v0  ;;  %v276_v24 = vmax.f32 %v244_v16, 0.0  ;;  %v277_v25 = vmax.f32 %v245_v17, 0.0  ;;  %v278_v26 = vmax.f32 %v246_v18, 0.0  ;;  %v1136_v31 = vadd.f32 %v1099_v6, %v214_v22 }
  0x14   : > { %317 = vst.msk [vmem:[%s1035_s17 + $0x1c] sm:$0xf] %vm308_vm0, %v1003_v0  ;;  %v279_v29 = vmax.f32 %v247_v20, 0.0  ;;  %v280_v30 = vmax.f32 %v248_v21, 0.0  ;;  %v1139_v32 = vadd.f32 %v1099_v6, %v215_v23  ;;  %v281_v36 = vmax.f32 %v249_v27, 0.0 }
  0x15   : > { %319 = vst.msk [vmem:[%s1035_s17 + $0x24] sm:$0xf] %vm308_vm0, %v1003_v0  ;;  %v364_v33 = vpack.c.bf16 %v276_v24, %v276_v24  ;;  %v365_v34 = vpack.c.bf16 %v277_v25, %v277_v25  ;;  %v366_v35 = vpack.c.bf16 %v278_v26, %v278_v26  ;;  %v216_v39 = vmul.f32 %v1084_v1, %v180_v28 }
  0x16   : > { %320 = vst.msk [vmem:[%s1035_s17 + $0x28] sm:$0xf] %vm308_vm0, %v1003_v0  ;;  %v367_v37 = vpack.c.bf16 %v279_v29, %v279_v29  ;;  %v368_v38 = vpack.c.bf16 %v280_v30, %v280_v30  ;;  %v369_v44 = vpack.c.bf16 %v281_v36, %v281_v36  ;;  %v1157_v45 = vld [vmem:[%s1035_s17 + $0xc] sm:$0xf]  ;;  %v217_v57 = vmul.f32 %v1084_v1, %v181_v40 }
  0x17   : > { %322 = vst.msk [vmem:[%s1035_s17 + $0x30] sm:$0xf] %vm308_vm0, %v1003_v0  ;;  %v400_v42 = vshrl.u32 %v364_v33, 16  ;;  %v403_v43 = vshll.u32 %v364_v33, 16  ;;  %v408_v46 = vshrl.u32 %v365_v34, 16  ;;  %v411_v47 = vshll.u32 %v365_v34, 16 }
  0x18   : > { %323 = vst.msk [vmem:[%s1035_s17 + $0x34] sm:$0xf] %vm308_vm0, %v1003_v0  ;;  %v252_v48 = vadd.f32 %v1099_v6, %v216_v39  ;;  %v417_v50 = vshrl.u32 %v366_v35, 16  ;;  %v420_v51 = vshll.u32 %v366_v35, 16  ;;  %v425_v52 = vshrl.u32 %v367_v37, 16 }
  0x19   : > { %325 = vst.msk [vmem:[%s1035_s17 + $0x3c] sm:$0xf] %vm308_vm0, %v1003_v0  ;;  %v402_v49 = vrot.slane %v400_v42, 7  ;;  %v1172_v54 = vrot.slane %v408_v46, 7  ;;  %v428_v56 = vshll.u32 %v367_v37, 16  ;;  %v218_v58 = vmul.f32 %v1084_v1, %v182_v41  ;;  %v184_v37 = vld [vmem:[%s1073_s21 + $0x60] sm:$0xff] }
  0x1a   : > { %326 = vst.msk [vmem:[%s1035_s17 + $0x40] sm:$0xf] %vm308_vm0, %v1003_v0  ;;  %v1175_v55 = vld [vmem:[%s1035_s17 + $0x18] sm:$0xf]  ;;  %v419_v62 = vrot.slane %v417_v50, 7  ;;  %v1190_v63 = vrot.slane %v425_v52, 7  ;;  %v253_v26 = vadd.f32 %v1099_v6, %v217_v57  ;;  %v220_v52 = vmul.f32 %v1084_v1, %v184_v37 }
  0x1b   : > { %328 = vst.msk [vmem:[%s1035_s17 + $0x48] sm:$0xf] %vm308_vm0, %v1003_v0  ;;  %v1182_v59 = vor.u32 %v403_v43, %v402_v49  ;;  %v406_v61 = vrot.slane %v402_v49, 4  ;;  %v413_v2 = vor.u32 %v411_v47, %v1172_v54  ;;  %v415_v3 = vrot.slane %v1172_v54, 4 }
  0x1c   : > { %329 = vst.msk [vmem:[%s1035_s17 + $0x4c] sm:$0xf] %vm308_vm0, %v1003_v0  ;;  %v434_v4 = vshrl.u32 %v368_v38, 16  ;;  %v437_v5 = vshll.u32 %v368_v38, 16  ;;  %v1204_v8 = vor.u32 %v420_v51, %v419_v62  ;;  %v423_v9 = vrot.slane %v419_v62, 4 }
  0x1d   : > { %331 = vst.msk [vmem:[%s1035_s17 + $0x54] sm:$0xf] %vm308_vm0, %v1003_v0  ;;  %v724_v7 = vsel %vm1168_vm5, %v1182_v59, %v1157_v45  ;;  %v430_v10 = vor.u32 %v428_v56, %v1190_v63  ;;  %v1212_v11 = vsel %vm1186_vm6, %v406_v61, %v413_v2  ;;  %v432_v12 = vrot.slane %v1190_v63, 4  ;;  %v1227_v17 = vld [vmem:[%s1035_s17 + $0x24] sm:$0xf] }
  0x1e   : > { %332 = vst.msk [vmem:[%s1035_s17 + $0x58] sm:$0xf] %vm308_vm0, %v1003_v0  ;;  %v436_v13 = vrot.slane %v434_v4, 7  ;;  %v442_v14 = vshrl.u32 %v369_v44, 16  ;;  %v733_v15 = vsel %vm1168_vm5, %v1204_v8, %v1175_v55  ;;  %v445_v18 = vshll.u32 %v369_v44, 16 }
  0x1f   : > { %334 = vst.msk [vmem:[%s1035_s17 + $0x60] sm:$0xf] %vm308_vm0, %v1003_v0  ;;  %v1224_v16 = vsel %vm1186_vm6, %v423_v9, %v430_v10  ;;  %v282_v19 = vmax.f32 %v1136_v31, 0.0  ;;  %v283_v23 = vmax.f32 %v1139_v32, 0.0  ;;  %v284_v25 = vmax.f32 %v252_v48, 0.0  ;;  %v183_v32 = vld [vmem:[%s1073_s21 + $0x58] sm:$0xff] }
  0x20   : > { %335 = vst.msk [vmem:[%s1035_s17 + $0x64] sm:$0xf] %vm308_vm0, %v1003_v0  ;;  %v1233_v20 = vor.u32 %v437_v5, %v436_v13  ;;  %v440_v21 = vrot.slane %v436_v13, 4  ;;  %v1235_v22 = vrot.slane %v442_v14, 7  ;;  %v254_v27 = vadd.f32 %v1099_v6, %v218_v58  ;;  %v1265_v39 = vld [vmem:[%s1035_s17 + $0x30] sm:$0xf] }
  0x21   : > { %337 = vst.msk [vmem:[%s1035_s17 + $0x6c] sm:$0xf] %vm308_vm0, %v1003_v0  ;;  %v370_v24 = vpack.c.bf16 %v282_v19, %v282_v19  ;;  %v371_v31 = vpack.c.bf16 %v283_v23, %v283_v23  ;;  %v372_v35 = vpack.c.bf16 %v284_v25, %v284_v25  ;;  %v285_v36 = vmax.f32 %v253_v26, 0.0  ;;  %v1276_v49 = vld [vmem:[%s1035_s17 + $0x3c] sm:$0xf]  ;;  %v186_v26 = vld [vmem:[%s1073_s21 + $0x70] sm:$0xff] }
  0x22   : > { %338 = vst.msk [vmem:[%s1035_s17 + $0x70] sm:$0xf] %vm308_vm0, %v1003_v0  ;;  %v740_v28 = vsel %vm1168_vm5, %v1233_v20, %v1227_v17  ;;  %v447_v29 = vor.u32 %v445_v18, %v1235_v22  ;;  %v449_v30 = vrot.slane %v1235_v22, 4  ;;  %v286_v42 = vmax.f32 %v254_v27, 0.0  ;;  %v185_v18 = vld [vmem:[%s1073_s21 + $0x68] sm:$0xff]  ;;  %v187_v27 = vld [vmem:[%s1073_s21 + $0x78] sm:$0xff] }
  0x23   : > { %340 = vst.msk [vmem:[%s1035_s17 + $0x78] sm:$0xf] %vm308_vm0, %v1003_v0  ;;  %v451_v33 = vshrl.u32 %v370_v24, 16  ;;  %v454_v34 = vshll.u32 %v370_v24, 16  ;;  %v459_v40 = vshrl.u32 %v371_v31, 16  ;;  %v462_v41 = vshll.u32 %v371_v31, 16 }
  0x24   : > { %341 = vst.msk [vmem:[%s1035_s17 + $0x7c] sm:$0xf] %vm308_vm0, %v1003_v0  ;;  %v1262_v38 = vsel %vm1186_vm6, %v440_v21, %v447_v29  ;;  %v468_v44 = vshrl.u32 %v372_v35, 16  ;;  %v471_v46 = vshll.u32 %v372_v35, 16  ;;  %v373_v47 = vpack.c.bf16 %v285_v36, %v285_v36  ;;  %v188_v35 = vld [vmem:[%s1073_s21 + $0x80] sm:$0xff] }
  0x25   : > { %343 = vst.msk [vmem:[%s1035_s17 + $0x84] sm:$0xf] %vm308_vm0, %v1003_v0  ;;  %v453_v43 = vrot.slane %v451_v33, 7  ;;  %v1273_v48 = vrot.slane %v459_v40, 7  ;;  %v374_v50 = vpack.c.bf16 %v286_v42, %v286_v42  ;;  %v219_v51 = vmul.f32 %v1084_v1, %v183_v32  ;;  %v1326_v33 = vld [vmem:[%s1035_s17 + $0x48] sm:$0xf] }
  0x26   : > { %344 = vst.msk [vmem:[%s1035_s17 + $0x88] sm:$0xf] %vm308_vm0, %v1003_v0  ;;  %v470_v58 = vrot.slane %v468_v44, 7  ;;  %v476_v61 = vshrl.u32 %v373_v47, 16  ;;  %v479_v4 = vshll.u32 %v373_v47, 16  ;;  %v221_v42 = vmul.f32 %v1084_v1, %v185_v18 }
  0x27   : > { %346 = vst.msk [vmem:[%s1035_s17 + $0x90] sm:$0xf] %vm308_vm0, %v1003_v0  ;;  %v1283_v56 = vor.u32 %v454_v34, %v453_v43  ;;  %v457_v57 = vrot.slane %v453_v43, 4  ;;  %v464_v62 = vor.u32 %v462_v41, %v1273_v48  ;;  %v466_v2 = vrot.slane %v1273_v48, 4 }
  0x28   : > { %347 = vst.msk [vmem:[%s1035_s17 + $0x94] sm:$0xf] %vm308_vm0, %v1003_v0  ;;  %v485_v5 = vshrl.u32 %v374_v50, 16  ;;  %v1297_v10 = vor.u32 %v471_v46, %v470_v58  ;;  %v474_v13 = vrot.slane %v470_v58, 4  ;;  %v478_v14 = vrot.slane %v476_v61, 7 }
  0x29   : > { %349 = vst.msk [vmem:[%s1035_s17 + $0x9c] sm:$0xf] %vm308_vm0, %v1003_v0  ;;  %v747_v9 = vsel %vm1168_vm5, %v1283_v56, %v1265_v39  ;;  %v1311_v21 = vsel %vm1186_vm6, %v457_v57, %v464_v62  ;;  %v488_v24 = vshll.u32 %v374_v50, 16  ;;  %v255_v25 = vadd.f32 %v1099_v6, %v219_v51 }
  0x2a   : > { %350 = vst.msk [vmem:[%s1035_s17 + $0xa0] sm:$0xf] %vm308_vm0, %v1003_v0  ;;  %v1313_v23 = vrot.slane %v485_v5, 7  ;;  %v754_v29 = vsel %vm1168_vm5, %v1297_v10, %v1276_v49  ;;  %v481_v31 = vor.u32 %v479_v4, %v478_v14  ;;  %v483_v32 = vrot.slane %v478_v14, 4  ;;  %v190_v5 = vld [vmem:[%s1073_s21 + $0x90] sm:$0xff]  ;;  %v196_v10 = vld [vmem:[%s1073_s21 + $0xc0] sm:$0xff] }
  0x2b   : > { %352 = vst.msk [vmem:[%s1035_s17 + $0xa8] sm:$0xf] %vm308_vm0, %v1003_v0  ;;  %v256_v34 = vadd.f32 %v1099_v6, %v220_v52  ;;  %v287_v40 = vmax.f32 %v255_v25, 0.0  ;;  %v222_v47 = vmul.f32 %v1084_v1, %v186_v26  ;;  %v257_v50 = vadd.f32 %v1099_v6, %v221_v42  ;;  %v189_v52 = vld [vmem:[%s1073_s21 + $0x88] sm:$0xff] }
  0x2c   : > { %353 = vst.msk [vmem:[%s1035_s17 + $0xac] sm:$0xf] %vm308_vm0, %v1003_v0  ;;  %v1335_v37 = vor.u32 %v488_v24, %v1313_v23  ;;  %v491_v41 = vrot.slane %v1313_v23, 4  ;;  %v1350_v44 = vsel %vm1186_vm6, %v474_v13, %v481_v31  ;;  %v223_v51 = vmul.f32 %v1084_v1, %v187_v27  ;;  %v191_v13 = vld [vmem:[%s1073_s21 + $0x98] sm:$0xff] }
  0x2d   : > { %355 = vst.msk [vmem:[%s1035_s17 + $0xb4] sm:$0xf] %vm308_vm0, %v1003_v0  ;;  %v288_v46 = vmax.f32 %v256_v34, 0.0  ;;  %v258_v62 = vadd.f32 %v1099_v6, %v222_v47  ;;  %v224_v4 = vmul.f32 %v1084_v1, %v188_v35  ;;  %v289_v34 = vmax.f32 %v257_v50, 0.0 }
  0x2e   : > { %356 = vst.msk [vmem:[%s1035_s17 + $0xb8] sm:$0xf] %vm308_vm0, %v1003_v0  ;;  %v761_v54 = vsel %vm1168_vm5, %v1335_v37, %v1326_v33  ;;  %v259_v23 = vadd.f32 %v1099_v6, %v223_v51  ;;  %v226_v42 = vmul.f32 %v1084_v1, %v190_v5  ;;  %v232_v37 = vmul.f32 %v1084_v1, %v196_v10 }
  0x2f   : > { %358 = vst.msk [vmem:[%s1035_s17 + $0xc0] sm:$0xf] %vm308_vm0, %v1003_v0  ;;  %v376_v61 = vpack.c.bf16 %v288_v46, %v288_v46  ;;  %v227_v46 = vmul.f32 %v1084_v1, %v191_v13 }
  0x30   : > { %359 = vst.msk [vmem:[%s1035_s17 + $0xc4] sm:$0xf] %vm308_vm0, %v1003_v0  ;;  %v291_v50 = vmax.f32 %v259_v23, 0.0  ;;  %v262_v59 = vadd.f32 %v1099_v6, %v226_v42 }
  0x31   : > { %361 = vst.msk [vmem:[%s1035_s17 + $0xcc] sm:$0xf] %vm308_vm0, %v1003_v0  ;;  %v502_v25 = vshrl.u32 %v376_v61, 16  ;;  %v505_v26 = vshll.u32 %v376_v61, 16 }
  0x32   : > { %362 = vst.msk [vmem:[%s1035_s17 + $0xd0] sm:$0xf] %vm308_vm0, %v1003_v0 }
  0x33   : > { %315 = vst.msk [vmem:[%s1035_s17 + $0x14] sm:$0x1] %vm311_vm4, %v1003_v0 }
  0x34   : > { %312 = vst.msk [vmem:[%s1035_s17 + $0x8] sm:$0x1] %vm311_vm4, %v1003_v0 }
  0x35   : > { %318 = vst.msk [vmem:[%s1035_s17 + $0x20] sm:$0x1] %vm311_vm4, %v1003_v0 }
  0x36   : > { %321 = vst.msk [vmem:[%s1035_s17 + $0x2c] sm:$0x1] %vm311_vm4, %v1003_v0 }
  0x37   : > { %324 = vst.msk [vmem:[%s1035_s17 + $0x38] sm:$0x1] %vm311_vm4, %v1003_v0 }
  0x38   : > { %327 = vst.msk [vmem:[%s1035_s17 + $0x44] sm:$0x1] %vm311_vm4, %v1003_v0 }
  0x39   : > { %330 = vst.msk [vmem:[%s1035_s17 + $0x50] sm:$0x1] %vm311_vm4, %v1003_v0 }
  0x3a   : > { %333 = vst.msk [vmem:[%s1035_s17 + $0x5c] sm:$0x1] %vm311_vm4, %v1003_v0  ;;  %v903_v36 = vld [vmem:[%s1035_s17 + $0x14] sm:$0x1] }
  0x3b   : > { %336 = vst.msk [vmem:[%s1035_s17 + $0x68] sm:$0x1] %vm311_vm4, %v1003_v0  ;;  %v1346_v43 = vsel %vm1305_vm7, %v415_v3, %v903_v36  ;;  %v375_v3 = vpack.c.bf16 %v287_v40, %v287_v40  ;;  %v504_v36 = vrot.slane %v502_v25, 7  ;;  %v290_v40 = vmax.f32 %v258_v62, 0.0 }
  0x3c   : > { %339 = vst.msk [vmem:[%s1035_s17 + $0x74] sm:$0x1] %vm311_vm4, %v1003_v0  ;;  %v908_v48 = vld [vmem:[%s1035_s17 + $0x20] sm:$0x1] }
  0x3d   : > { %342 = vst.msk [vmem:[%s1035_s17 + $0x80] sm:$0x1] %vm311_vm4, %v1003_v0  ;;  %v1371_v57 = vsel %vm1305_vm7, %v432_v12, %v908_v48  ;;  %v913_v58 = vld [vmem:[%s1035_s17 + $0x2c] sm:$0x1]  ;;  %v493_v14 = vshrl.u32 %v375_v3, 16  ;;  %v496_v18 = vshll.u32 %v375_v3, 16  ;;  %v377_v3 = vpack.c.bf16 %v289_v34, %v289_v34 }
  0x3e   : > { %345 = vst.msk [vmem:[%s1035_s17 + $0x8c] sm:$0x1] %vm311_vm4, %v1003_v0  ;;  %v1385_v63 = vsel %vm1305_vm7, %v449_v30, %v913_v58  ;;  %v918_v12 = vld [vmem:[%s1035_s17 + $0x38] sm:$0x1]  ;;  %v260_v30 = vadd.f32 %v1099_v6, %v224_v4  ;;  %v1416_v48 = vld [vmem:[%s1035_s17 + $0x54] sm:$0xf]  ;;  %v1421_v51 = vor.u32 %v505_v26, %v504_v36  ;;  %v378_v58 = vpack.c.bf16 %v290_v40, %v290_v40 }
  0x3f   : > { %348 = vst.msk [vmem:[%s1035_s17 + $0x98] sm:$0x1] %vm311_vm4, %v1003_v0  ;;  %v1394_v24 = vsel %vm1305_vm7, %v466_v2, %v918_v12  ;;  %v923_v22 = vld [vmem:[%s1035_s17 + $0x44] sm:$0x1]  ;;  %v495_v31 = vrot.slane %v493_v14, 7  ;;  %v225_v2 = vmul.f32 %v1084_v1, %v189_v52  ;;  %v508_v52 = vrot.slane %v504_v36, 4 }
  0x40   : > { %351 = vst.msk [vmem:[%s1035_s17 + $0xa4] sm:$0x1] %vm311_vm4, %v1003_v0  ;;  %v1403_v27 = vsel %vm1305_vm7, %v483_v32, %v923_v22  ;;  %v928_v35 = vld [vmem:[%s1035_s17 + $0x50] sm:$0x1]  ;;  %v292_v61 = vmax.f32 %v260_v30, 0.0  ;;  %v510_v5 = vshrl.u32 %v377_v3, 16  ;;  %v379_v14 = vpack.c.bf16 %v291_v50, %v291_v50 }
  0x41   : > { %354 = vst.msk [vmem:[%s1035_s17 + $0xb0] sm:$0x1] %vm311_vm4, %v1003_v0  ;;  %v498_v32 = vor.u32 %v496_v18, %v495_v31  ;;  %v500_v47 = vrot.slane %v495_v31, 4  ;;  %v513_v13 = vshll.u32 %v377_v3, 16  ;;  %v522_v12 = vshll.u32 %v378_v58, 16 }
  0x42   : > { %357 = vst.msk [vmem:[%s1035_s17 + $0xbc] sm:$0x1] %vm311_vm4, %v1003_v0  ;;  %v512_v18 = vrot.slane %v510_v5, 7  ;;  %v933_v23 = vld [vmem:[%s1035_s17 + $0x5c] sm:$0x1]  ;;  %v380_v25 = vpack.c.bf16 %v292_v61, %v292_v61  ;;  %v261_v45 = vadd.f32 %v1099_v6, %v225_v2  ;;  %v527_v26 = vshrl.u32 %v379_v14, 16 }
  0x43   : > { %360 = vst.msk [vmem:[%s1035_s17 + $0xc8] sm:$0x1] %vm311_vm4, %v1003_v0  ;;  %v1428_v62 = vsel %vm1186_vm6, %v491_v41, %v498_v32  ;;  %v1432_v4 = vsel %vm1305_vm7, %v500_v47, %v928_v35  ;;  %v519_v41 = vshrl.u32 %v378_v58, 16  ;;  %v1449_v22 = vld [vmem:[%s1035_s17 + $0x60] sm:$0xf]  ;;  %v530_v30 = vshll.u32 %v379_v14, 16 }
  0x44   : > { %363 = vst.msk [vmem:[%s1035_s17 + $0xd4] sm:$0x1] %vm311_vm4, %v1003_v0  ;;  %v768_v0 = vsel %vm1168_vm5, %v1421_v51, %v1416_v48  ;;  %v263_v31 = vadd.f32 %v1099_v6, %v227_v46  ;;  %v517_v34 = vrot.slane %v512_v18, 4  ;;  %v536_v2 = vshrl.u32 %v380_v25, 16  ;;  %v1489_v3 = vld [vmem:[%s1035_s17 + $0x6c] sm:$0xf] }
  0x45   : > { %901 = vst [vmem:[%s1035_s17 + $0xc] sm:$0xf] %v724_v7  ;;  %v521_v7 = vrot.slane %v519_v41, 7  ;;  %v539_v35 = vshll.u32 %v380_v25, 16  ;;  %v529_v40 = vrot.slane %v527_v26, 7  ;;  %v293_v42 = vmax.f32 %v261_v45, 0.0 }
  0x46   : > { %902 = vst.msk [vmem:[%s1035_s17 + $0x10] sm:$0xf] %vm308_vm0, %v1212_v11  ;;  %v515_v11 = vor.u32 %v513_v13, %v512_v18  ;;  %v1475_v8 = vsel %vm1305_vm7, %v517_v34, %v933_v23  ;;  %v294_v46 = vmax.f32 %v262_v59, 0.0  ;;  %v193_v61 = vld [vmem:[%s1073_s21 + $0xa8] sm:$0xff]  ;;  %v194_v5 = vld [vmem:[%s1073_s21 + $0xb0] sm:$0xff]  ;;  %v195_v14 = vld [vmem:[%s1073_s21 + $0xb8] sm:$0xff] }
  0x47   : > { %904 = vst [vmem:[%s1035_s17 + $0x14] sm:$0x1] %v1346_v43  ;;  %v1465_v43 = vor.u32 %v522_v12, %v521_v7  ;;  %v525_v36 = vrot.slane %v521_v7, 4  ;;  %v532_v32 = vor.u32 %v530_v30, %v529_v40  ;;  %v534_v47 = vrot.slane %v529_v40, 4  ;;  %v943_v59 = vld [vmem:[%s1035_s17 + $0x74] sm:$0x1] }
  0x48   : > { %906 = vst [vmem:[%s1035_s17 + $0x18] sm:$0xf] %v733_v15  ;;  %v1471_v55 = vsel %vm1186_vm6, %v508_v52, %v515_v11  ;;  %v938_v15 = vld [vmem:[%s1035_s17 + $0x68] sm:$0x1]  ;;  %v381_v50 = vpack.c.bf16 %v293_v42, %v293_v42  ;;  %v192_v52 = vld [vmem:[%s1073_s21 + $0xa0] sm:$0xff]  ;;  %v382_v20 = vpack.c.bf16 %v294_v46, %v294_v46  ;;  %v229_v39 = vmul.f32 %v1084_v1, %v193_v61  ;;  %v198_v61 = vld [vmem:[%s1073_s21 + $0xd0] sm:$0xff] }
  0x49   : > { %907 = vst.msk [vmem:[%s1035_s17 + $0x1c] sm:$0xf] %vm308_vm0, %v1224_v16  ;;  %v538_v16 = vrot.slane %v536_v2, 7  ;;  %v1503_v13 = vsel %vm1186_vm6, %v525_v36, %v532_v32  ;;  %v1507_v41 = vsel %vm1305_vm7, %v534_v47, %v938_v15  ;;  %v228_v7 = vmul.f32 %v1084_v1, %v192_v52  ;;  %v1537_v34 = vld [vmem:[%s1035_s17 + $0x78] sm:$0xf] }
  0x4a   : > { %909 = vst [vmem:[%s1035_s17 + $0x20] sm:$0x1] %v1371_v57  ;;  %v775_v57 = vsel %vm1168_vm5, %v1465_v43, %v1449_v22  ;;  %v547_v12 = vshll.u32 %v381_v50, 16  ;;  %v553_v18 = vshrl.u32 %v382_v20, 16  ;;  %v556_v23 = vshll.u32 %v382_v20, 16 }
  0x4b   : > { %911 = vst [vmem:[%s1035_s17 + $0x24] sm:$0xf] %v740_v28  ;;  %v1495_v58 = vor.u32 %v539_v35, %v538_v16  ;;  %v542_v17 = vrot.slane %v538_v16, 4  ;;  %v295_v28 = vmax.f32 %v263_v31, 0.0  ;;  %v230_v56 = vmul.f32 %v1084_v1, %v194_v5  ;;  %v199_v5 = vld [vmem:[%s1073_s21 + $0xd8] sm:$0xff] }
  0x4c   : > { %912 = vst.msk [vmem:[%s1035_s17 + $0x28] sm:$0xf] %vm308_vm0, %v1262_v38  ;;  %v544_v38 = vshrl.u32 %v381_v50, 16  ;;  %v231_v31 = vmul.f32 %v1084_v1, %v195_v14  ;;  %v265_v2 = vadd.f32 %v1099_v6, %v229_v39  ;;  %v950_v48 = vld [vmem:[%s1035_s17 + $0x84] sm:$0xf] }
  0x4d   : > { %914 = vst [vmem:[%s1035_s17 + $0x2c] sm:$0x1] %v1385_v63  ;;  %v782_v63 = vsel %vm1168_vm5, %v1495_v58, %v1489_v3  ;;  %v383_v25 = vpack.c.bf16 %v295_v28, %v295_v28  ;;  %v266_v49 = vadd.f32 %v1099_v6, %v230_v56 }
  0x4e   : > { %916 = vst [vmem:[%s1035_s17 + $0x30] sm:$0xf] %v747_v9  ;;  %v546_v45 = vrot.slane %v544_v38, 7  ;;  %v555_v9 = vrot.slane %v553_v18, 7  ;;  %v297_v46 = vmax.f32 %v265_v2, 0.0  ;;  %v267_v33 = vadd.f32 %v1099_v6, %v231_v31  ;;  %v200_v2 = vld [vmem:[%s1073_s21 + $0xe0] sm:$0xff] }
  0x4f   : > { %917 = vst.msk [vmem:[%s1035_s17 + $0x34] sm:$0xf] %vm308_vm0, %v1311_v21  ;;  %v561_v26 = vshrl.u32 %v383_v25, 16  ;;  %v564_v30 = vshll.u32 %v383_v25, 16  ;;  %v298_v50 = vmax.f32 %v266_v49, 0.0 }
  0x50   : > { %919 = vst [vmem:[%s1035_s17 + $0x38] sm:$0x1] %v1394_v24  ;;  %v549_v21 = vor.u32 %v547_v12, %v546_v45  ;;  %v551_v11 = vrot.slane %v546_v45, 4  ;;  %v264_v24 = vadd.f32 %v1099_v6, %v228_v7  ;;  %v1544_v35 = vor.u32 %v556_v23, %v555_v9 }
  0x51   : > { %921 = vst [vmem:[%s1035_s17 + $0x3c] sm:$0xf] %v754_v29  ;;  %v559_v36 = vrot.slane %v555_v9, 4  ;;  %v563_v40 = vrot.slane %v561_v26, 7  ;;  %v197_v29 = vld [vmem:[%s1073_s21 + $0xc8] sm:$0xff]  ;;  %v386_v28 = vpack.c.bf16 %v298_v50, %v298_v50  ;;  %v299_v25 = vmax.f32 %v267_v33, 0.0 }
  0x52   : > { %922 = vst.msk [vmem:[%s1035_s17 + $0x40] sm:$0xf] %vm308_vm0, %v1350_v44  ;;  %v550_v42 = vsel %vm1186_vm6, %v542_v17, %v549_v21  ;;  %v1555_v15 = vsel %vm1305_vm7, %v551_v11, %v943_v59  ;;  %v948_v44 = vld [vmem:[%s1035_s17 + $0x80] sm:$0x1]  ;;  %v296_v16 = vmax.f32 %v264_v24, 0.0  ;;  %v385_v17 = vpack.c.bf16 %v297_v46, %v297_v46 }
  0x53   : > { %924 = vst [vmem:[%s1035_s17 + $0x44] sm:$0x1] %v1403_v27  ;;  %v789_v27 = vsel %vm1168_vm5, %v1544_v35, %v1537_v34  ;;  %v566_v32 = vor.u32 %v564_v30, %v563_v40  ;;  %v568_v47 = vrot.slane %v563_v40, 4  ;;  %v587_v18 = vshrl.u32 %v386_v28, 16  ;;  %v955_v11 = vld [vmem:[%s1035_s17 + $0x90] sm:$0xf] }
  0x54   : > { %926 = vst [vmem:[%s1035_s17 + $0x48] sm:$0xf] %v761_v54  ;;  %v384_v52 = vpack.c.bf16 %v296_v16, %v296_v16  ;;  %v578_v12 = vshrl.u32 %v385_v17, 16  ;;  %v581_v14 = vshll.u32 %v385_v17, 16  ;;  %v590_v23 = vshll.u32 %v386_v28, 16  ;;  %v202_v28 = vld [vmem:[%s1073_s21 + $0xf0] sm:$0xff] }
  0x55   : > { %927 = vst.msk [vmem:[%s1035_s17 + $0x4c] sm:$0xf] %vm308_vm0, %v1428_v62  ;;  %v567_v54 = vsel %vm1186_vm6, %v559_v36, %v566_v32  ;;  %v1579_v20 = vsel %vm1305_vm7, %v568_v47, %v948_v44  ;;  %v233_v62 = vmul.f32 %v1084_v1, %v197_v29  ;;  %v268_v45 = vadd.f32 %v1099_v6, %v232_v37  ;;  %v958_v29 = vld [vmem:[%s1035_s17 + $0x98] sm:$0x1] }
  0x56   : > { %929 = vst [vmem:[%s1035_s17 + $0x50] sm:$0x1] %v1432_v4  ;;  %v570_v4 = vshrl.u32 %v384_v52, 16  ;;  %v573_v38 = vshll.u32 %v384_v52, 16  ;;  %v580_v51 = vrot.slane %v578_v12, 7  ;;  %v234_v7 = vmul.f32 %v1084_v1, %v198_v61 }
  0x57   : > { %931 = vst [vmem:[%s1035_s17 + $0x54] sm:$0xf] %v768_v0  ;;  %v269_v0 = vadd.f32 %v1099_v6, %v233_v62  ;;  %v589_v39 = vrot.slane %v587_v18, 7  ;;  %v300_v56 = vmax.f32 %v268_v45, 0.0  ;;  %v235_v9 = vmul.f32 %v1084_v1, %v199_v5  ;;  %v963_v12 = vld [vmem:[%s1035_s17 + $0xa4] sm:$0x1] }
  0x58   : > { %932 = vst.msk [vmem:[%s1035_s17 + $0x58] sm:$0xf] %vm308_vm0, %v1471_v55  ;;  %v572_v59 = vrot.slane %v570_v4, 7  ;;  %v953_v55 = vld [vmem:[%s1035_s17 + $0x8c] sm:$0x1]  ;;  %v583_v31 = vor.u32 %v581_v14, %v580_v51  ;;  %v585_v21 = vrot.slane %v580_v51, 4  ;;  %v270_v58 = vadd.f32 %v1099_v6, %v234_v7 }
  0x59   : > { %934 = vst [vmem:[%s1035_s17 + $0x5c] sm:$0x1] %v1475_v8  ;;  %v387_v8 = vpack.c.bf16 %v299_v25, %v299_v25  ;;  %v592_v22 = vor.u32 %v590_v23, %v589_v39  ;;  %v593_v43 = vrot.slane %v589_v39, 4  ;;  %v388_v40 = vpack.c.bf16 %v300_v56, %v300_v56  ;;  %v965_v7 = vld [vmem:[%s1035_s17 + $0xa8] sm:$0xf] }
  0x5a   : > { %936 = vst [vmem:[%s1035_s17 + $0x60] sm:$0xf] %v775_v57  ;;  %v575_v26 = vor.u32 %v573_v38, %v572_v59  ;;  %v576_v30 = vrot.slane %v572_v59, 4  ;;  %v800_v36 = vsel %vm1305_vm7, %v585_v21, %v953_v55  ;;  %v301_v3 = vmax.f32 %v269_v0, 0.0 }
  0x5b   : > { %937 = vst.msk [vmem:[%s1035_s17 + $0x64] sm:$0xf] %vm308_vm0, %v1503_v13  ;;  %v595_v57 = vshrl.u32 %v387_v8, 16  ;;  %v598_v24 = vshll.u32 %v387_v8, 16  ;;  %v803_v49 = vsel %vm1168_vm5, %v592_v22, %v955_v11  ;;  %v604_v44 = vshrl.u32 %v388_v40, 16 }
  0x5c   : > { %939 = vst [vmem:[%s1035_s17 + $0x68] sm:$0x1] %v1507_v41  ;;  %v796_v13 = vsel %vm1168_vm5, %v575_v26, %v950_v48  ;;  %v584_v41 = vsel %vm1186_vm6, %v576_v30, %v583_v31  ;;  %v607_v16 = vshll.u32 %v388_v40, 16  ;;  %v271_v46 = vadd.f32 %v1099_v6, %v235_v9  ;;  %v203_v30 = vld [vmem:[%s1073_s21 + $0xf8] sm:$0xff]  ;;  %v968_v11 = vld [vmem:[%s1035_s17 + $0xb0] sm:$0x1] }
  0x5d   : > { %941 = vst [vmem:[%s1035_s17 + $0x6c] sm:$0xf] %v782_v63  ;;  %v597_v10 = vrot.slane %v595_v57, 7  ;;  %v201_v63 = vld [vmem:[%s1073_s21 + $0xe8] sm:$0xff]  ;;  %v302_v50 = vmax.f32 %v270_v58, 0.0  ;;  %v606_v52 = vrot.slane %v604_v44, 7  ;;  %v238_v23 = vmul.f32 %v1084_v1, %v202_v28 }
  0x5e   : > { %942 = vst.msk [vmem:[%s1035_s17 + $0x70] sm:$0xf] %vm308_vm0, %v550_v42  ;;  %v236_v42 = vmul.f32 %v1084_v1, %v200_v2  ;;  %v303_v17 = vmax.f32 %v271_v46, 0.0  ;;  %v237_v37 = vmul.f32 %v1084_v1, %v201_v63  ;;  %v970_v63 = vld [vmem:[%s1035_s17 + $0xb4] sm:$0xf] }
  0x5f   : > { %944 = vst [vmem:[%s1035_s17 + $0x74] sm:$0x1] %v1555_v15  ;;  %v600_v32 = vor.u32 %v598_v24, %v597_v10  ;;  %v602_v47 = vrot.slane %v597_v10, 4  ;;  %v389_v15 = vpack.c.bf16 %v301_v3, %v301_v3  ;;  %v609_v61 = vor.u32 %v607_v16, %v606_v52 }
  0x60   : > { %946 = vst [vmem:[%s1035_s17 + $0x78] sm:$0xf] %v789_v27  ;;  %v272_v33 = vadd.f32 %v1099_v6, %v236_v42  ;;  %v960_v27 = vld [vmem:[%s1035_s17 + $0x9c] sm:$0xf]  ;;  %v610_v5 = vrot.slane %v606_v52, 4  ;;  %v390_v4 = vpack.c.bf16 %v302_v50, %v302_v50  ;;  %v391_v38 = vpack.c.bf16 %v303_v17, %v303_v17 }
  0x61   : > { %947 = vst.msk [vmem:[%s1035_s17 + $0x7c] sm:$0xf] %vm308_vm0, %v567_v54  ;;  %v601_v34 = vsel %vm1186_vm6, %v593_v43, %v600_v32  ;;  %v807_v35 = vsel %vm1305_vm7, %v602_v47, %v958_v29  ;;  %v612_v54 = vshrl.u32 %v389_v15, 16  ;;  %v615_v62 = vshll.u32 %v389_v15, 16  ;;  %v973_v15 = vld [vmem:[%s1035_s17 + $0xbc] sm:$0x1] }
  0x62   : > { %949 = vst [vmem:[%s1035_s17 + $0x80] sm:$0x1] %v1579_v20  ;;  %v304_v14 = vmax.f32 %v272_v33, 0.0  ;;  %v273_v18 = vadd.f32 %v1099_v6, %v237_v37  ;;  %v810_v25 = vsel %vm1168_vm5, %v609_v61, %v960_v27  ;;  %v621_v45 = vshrl.u32 %v390_v4, 16  ;;  %v975_v27 = vld [vmem:[%s1035_s17 + $0xc0] sm:$0xf] }
  0x63   : > { %951 = vst [vmem:[%s1035_s17 + $0x84] sm:$0xf] %v796_v13  ;;  %v614_v20 = vrot.slane %v612_v54, 7  ;;  %v624_v59 = vshll.u32 %v390_v4, 16  ;;  %v629_v48 = vshrl.u32 %v391_v38, 16  ;;  %v632_v55 = vshll.u32 %v391_v38, 16 }
  0x64   : > { %952 = vst.msk [vmem:[%s1035_s17 + $0x88] sm:$0xf] %vm308_vm0, %v584_v41  ;;  %v392_v39 = vpack.c.bf16 %v304_v14, %v304_v14  ;;  %v623_v8 = vrot.slane %v621_v45, 7  ;;  %v305_v9 = vmax.f32 %v273_v18, 0.0  ;;  %v274_v26 = vadd.f32 %v1099_v6, %v238_v23 }
  0x65   : > { %954 = vst [vmem:[%s1035_s17 + $0x8c] sm:$0x1] %v800_v36  ;;  %v617_v51 = vor.u32 %v615_v62, %v614_v20  ;;  %v619_v0 = vrot.slane %v614_v20, 4  ;;  %v631_v56 = vrot.slane %v629_v48, 7  ;;  %v978_v20 = vld [vmem:[%s1035_s17 + $0xc8] sm:$0x1] }
  0x66   : > { %956 = vst [vmem:[%s1035_s17 + $0x90] sm:$0xf] %v803_v49  ;;  %v638_v22 = vshrl.u32 %v392_v39, 16  ;;  %v641_v43 = vshll.u32 %v392_v39, 16  ;;  %v626_v57 = vor.u32 %v624_v59, %v623_v8  ;;  %v627_v24 = vrot.slane %v623_v8, 4 }
  0x67   : > { %957 = vst.msk [vmem:[%s1035_s17 + $0x94] sm:$0xf] %vm308_vm0, %v601_v34  ;;  %v618_v31 = vsel %vm1186_vm6, %v610_v5, %v617_v51  ;;  %v814_v21 = vsel %vm1305_vm7, %v619_v0, %v963_v12  ;;  %v634_v2 = vor.u32 %v632_v55, %v631_v56  ;;  %v636_v13 = vrot.slane %v631_v56, 4 }
  0x68   : > { %959 = vst [vmem:[%s1035_s17 + $0x98] sm:$0x1] %v807_v35  ;;  %v640_v41 = vrot.slane %v638_v22, 7  ;;  %v393_v36 = vpack.c.bf16 %v305_v9, %v305_v9  ;;  %v306_v40 = vmax.f32 %v274_v26, 0.0  ;;  %v239_v49 = vmul.f32 %v1084_v1, %v203_v30 }
  0x69   : > { %961 = vst [vmem:[%s1035_s17 + $0x9c] sm:$0xf] %v810_v25  ;;  %v817_v10 = vsel %vm1168_vm5, %v626_v57, %v965_v7  ;;  %v635_v3 = vsel %vm1186_vm6, %v627_v24, %v634_v2  ;;  %v821_v58 = vsel %vm1305_vm7, %v636_v13, %v968_v11 }
  0x6a   : > { %962 = vst.msk [vmem:[%s1035_s17 + $0xa0] sm:$0xf] %vm308_vm0, %v618_v31  ;;  %v643_v29 = vor.u32 %v641_v43, %v640_v41  ;;  %v646_v44 = vshrl.u32 %v393_v36, 16  ;;  %v649_v16 = vshll.u32 %v393_v36, 16  ;;  %v394_v1 = vpack.c.bf16 %v306_v40, %v306_v40 }
  0x6b   : > { %964 = vst [vmem:[%s1035_s17 + $0xa4] sm:$0x1] %v814_v21  ;;  %v275_v46 = vadd.f32 %v1099_v6, %v239_v49  ;;  %v644_v32 = vrot.slane %v640_v41, 4 }
  0x6c   : > { %966 = vst [vmem:[%s1035_s17 + $0xa8] sm:$0xf] %v817_v10  ;;  %v824_v42 = vsel %vm1168_vm5, %v643_v29, %v970_v63  ;;  %v648_v47 = vrot.slane %v646_v44, 7  ;;  %v655_v50 = vshrl.u32 %v394_v1, 16  ;;  %v658_v52 = vshll.u32 %v394_v1, 16 }
  0x6d   : > { %967 = vst.msk [vmem:[%s1035_s17 + $0xac] sm:$0xf] %vm308_vm0, %v635_v3  ;;  %v307_v17 = vmax.f32 %v275_v46, 0.0 }
  0x6e   : > { %969 = vst [vmem:[%s1035_s17 + $0xb0] sm:$0x1] %v821_v58  ;;  %v651_v33 = vor.u32 %v649_v16, %v648_v47  ;;  %v653_v37 = vrot.slane %v648_v47, 4  ;;  %v657_v28 = vrot.slane %v655_v50, 7 }
  0x6f   : > { %971 = vst [vmem:[%s1035_s17 + $0xb4] sm:$0xf] %v824_v42  ;;  %v395_v6 = vpack.c.bf16 %v307_v17, %v307_v17 }
  0x70   : > { %v652_v34 = vsel %vm1186_vm6, %v644_v32, %v651_v33  ;;  %v828_v35 = vsel %vm1305_vm7, %v653_v37, %v973_v15  ;;  %v660_v54 = vor.u32 %v658_v52, %v657_v28  ;;  %v661_v4 = vrot.slane %v657_v28, 4 }
  0x71   : > { %972 = vst.msk [vmem:[%s1035_s17 + $0xb8] sm:$0xf] %vm308_vm0, %v652_v34  ;;  %v663_v62 = vshrl.u32 %v395_v6, 16  ;;  %v666_v61 = vshll.u32 %v395_v6, 16 }
  0x72   : > { %974 = vst [vmem:[%s1035_s17 + $0xbc] sm:$0x1] %v828_v35  ;;  %v831_v5 = vsel %vm1168_vm5, %v660_v54, %v975_v27 }
  0x73   : > { %v665_v38 = vrot.slane %v663_v62, 7  ;;  %976 = vst [vmem:[%s1035_s17 + $0xc0] sm:$0xf] %v831_v5 }
  0x75   : > { %v668_v12 = vor.u32 %v666_v61, %v665_v38  ;;  %v670_v14 = vrot.slane %v665_v38, 4 }
  0x77   : > { %v669_v18 = vsel %vm1186_vm6, %v661_v4, %v668_v12  ;;  %v835_v23 = vsel %vm1305_vm7, %v670_v14, %v978_v20 }
  0x78   : > { %977 = vst.msk [vmem:[%s1035_s17 + $0xc4] sm:$0xf] %vm308_vm0, %v669_v18 }
  0x79   : > { %979 = vst [vmem:[%s1035_s17 + $0xc8] sm:$0x1] %v835_v23 }
  0x7a PF: > { %s13_s12 = sadd.s32 1, %s1001_s12  }
  0x7b   : > { %p10_p4 = scmp.ge.s32.totalorder %s13_s12, 4  }
  0x7d   :  { %12 = sbr.rel (!%p10_p4) target bundleno = 1 (0x1), region = 63 }

// kernel: bottleneck_block.9
= control target key start
LH: loop header
LB: loop body
LE: loop exit
PB: predicated region body
PF: predicated region fallthrough
CT: control target
= control target key end

     0   :  { %s574_s21 = smov 0   ;;  %s753_s0 = inlined_call_operand.vmem [shape: f32[512,16], index: 0, kind: input, shape index: {}]   ;;  %s754_s1 = inlined_call_operand.vmem [shape: f32[512,16], index: 1, kind: input, shape index: {}]   ;;  %s755_s2 = inlined_call_operand.vmem [shape: f32[1,16], index: 2, kind: input, shape index: {}]   ;;  %s756_s3 = inlined_call_operand.vmem [shape: f32[1,16], index: 3, kind: input, shape index: {}]   ;;  %s757_s4 = inlined_call_operand.vmem [shape: f32[1,16], index: 4, kind: input, shape index: {}]   ;;  %s758_s5 = inlined_call_operand.vmem [shape: f32[1,16], index: 5, kind: input, shape index: {}]   ;;  %s759_s6 = inlined_call_operand.vmem [shape: f32[512,16], index: 6, kind: output, shape index: {}]  }
   0x1 LB: > { %s506_s22 = sadd.s32 4294967295, %s537_s21   ;;  %p510_p0 = scmp.ge.s32.totalorder %s537_s21, 1  ;;  %s537_s21 = sphi %s574_s21, %s16_s21  }
   0x2   : > { %p224_p1 = scmp.lt.s32.totalorder %s537_s21, 5 }
   0x4   : > { %p225_p2 = pnand %p510_p0, %p224_p1 }
   0x5   : > { %s511_s23 = sshll.u32 (!%p225_p2), %s506_s22, 4 }
   0x6   : > { %228 = sbr.rel (%p225_p2) target bundleno = 45 (0x2d), region = 44  ;;  %p260_p3 = scmp.lt.s32.totalorder (!%p225_p2), %s511_s23, 63 }
   0xb   : > { %s761_s23 = smov (!%p260_p3, %s511_s23), 63  ;;  %v585_v0 = vld [vmem:[%s755_s2] ss:$0 sm:$0xff]  ;;  %vm421_vm0 = vcmask 130048  }
   0xc   : > { %v590_v1 = vld [vmem:[%s757_s4] ss:$0 sm:$0xff]  ;;  %s592_s28 = sshll.u32 %s761_s23, 3 }
   0xd   : > { %s598_s7 = scalar_lea.vmem %s753_s0, %s592_s28  ;;  %s604_s10 = scalar_lea.vmem %s754_s1, %s592_s28  ;;  %v609_v2 = vld [vmem:[%s756_s3] ss:$0 sm:$0xff] }
   0xe   : > { %v614_v3 = vld [vmem:[%s758_s5] ss:$0 sm:$0xff]  ;;  %v278_v6 = vld [vmem:[%s598_s7 + $0x8] sm:$0xff]  ;;  %v279_v11 = vld [vmem:[%s598_s7 + $0x10] sm:$0xff]  ;;  %s649_s17 = scalar_lea.vmem %s759_s6, %s592_s28 }
   0xf   : > { %v277_v4 = vld [vmem:[%s598_s7] sm:$0xff]  ;;  %v298_v9 = vmul.f32 %v585_v0, %v278_v6  ;;  %v334_v10 = vld [vmem:[%s604_s10 + $0x8] sm:$0xff]  ;;  %v335_v12 = vld [vmem:[%s604_s10 + $0x10] sm:$0xff]  ;;  %v299_v14 = vmul.f32 %v585_v0, %v279_v11 }
  0x10   : > { %v333_v5 = vld [vmem:[%s604_s10] sm:$0xff]  ;;  %v297_v7 = vmul.f32 %v585_v0, %v277_v4  ;;  %v354_v13 = vmul.f32 %v590_v1, %v334_v10  ;;  %v355_v15 = vmul.f32 %v590_v1, %v335_v12  ;;  %v280_v16 = vld [vmem:[%s598_s7 + $0x18] sm:$0xff]  ;;  %v282_v24 = vld [vmem:[%s598_s7 + $0x28] sm:$0xff] }
  0x11   : > { %v353_v8 = vmul.f32 %v590_v1, %v333_v5  ;;  %v336_v17 = vld [vmem:[%s604_s10 + $0x18] sm:$0xff]  ;;  %v281_v18 = vld [vmem:[%s598_s7 + $0x20] sm:$0xff]  ;;  %v318_v21 = vadd.f32 %v609_v2, %v298_v9  ;;  %v300_v22 = vmul.f32 %v585_v0, %v280_v16  ;;  %v319_v26 = vadd.f32 %v609_v2, %v299_v14  ;;  %v338_v29 = vld [vmem:[%s604_s10 + $0x28] sm:$0xff] }
  0x12   : > { %v317_v19 = vadd.f32 %v609_v2, %v297_v7  ;;  %v337_v23 = vld [vmem:[%s604_s10 + $0x20] sm:$0xff]  ;;  %v374_v25 = vadd.f32 %v614_v3, %v354_v13  ;;  %v375_v27 = vadd.f32 %v614_v3, %v355_v15  ;;  %v356_v28 = vmul.f32 %v590_v1, %v336_v17  ;;  %v283_v38 = vld [vmem:[%s598_s7 + $0x30] sm:$0xff]  ;;  %v284_v44 = vld [vmem:[%s598_s7 + $0x38] sm:$0xff] }
  0x13   : > { %v373_v20 = vadd.f32 %v614_v3, %v353_v8  ;;  %v320_v31 = vadd.f32 %v609_v2, %v300_v22  ;;  %v301_v32 = vmul.f32 %v585_v0, %v281_v18  ;;  %v357_v33 = vmul.f32 %v590_v1, %v337_v23  ;;  %v339_v39 = vld [vmem:[%s604_s10 + $0x30] sm:$0xff]  ;;  %v340_v45 = vld [vmem:[%s604_s10 + $0x38] sm:$0xff]  ;;  %v285_v46 = vld [vmem:[%s598_s7 + $0x40] sm:$0xff] }
  0x14   : > { %v390_v34 = vadd.f32 %v374_v25, %v318_v21  ;;  %v391_v35 = vadd.f32 %v375_v27, %v319_v26  ;;  %v376_v36 = vadd.f32 %v614_v3, %v356_v28  ;;  %v302_v37 = vmul.f32 %v585_v0, %v282_v24  ;;  %v341_v55 = vld [vmem:[%s604_s10 + $0x40] sm:$0xff]  ;;  %v286_v60 = vld [vmem:[%s598_s7 + $0x48] sm:$0xff]  ;;  %v287_v6 = vld [vmem:[%s598_s7 + $0x50] sm:$0xff] }
  0x15   : > { %v389_v30 = vadd.f32 %v373_v20, %v317_v19  ;;  %v321_v41 = vadd.f32 %v609_v2, %v301_v32  ;;  %v377_v42 = vadd.f32 %v614_v3, %v357_v33  ;;  %v358_v43 = vmul.f32 %v590_v1, %v338_v29  ;;  %v342_v61 = vld [vmem:[%s604_s10 + $0x48] sm:$0xff]  ;;  %v343_v7 = vld [vmem:[%s604_s10 + $0x50] sm:$0xff]  ;;  %v288_v12 = vld [vmem:[%s598_s7 + $0x58] sm:$0xff] }
  0x16   : > { %v406_v47 = vmax.f32 %v390_v34, 0.0  ;;  %v407_v48 = vmax.f32 %v391_v35, 0.0  ;;  %v392_v49 = vadd.f32 %v376_v36, %v320_v31  ;;  %v322_v50 = vadd.f32 %v609_v2, %v302_v37  ;;  %v344_v21 = vld [vmem:[%s604_s10 + $0x58] sm:$0xff]  ;;  %v289_v22 = vld [vmem:[%s598_s7 + $0x60] sm:$0xff]  ;;  %v290_v28 = vld [vmem:[%s598_s7 + $0x68] sm:$0xff] }
  0x17   : > { %v405_v40 = vmax.f32 %v389_v30, 0.0  ;;  %v393_v51 = vadd.f32 %v377_v42, %v321_v41  ;;  %v378_v52 = vadd.f32 %v614_v3, %v358_v43  ;;  %v303_v53 = vmul.f32 %v585_v0, %v283_v38  ;;  %v345_v27 = vld [vmem:[%s604_s10 + $0x60] sm:$0xff]  ;;  %v346_v33 = vld [vmem:[%s604_s10 + $0x68] sm:$0xff]  ;;  %v291_v38 = vld [vmem:[%s598_s7 + $0x70] sm:$0xff] }
  0x18   : > { %v359_v54 = vmul.f32 %v590_v1, %v339_v39  ;;  %423 = vst.msk [vmem:[%s649_s17 + $0x8] sm:$0xff] %vm421_vm0, %v406_v47  ;;  %v408_v56 = vmax.f32 %v392_v49, 0.0  ;;  %v304_v57 = vmul.f32 %v585_v0, %v284_v44  ;;  %v360_v58 = vmul.f32 %v590_v1, %v340_v45  ;;  %v347_v43 = vld [vmem:[%s604_s10 + $0x70] sm:$0xff]  ;;  %v292_v44 = vld [vmem:[%s598_s7 + $0x78] sm:$0xff] }
  0x19   : > { %422 = vst.msk [vmem:[%s649_s17] sm:$0xff] %vm421_vm0, %v405_v40  ;;  %v305_v59 = vmul.f32 %v585_v0, %v285_v46  ;;  %v409_v62 = vmax.f32 %v393_v51, 0.0  ;;  %v394_v63 = vadd.f32 %v378_v52, %v322_v50  ;;  %v323_v4 = vadd.f32 %v609_v2, %v303_v53  ;;  %v348_v49 = vld [vmem:[%s604_s10 + $0x78] sm:$0xff] }
  0x1a   : > { %424 = vst.msk [vmem:[%s649_s17 + $0x10] sm:$0xff] %vm421_vm0, %v407_v48  ;;  %v379_v5 = vadd.f32 %v614_v3, %v359_v54  ;;  %v324_v8 = vadd.f32 %v609_v2, %v304_v57  ;;  %v380_v9 = vadd.f32 %v614_v3, %v360_v58  ;;  %v361_v11 = vmul.f32 %v590_v1, %v341_v55 }
  0x1b   : > { %425 = vst.msk [vmem:[%s649_s17 + $0x18] sm:$0xff] %vm421_vm0, %v408_v56  ;;  %v325_v10 = vadd.f32 %v609_v2, %v305_v59  ;;  %v410_v13 = vmax.f32 %v394_v63, 0.0  ;;  %v306_v15 = vmul.f32 %v585_v0, %v286_v60  ;;  %v362_v16 = vmul.f32 %v590_v1, %v342_v61 }
  0x1c   : > { %426 = vst.msk [vmem:[%s649_s17 + $0x20] sm:$0xff] %vm421_vm0, %v409_v62  ;;  %v395_v14 = vadd.f32 %v379_v5, %v323_v4  ;;  %v396_v17 = vadd.f32 %v380_v9, %v324_v8  ;;  %v381_v18 = vadd.f32 %v614_v3, %v361_v11  ;;  %v307_v19 = vmul.f32 %v585_v0, %v287_v6 }
  0x1d   : > { %v363_v20 = vmul.f32 %v590_v1, %v343_v7  ;;  %427 = vst.msk [vmem:[%s649_s17 + $0x28] sm:$0xff] %vm421_vm0, %v410_v13  ;;  %v326_v24 = vadd.f32 %v609_v2, %v306_v15  ;;  %v382_v25 = vadd.f32 %v614_v3, %v362_v16  ;;  %v308_v26 = vmul.f32 %v585_v0, %v288_v12 }
  0x1e   : > { %v411_v23 = vmax.f32 %v395_v14, 0.0  ;;  %v412_v29 = vmax.f32 %v396_v17, 0.0  ;;  %v397_v30 = vadd.f32 %v381_v18, %v325_v10  ;;  %v327_v31 = vadd.f32 %v609_v2, %v307_v19 }
  0x1f   : > { %v383_v32 = vadd.f32 %v614_v3, %v363_v20  ;;  %v398_v34 = vadd.f32 %v382_v25, %v326_v24  ;;  %v328_v35 = vadd.f32 %v609_v2, %v308_v26  ;;  %v364_v36 = vmul.f32 %v590_v1, %v344_v21 }
  0x20   : > { %428 = vst.msk [vmem:[%s649_s17 + $0x30] sm:$0xff] %vm421_vm0, %v411_v23  ;;  %v309_v37 = vmul.f32 %v585_v0, %v289_v22  ;;  %v413_v39 = vmax.f32 %v397_v30, 0.0  ;;  %v365_v41 = vmul.f32 %v590_v1, %v345_v27  ;;  %v310_v42 = vmul.f32 %v585_v0, %v290_v28 }
  0x21   : > { %429 = vst.msk [vmem:[%s649_s17 + $0x38] sm:$0xff] %vm421_vm0, %v412_v29  ;;  %v399_v40 = vadd.f32 %v383_v32, %v327_v31  ;;  %v414_v45 = vmax.f32 %v398_v34, 0.0  ;;  %v384_v46 = vadd.f32 %v614_v3, %v364_v36  ;;  %v366_v48 = vmul.f32 %v590_v1, %v346_v33 }
  0x22   : > { %v329_v47 = vadd.f32 %v609_v2, %v309_v37  ;;  %430 = vst.msk [vmem:[%s649_s17 + $0x40] sm:$0xff] %vm421_vm0, %v413_v39  ;;  %v385_v51 = vadd.f32 %v614_v3, %v365_v41  ;;  %v330_v52 = vadd.f32 %v609_v2, %v310_v42  ;;  %v311_v53 = vmul.f32 %v585_v0, %v291_v38 }
  0x23   : > { %v415_v50 = vmax.f32 %v399_v40, 0.0  ;;  %431 = vst.msk [vmem:[%s649_s17 + $0x48] sm:$0xff] %vm421_vm0, %v414_v45  ;;  %v400_v54 = vadd.f32 %v384_v46, %v328_v35  ;;  %v386_v55 = vadd.f32 %v614_v3, %v366_v48  ;;  %v367_v56 = vmul.f32 %v590_v1, %v347_v43 }
  0x24   : > { %v312_v57 = vmul.f32 %v585_v0, %v292_v44  ;;  %v401_v58 = vadd.f32 %v385_v51, %v329_v47  ;;  %v331_v59 = vadd.f32 %v609_v2, %v311_v53  ;;  %v368_v60 = vmul.f32 %v590_v1, %v348_v49 }
  0x25   : > { %432 = vst.msk [vmem:[%s649_s17 + $0x50] sm:$0xff] %vm421_vm0, %v415_v50  ;;  %v416_v61 = vmax.f32 %v400_v54, 0.0  ;;  %v402_v62 = vadd.f32 %v386_v55, %v330_v52  ;;  %v387_v63 = vadd.f32 %v614_v3, %v367_v56 }
  0x26   : > { %v332_v4 = vadd.f32 %v609_v2, %v312_v57  ;;  %v417_v5 = vmax.f32 %v401_v58, 0.0  ;;  %v388_v6 = vadd.f32 %v614_v3, %v368_v60 }
  0x27   : > { %433 = vst.msk [vmem:[%s649_s17 + $0x58] sm:$0xff] %vm421_vm0, %v416_v61  ;;  %v418_v0 = vmax.f32 %v402_v62, 0.0  ;;  %v403_v7 = vadd.f32 %v387_v63, %v331_v59 }
  0x28   : > { %434 = vst.msk [vmem:[%s649_s17 + $0x60] sm:$0xff] %vm421_vm0, %v417_v5  ;;  %v404_v8 = vadd.f32 %v388_v6, %v332_v4 }
  0x29   : > { %435 = vst.msk [vmem:[%s649_s17 + $0x68] sm:$0xff] %vm421_vm0, %v418_v0  ;;  %v419_v1 = vmax.f32 %v403_v7, 0.0 }
  0x2a   : > { %v420_v9 = vmax.f32 %v404_v8, 0.0 }
  0x2b   : > { %436 = vst.msk [vmem:[%s649_s17 + $0x70] sm:$0xff] %vm421_vm0, %v419_v1 }
  0x2c   : > { %437 = vst.msk [vmem:[%s649_s17 + $0x78] sm:$0xff] %vm421_vm0, %v420_v9 }
  0x2d PF: > { %s16_s21 = sadd.s32 1, %s537_s21  }
  0x2e   : > { %p13_p4 = scmp.ge.s32.totalorder %s16_s21, 6  }
  0x30   :  { %15 = sbr.rel (!%p13_p4) target bundleno = 1 (0x1), region = 77 }

// kernel: bottleneck_block.7
= control target key start
LH: loop header
LB: loop body
LE: loop exit
PB: predicated region body
PF: predicated region fallthrough
CT: control target
= control target key end

     0   :  { %s5123_s12 = smov 0   ;;  %s6587_s0 = inlined_call_operand.vmem [shape: bf16[2,18,18,4], index: 0, kind: input, shape index: {}]   ;;  %s6588_s1 = inlined_call_operand.vmem [shape: bf16[3,3,4,4], index: 1, kind: input, shape index: {}]   ;;  %s6589_s2 = inlined_call_operand.vmem [shape: f32[2,16,16,4], index: 2, kind: output, shape index: {0}]   ;;  %s6590_s3 = inlined_call_operand.vmem [shape: f32[2,8,4], index: 3, kind: output, shape index: {1}]  }
   0x1 LB: > { %s4387_s13 = sadd.s32 4294967295, %s5100_s12   ;;  %p4391_p0 = scmp.ge.s32.totalorder %s5100_s12, 1  ;;  %s5100_s12 = sphi %s5123_s12, %s14_s12  }
   0x2   : > { %p140_p1 = scmp.lt.s32.totalorder %s5100_s12, 3 }
   0x4   : > { %p141_p2 = pnand %p4391_p0, %p140_p1 }
   0x6   : > { %144 = sbr.rel (%p141_p2) target bundleno = 771 (0x303), region = 28 }
   0xb   : > { %v4396_v0 = vld [vmem:[%s6588_s1 + $0x2] sm:$0x3]  ;;  %vm718_vm0 = vcmask 1041408   ;;  %p168_p3 = scmp.lt.s32.totalorder %s4387_s13, 1  ;;  %v4509_v2 = vld [vmem:[%s6588_s1 + $0x4] sm:$0x3] }
   0xc   : > { %v720_v1 = vsel %vm718_vm0, %v4396_v0, 0  ;;  %v1293_v3 = vsel %vm718_vm0, %v4509_v2, 0  ;;  %v4558_v4 = vld [vmem:[%s6588_s1 + $0x6] sm:$0x3]  ;;  %v215_v5 = vld [vmem:[%s6588_s1] sm:$0x3] }
   0xd   : > { %5031 = vmatpush.bf16.msra.mxu1 %v720_v1  ;;  %5032 = vmatpush.bf16.msra.mxu2 %v720_v1  ;;  %s6602_s13 = smov (!%p168_p3, %s4387_s13), 1  ;;  %v4687_v6 = vld [vmem:[%s6588_s1 + $0x8] sm:$0x3]  ;;  %v1580_v7 = vsel %vm718_vm0, %v4558_v4, 0  ;;  %v940_v8 = vsel %vm718_vm0, %v215_v5, 0  ;;  %vm669_vm4 = vcmask 31744  }
   0xe   : > { %5033 = vmatpush.bf16.msra.mxu3 %v720_v1  ;;  %729 = vmatpush.bf16.msra.mxu0 %v720_v1  ;;  %s5034_s24 = smul.u32 216, %s6602_s13  ;;  %v2234_v9 = vsel %vm718_vm0, %v4687_v6, 0  ;;  %vm232_vm1 = vsmask.f32 3328  ;;  %vm233_vm2 = vsmask.f32 7440 }
   0xf   : > { %vm5169_vm3 = vmor %vm232_vm1, %vm233_vm2  ;;  %vm1079_vm5 = vcmask 1042432   ;;  %vm1080_vm6 = vcmask 1046532   ;;  %s4982_s9 = sshll.u32 %s6602_s13, 8  ;;  %s4395_s15 = sshll.u32 %s6602_s13, 3  ;;  %vm4299_vm8 = vcmask 29696   ;;  %vm4195_vm9 = vcmask 24576  }
  0x10   : > { %s5157_s27 = scalar_lea.vmem %s6587_s0, %s5034_s24  ;;  %vm5343_vm7 = vmor %vm1079_vm5, %vm1080_vm6  ;;  %s6205_s14 = scalar_lea.vmem %s6589_s2, %s4982_s9 }
  0x11   : > { %1302 = vmatpush.bf16.msrb.mxu2 %v1293_v3  ;;  %949 = vmatpush.bf16.msrb.mxu1 %v940_v8  ;;  %v191_v10 = vld [vmem:[%s5157_s27 + $0x30] sm:$0xf]  ;;  %v192_v11 = vld [vmem:[%s5157_s27 + $0x34] sm:$0xf]  ;;  %v220_v12 = vld [vmem:[%s5157_s27 + $0x38] sm:$0x1]  ;;  %s6569_s18 = scalar_lea.vmem %s6590_s3, %s4395_s15 }
  0x12   : > { %1589 = vmatpush.bf16.msrb.mxu3 %v1580_v7  ;;  %2243 = vmatpush.bf16.msrb.mxu0 %v2234_v9  ;;  %v332_v13 = vshrl.u32 %v191_v10, 16  ;;  %v335_v14 = vshll.u32 %v191_v10, 16  ;;  %v341_v15 = vshll.u32 %v192_v11, 16  ;;  %v345_v16 = vshrl.u32 %v192_v11, 16  ;;  %v199_v17 = vld [vmem:[%s5157_s27 + $0x60] sm:$0xf] }
  0x13   : > { %v351_v18 = vshll.u32 %v220_v12, 16  ;;  %v200_v19 = vld [vmem:[%s5157_s27 + $0x64] sm:$0xf]  ;;  %v224_v20 = vld [vmem:[%s5157_s27 + $0x68] sm:$0x1]  ;;  %v428_v21 = vshrl.u32 %v199_v17, 16 }
  0x14   : > { %v334_v22 = vrot.slane %v332_v13, 4  ;;  %v337_v23 = vrot.slane %v335_v14, 5  ;;  %v343_v24 = vrot.slane %v341_v15, 5  ;;  %v347_v25 = vrot.slane %v345_v16, 4  ;;  %v207_v26 = vld [vmem:[%s5157_s27 + $0x90] sm:$0xf] }
  0x15   : > { %v353_v27 = vrot.slane %v351_v18, 5  ;;  %v430_v28 = vrot.slane %v428_v21, 4  ;;  %v431_v29 = vshll.u32 %v199_v17, 16  ;;  %v437_v30 = vshll.u32 %v200_v19, 16  ;;  %v208_v35 = vld [vmem:[%s5157_s27 + $0x94] sm:$0xf] }
  0x16   : > { %v338_v31 = vor.u32 %v337_v23, %v334_v22  ;;  %v348_v32 = vor.u32 %v347_v25, %v343_v24  ;;  %v441_v33 = vshrl.u32 %v200_v19, 16  ;;  %v447_v34 = vshll.u32 %v224_v20, 16  ;;  %v228_v45 = vld [vmem:[%s5157_s27 + $0x98] sm:$0x1]  ;;  %v183_v61 = vld [vmem:[%s5157_s27] sm:$0xf] }
  0x17   : > { %v433_v37 = vrot.slane %v431_v29, 5  ;;  %v439_v38 = vrot.slane %v437_v30, 5  ;;  %v524_v39 = vshrl.u32 %v207_v26, 16  ;;  %v527_v47 = vshll.u32 %v207_v26, 16  ;;  %v5182_v1 = vld [vmem:[%s5157_s27 + $0x4] sm:$0xf] }
  0x18   : > { %v339_v40 = vrot.slane %v338_v31, 4  ;;  %v349_v41 = vrot.slane %v348_v32, 4  ;;  %v443_v42 = vrot.slane %v441_v33, 4  ;;  %v449_v43 = vrot.slane %v447_v34, 5  ;;  %v5185_v2 = vld [vmem:[%s5157_s27 + $0x8] sm:$0x1] }
  0x19   : > { %v434_v44 = vor.u32 %v433_v37, %v430_v28  ;;  %v526_v46 = vrot.slane %v524_v39, 4  ;;  %v533_v48 = vshll.u32 %v208_v35, 16  ;;  %v537_v52 = vshrl.u32 %v208_v35, 16  ;;  %v193_v19 = vld [vmem:[%s5157_s27 + $0x3c] sm:$0xf] }
  0x1a   : > { %v344_v49 = vsel %vm5169_vm3, %v339_v40, %v343_v24  ;;  %v354_v50 = vsel %vm5169_vm3, %v349_v41, %v353_v27  ;;  %v444_v51 = vor.u32 %v443_v42, %v439_v38  ;;  %v529_v56 = vrot.slane %v527_v47, 5  ;;  %v5197_v20 = vld [vmem:[%s5157_s27 + $0x40] sm:$0xf]  ;;  %v5202_v25 = vld [vmem:[%s5157_s27 + $0x44] sm:$0x1] }
  0x1b   : > { %v629_v53 = vunpack.c.l.b16 %v344_v49  ;;  %v630_v54 = vunpack.c.l.b16 %v354_v50  ;;  %v435_v55 = vrot.slane %v434_v44, 4  ;;  %v535_v58 = vrot.slane %v533_v48, 5  ;;  %v201_v33 = vld [vmem:[%s5157_s27 + $0x6c] sm:$0xf]  ;;  %v225_v47 = vld [vmem:[%s5157_s27 + $0x74] sm:$0x1] }
  0x1c   : > { %v445_v57 = vrot.slane %v444_v51, 4  ;;  %v539_v59 = vrot.slane %v537_v52, 4  ;;  %v543_v60 = vshll.u32 %v228_v45, 16  ;;  %v530_v0 = vor.u32 %v529_v56, %v526_v46 }
  0x1d   : > { %v657_v62 = vpack.c.b16 %v630_v54, %v629_v53  ;;  %v440_v63 = vsel %vm5169_vm3, %v435_v55, %v439_v38  ;;  %v236_v9 = vshrl.u32 %v183_v61, 16  ;;  %v239_v10 = vshll.u32 %v183_v61, 16  ;;  %v209_v61 = vld [vmem:[%s5157_s27 + $0x9c] sm:$0xf] }
  0x1e   : > { %v450_v3 = vsel %vm5169_vm3, %v445_v57, %v449_v43  ;;  %v637_v4 = vunpack.c.l.b16 %v440_v63  ;;  %v540_v5 = vor.u32 %v539_v59, %v535_v58  ;;  %v545_v6 = vrot.slane %v543_v60, 5  ;;  %v202_v43 = vld [vmem:[%s5157_s27 + $0x70] sm:$0xf] }
  0x1f   : > { %4401 = vmatmul.msk.bf16.vlgmr.msra.gmra.mxu1 %vm669_vm4, %v657_v62  ;;  %v638_v7 = vunpack.c.l.b16 %v450_v3  ;;  %v531_v8 = vrot.slane %v530_v0, 4  ;;  %v245_v12 = vshll.u32 %v5182_v1, 16  ;;  %v249_v13 = vshrl.u32 %v5182_v1, 16  ;;  %v210_v3 = vld [vmem:[%s5157_s27 + $0xa0] sm:$0xf] }
  0x20   : > { %v541_v11 = vrot.slane %v540_v5, 4  ;;  %v255_v14 = vshll.u32 %v5185_v2, 16  ;;  %v238_v17 = vrot.slane %v236_v9, 4  ;;  %v241_v18 = vrot.slane %v239_v10, 5 }
  0x21   : > { %v661_v15 = vpack.c.b16 %v638_v7, %v637_v4  ;;  %v536_v16 = vsel %vm5169_vm3, %v531_v8, %v535_v58  ;;  %v247_v23 = vrot.slane %v245_v12, 5  ;;  %v251_v24 = vrot.slane %v249_v13, 4  ;;  %v229_v8 = vld [vmem:[%s5157_s27 + $0xa4] sm:$0x1] }
  0x22   : > { %v546_v21 = vsel %vm5169_vm3, %v541_v11, %v545_v6  ;;  %v645_v22 = vunpack.c.l.b16 %v536_v16  ;;  %v242_v27 = vor.u32 %v241_v18, %v238_v17  ;;  %v257_v28 = vrot.slane %v255_v14, 5 }
  0x23   : > { %4405 = vmatmul.msk.bf16.vlgmr.msra.gmra.mxu2 %vm669_vm4, %v661_v15  ;;  %v646_v26 = vunpack.c.l.b16 %v546_v21  ;;  %v252_v29 = vor.u32 %v251_v24, %v247_v23  ;;  %v356_v30 = vshrl.u32 %v193_v19, 16  ;;  %v359_v31 = vshll.u32 %v193_v19, 16 }
  0x24   : > { %v365_v32 = vshll.u32 %v5197_v20, 16  ;;  %v243_v35 = vrot.slane %v242_v27, 4  ;;  %v369_v37 = vshrl.u32 %v5197_v20, 16  ;;  %v375_v38 = vshll.u32 %v5202_v25, 16 }
  0x25   : > { %v665_v34 = vpack.c.b16 %v646_v26, %v645_v22  ;;  %v253_v39 = vrot.slane %v252_v29, 4  ;;  %v358_v40 = vrot.slane %v356_v30, 4  ;;  %v361_v41 = vrot.slane %v359_v31, 5  ;;  %v185_v22 = vld [vmem:[%s5157_s27 + $0xc] sm:$0xf] }
  0x26   : > { %v367_v42 = vrot.slane %v365_v32, 5  ;;  %v248_v44 = vsel %vm5169_vm3, %v243_v35, %v247_v23  ;;  %v371_v45 = vrot.slane %v369_v37, 4  ;;  %v377_v46 = vrot.slane %v375_v38, 5  ;;  %v5231_v32 = vld [vmem:[%s5157_s27 + $0x14] sm:$0x1] }
  0x27   : > { %4409 = vmatmul.msk.bf16.vlgmr.msra.gmra.mxu3 %vm669_vm4, %v665_v34  ;;  %v452_v48 = vshrl.u32 %v201_v33, 16  ;;  %v258_v49 = vsel %vm5169_vm3, %v253_v39, %v257_v28  ;;  %v621_v50 = vunpack.c.l.b16 %v248_v44  ;;  %v362_v51 = vor.u32 %v361_v41, %v358_v40  ;;  %v5228_v28 = vld [vmem:[%s5157_s27 + $0x10] sm:$0xf] }
  0x28   : > { %v455_v52 = vshll.u32 %v201_v33, 16  ;;  %v622_v53 = vunpack.c.l.b16 %v258_v49  ;;  %v372_v54 = vor.u32 %v371_v45, %v367_v42  ;;  %v461_v56 = vshll.u32 %v202_v43, 16 }
  0x29   : > { %v454_v55 = vrot.slane %v452_v48, 4  ;;  %v363_v57 = vrot.slane %v362_v51, 4  ;;  %v465_v59 = vshrl.u32 %v202_v43, 16  ;;  %v471_v60 = vshll.u32 %v225_v47, 16  ;;  %v5241_v47 = vld [vmem:[%s5157_s27 + $0x4c] sm:$0xf] }
  0x2a   : > { %v457_v58 = vrot.slane %v455_v52, 5  ;;  %v653_v62 = vpack.c.b16 %v622_v53, %v621_v50  ;;  %v373_v63 = vrot.slane %v372_v54, 4  ;;  %v463_v0 = vrot.slane %v461_v56, 5  ;;  %v5246_v56 = vld [vmem:[%s5157_s27 + $0x50] sm:$0x1] }
  0x2b   : > { %v368_v4 = vsel %vm5169_vm3, %v363_v57, %v367_v42  ;;  %v467_v6 = vrot.slane %v465_v59, 4  ;;  %v473_v7 = vrot.slane %v471_v60, 5  ;;  %v548_v11 = vshrl.u32 %v209_v61, 16  ;;  %v195_v42 = vld [vmem:[%s5157_s27 + $0x48] sm:$0xf] }
  0x2c   : > { %v458_v5 = vor.u32 %v457_v58, %v454_v55  ;;  %4397 = vmatmul.msk.bf16.vlgmr.msra.gmra.mxu0 %vm669_vm4, %v653_v62  ;;  %v378_v9 = vsel %vm5169_vm3, %v373_v63, %v377_v46  ;;  %v631_v10 = vunpack.c.l.b16 %v368_v4  ;;  %v551_v12 = vshll.u32 %v209_v61, 16 }
  0x2d   : > { %v632_v13 = vunpack.c.l.b16 %v378_v9  ;;  %v468_v15 = vor.u32 %v467_v6, %v463_v0  ;;  %v557_v16 = vshll.u32 %v210_v3, 16  ;;  %v550_v17 = vrot.slane %v548_v11, 4 }
  0x2e   : > { %v459_v14 = vrot.slane %v458_v5, 4  ;;  %v553_v18 = vrot.slane %v551_v12, 5  ;;  %v561_v19 = vshrl.u32 %v210_v3, 16  ;;  %v567_v21 = vshll.u32 %v229_v8, 16  ;;  %v203_v3 = vld [vmem:[%s5157_s27 + $0x78] sm:$0xf] }
  0x2f   : > { %v658_v23 = vpack.c.b16 %v632_v13, %v631_v10  ;;  %v469_v26 = vrot.slane %v468_v15, 4  ;;  %v559_v27 = vrot.slane %v557_v16, 5  ;;  %v260_v35 = vshrl.u32 %v185_v22, 16  ;;  %v204_v8 = vld [vmem:[%s5157_s27 + $0x7c] sm:$0xf] }
  0x30   : > { %v464_v24 = vsel %vm5169_vm3, %v459_v14, %v463_v0  ;;  %v554_v30 = vor.u32 %v553_v18, %v550_v17  ;;  %v563_v31 = vrot.slane %v561_v19, 4  ;;  %v569_v34 = vrot.slane %v567_v21, 5  ;;  %v226_v16 = vld [vmem:[%s5157_s27 + $0x80] sm:$0x1] }
  0x31   : > { %v639_v29 = vunpack.c.l.b16 %v464_v24  ;;  %4402 = vmatmul.msk.bf16.gmra.mxu1 %vm669_vm4, %v658_v23  ;;  %v474_v33 = vsel %vm5169_vm3, %v469_v26, %v473_v7  ;;  %v263_v37 = vshll.u32 %v185_v22, 16  ;;  %v269_v41 = vshll.u32 %v5228_v28, 16 }
  0x32   : > { %v640_v38 = vunpack.c.l.b16 %v474_v33  ;;  %v555_v39 = vrot.slane %v554_v30, 4  ;;  %v564_v40 = vor.u32 %v563_v31, %v559_v27  ;;  %v262_v43 = vrot.slane %v260_v35, 4 }
  0x33   : > { %v265_v44 = vrot.slane %v263_v37, 5  ;;  %v273_v45 = vshrl.u32 %v5228_v28, 16  ;;  %v279_v46 = vshll.u32 %v5231_v32, 16  ;;  %v271_v51 = vrot.slane %v269_v41, 5 }
  0x34   : > { %v662_v48 = vpack.c.b16 %v640_v38, %v639_v29  ;;  %v560_v49 = vsel %vm5169_vm3, %v555_v39, %v559_v27  ;;  %v565_v50 = vrot.slane %v564_v40, 4  ;;  %v380_v58 = vshrl.u32 %v195_v42, 16  ;;  %v212_v39 = vld [vmem:[%s5157_s27 + $0xac] sm:$0xf]  ;;  %v230_v40 = vld [vmem:[%s5157_s27 + $0xb0] sm:$0x1] }
  0x35   : > { %v647_v52 = vunpack.c.l.b16 %v560_v49  ;;  %v266_v53 = vor.u32 %v265_v44, %v262_v43  ;;  %v275_v54 = vrot.slane %v273_v45, 4  ;;  %v281_v55 = vrot.slane %v279_v46, 5 }
  0x36   : > { %4406 = vmatmul.msk.bf16.gmra.mxu2 %vm669_vm4, %v662_v48  ;;  %v570_v57 = vsel %vm5169_vm3, %v565_v50, %v569_v34  ;;  %v383_v59 = vshll.u32 %v195_v42, 16  ;;  %v389_v60 = vshll.u32 %v5241_v47, 16  ;;  %v393_v0 = vshrl.u32 %v5241_v47, 16  ;;  %v211_v34 = vld [vmem:[%s5157_s27 + $0xa8] sm:$0xf] }
  0x37   : > { %v648_v61 = vunpack.c.l.b16 %v570_v57  ;;  %v267_v62 = vrot.slane %v266_v53, 4  ;;  %v276_v63 = vor.u32 %v275_v54, %v271_v51  ;;  %v382_v4 = vrot.slane %v380_v58, 4 }
  0x38   : > { %v385_v5 = vrot.slane %v383_v59, 5  ;;  %v391_v6 = vrot.slane %v389_v60, 5  ;;  %v399_v7 = vshll.u32 %v5246_v56, 16  ;;  %v395_v12 = vrot.slane %v393_v0, 4  ;;  %v187_v59 = vld [vmem:[%s5157_s27 + $0x18] sm:$0xf] }
  0x39   : > { %v666_v9 = vpack.c.b16 %v648_v61, %v647_v52  ;;  %v272_v10 = vsel %vm5169_vm3, %v267_v62, %v271_v51  ;;  %v277_v11 = vrot.slane %v276_v63, 4  ;;  %v476_v17 = vshrl.u32 %v203_v3, 16  ;;  %v5274_v63 = vld [vmem:[%s5157_s27 + $0x1c] sm:$0xf]  ;;  %v5277_v0 = vld [vmem:[%s5157_s27 + $0x20] sm:$0x1] }
  0x3a   : > { %v623_v13 = vunpack.c.l.b16 %v272_v10  ;;  %v386_v14 = vor.u32 %v385_v5, %v382_v4  ;;  %v401_v15 = vrot.slane %v399_v7, 5  ;;  %v396_v19 = vor.u32 %v395_v12, %v391_v6 }
  0x3b   : > { %4410 = vmatmul.msk.bf16.gmra.mxu3 %vm669_vm4, %v666_v9  ;;  %v282_v18 = vsel %vm5169_vm3, %v277_v11, %v281_v55  ;;  %v479_v21 = vshll.u32 %v203_v3, 16  ;;  %v485_v22 = vshll.u32 %v204_v8, 16  ;;  %v478_v26 = vrot.slane %v476_v17, 4 }
  0x3c   : > { %v624_v23 = vunpack.c.l.b16 %v282_v18  ;;  %v387_v24 = vrot.slane %v386_v14, 4  ;;  %v489_v27 = vshrl.u32 %v204_v8, 16  ;;  %v397_v29 = vrot.slane %v396_v19, 4 }
  0x3d   : > { %v481_v30 = vrot.slane %v479_v21, 5  ;;  %v487_v31 = vrot.slane %v485_v22, 5  ;;  %v495_v33 = vshll.u32 %v226_v16, 16  ;;  %v572_v48 = vshrl.u32 %v211_v34, 16  ;;  %v5287_v21 = vld [vmem:[%s5157_s27 + $0x58] sm:$0xf] }
  0x3e   : > { %v654_v35 = vpack.c.b16 %v624_v23, %v623_v13  ;;  %v392_v37 = vsel %vm5169_vm3, %v387_v24, %v391_v6  ;;  %v491_v38 = vrot.slane %v489_v27, 4  ;;  %v402_v41 = vsel %vm5169_vm3, %v397_v29, %v401_v15  ;;  %v197_v15 = vld [vmem:[%s5157_s27 + $0x54] sm:$0xf]  ;;  %v5292_v27 = vld [vmem:[%s5157_s27 + $0x5c] sm:$0x1] }
  0x3f   : > { %v633_v42 = vunpack.c.l.b16 %v392_v37  ;;  %v482_v43 = vor.u32 %v481_v30, %v478_v26  ;;  %v497_v44 = vrot.slane %v495_v33, 5  ;;  %v634_v45 = vunpack.c.l.b16 %v402_v41 }
  0x40   : > { %4398 = vmatmul.msk.bf16.gmra.mxu0 %vm669_vm4, %v654_v35  ;;  %v492_v46 = vor.u32 %v491_v38, %v487_v31  ;;  %v575_v49 = vshll.u32 %v211_v34, 16  ;;  %v581_v51 = vshll.u32 %v212_v39, 16  ;;  %v585_v52 = vshrl.u32 %v212_v39, 16  ;;  %v205_v39 = vld [vmem:[%s5157_s27 + $0x84] sm:$0xf] }
  0x41   : > { %v483_v50 = vrot.slane %v482_v43, 4  ;;  %v591_v53 = vshll.u32 %v230_v40, 16  ;;  %v659_v54 = vpack.c.b16 %v634_v45, %v633_v42  ;;  %v574_v57 = vrot.slane %v572_v48, 4 }
  0x42   : > { %v493_v55 = vrot.slane %v492_v46, 4  ;;  %v577_v58 = vrot.slane %v575_v49, 5  ;;  %v583_v61 = vrot.slane %v581_v51, 5  ;;  %v587_v62 = vrot.slane %v585_v52, 4  ;;  %v206_v49 = vld [vmem:[%s5157_s27 + $0x88] sm:$0xf] }
  0x43   : > { %v488_v60 = vsel %vm5169_vm3, %v483_v50, %v487_v31  ;;  %4403 = vmatmul.msk.bf16.gmra.mxu1 %vm669_vm4, %v659_v54  ;;  %v593_v6 = vrot.slane %v591_v53, 5  ;;  %v284_v9 = vshrl.u32 %v187_v59, 16  ;;  %v287_v10 = vshll.u32 %v187_v59, 16  ;;  %v227_v53 = vld [vmem:[%s5157_s27 + $0x8c] sm:$0x1] }
  0x44   : > { %v498_v3 = vsel %vm5169_vm3, %v493_v55, %v497_v44  ;;  %v641_v4 = vunpack.c.l.b16 %v488_v60  ;;  %v578_v5 = vor.u32 %v577_v58, %v574_v57  ;;  %v588_v8 = vor.u32 %v587_v62, %v583_v61 }
  0x45   : > { %v642_v7 = vunpack.c.l.b16 %v498_v3  ;;  %v293_v12 = vshll.u32 %v5274_v63, 16  ;;  %v297_v13 = vshrl.u32 %v5274_v63, 16  ;;  %v303_v14 = vshll.u32 %v5277_v0, 16 }
  0x46   : > { %v579_v11 = vrot.slane %v578_v5, 4  ;;  %v589_v17 = vrot.slane %v588_v8, 4  ;;  %v286_v18 = vrot.slane %v284_v9, 4  ;;  %v289_v19 = vrot.slane %v287_v10, 5  ;;  %v213_v8 = vld [vmem:[%s5157_s27 + $0xb4] sm:$0xf] }
  0x47   : > { %v663_v16 = vpack.c.b16 %v642_v7, %v641_v4  ;;  %v295_v23 = vrot.slane %v293_v12, 5  ;;  %v299_v24 = vrot.slane %v297_v13, 4  ;;  %v305_v26 = vrot.slane %v303_v14, 5  ;;  %v214_v12 = vld [vmem:[%s5157_s27 + $0xb8] sm:$0xf] }
  0x48   : > { %v584_v22 = vsel %vm5169_vm3, %v579_v11, %v583_v61  ;;  %v594_v29 = vsel %vm5169_vm3, %v589_v17, %v593_v6  ;;  %v290_v31 = vor.u32 %v289_v19, %v286_v18  ;;  %v404_v33 = vshrl.u32 %v197_v15, 16  ;;  %v231_v17 = vld [vmem:[%s5157_s27 + $0xbc] sm:$0x1] }
  0x49   : > { %4407 = vmatmul.msk.bf16.gmra.mxu2 %vm669_vm4, %v663_v16  ;;  %v649_v30 = vunpack.c.l.b16 %v584_v22  ;;  %v650_v34 = vunpack.c.l.b16 %v594_v29  ;;  %v300_v35 = vor.u32 %v299_v24, %v295_v23  ;;  %v407_v37 = vshll.u32 %v197_v15, 16 }
  0x4a   : > { %v413_v38 = vshll.u32 %v5287_v21, 16  ;;  %v291_v40 = vrot.slane %v290_v31, 4  ;;  %v406_v41 = vrot.slane %v404_v33, 4  ;;  %v417_v42 = vshrl.u32 %v5287_v21, 16 }
  0x4b   : > { %v423_v43 = vshll.u32 %v5292_v27, 16  ;;  %v667_v44 = vpack.c.b16 %v650_v34, %v649_v30  ;;  %v301_v45 = vrot.slane %v300_v35, 4  ;;  %v409_v46 = vrot.slane %v407_v37, 5  ;;  %v189_v37 = vld [vmem:[%s5157_s27 + $0x24] sm:$0xf] }
  0x4c   : > { %v415_v48 = vrot.slane %v413_v38, 5  ;;  %v296_v50 = vsel %vm5169_vm3, %v291_v40, %v295_v23  ;;  %v419_v51 = vrot.slane %v417_v42, 4  ;;  %v500_v54 = vshrl.u32 %v205_v39, 16  ;;  %v5320_v42 = vld [vmem:[%s5157_s27 + $0x28] sm:$0xf] }
  0x4d   : > { %v425_v52 = vrot.slane %v423_v43, 5  ;;  %4411 = vmatmul.msk.bf16.gmra.mxu3 %vm669_vm4, %v667_v44  ;;  %v306_v55 = vsel %vm5169_vm3, %v301_v45, %v305_v26  ;;  %v625_v57 = vunpack.c.l.b16 %v296_v50  ;;  %v410_v58 = vor.u32 %v409_v46, %v406_v41 }
  0x4e   : > { %v503_v59 = vshll.u32 %v205_v39, 16  ;;  %v626_v60 = vunpack.c.l.b16 %v306_v55  ;;  %v420_v61 = vor.u32 %v419_v51, %v415_v48  ;;  %v502_v62 = vrot.slane %v500_v54, 4 }
  0x4f   : > { %v509_v3 = vshll.u32 %v206_v49, 16  ;;  %v411_v4 = vrot.slane %v410_v58, 4  ;;  %v513_v6 = vshrl.u32 %v206_v49, 16  ;;  %v519_v7 = vshll.u32 %v227_v53, 16 }
  0x50   : > { %v505_v5 = vrot.slane %v503_v59, 5  ;;  %v655_v9 = vpack.c.b16 %v626_v60, %v625_v57  ;;  %v421_v10 = vrot.slane %v420_v61, 4  ;;  %v596_v22 = vshrl.u32 %v213_v8, 16  ;;  %v1031_v61 = vld [vmem:[%s5157_s27] sm:$0xe] }
  0x51   : > { %v511_v11 = vrot.slane %v509_v3, 5  ;;  %v416_v13 = vsel %vm5169_vm3, %v411_v4, %v415_v48  ;;  %v515_v15 = vrot.slane %v513_v6, 4  ;;  %v521_v16 = vrot.slane %v519_v7, 5  ;;  %v5324_v48 = vld [vmem:[%s5157_s27 + $0x2c] sm:$0x1] }
  0x52   : > { %v506_v14 = vor.u32 %v505_v5, %v502_v62  ;;  %4399 = vmatmul.msk.bf16.gmra.mxu0 %vm669_vm4, %v655_v9  ;;  %v426_v18 = vsel %vm5169_vm3, %v421_v10, %v425_v52  ;;  %v635_v19 = vunpack.c.l.b16 %v416_v13  ;;  %v599_v23 = vshll.u32 %v213_v8, 16  ;;  %v4639_v6 = vld [vmem:[%s5157_s27 + $0xc] sm:$0xf] }
  0x53   : > { %v636_v24 = vunpack.c.l.b16 %v426_v18  ;;  %v516_v29 = vor.u32 %v515_v15, %v511_v11  ;;  %v605_v30 = vshll.u32 %v214_v12, 16  ;;  %v598_v31 = vrot.slane %v596_v22, 4 }
  0x54   : > { %v507_v26 = vrot.slane %v506_v14, 4  ;;  %v601_v33 = vrot.slane %v599_v23, 5  ;;  %v609_v34 = vshrl.u32 %v214_v12, 16  ;;  %v615_v35 = vshll.u32 %v231_v17, 16  ;;  %v4640_v12 = vld [vmem:[%s5157_s27 + $0x10] sm:$0xf] }
  0x55   : > { %v660_v38 = vpack.c.b16 %v636_v24, %v635_v19  ;;  %v517_v40 = vrot.slane %v516_v29, 4  ;;  %v607_v41 = vrot.slane %v605_v30, 5  ;;  %v1087_v43 = vrot.slane %v5185_v2, 5 }
  0x56   : > { %v512_v39 = vsel %vm5169_vm3, %v507_v26, %v511_v11  ;;  %v602_v45 = vor.u32 %v601_v33, %v598_v31  ;;  %v611_v46 = vrot.slane %v609_v34, 4  ;;  %v617_v50 = vrot.slane %v615_v35, 5  ;;  %v4785_v11 = vld [vmem:[%s6588_s1 + $0xc] sm:$0x3] }
  0x57   : > { %v643_v44 = vunpack.c.l.b16 %v512_v39  ;;  %4404 = vmatmul.msk.bf16.gmra.mxu1 %vm669_vm4, %v660_v38  ;;  %v522_v49 = vsel %vm5169_vm3, %v517_v40, %v521_v16  ;;  %v308_v51 = vshrl.u32 %v189_v37, 16  ;;  %v311_v52 = vshll.u32 %v189_v37, 16  ;;  %v4641_v38 = vld [vmem:[%s5157_s27 + $0x14] sm:$0x1] }
  0x58   : > { %v644_v53 = vunpack.c.l.b16 %v522_v49  ;;  %v603_v54 = vrot.slane %v602_v45, 4  ;;  %v612_v55 = vor.u32 %v611_v46, %v607_v41  ;;  %v317_v2 = vshll.u32 %v5320_v42, 16  ;;  %v4914_v45 = vld [vmem:[%s6588_s1 + $0xe] sm:$0x3] }
  0x59   : > { %v310_v57 = vrot.slane %v308_v51, 4  ;;  %v313_v58 = vrot.slane %v311_v52, 5  ;;  %v321_v59 = vshrl.u32 %v5320_v42, 16  ;;  %v327_v60 = vshll.u32 %v5324_v48, 16  ;;  %v4983_v51 = vld [vmem:[%s5157_s27] sm:$0xff] }
  0x5a   : > { %v664_v62 = vpack.c.b16 %v644_v53, %v643_v44  ;;  %v608_v3 = vsel %vm5169_vm3, %v603_v54, %v607_v41  ;;  %v613_v4 = vrot.slane %v612_v55, 4  ;;  %v319_v5 = vrot.slane %v317_v2, 5  ;;  %v4963_v2 = vld [vmem:[%s6588_s1 + $0x10] sm:$0x3] }
  0x5b   : > { %v651_v7 = vunpack.c.l.b16 %v608_v3  ;;  %v314_v8 = vor.u32 %v313_v58, %v310_v57  ;;  %v323_v9 = vrot.slane %v321_v59, 4  ;;  %v329_v10 = vrot.slane %v327_v60, 5 }
  0x5c   : > { %4408 = vmatmul.msk.bf16.gmra.mxu2 %vm669_vm4, %v664_v62  ;;  %v618_v13 = vsel %vm5169_vm3, %v613_v4, %v617_v50  ;;  %v4493_v14 = vrot.slane %v1031_v61, 9  ;;  %v1084_v19 = vrot.slane %v5182_v1, 5  ;;  %v2919_v22 = vsel %vm718_vm0, %v4785_v11, 0  ;;  %v4736_v50 = vld [vmem:[%s6588_s1 + $0xa] sm:$0x3] }
  0x5d   : > { %v652_v15 = vunpack.c.l.b16 %v618_v13  ;;  %v315_v16 = vrot.slane %v314_v8, 4  ;;  %v324_v17 = vor.u32 %v323_v9, %v319_v5  ;;  %v1752_v23 = vshrl.u32 %v4639_v6, 16  ;;  %2928 = vmatpush.bf16.msra.mxu2 %v2919_v22  ;;  %v1032_v8 = vld [vmem:[%s5157_s27 + $0xc] sm:$0xe] }
  0x5e   : > { %v1755_v24 = vshll.u32 %v4639_v6, 16  ;;  %v1761_v26 = vshll.u32 %v4640_v12, 16  ;;  %v1085_v33 = vsel %vm5343_vm7, %v4493_v14, %v1084_v19  ;;  %v1086_v35 = vrot.slane %v1084_v19, 4  ;;  %v4643_v6 = vld [vmem:[%s5157_s27 + $0x1c] sm:$0xf] }
  0x5f   : > { %v668_v29 = vpack.c.b16 %v652_v15, %v651_v7  ;;  %v320_v30 = vsel %vm5169_vm3, %v315_v16, %v319_v5  ;;  %v325_v31 = vrot.slane %v324_v17, 4  ;;  %v1196_v37 = vunpack.c.l.b16 %v1085_v33  ;;  %v4642_v5 = vld [vmem:[%s5157_s27 + $0x18] sm:$0xf]  ;;  %v4999_v15 = vld [vmem:[%s5157_s27 + $0xc] sm:$0xff] }
  0x60   : > { %v627_v34 = vunpack.c.l.b16 %v320_v30  ;;  %v1754_v1 = vrot.slane %v1752_v23, 4  ;;  %v1757_v40 = vrot.slane %v1755_v24, 5  ;;  %v1763_v41 = vrot.slane %v1761_v26, 5  ;;  %v4644_v30 = vld [vmem:[%s5157_s27 + $0x20] sm:$0x1] }
  0x61   : > { %4412 = vmatmul.msk.bf16.gmra.mxu3 %vm669_vm4, %v668_v29  ;;  %v330_v39 = vsel %vm5169_vm3, %v325_v31, %v329_v10  ;;  %v1765_v44 = vshrl.u32 %v4640_v12, 16  ;;  %v1088_v49 = vsel %vm5343_vm7, %v1086_v35, %v1087_v43  ;;  %v1771_v55 = vshll.u32 %v4641_v38, 16  ;;  %v4984_v35 = vld [vmem:[%s5157_s27 + $0xc] sm:$0xff] }
  0x62   : > { %v628_v46 = vunpack.c.l.b16 %v330_v39  ;;  %v1197_v52 = vunpack.c.l.b16 %v1088_v49  ;;  %v1758_v53 = vor.u32 %v1757_v40, %v1754_v1  ;;  %v3573_v58 = vsel %vm718_vm0, %v4914_v45, 0 }
  0x63   : > { %v1767_v54 = vrot.slane %v1765_v44, 4  ;;  %3582 = vmatpush.bf16.msra.mxu3 %v3573_v58  ;;  %v2632_v60 = vsel %vm718_vm0, %v4736_v50, 0  ;;  %v3971_v61 = vsel %vm718_vm0, %v4963_v2, 0  ;;  %v1773_v4 = vrot.slane %v1771_v55, 5  ;;  %v1033_v50 = vld [vmem:[%s5157_s27 + $0x18] sm:$0xe] }
  0x64   : > { %v656_v57 = vpack.c.b16 %v628_v46, %v627_v34  ;;  %v1228_v43 = vpack.c.b16 %v1197_v52, %v1196_v37  ;;  %2641 = vmatpush.bf16.msra.mxu1 %v2632_v60  ;;  %v1759_v62 = vrot.slane %v1758_v53, 4  ;;  %3980 = vmatpush.bf16.msra.mxu0 %v3971_v61  ;;  %v1091_v7 = vrot.slane %v5228_v28, 5  ;;  %v4646_v46 = vld [vmem:[%s5157_s27 + $0x28] sm:$0xf] }
  0x65   : > { %v1768_v59 = vor.u32 %v1767_v54, %v1763_v41  ;;  %v1776_v9 = vshrl.u32 %v4642_v5, 16  ;;  %v1779_v10 = vshll.u32 %v4642_v5, 16  ;;  %v1785_v13 = vshll.u32 %v4643_v6, 16 }
  0x66   : > { %4400 = vmatmul.msk.bf16.gmra.mxu0 %vm669_vm4, %v656_v57  ;;  %v1764_v11 = vsel %vm5169_vm3, %v1759_v62, %v1763_v41  ;;  %v1789_v14 = vshrl.u32 %v4643_v6, 16  ;;  %v4494_v16 = vrot.slane %v1032_v8, 9  ;;  %v1093_v17 = vrot.slane %v1091_v7, 4  ;;  %v4645_v41 = vld [vmem:[%s5157_s27 + $0x24] sm:$0xf] }
  0x67   : > { %4477 = vmatmul.msk.bf16.vlgmr.msrb.gmra.mxu1 %vm669_vm4, %v4983_v51  ;;  %v1769_v3 = vrot.slane %v1768_v59, 4  ;;  %v1094_v28 = vrot.slane %v5231_v32, 5  ;;  %v2137_v19 = vunpack.c.l.b16 %v1764_v11  ;;  %v1778_v23 = vrot.slane %v1776_v9, 4  ;;  %v4647_v6 = vld [vmem:[%s5157_s27 + $0x2c] sm:$0x1] }
  0x68   : > { %v1781_v24 = vrot.slane %v1779_v10, 5  ;;  %v1787_v26 = vrot.slane %v1785_v13, 5  ;;  %v1791_v29 = vrot.slane %v1789_v14, 4  ;;  %v1092_v31 = vsel %vm5343_vm7, %v4494_v16, %v1091_v7 }
  0x69   : > { %v1774_v12 = vsel %vm5169_vm3, %v1769_v3, %v1773_v4  ;;  %v1095_v33 = vsel %vm5343_vm7, %v1093_v17, %v1094_v28  ;;  %v1795_v38 = vshll.u32 %v4644_v30, 16  ;;  %v1198_v1 = vunpack.c.l.b16 %v1092_v31 }
  0x6a   : > { %v2138_v22 = vunpack.c.l.b16 %v1774_v12  ;;  %v1782_v32 = vor.u32 %v1781_v24, %v1778_v23  ;;  %v1792_v37 = vor.u32 %v1791_v29, %v1787_v26  ;;  %v1199_v39 = vunpack.c.l.b16 %v1095_v33  ;;  %v4985_v12 = vld [vmem:[%s5157_s27 + $0x18] sm:$0xff]  ;;  %v1034_v29 = vld [vmem:[%s5157_s27 + $0x24] sm:$0xe] }
  0x6b   : > { %v1797_v45 = vrot.slane %v1795_v38, 5  ;;  %v1098_v51 = vrot.slane %v5274_v63, 5  ;;  %v1800_v52 = vshrl.u32 %v4645_v41, 16  ;;  %v1803_v54 = vshll.u32 %v4645_v41, 16 }
  0x6c   : > { %4510 = vmatmul.msk.bf16.vlgmr.msrb.gmra.mxu2 %vm669_vm4, %v1228_v43  ;;  %v2169_v34 = vpack.c.b16 %v2138_v22, %v2137_v19  ;;  %v1783_v40 = vrot.slane %v1782_v32, 4  ;;  %v1793_v44 = vrot.slane %v1792_v37, 4  ;;  %v1229_v49 = vpack.c.b16 %v1199_v39, %v1198_v1  ;;  %v5000_v43 = vld [vmem:[%s5157_s27 + $0x18] sm:$0xff]  ;;  %v4648_v19 = vld [vmem:[%s5157_s27 + $0x30] sm:$0xf]  ;;  %v5001_v32 = vld [vmem:[%s5157_s27 + $0x24] sm:$0xff] }
  0x6d   : > { %v1809_v55 = vshll.u32 %v4646_v46, 16  ;;  %v1813_v2 = vshrl.u32 %v4646_v46, 16  ;;  %v4495_v58 = vrot.slane %v1033_v50, 9  ;;  %v1100_v60 = vrot.slane %v1098_v51, 4  ;;  %v4649_v22 = vld [vmem:[%s5157_s27 + $0x34] sm:$0xf] }
  0x6e   : > { %v1788_v53 = vsel %vm5169_vm3, %v1783_v40, %v1787_v26  ;;  %v1798_v57 = vsel %vm5169_vm3, %v1793_v44, %v1797_v45  ;;  %v1101_v63 = vrot.slane %v5277_v0, 5  ;;  %v1802_v61 = vrot.slane %v1800_v52, 4  ;;  %v4650_v45 = vld [vmem:[%s5157_s27 + $0x38] sm:$0x1] }
  0x6f   : > { %v2139_v59 = vunpack.c.l.b16 %v1788_v53  ;;  %v2140_v62 = vunpack.c.l.b16 %v1798_v57  ;;  %v1805_v3 = vrot.slane %v1803_v54, 5  ;;  %v1811_v4 = vrot.slane %v1809_v55, 5  ;;  %v4652_v57 = vld [vmem:[%s5157_s27 + $0x40] sm:$0xf] }
  0x70   : > { %v1815_v5 = vrot.slane %v1813_v2, 4  ;;  %v1099_v7 = vsel %vm5343_vm7, %v4495_v58, %v1098_v51  ;;  %v1102_v8 = vsel %vm5343_vm7, %v1100_v60, %v1101_v63  ;;  %v1819_v0 = vshll.u32 %v4647_v6, 16  ;;  %v4651_v2 = vld [vmem:[%s5157_s27 + $0x3c] sm:$0xf]  ;;  %v5044_v63 = vld [vmem:[%s5157_s27 + $0x34] sm:$0xf] }
  0x71   : > { %4623 = vmatmul.msk.bf16.vlgmr.msrb.gmra.mxu3 %vm669_vm4, %v4999_v15  ;;  %v2170_v9 = vpack.c.b16 %v2140_v62, %v2139_v59  ;;  %v1806_v10 = vor.u32 %v1805_v3, %v1802_v61  ;;  %v1200_v13 = vunpack.c.l.b16 %v1099_v7  ;;  %v1201_v14 = vunpack.c.l.b16 %v1102_v8  ;;  %v1035_v62 = vld [vmem:[%s5157_s27 + $0x30] sm:$0xe] }
  0x72   : > { %v1816_v11 = vor.u32 %v1815_v5, %v1811_v4  ;;  %v1821_v17 = vrot.slane %v1819_v0, 5  ;;  %v1105_v23 = vrot.slane %v5320_v42, 5  ;;  %v1824_v30 = vshrl.u32 %v4648_v19, 16  ;;  %v5045_v0 = vld [vmem:[%s5157_s27 + $0x38] sm:$0x1] }
  0x73   : > { %v1807_v15 = vrot.slane %v1806_v10, 4  ;;  %v1230_v28 = vpack.c.b16 %v1201_v14, %v1200_v13  ;;  %v1827_v31 = vshll.u32 %v4648_v19, 16  ;;  %v1833_v33 = vshll.u32 %v4649_v22, 16  ;;  %v5002_v13 = vld [vmem:[%s5157_s27 + $0x30] sm:$0xff] }
  0x74   : > { %v1817_v16 = vrot.slane %v1816_v11, 4  ;;  %v1107_v37 = vrot.slane %v1105_v23, 4  ;;  %v1108_v42 = vrot.slane %v5324_v48, 5  ;;  %v1826_v39 = vrot.slane %v1824_v30, 4  ;;  %v4986_v48 = vld [vmem:[%s5157_s27 + $0x24] sm:$0xff] }
  0x75   : > { %v1812_v24 = vsel %vm5169_vm3, %v1807_v15, %v1811_v4  ;;  %v1829_v40 = vrot.slane %v1827_v31, 5  ;;  %v1835_v41 = vrot.slane %v1833_v33, 5  ;;  %v1843_v53 = vshll.u32 %v4650_v45, 16  ;;  %v4987_v33 = vld [vmem:[%s5157_s27 + $0x30] sm:$0xff] }
  0x76   : > { %4688 = vmatmul.msk.bf16.vlgmr.msrb.gmra.mxu0 %vm669_vm4, %v2169_v34  ;;  %v1822_v26 = vsel %vm5169_vm3, %v1817_v16, %v1821_v17  ;;  %v1837_v34 = vshrl.u32 %v4649_v22, 16  ;;  %v2141_v38 = vunpack.c.l.b16 %v1812_v24  ;;  %v1112_v61 = vrot.slane %v5044_v63, 5  ;;  %v4653_v22 = vld [vmem:[%s5157_s27 + $0x44] sm:$0x1] }
  0x77   : > { %4478 = vmatmul.msk.bf16.gmra.mxu1 %vm669_vm4, %v4984_v35  ;;  %v4496_v35 = vrot.slane %v1034_v29, 9  ;;  %v2142_v1 = vunpack.c.l.b16 %v1822_v26  ;;  %v1830_v51 = vor.u32 %v1829_v40, %v1826_v39  ;;  %v1845_v59 = vrot.slane %v1843_v53, 5  ;;  %v4654_v39 = vld [vmem:[%s5157_s27 + $0x48] sm:$0xf]  ;;  %v4655_v40 = vld [vmem:[%s5157_s27 + $0x4c] sm:$0xf] }
  0x78   : > { %v1839_v44 = vrot.slane %v1837_v34, 4  ;;  %v1848_v3 = vshrl.u32 %v4651_v2, 16  ;;  %v1851_v4 = vshll.u32 %v4651_v2, 16  ;;  %v1857_v5 = vshll.u32 %v4652_v57, 16  ;;  %v5003_v2 = vld [vmem:[%s5157_s27 + $0x3c] sm:$0xff] }
  0x79   : > { %v1106_v46 = vsel %vm5343_vm7, %v4496_v35, %v1105_v23  ;;  %v2171_v50 = vpack.c.b16 %v2142_v1, %v2141_v38  ;;  %v1831_v58 = vrot.slane %v1830_v51, 4  ;;  %v1861_v6 = vshrl.u32 %v4652_v57, 16 }
  0x7a   : > { %v1840_v52 = vor.u32 %v1839_v44, %v1835_v41  ;;  %v1202_v54 = vunpack.c.l.b16 %v1106_v46  ;;  %v4497_v10 = vrot.slane %v1035_v62, 9  ;;  %v1114_v11 = vrot.slane %v1112_v61, 4 }
  0x7b   : > { %v1836_v8 = vsel %vm5169_vm3, %v1831_v58, %v1835_v41  ;;  %v1850_v14 = vrot.slane %v1848_v3, 4  ;;  %v1853_v15 = vrot.slane %v1851_v4, 5  ;;  %v1859_v16 = vrot.slane %v1857_v5, 5  ;;  %v4656_v4 = vld [vmem:[%s5157_s27 + $0x50] sm:$0x1] }
  0x7c   : > { %4511 = vmatmul.msk.bf16.gmra.mxu2 %vm669_vm4, %v1229_v49  ;;  %v1109_v49 = vsel %vm5343_vm7, %v1107_v37, %v1108_v42  ;;  %v1863_v17 = vrot.slane %v1861_v6, 4  ;;  %v1113_v23 = vsel %vm5343_vm7, %v4497_v10, %v1112_v61  ;;  %v1867_v30 = vshll.u32 %v4653_v22, 16 }
  0x7d   : > { %v1203_v55 = vunpack.c.l.b16 %v1109_v49  ;;  %v1854_v26 = vor.u32 %v1853_v15, %v1850_v14  ;;  %v1872_v51 = vshrl.u32 %v4654_v39, 16  ;;  %v1881_v53 = vshll.u32 %v4655_v40, 16 }
  0x7e   : > { %v1864_v29 = vor.u32 %v1863_v17, %v1859_v16  ;;  %v1869_v1 = vrot.slane %v1867_v30, 5 }
  0x7f   : > { %v1231_v60 = vpack.c.b16 %v1203_v55, %v1202_v54  ;;  %v1855_v42 = vrot.slane %v1854_v26, 4  ;;  %v1885_v54 = vshrl.u32 %v4655_v40, 16  ;;  %v1883_v62 = vrot.slane %v1881_v53, 5 }
  0x80   : > { %v1865_v38 = vrot.slane %v1864_v29, 4  ;;  %v1126_v26 = vrot.slane %v5241_v47, 5 }
  0x81   : > { %4624 = vmatmul.msk.bf16.gmra.mxu3 %vm669_vm4, %v5000_v43  ;;  %v1841_v43 = vrot.slane %v1840_v52, 4  ;;  %v1860_v45 = vsel %vm5169_vm3, %v1855_v42, %v1859_v16  ;;  %v1875_v52 = vshll.u32 %v4654_v39, 16  ;;  %v1887_v3 = vrot.slane %v1885_v54, 4  ;;  %v4659_v54 = vld [vmem:[%s5157_s27 + $0x5c] sm:$0x1] }
  0x82   : > { %v1870_v46 = vsel %vm5169_vm3, %v1865_v38, %v1869_v1  ;;  %v2145_v55 = vunpack.c.l.b16 %v1860_v45  ;;  %v5004_v1 = vld [vmem:[%s5157_s27 + $0x48] sm:$0xff]  ;;  %v1128_v40 = vrot.slane %v1126_v26, 4 }
  0x83   : > { %v2146_v57 = vunpack.c.l.b16 %v1870_v46  ;;  %v1877_v61 = vrot.slane %v1875_v52, 5  ;;  %v1888_v10 = vor.u32 %v1887_v3, %v1883_v62 }
  0x85   : > { %v1889_v16 = vrot.slane %v1888_v10, 4 }
  0x86   : > { %4689 = vmatmul.msk.bf16.gmra.mxu0 %vm669_vm4, %v2170_v9  ;;  %v1846_v9 = vsel %vm5169_vm3, %v1841_v43, %v1845_v59 }
  0x87   : > { %4479 = vmatmul.msk.bf16.gmra.mxu1 %vm669_vm4, %v4985_v12  ;;  %v1115_v12 = vrot.slane %v5045_v0, 5  ;;  %v2144_v19 = vunpack.c.l.b16 %v1846_v9 }
  0x89   : > { %v1116_v24 = vsel %vm5343_vm7, %v1114_v11, %v1115_v12  ;;  %v1891_v11 = vshll.u32 %v4656_v4, 16  ;;  %v4988_v12 = vld [vmem:[%s5157_s27 + $0x3c] sm:$0xff] }
  0x8a   : > { %v1205_v35 = vunpack.c.l.b16 %v1116_v24  ;;  %v4658_v24 = vld [vmem:[%s5157_s27 + $0x58] sm:$0xf]  ;;  %v4660_v4 = vld [vmem:[%s5157_s27 + $0x60] sm:$0xf] }
  0x8b   : > { %v1893_v17 = vrot.slane %v1891_v11, 5  ;;  %v1909_v42 = vshrl.u32 %v4658_v24, 16 }
  0x8c   : > { %4512 = vmatmul.msk.bf16.gmra.mxu2 %vm669_vm4, %v1230_v28  ;;  %v2143_v28 = vunpack.c.l.b16 %v1836_v8  ;;  %v2173_v8 = vpack.c.b16 %v2146_v57, %v2145_v55 }
  0x8d   : > { %v1894_v30 = vsel %vm5169_vm3, %v1889_v16, %v1893_v17  ;;  %v1911_v52 = vrot.slane %v1909_v42, 4 }
  0x8e   : > { %v2172_v31 = vpack.c.b16 %v2144_v19, %v2143_v28  ;;  %v2148_v46 = vunpack.c.l.b16 %v1894_v30 }
  0x91   : > { %4625 = vmatmul.msk.bf16.gmra.mxu3 %vm669_vm4, %v5001_v32  ;;  %v1204_v32 = vunpack.c.l.b16 %v1113_v23  ;;  %v4657_v23 = vld [vmem:[%s5157_s27 + $0x54] sm:$0xf] }
  0x93   : > { %v1232_v44 = vpack.c.b16 %v1205_v35, %v1204_v32  ;;  %v1899_v32 = vshll.u32 %v4657_v23, 16  ;;  %v1905_v35 = vshll.u32 %v4658_v24, 16 }
  0x96   : > { %4690 = vmatmul.msk.bf16.gmra.mxu0 %vm669_vm4, %v2171_v50  ;;  %v1119_v50 = vrot.slane %v5197_v20, 5  ;;  %v1874_v20 = vrot.slane %v1872_v51, 4  ;;  %v1907_v51 = vrot.slane %v1905_v35, 5  ;;  %v1136_v35 = vrot.slane %v5292_v27, 5 }
  0x97   : > { %4480 = vmatmul.msk.bf16.gmra.mxu1 %vm669_vm4, %v4986_v48  ;;  %v1036_v48 = vld [vmem:[%s5157_s27 + $0x3c] sm:$0xe] }
  0x98   : > { %v4498_v43 = vrot.slane %v1036_v48, 9  ;;  %v1121_v59 = vrot.slane %v1119_v50, 4  ;;  %v1901_v48 = vrot.slane %v1899_v32, 5 }
  0x9a   : > { %v1120_v5 = vsel %vm5343_vm7, %v4498_v43, %v1119_v50  ;;  %v4989_v43 = vld [vmem:[%s5157_s27 + $0x48] sm:$0xff] }
  0x9c   : > { %v5438_v7 = vpop.f32.mrf.mxu1  ;;  %4513 = vmatmul.msk.bf16.gmra.mxu2 %vm669_vm4, %v1231_v60  ;;  %v1122_v60 = vrot.slane %v5202_v25, 5  ;;  %v1878_v25 = vor.u32 %v1877_v61, %v1874_v20  ;;  %v1915_v20 = vshll.u32 %v4659_v54, 16  ;;  %v4990_v54 = vld [vmem:[%s5157_s27 + $0x54] sm:$0xff] }
  0x9e   : > { %v1123_v6 = vsel %vm5343_vm7, %v1121_v59, %v1122_v60  ;;  %v1879_v15 = vrot.slane %v1878_v25, 4  ;;  %v1912_v60 = vor.u32 %v1911_v52, %v1907_v51  ;;  %v1917_v10 = vrot.slane %v1915_v20, 5 }
  0x9f   : > { %v1207_v14 = vunpack.c.l.b16 %v1123_v6 }
  0xa0   : > { %v1884_v29 = vsel %vm5169_vm3, %v1879_v15, %v1883_v62  ;;  %v1913_v25 = vrot.slane %v1912_v60, 4  ;;  %v1133_v15 = vrot.slane %v5287_v21, 5 }
  0xa1   : > { %4626 = vmatmul.msk.bf16.gmra.mxu3 %vm669_vm4, %v5002_v13  ;;  %v1206_v13 = vunpack.c.l.b16 %v1120_v5  ;;  %v2147_v45 = vunpack.c.l.b16 %v1884_v29  ;;  %v4661_v5 = vld [vmem:[%s5157_s27 + $0x64] sm:$0xf] }
  0xa2   : > { %v1933_v16 = vshrl.u32 %v4661_v5, 16  ;;  %v1918_v24 = vsel %vm5169_vm3, %v1913_v25, %v1917_v10  ;;  %v1135_v32 = vrot.slane %v1133_v15, 4  ;;  %v5046_v10 = vld [vmem:[%s5157_s27 + $0x64] sm:$0xf] }
  0xa3   : > { %v1233_v19 = vpack.c.b16 %v1207_v14, %v1206_v13  ;;  %v2174_v57 = vpack.c.b16 %v2148_v46, %v2147_v45  ;;  %v1923_v13 = vshll.u32 %v4660_v4, 16  ;;  %v1929_v14 = vshll.u32 %v4661_v5, 16 }
  0xa4   : > { %v5454_v34 = vpop.f32.mrf.mxu1  ;;  %v1935_v42 = vrot.slane %v1933_v16, 4 }
  0xa5   : > { %v1925_v30 = vrot.slane %v1923_v13, 5  ;;  %v1039_v13 = vld [vmem:[%s5157_s27 + $0x60] sm:$0xe] }
  0xa6   : > { %v5456_v37 = vpop.f32.mrf.mxu2  ;;  %4691 = vmatmul.msk.bf16.gmra.mxu0 %vm669_vm4, %v2172_v31  ;;  %v1037_v31 = vld [vmem:[%s5157_s27 + $0x48] sm:$0xe] }
  0xa7   : > { %4481 = vmatmul.msk.bf16.gmra.mxu1 %vm669_vm4, %v4987_v33  ;;  %v1896_v33 = vshrl.u32 %v4657_v23, 16  ;;  %v4499_v47 = vrot.slane %v1037_v31, 9  ;;  %v1931_v31 = vrot.slane %v1929_v14, 5 }
  0xa9   : > { %v5462_v41 = vpop.f32.mrf.mxu0  ;;  %v1898_v50 = vrot.slane %v1896_v33, 4  ;;  %v5005_v33 = vld [vmem:[%s5157_s27 + $0x54] sm:$0xff]  ;;  %v1936_v27 = vor.u32 %v1935_v42, %v1931_v31 }
  0xaa   : > { %v5468_v49 = vpop.f32.mrf.mxu3 }
  0xab   : > { %v1902_v59 = vor.u32 %v1901_v48, %v1898_v50  ;;  %v1137_v48 = vsel %vm5343_vm7, %v1135_v32, %v1136_v35  ;;  %v1937_v60 = vrot.slane %v1936_v27, 4 }
  0xac   : > { %4514 = vmatmul.msk.bf16.gmra.mxu2 %vm669_vm4, %v1232_v44  ;;  %v1129_v44 = vrot.slane %v5246_v56, 5 }
  0xae   : > { %v5474_v58 = vpop.f32.mrf.mxu1  ;;  %v5477_v63 = vpop.f32.mrf.mxu2  ;;  %v1130_v56 = vsel %vm5343_vm7, %v1128_v40, %v1129_v44  ;;  %v4662_v40 = vld [vmem:[%s5157_s27 + $0x68] sm:$0x1] }
  0xaf   : > { %v1209_v62 = vunpack.c.l.b16 %v1130_v56 }
  0xb1   : > { %4627 = vmatmul.msk.bf16.gmra.mxu3 %vm669_vm4, %v5003_v2  ;;  %v5485_v9 = vpop.f32.mrf.mxu0  ;;  %v1127_v2 = vsel %vm5343_vm7, %v4499_v47, %v1126_v26  ;;  %v2150_v47 = vunpack.c.l.b16 %v1918_v24 }
  0xb2   : > { %v5487_v0 = vpop.f32.mrf.mxu3  ;;  %v1208_v61 = vunpack.c.l.b16 %v1127_v2 }
  0xb4   : > { %v1234_v11 = vpack.c.b16 %v1209_v62, %v1208_v61  ;;  %v4663_v61 = vld [vmem:[%s5157_s27 + $0x6c] sm:$0xf]  ;;  %v4664_v62 = vld [vmem:[%s5157_s27 + $0x70] sm:$0xf] }
  0xb5   : > { %v1944_v14 = vshrl.u32 %v4663_v61, 16  ;;  %v1953_v16 = vshll.u32 %v4664_v62, 16 }
  0xb6   : > { %4692 = vmatmul.msk.bf16.gmra.mxu0 %vm669_vm4, %v2173_v8  ;;  %v5491_v28 = vpop.f32.mrf.mxu1  ;;  %v1903_v8 = vrot.slane %v1902_v59, 4 }
  0xb7   : > { %4482 = vmatmul.msk.bf16.gmra.mxu1 %vm669_vm4, %v4988_v12  ;;  %v1920_v12 = vshrl.u32 %v4660_v4, 16  ;;  %v1946_v35 = vrot.slane %v1944_v14, 4  ;;  %v4667_v14 = vld [vmem:[%s5157_s27 + $0x7c] sm:$0xf] }
  0xb8   : > { %v1908_v23 = vsel %vm5169_vm3, %v1903_v8, %v1907_v51  ;;  %v1939_v51 = vshll.u32 %v4662_v40, 16 }
  0xb9   : > { %v5494_v22 = vpop.f32.mrf.mxu2  ;;  %v1922_v29 = vrot.slane %v1920_v12, 4 }
  0xba   : > { %v1941_v20 = vrot.slane %v1939_v51, 5 }
  0xbb   : > { %v1926_v46 = vor.u32 %v1925_v30, %v1922_v29  ;;  %v5006_v30 = vld [vmem:[%s5157_s27 + $0x60] sm:$0xff] }
  0xbc   : > { %4515 = vmatmul.msk.bf16.gmra.mxu2 %vm669_vm4, %v1233_v19  ;;  %v1038_v19 = vld [vmem:[%s5157_s27 + $0x54] sm:$0xe]  ;;  %v1942_v25 = vsel %vm5169_vm3, %v1937_v60, %v1941_v20 }
  0xbd   : > { %v5504_v38 = vpop.f32.mrf.mxu0  ;;  %v4500_v21 = vrot.slane %v1038_v19, 9  ;;  %v1927_v59 = vrot.slane %v1926_v46, 4  ;;  %v1957_v19 = vshrl.u32 %v4664_v62, 16  ;;  %v4665_v46 = vld [vmem:[%s5157_s27 + $0x74] sm:$0x1] }
  0xbe   : > { %v5508_v39 = vpop.f32.mrf.mxu3 }
  0xbf   : > { %v1134_v50 = vsel %vm5343_vm7, %v4500_v21, %v1133_v15  ;;  %v1932_v8 = vsel %vm5169_vm3, %v1927_v59, %v1931_v31  ;;  %v1947_v15 = vshll.u32 %v4663_v61, 16  ;;  %v4501_v21 = vrot.slane %v1039_v13, 9  ;;  %v4666_v13 = vld [vmem:[%s5157_s27 + $0x78] sm:$0xf] }
  0xc0   : > { %v5511_v53 = vpop.f32.mrf.mxu1  ;;  %v1210_v56 = vunpack.c.l.b16 %v1134_v50  ;;  %v2151_v31 = vunpack.c.l.b16 %v1932_v8 }
  0xc1   : > { %4628 = vmatmul.msk.bf16.gmra.mxu3 %vm669_vm4, %v5004_v1  ;;  %v5515_v55 = vpop.f32.mrf.mxu2  ;;  %v2149_v1 = vunpack.c.l.b16 %v1908_v23  ;;  %v5047_v23 = vld [vmem:[%s5157_s27 + $0x68] sm:$0x1]  ;;  %v1949_v42 = vrot.slane %v1947_v15, 5  ;;  %v5048_v15 = vld [vmem:[%s5157_s27 + $0x70] sm:$0xf] }
  0xc2   : > { %v1143_v24 = vrot.slane %v5047_v23, 5  ;;  %v1040_v23 = vld [vmem:[%s5157_s27 + $0x6c] sm:$0xe] }
  0xc3   : > { %v2175_v52 = vpack.c.b16 %v2150_v47, %v2149_v1  ;;  %v1955_v1 = vrot.slane %v1953_v16, 5  ;;  %v1959_v47 = vrot.slane %v1957_v19, 4  ;;  %v1950_v51 = vor.u32 %v1949_v42, %v1946_v35  ;;  %v5049_v42 = vld [vmem:[%s5157_s27 + $0x74] sm:$0x1] }
  0xc4   : > { %v1147_v16 = vrot.slane %v5048_v15, 5 }
  0xc5   : > { %v5522_v3 = vpop.f32.mrf.mxu0 }
  0xc6   : > { %4693 = vmatmul.msk.bf16.gmra.mxu0 %vm669_vm4, %v2174_v57  ;;  %v5527_v6 = vpop.f32.mrf.mxu3  ;;  %v1211_v57 = vunpack.c.l.b16 %v1137_v48 }
  0xc7   : > { %4483 = vmatmul.msk.bf16.gmra.mxu1 %vm669_vm4, %v4989_v43 }
  0xc8   : > { %v5531_v17 = vpop.f32.mrf.mxu1  ;;  %v1235_v4 = vpack.c.b16 %v1211_v57, %v1210_v56  ;;  %v4991_v57 = vld [vmem:[%s5157_s27 + $0x60] sm:$0xff] }
  0xcc   : > { %v5538_v26 = vpop.f32.mrf.mxu2  ;;  %4516 = vmatmul.msk.bf16.gmra.mxu2 %vm669_vm4, %v1234_v11  ;;  %v1140_v11 = vrot.slane %v5046_v10, 5 }
  0xce   : > { %v1142_v32 = vrot.slane %v1140_v11, 4  ;;  %v1141_v50 = vsel %vm5343_vm7, %v4501_v21, %v1140_v11  ;;  %v1981_v21 = vshrl.u32 %v4667_v14, 16 }
  0xcf   : > { %v5544_v44 = vpop.f32.mrf.mxu0  ;;  %v1212_v20 = vunpack.c.l.b16 %v1141_v50  ;;  %v4502_v50 = vrot.slane %v1040_v23, 9 }
  0xd0   : > { %v5546_v45 = vpop.f32.mrf.mxu3  ;;  %v1144_v48 = vsel %vm5343_vm7, %v1142_v32, %v1143_v24 }
  0xd1   : > { %4629 = vmatmul.msk.bf16.gmra.mxu3 %vm669_vm4, %v5005_v33  ;;  %v2152_v33 = vunpack.c.l.b16 %v1942_v25  ;;  %v1213_v61 = vunpack.c.l.b16 %v1144_v48  ;;  %v1149_v48 = vrot.slane %v1147_v16, 4 }
  0xd3   : > { %v2176_v27 = vpack.c.b16 %v2152_v33, %v2151_v31  ;;  %v1236_v11 = vpack.c.b16 %v1213_v61, %v1212_v20  ;;  %v1971_v31 = vshll.u32 %v4666_v13, 16  ;;  %v1977_v33 = vshll.u32 %v4667_v14, 16 }
  0xd4   : > { %v5554_v2 = vpop.f32.mrf.mxu1  ;;  %v5556_v43 = vpop.f32.mrf.mxu2  ;;  %v1983_v20 = vrot.slane %v1981_v21, 4 }
  0xd6   : > { %4694 = vmatmul.msk.bf16.gmra.mxu0 %vm669_vm4, %v2175_v52  ;;  %v1960_v52 = vor.u32 %v1959_v47, %v1955_v1  ;;  %v1150_v47 = vrot.slane %v5049_v42, 5 }
  0xd7   : > { %4484 = vmatmul.msk.bf16.gmra.mxu1 %vm669_vm4, %v4990_v54  ;;  %v5562_v5 = vpop.f32.mrf.mxu0  ;;  %v1963_v54 = vshll.u32 %v4665_v46, 16  ;;  %v5007_v46 = vld [vmem:[%s5157_s27 + $0x6c] sm:$0xff] }
  0xd8   : > { %v5569_v12 = vpop.f32.mrf.mxu3  ;;  %v1961_v8 = vrot.slane %v1960_v52, 4 }
  0xd9   : > { %v1965_v25 = vrot.slane %v1963_v54, 5 }
  0xdc   : > { %4517 = vmatmul.msk.bf16.gmra.mxu2 %vm669_vm4, %v1235_v4  ;;  %v5574_v29 = vpop.f32.mrf.mxu1  ;;  %v1951_v4 = vrot.slane %v1950_v51, 4 }
  0xde   : > { %v1956_v19 = vsel %vm5169_vm3, %v1951_v4, %v1955_v1  ;;  %v4668_v4 = vld [vmem:[%s5157_s27 + $0x80] sm:$0x1] }
  0xdf   : > { %v5577_v40 = vpop.f32.mrf.mxu2 }
  0xe1   : > { %4630 = vmatmul.msk.bf16.gmra.mxu3 %vm669_vm4, %v5006_v30  ;;  %v1968_v30 = vshrl.u32 %v4666_v13, 16  ;;  %v4992_v13 = vld [vmem:[%s5157_s27 + $0x6c] sm:$0xff] }
  0xe3   : > { %v5585_v56 = vpop.f32.mrf.mxu0  ;;  %v1970_v54 = vrot.slane %v1968_v30, 4 }
  0xe4   : > { %v5588_v59 = vpop.f32.mrf.mxu3  ;;  %v951_v60 = vpop.f32.mrf.mxu1 }
  0xe5   : > { %v952_v62 = vadd.f32 %v951_v60, %v5462_v41  ;;  %v1966_v41 = vsel %vm5169_vm3, %v1961_v8, %v1965_v25  ;;  %v1979_v60 = vrot.slane %v1977_v33, 5  ;;  %v1148_v8 = vsel %vm5343_vm7, %v4502_v50, %v1147_v16 }
  0xe6   : > { %4695 = vmatmul.msk.bf16.gmra.mxu0 %vm669_vm4, %v2176_v27  ;;  %v2153_v27 = vunpack.c.l.b16 %v1956_v19  ;;  %v2154_v51 = vunpack.c.l.b16 %v1966_v41  ;;  %v1987_v19 = vshll.u32 %v4668_v4, 16 }
  0xe7   : > { %v5592_v10 = vpop.f32.mrf.mxu2  ;;  %4485 = vmatmul.msk.bf16.gmra.mxu1 %vm669_vm4, %v4991_v57  ;;  %v1973_v57 = vrot.slane %v1971_v31, 5  ;;  %v1984_v15 = vor.u32 %v1983_v20, %v1979_v60 }
  0xe8   : > { %v2177_v25 = vpack.c.b16 %v2154_v51, %v2153_v27  ;;  %v1989_v42 = vrot.slane %v1987_v19, 5  ;;  %v4670_v27 = vld [vmem:[%s5157_s27 + $0x88] sm:$0xf]  ;;  %v5050_v51 = vld [vmem:[%s5157_s27 + $0x7c] sm:$0xf] }
  0xe9   : > { %v1974_v14 = vor.u32 %v1973_v57, %v1970_v54  ;;  %v1041_v54 = vld [vmem:[%s5157_s27 + $0x78] sm:$0xe] }
  0xeb   : > { %v5603_v24 = vpop.f32.mrf.mxu0  ;;  %v1975_v21 = vrot.slane %v1974_v14, 4 }
  0xec   : > { %v5605_v32 = vpop.f32.mrf.mxu3  ;;  %4518 = vmatmul.msk.bf16.gmra.mxu2 %vm669_vm4, %v1236_v11  ;;  %v953_v35 = vpop.f32.mrf.mxu1 }
  0xed   : > { %v954_v1 = vadd.f32 %v953_v35, %v5485_v9  ;;  %v1151_v9 = vsel %vm5343_vm7, %v1149_v48, %v1150_v47  ;;  %v1985_v35 = vrot.slane %v1984_v15, 4  ;;  %v4669_v47 = vld [vmem:[%s5157_s27 + $0x84] sm:$0xf]  ;;  %v5008_v15 = vld [vmem:[%s5157_s27 + $0x78] sm:$0xff] }
  0xee   : > { %v1215_v30 = vunpack.c.l.b16 %v1151_v9  ;;  %v1995_v57 = vshll.u32 %v4669_v47, 16  ;;  %v2005_v9 = vshrl.u32 %v4670_v27, 16 }
  0xef   : > { %v1304_v52 = vpop.f32.mrf.mxu2  ;;  %v1990_v4 = vsel %vm5169_vm3, %v1985_v35, %v1989_v42 }
  0xf0   : > { %v1384_v61 = vadd.f32 %v1304_v52, %v952_v62  ;;  %v1214_v62 = vunpack.c.l.b16 %v1148_v8  ;;  %v1154_v52 = vrot.slane %v5050_v51, 5  ;;  %v2001_v8 = vshll.u32 %v4670_v27, 16 }
  0xf1   : > { %4631 = vmatmul.msk.bf16.gmra.mxu3 %vm669_vm4, %v5007_v46  ;;  %v2007_v35 = vrot.slane %v2005_v9, 4 }
  0xf2   : > { %v1237_v48 = vpack.c.b16 %v1215_v30, %v1214_v62 }
  0xf3   : > { %v2245_v11 = vpop.f32.mrf.mxu0 }
  0xf4   : > { %v1591_v41 = vpop.f32.mrf.mxu3  ;;  %v956_v23 = vpop.f32.mrf.mxu1 }
  0xf5   : > { %v1671_v31 = vadd.f32 %v1591_v41, %v1384_v61  ;;  %v957_v16 = vadd.f32 %v956_v23, %v5504_v38  ;;  %v1992_v38 = vshrl.u32 %v4669_v47, 16  ;;  %v1980_v61 = vsel %vm5169_vm3, %v1975_v21, %v1979_v60 }
  0xf6   : > { %4696 = vmatmul.msk.bf16.gmra.mxu0 %vm669_vm4, %v2177_v25  ;;  %v5051_v25 = vld [vmem:[%s5157_s27 + $0x80] sm:$0x1]  ;;  %v4503_v41 = vrot.slane %v1041_v54, 9  ;;  %v1156_v23 = vrot.slane %v1154_v52, 4  ;;  %v2155_v62 = vunpack.c.l.b16 %v1980_v61  ;;  %v2156_v60 = vunpack.c.l.b16 %v1990_v4 }
  0xf7   : > { %v1306_v33 = vpop.f32.mrf.mxu2  ;;  %4486 = vmatmul.msk.bf16.gmra.mxu1 %vm669_vm4, %v4992_v13  ;;  %v5622_v46 = vadd.f32 %v2245_v11, %v1671_v31  ;;  %v1157_v11 = vrot.slane %v5051_v25, 5  ;;  %v1994_v30 = vrot.slane %v1992_v38, 4  ;;  %v1997_v31 = vrot.slane %v1995_v57, 5  ;;  %v4993_v38 = vld [vmem:[%s5157_s27 + $0x78] sm:$0xff] }
  0xf8   : > { %v1385_v50 = vadd.f32 %v1306_v33, %v954_v1  ;;  %v2003_v21 = vrot.slane %v2001_v8, 5  ;;  %v2178_v27 = vpack.c.b16 %v2156_v60, %v2155_v62  ;;  %v4673_v62 = vld [vmem:[%s5157_s27 + $0x94] sm:$0xf]  ;;  %v5052_v60 = vld [vmem:[%s5157_s27 + $0x88] sm:$0xf] }
  0xf9   : > { %v1998_v51 = vor.u32 %v1997_v31, %v1994_v30  ;;  %v1161_v30 = vrot.slane %v5052_v60, 5  ;;  %v1042_v31 = vld [vmem:[%s5157_s27 + $0x84] sm:$0xe] }
  0xfa   : > { %v2008_v57 = vor.u32 %v2007_v35, %v2003_v21 }
  0xfb   : > { %v2247_v20 = vpop.f32.mrf.mxu0  ;;  %v1999_v25 = vrot.slane %v1998_v51, 4 }
  0xfc   : > { %v1593_v1 = vpop.f32.mrf.mxu3  ;;  %4519 = vmatmul.msk.bf16.gmra.mxu2 %vm669_vm4, %v1237_v48  ;;  %v958_v13 = vpop.f32.mrf.mxu1  ;;  %v4671_v48 = vld [vmem:[%s5157_s27 + $0x8c] sm:$0x1] }
  0xfd   : > { %v1672_v14 = vadd.f32 %v1593_v1, %v1385_v50  ;;  %v959_v19 = vadd.f32 %v958_v13, %v5522_v3  ;;  %v1155_v50 = vsel %vm5343_vm7, %v4503_v41, %v1154_v52  ;;  %v1158_v3 = vsel %vm5343_vm7, %v1156_v23, %v1157_v11 }
  0xfe   : > { %v2011_v61 = vshll.u32 %v4671_v48, 16  ;;  %v1217_v8 = vunpack.c.l.b16 %v1158_v3  ;;  %v2009_v1 = vrot.slane %v2008_v57, 4  ;;  %v2029_v3 = vshrl.u32 %v4673_v62, 16  ;;  %v5009_v57 = vld [vmem:[%s5157_s27 + $0x84] sm:$0xff] }
  0xff   : > { %v1309_v33 = vpop.f32.mrf.mxu2  ;;  %v5635_v42 = vadd.f32 %v2247_v20, %v1672_v14  ;;  %v4672_v14 = vld [vmem:[%s5157_s27 + $0x90] sm:$0xf] }
 0x100   : > { %v1386_v47 = vadd.f32 %v1309_v33, %v957_v16  ;;  %v1216_v16 = vunpack.c.l.b16 %v1155_v50  ;;  %v2013_v13 = vrot.slane %v2011_v61, 5  ;;  %v2016_v33 = vshrl.u32 %v4672_v14, 16 }
 0x101   : > { %4632 = vmatmul.msk.bf16.gmra.mxu3 %vm669_vm4, %v5008_v15  ;;  %v2019_v48 = vshll.u32 %v4672_v14, 16  ;;  %v2025_v50 = vshll.u32 %v4673_v62, 16  ;;  %v4504_v61 = vrot.slane %v1042_v31, 9 }
 0x102   : > { %v1238_v23 = vpack.c.b16 %v1217_v8, %v1216_v16  ;;  %v2018_v8 = vrot.slane %v2016_v33, 4 }
 0x103   : > { %v2250_v54 = vpop.f32.mrf.mxu0 }
 0x104   : > { %v1596_v4 = vpop.f32.mrf.mxu3  ;;  %v961_v20 = vpop.f32.mrf.mxu1 }
 0x105   : > { %v1673_v9 = vadd.f32 %v1596_v4, %v1386_v47  ;;  %v962_v52 = vadd.f32 %v961_v20, %v5544_v44  ;;  %v2004_v44 = vsel %vm5169_vm3, %v1999_v25, %v2003_v21  ;;  %v2014_v47 = vsel %vm5169_vm3, %v2009_v1, %v2013_v13 }
 0x106   : > { %4697 = vmatmul.msk.bf16.gmra.mxu0 %vm669_vm4, %v2178_v27  ;;  %v5053_v27 = vld [vmem:[%s5157_s27 + $0x8c] sm:$0x1]  ;;  %v1163_v4 = vrot.slane %v1161_v30, 4  ;;  %v2157_v20 = vunpack.c.l.b16 %v2004_v44  ;;  %v2158_v16 = vunpack.c.l.b16 %v2014_v47  ;;  %v2021_v25 = vrot.slane %v2019_v48, 5  ;;  %v4994_v44 = vld [vmem:[%s5157_s27 + $0x84] sm:$0xff] }
 0x107   : > { %v1311_v11 = vpop.f32.mrf.mxu2  ;;  %4487 = vmatmul.msk.bf16.gmra.mxu1 %vm669_vm4, %v4993_v38  ;;  %v5648_v15 = vadd.f32 %v2250_v54, %v1673_v9  ;;  %v1164_v51 = vrot.slane %v5053_v27, 5  ;;  %v2031_v1 = vrot.slane %v2029_v3, 4 }
 0x108   : > { %v1387_v41 = vadd.f32 %v1311_v11, %v959_v19  ;;  %v2027_v11 = vrot.slane %v2025_v50, 5  ;;  %v2179_v62 = vpack.c.b16 %v2158_v16, %v2157_v20  ;;  %v2022_v31 = vor.u32 %v2021_v25, %v2018_v8  ;;  %v4676_v20 = vld [vmem:[%s5157_s27 + $0xa0] sm:$0xf]  ;;  %v1043_v25 = vld [vmem:[%s5157_s27 + $0x90] sm:$0xe] }
 0x10a   : > { %v2032_v33 = vor.u32 %v2031_v1, %v2027_v11 }
 0x10b   : > { %v2252_v35 = vpop.f32.mrf.mxu0 }
 0x10c   : > { %v1598_v19 = vpop.f32.mrf.mxu3  ;;  %4520 = vmatmul.msk.bf16.gmra.mxu2 %vm669_vm4, %v1238_v23  ;;  %v963_v54 = vpop.f32.mrf.mxu1  ;;  %v4674_v23 = vld [vmem:[%s5157_s27 + $0x98] sm:$0x1] }
 0x10d   : > { %v1674_v38 = vadd.f32 %v1598_v19, %v1387_v41  ;;  %v964_v21 = vadd.f32 %v963_v54, %v5562_v5  ;;  %v1162_v5 = vsel %vm5343_vm7, %v4504_v61, %v1161_v30  ;;  %v1165_v41 = vsel %vm5343_vm7, %v1163_v4, %v1164_v51  ;;  %v4675_v30 = vld [vmem:[%s5157_s27 + $0x9c] sm:$0xf] }
 0x10e   : > { %v2035_v47 = vshll.u32 %v4674_v23, 16  ;;  %v1219_v50 = vunpack.c.l.b16 %v1165_v41  ;;  %v2023_v19 = vrot.slane %v2022_v31, 4  ;;  %v2033_v54 = vrot.slane %v2032_v33, 4 }
 0x10f   : > { %v1314_v9 = vpop.f32.mrf.mxu2  ;;  %v5661_v13 = vadd.f32 %v2252_v35, %v1674_v38  ;;  %v2040_v16 = vshrl.u32 %v4675_v30, 16  ;;  %v2043_v8 = vshll.u32 %v4675_v30, 16  ;;  %v2053_v41 = vshrl.u32 %v4676_v20, 16 }
 0x110   : > { %v1388_v14 = vadd.f32 %v1314_v9, %v962_v52  ;;  %v1218_v52 = vunpack.c.l.b16 %v1162_v5  ;;  %v2037_v38 = vrot.slane %v2035_v47, 5  ;;  %v5054_v9 = vld [vmem:[%s5157_s27 + $0x94] sm:$0xf]  ;;  %v2049_v5 = vshll.u32 %v4676_v20, 16 }
 0x111   : > { %4633 = vmatmul.msk.bf16.gmra.mxu3 %vm669_vm4, %v5009_v57  ;;  %v2042_v31 = vrot.slane %v2040_v16, 4  ;;  %v2045_v33 = vrot.slane %v2043_v8, 5 }
 0x112   : > { %v1239_v4 = vpack.c.b16 %v1219_v50, %v1218_v52  ;;  %v2038_v23 = vsel %vm5169_vm3, %v2033_v54, %v2037_v38  ;;  %v4505_v52 = vrot.slane %v1043_v25, 9 }
 0x113   : > { %v2255_v60 = vpop.f32.mrf.mxu0  ;;  %v2046_v20 = vor.u32 %v2045_v33, %v2042_v31  ;;  %v4679_v31 = vld [vmem:[%s5157_s27 + $0xac] sm:$0xf] }
 0x114   : > { %v1601_v48 = vpop.f32.mrf.mxu3  ;;  %v966_v35 = vpop.f32.mrf.mxu1 }
 0x115   : > { %v1675_v3 = vadd.f32 %v1601_v48, %v1388_v14  ;;  %v967_v27 = vadd.f32 %v966_v35, %v5585_v56  ;;  %v1168_v56 = vrot.slane %v5054_v9, 5  ;;  %v2028_v14 = vsel %vm5169_vm3, %v2023_v19, %v2027_v11  ;;  %v5010_v48 = vld [vmem:[%s5157_s27 + $0x90] sm:$0xff] }
 0x116   : > { %4698 = vmatmul.msk.bf16.gmra.mxu0 %vm669_vm4, %v2179_v62  ;;  %v5055_v62 = vld [vmem:[%s5157_s27 + $0x98] sm:$0x1]  ;;  %v2159_v50 = vunpack.c.l.b16 %v2028_v14  ;;  %v2055_v19 = vrot.slane %v2053_v41, 4  ;;  %v4995_v9 = vld [vmem:[%s5157_s27 + $0x90] sm:$0xff] }
 0x117   : > { %v1316_v51 = vpop.f32.mrf.mxu2  ;;  %4488 = vmatmul.msk.bf16.gmra.mxu1 %vm669_vm4, %v4994_v44  ;;  %v5674_v57 = vadd.f32 %v2255_v60, %v1675_v3  ;;  %v1171_v60 = vrot.slane %v5055_v62, 5  ;;  %v1170_v11 = vrot.slane %v1168_v56, 4  ;;  %v2160_v3 = vunpack.c.l.b16 %v2038_v23 }
 0x118   : > { %v1389_v61 = vadd.f32 %v1316_v51, %v964_v21  ;;  %v2051_v51 = vrot.slane %v2049_v5, 5  ;;  %v2047_v62 = vrot.slane %v2046_v20, 4  ;;  %v5057_v20 = vld [vmem:[%s5157_s27 + $0xa4] sm:$0x1] }
 0x119   : > { %v2180_v16 = vpack.c.b16 %v2160_v3, %v2159_v50  ;;  %v5056_v50 = vld [vmem:[%s5157_s27 + $0xa0] sm:$0xf] }
 0x11a   : > { %v2056_v25 = vor.u32 %v2055_v19, %v2051_v51  ;;  %v1175_v3 = vrot.slane %v5056_v50, 5  ;;  %v1044_v19 = vld [vmem:[%s5157_s27 + $0x9c] sm:$0xe] }
 0x11b   : > { %v2257_v1 = vpop.f32.mrf.mxu0 }
 0x11c   : > { %v1603_v21 = vpop.f32.mrf.mxu3  ;;  %4521 = vmatmul.msk.bf16.gmra.mxu2 %vm669_vm4, %v1239_v4  ;;  %v968_v44 = vpop.f32.mrf.mxu1  ;;  %v4677_v4 = vld [vmem:[%s5157_s27 + $0xa4] sm:$0x1] }
 0x11d   : > { %v1676_v47 = vadd.f32 %v1603_v21, %v1389_v61  ;;  %v969_v35 = vadd.f32 %v968_v44, %v5603_v24  ;;  %v1169_v61 = vsel %vm5343_vm7, %v4505_v52, %v1168_v56  ;;  %v1172_v24 = vsel %vm5343_vm7, %v1170_v11, %v1171_v60  ;;  %v4678_v21 = vld [vmem:[%s5157_s27 + $0xa8] sm:$0xf] }
 0x11e   : > { %v2059_v14 = vshll.u32 %v4677_v4, 16  ;;  %v1221_v5 = vunpack.c.l.b16 %v1172_v24  ;;  %v2057_v60 = vrot.slane %v2056_v25, 4  ;;  %v2064_v52 = vshrl.u32 %v4678_v21, 16 }
 0x11f   : > { %v1319_v30 = vpop.f32.mrf.mxu2  ;;  %v5687_v54 = vadd.f32 %v2257_v1, %v1676_v47  ;;  %v2052_v11 = vsel %vm5169_vm3, %v2047_v62, %v2051_v51  ;;  %v2077_v4 = vshrl.u32 %v4679_v31, 16 }
 0x120   : > { %v1390_v38 = vadd.f32 %v1319_v30, %v967_v27  ;;  %v1220_v27 = vunpack.c.l.b16 %v1169_v61  ;;  %v2061_v44 = vrot.slane %v2059_v14, 5  ;;  %v2067_v30 = vshll.u32 %v4678_v21, 16  ;;  %v5011_v14 = vld [vmem:[%s5157_s27 + $0x9c] sm:$0xff] }
 0x121   : > { %4634 = vmatmul.msk.bf16.gmra.mxu3 %vm669_vm4, %v5010_v48  ;;  %v2066_v51 = vrot.slane %v2064_v52, 4 }
 0x122   : > { %v1240_v48 = vpack.c.b16 %v1221_v5, %v1220_v27  ;;  %v2062_v24 = vsel %vm5169_vm3, %v2057_v60, %v2061_v44  ;;  %v1177_v27 = vrot.slane %v1175_v3, 4  ;;  %v2069_v5 = vrot.slane %v2067_v30, 5  ;;  %v4680_v44 = vld [vmem:[%s5157_s27 + $0xb0] sm:$0x1] }
 0x123   : > { %v2260_v8 = vpop.f32.mrf.mxu0  ;;  %v2162_v62 = vunpack.c.l.b16 %v2062_v24 }
 0x124   : > { %v1606_v1 = vpop.f32.mrf.mxu3  ;;  %v971_v23 = vpop.f32.mrf.mxu1  ;;  %v2070_v52 = vor.u32 %v2069_v5, %v2066_v51 }
 0x125   : > { %v1677_v41 = vadd.f32 %v1606_v1, %v1390_v38  ;;  %v2073_v38 = vshll.u32 %v4679_v31, 16  ;;  %v4506_v1 = vrot.slane %v1044_v19, 9  ;;  %v4996_v19 = vld [vmem:[%s5157_s27 + $0x9c] sm:$0xff] }
 0x126   : > { %4699 = vmatmul.msk.bf16.gmra.mxu0 %vm669_vm4, %v2180_v16  ;;  %v1178_v16 = vrot.slane %v5057_v20, 5 }
 0x127   : > { %v1321_v56 = vpop.f32.mrf.mxu2  ;;  %4489 = vmatmul.msk.bf16.gmra.mxu1 %vm669_vm4, %v4995_v9  ;;  %v5700_v33 = vadd.f32 %v2260_v8, %v1677_v41  ;;  %v2161_v8 = vunpack.c.l.b16 %v2052_v11  ;;  %v972_v41 = vadd.f32 %v971_v23, %v5438_v7  ;;  %v2075_v21 = vrot.slane %v2073_v38, 5 }
 0x128   : > { %v1391_v47 = vadd.f32 %v1321_v56, %v969_v35  ;;  %v2079_v56 = vrot.slane %v2077_v4, 4  ;;  %v2083_v11 = vshll.u32 %v4680_v44, 16 }
 0x129   : > { %v2181_v7 = vpack.c.b16 %v2162_v62, %v2161_v8  ;;  %v4681_v8 = vld [vmem:[%s5157_s27 + $0xb4] sm:$0xf] }
 0x12a   : > { %v2080_v23 = vor.u32 %v2079_v56, %v2075_v21  ;;  %v2085_v51 = vrot.slane %v2083_v11, 5  ;;  %v2091_v44 = vshll.u32 %v4681_v8, 16 }
 0x12b   : > { %v2262_v61 = vpop.f32.mrf.mxu0 }
 0x12c   : > { %v1608_v35 = vpop.f32.mrf.mxu3  ;;  %4522 = vmatmul.msk.bf16.gmra.mxu2 %vm669_vm4, %v1240_v48  ;;  %v973_v9 = vpop.f32.mrf.mxu1  ;;  %v1179_v48 = vsel %vm5343_vm7, %v1177_v27, %v1178_v16  ;;  %v2081_v16 = vrot.slane %v2080_v23, 4 }
 0x12d   : > { %v1678_v25 = vadd.f32 %v1608_v35, %v1391_v47  ;;  %v1176_v47 = vsel %vm5343_vm7, %v4506_v1, %v1175_v3  ;;  %v1223_v24 = vunpack.c.l.b16 %v1179_v48  ;;  %v2071_v35 = vrot.slane %v2070_v52, 4  ;;  %v5059_v52 = vld [vmem:[%s5157_s27 + $0xb0] sm:$0x1] }
 0x12e   : > { %v974_v3 = vadd.f32 %v973_v9, %v5454_v34  ;;  %v2088_v34 = vshrl.u32 %v4681_v8, 16  ;;  %v2086_v9 = vsel %vm5169_vm3, %v2081_v16, %v2085_v51 }
 0x12f   : > { %v1324_v60 = vpop.f32.mrf.mxu2  ;;  %v5713_v31 = vadd.f32 %v2262_v61, %v1678_v25  ;;  %v1222_v61 = vunpack.c.l.b16 %v1176_v47  ;;  %v2076_v56 = vsel %vm5169_vm3, %v2071_v35, %v2075_v21 }
 0x130   : > { %v1392_v50 = vadd.f32 %v1324_v60, %v972_v41  ;;  %v5058_v41 = vld [vmem:[%s5157_s27 + $0xac] sm:$0xf]  ;;  %v1045_v60 = vld [vmem:[%s5157_s27 + $0xa8] sm:$0xe] }
 0x131   : > { %4635 = vmatmul.msk.bf16.gmra.mxu3 %vm669_vm4, %v5011_v14  ;;  %v4682_v14 = vld [vmem:[%s5157_s27 + $0xb8] sm:$0xf]  ;;  %v1241_v5 = vpack.c.b16 %v1223_v24, %v1222_v61  ;;  %v1182_v62 = vrot.slane %v5058_v41, 5  ;;  %v2163_v61 = vunpack.c.l.b16 %v2076_v56  ;;  %v2164_v24 = vunpack.c.l.b16 %v2086_v9  ;;  %v4683_v41 = vld [vmem:[%s5157_s27 + $0xbc] sm:$0x1] }
 0x132   : > { %v2101_v47 = vshrl.u32 %v4682_v14, 16 }
 0x133   : > { %v2265_v30 = vpop.f32.mrf.mxu0 }
 0x134   : > { %v1611_v38 = vpop.f32.mrf.mxu3  ;;  %v976_v4 = vpop.f32.mrf.mxu1  ;;  %v2103_v51 = vrot.slane %v2101_v47, 4 }
 0x135   : > { %v1679_v20 = vadd.f32 %v1611_v38, %v1392_v50  ;;  %v2097_v50 = vshll.u32 %v4682_v14, 16  ;;  %v5012_v38 = vld [vmem:[%s5157_s27 + $0xa8] sm:$0xff]  ;;  %v977_v35 = vadd.f32 %v976_v4, %v5474_v58  ;;  %v2182_v58 = vpack.c.b16 %v2164_v24, %v2163_v61 }
 0x136   : > { %4700 = vmatmul.msk.bf16.gmra.mxu0 %vm669_vm4, %v2181_v7  ;;  %v1185_v7 = vrot.slane %v5059_v52, 5 }
 0x137   : > { %v1326_v25 = vpop.f32.mrf.mxu2  ;;  %4490 = vmatmul.msk.bf16.gmra.mxu1 %vm669_vm4, %v4996_v19  ;;  %v5726_v1 = vadd.f32 %v2265_v30, %v1679_v20  ;;  %v4507_v30 = vrot.slane %v1045_v60, 9  ;;  %v1184_v19 = vrot.slane %v1182_v62, 4  ;;  %v2090_v20 = vrot.slane %v2088_v34, 4  ;;  %v4997_v34 = vld [vmem:[%s5157_s27 + $0xa8] sm:$0xff] }
 0x138   : > { %v1393_v27 = vadd.f32 %v1326_v25, %v974_v3  ;;  %v2093_v3 = vrot.slane %v2091_v44, 5  ;;  %v5738_v16 = vrot.slane %v2097_v50, 5  ;;  %v2107_v50 = vshll.u32 %v4683_v41, 16 }
 0x13a   : > { %v2094_v4 = vor.u32 %v2093_v3, %v2090_v20  ;;  %v2104_v56 = vor.u32 %v2103_v51, %v5738_v16  ;;  %v2109_v20 = vrot.slane %v2107_v50, 5 }
 0x13b   : > { %v2267_v48 = vpop.f32.mrf.mxu0 }
 0x13c   : > { %v1613_v23 = vpop.f32.mrf.mxu3  ;;  %4523 = vmatmul.msk.bf16.gmra.mxu2 %vm669_vm4, %v1241_v5  ;;  %v978_v11 = vpop.f32.mrf.mxu1  ;;  %v1183_v5 = vsel %vm5343_vm7, %v4507_v30, %v1182_v62  ;;  %v4684_v62 = vld [vmem:[%s5157_s27 + $0xc0] sm:$0xf]  ;;  %v5060_v30 = vld [vmem:[%s5157_s27 + $0x10] sm:$0xf] }
 0x13d   : > { %v1680_v21 = vadd.f32 %v1613_v23, %v1393_v27  ;;  %v1186_v27 = vsel %vm5343_vm7, %v1184_v19, %v1185_v7  ;;  %v1224_v9 = vunpack.c.l.b16 %v1183_v5  ;;  %v4685_v23 = vld [vmem:[%s5157_s27 + $0xc4] sm:$0xf]  ;;  %v2423_v7 = vrot.slane %v5060_v30, 5 }
 0x13e   : > { %v1225_v44 = vunpack.c.l.b16 %v1186_v27  ;;  %v979_v19 = vadd.f32 %v978_v11, %v5491_v28  ;;  %v2115_v3 = vshll.u32 %v4684_v62, 16  ;;  %v5061_v27 = vld [vmem:[%s5157_s27 + $0xb8] sm:$0xf]  ;;  %v1046_v11 = vld [vmem:[%s5157_s27 + $0xb4] sm:$0xe] }
 0x13f   : > { %v1329_v8 = vpop.f32.mrf.mxu2  ;;  %v5740_v25 = vadd.f32 %v2267_v48, %v1680_v21  ;;  %v2095_v21 = vrot.slane %v2094_v4, 4  ;;  %v1189_v41 = vrot.slane %v5061_v27, 5  ;;  %v2425_v4 = vrot.slane %v2423_v7, 4  ;;  %v5013_v27 = vld [vmem:[%s5157_s27 + $0xb4] sm:$0xff] }
 0x140   : > { %v1394_v14 = vadd.f32 %v1329_v8, %v977_v35  ;;  %v1242_v24 = vpack.c.b16 %v1225_v44, %v1224_v9  ;;  %v2112_v35 = vshrl.u32 %v4684_v62, 16  ;;  %v2121_v8 = vshll.u32 %v4685_v23, 16 }
 0x141   : > { %4636 = vmatmul.msk.bf16.gmra.mxu3 %vm669_vm4, %v5012_v38  ;;  %v2105_v38 = vrot.slane %v2104_v56, 4  ;;  %v5063_v56 = vld [vmem:[%s5157_s27 + $0x14] sm:$0x1]  ;;  %v2100_v9 = vsel %vm5169_vm3, %v2095_v21, %v5738_v16 }
 0x142   : > { %v2114_v62 = vrot.slane %v2112_v35, 4  ;;  %v2165_v21 = vunpack.c.l.b16 %v2100_v9 }
 0x143   : > { %v2270_v60 = vpop.f32.mrf.mxu0  ;;  %v2110_v44 = vsel %vm5169_vm3, %v2105_v38, %v2109_v20 }
 0x144   : > { %v1616_v47 = vpop.f32.mrf.mxu3  ;;  %v981_v48 = vpop.f32.mrf.mxu1  ;;  %v2166_v38 = vunpack.c.l.b16 %v2110_v44 }
 0x145   : > { %v1681_v52 = vadd.f32 %v1616_v47, %v1394_v14  ;;  %v2125_v14 = vshrl.u32 %v4685_v23, 16  ;;  %v2426_v47 = vrot.slane %v5063_v56, 5  ;;  %v5768_v23 = vrot.slane %v2121_v8, 5 }
 0x146   : > { %4701 = vmatmul.msk.bf16.gmra.mxu0 %vm669_vm4, %v2182_v58  ;;  %v5062_v58 = vld [vmem:[%s5157_s27 + $0xbc] sm:$0x1]  ;;  %v1191_v56 = vrot.slane %v1189_v41, 4  ;;  %v982_v16 = vadd.f32 %v981_v48, %v5511_v53 }
 0x147   : > { %v1331_v61 = vpop.f32.mrf.mxu2  ;;  %4491 = vmatmul.msk.bf16.gmra.mxu1 %vm669_vm4, %v4997_v34  ;;  %v5756_v5 = vadd.f32 %v2270_v60, %v1681_v52  ;;  %v1192_v28 = vrot.slane %v5062_v58, 5  ;;  %v2117_v52 = vrot.slane %v2115_v3, 5  ;;  %v2127_v30 = vrot.slane %v2125_v14, 4 }
 0x148   : > { %v1395_v51 = vadd.f32 %v1331_v61, %v979_v19  ;;  %v4704_v19 = vld [vmem:[%s5157_s27 + $0xc] sm:$0xe]  ;;  %v4508_v58 = vrot.slane %v1046_v11, 9  ;;  %v2427_v3 = vsel %vm5343_vm7, %v2425_v4, %v2426_v47  ;;  %v4866_v4 = vld [vmem:[%s5157_s27 + $0x18] sm:$0xf] }
 0x149   : > { %6595 = vst [vmem:[#allocation2_spill] sm:$0xff] %v5756_v5  ;;  %v4720_v5 = vrot.slane %v4704_v19, 9  ;;  %v2118_v8 = vor.u32 %v2117_v52, %v2114_v62  ;;  %v2536_v11 = vunpack.c.l.b16 %v2427_v3  ;;  %v1193_v48 = vsel %vm5343_vm7, %v1191_v56, %v1192_v28  ;;  %v4998_v62 = vld [vmem:[%s5157_s27 + $0xb4] sm:$0xff]  ;;  %v5791_v52 = vld [vmem:[%s5157_s27 + $0x1c] sm:$0xf] }
 0x14a   : > { %v1190_v53 = vsel %vm5343_vm7, %v4508_v58, %v1189_v41  ;;  %v2128_v9 = vor.u32 %v2127_v30, %v5768_v23  ;;  %v1227_v41 = vunpack.c.l.b16 %v1193_v48  ;;  %v3091_v56 = vshrl.u32 %v4866_v4, 16 }
 0x14b   : > { %v2272_v34 = vpop.f32.mrf.mxu0  ;;  %v2424_v35 = vsel %vm5343_vm7, %v4720_v5, %v2423_v7  ;;  %v2183_v7 = vpack.c.b16 %v2166_v38, %v2165_v21  ;;  %v2119_v58 = vrot.slane %v2118_v8, 4  ;;  %v3094_v30 = vshll.u32 %v4866_v4, 16 }
 0x14c   : > { %v1618_v60 = vpop.f32.mrf.mxu3  ;;  %4524 = vmatmul.msk.bf16.gmra.mxu2 %vm669_vm4, %v1242_v24  ;;  %v983_v50 = vpop.f32.mrf.mxu1  ;;  %v4686_v24 = vld [vmem:[%s5157_s27 + $0xc8] sm:$0x1]  ;;  %v2535_v14 = vunpack.c.l.b16 %v2424_v35  ;;  %v2129_v28 = vrot.slane %v2128_v9, 4  ;;  %v3104_v38 = vshrl.u32 %v5791_v52, 16  ;;  %v3093_v8 = vrot.slane %v3091_v56, 4 }
 0x14d   : > { %v1682_v61 = vadd.f32 %v1618_v60, %v1395_v51  ;;  %v2131_v5 = vshll.u32 %v4686_v24, 16  ;;  %v984_v21 = vadd.f32 %v983_v50, %v5531_v17  ;;  %v2124_v17 = vsel %vm5169_vm3, %v2119_v58, %v5768_v23  ;;  %v4868_v9 = vld [vmem:[%s5157_s27 + $0x20] sm:$0x1]  ;;  %v4869_v56 = vld [vmem:[%s5157_s27 + $0x24] sm:$0xf] }
 0x14e   : > { %v5784_v44 = vpack.c.b16 %v2536_v11, %v2535_v14  ;;  %v3096_v14 = vrot.slane %v3094_v30, 5  ;;  %v3110_v58 = vshll.u32 %v4868_v9, 16  ;;  %v5811_v30 = vld [vmem:[%s5157_s27 + $0x28] sm:$0xf] }
 0x14f   : > { %v1334_v20 = vpop.f32.mrf.mxu2  ;;  %v5787_v47 = vadd.f32 %v2272_v34, %v1682_v61  ;;  %v2133_v34 = vrot.slane %v2131_v5, 5  ;;  %v3100_v61 = vshll.u32 %v5791_v52, 16 }
 0x150   : > { %v1396_v51 = vadd.f32 %v1334_v20, %v982_v16  ;;  %v1226_v16 = vunpack.c.l.b16 %v1190_v53  ;;  %v3106_v53 = vrot.slane %v3104_v38, 4  ;;  %v3112_v38 = vrot.slane %v3110_v58, 5 }
 0x151   : > { %4637 = vmatmul.msk.bf16.gmra.mxu3 %vm669_vm4, %v5013_v27  ;;  %v2134_v50 = vsel %vm5169_vm3, %v2129_v28, %v2133_v34  ;;  %v3102_v11 = vrot.slane %v3100_v61, 5 }
 0x152   : > { %v1243_v3 = vpack.c.b16 %v1227_v41, %v1226_v16  ;;  %v3097_v16 = vor.u32 %v3096_v14, %v3093_v8  ;;  %v3118_v8 = vshll.u32 %v4869_v56, 16  ;;  %v3124_v14 = vshll.u32 %v5811_v30, 16 }
 0x153   : > { %v2275_v60 = vpop.f32.mrf.mxu0  ;;  %v3107_v41 = vor.u32 %v3106_v53, %v3102_v11 }
 0x154   : > { %v1621_v19 = vpop.f32.mrf.mxu3  ;;  %v986_v27 = vpop.f32.mrf.mxu1  ;;  %v3098_v34 = vrot.slane %v3097_v16, 4 }
 0x155   : > { %v1683_v20 = vadd.f32 %v1621_v19, %v1396_v51  ;;  %v2168_v19 = vunpack.c.l.b16 %v2134_v50  ;;  %v987_v23 = vadd.f32 %v986_v27, %v5554_v2  ;;  %v3108_v61 = vrot.slane %v3107_v41, 4 }
 0x156   : > { %4702 = vmatmul.msk.bf16.gmra.mxu0 %vm669_vm4, %v2183_v7 }
 0x157   : > { %v1336_v24 = vpop.f32.mrf.mxu2  ;;  %4492 = vmatmul.msk.bf16.gmra.mxu1 %vm669_vm4, %v4998_v62  ;;  %v5798_v51 = vadd.f32 %v2275_v60, %v1683_v20  ;;  %v5014_v60 = vld [vmem:[%s5157_s27 + $0xc0] sm:$0xff]  ;;  %v2167_v62 = vunpack.c.l.b16 %v2124_v17  ;;  %v3128_v17 = vshrl.u32 %v5811_v30, 16  ;;  %v3113_v41 = vsel %vm5169_vm3, %v3108_v61, %v3112_v38  ;;  %v5837_v38 = vld [vmem:[%s5157_s27 + $0x2c] sm:$0x1] }
 0x158   : > { %v1397_v35 = vadd.f32 %v1336_v24, %v984_v21  ;;  %v4931_v24 = vld [vmem:[%s5157_s27 + $0x18] sm:$0xe]  ;;  %v3477_v61 = vunpack.c.l.b16 %v3113_v41 }
 0x159   : > { %v2184_v21 = vpack.c.b16 %v2168_v19, %v2167_v62  ;;  %v5065_v62 = vld [vmem:[%s5157_s27 + $0x20] sm:$0x1] }
 0x15a   : > { %v2433_v19 = vrot.slane %v5065_v62, 5 }
 0x15b   : > { %v2277_v48 = vpop.f32.mrf.mxu0 }
 0x15c   : > { %v1623_v7 = vpop.f32.mrf.mxu3  ;;  %4525 = vmatmul.msk.bf16.gmra.mxu2 %vm669_vm4, %v1243_v3  ;;  %v988_v5 = vpop.f32.mrf.mxu1  ;;  %v3115_v3 = vshrl.u32 %v4869_v56, 16 }
 0x15d   : > { %v1684_v4 = vadd.f32 %v1623_v7, %v1397_v35  ;;  %v3762_v35 = vrot.slane %v5791_v52, 5  ;;  %v5064_v7 = vld [vmem:[%s5157_s27 + $0x1c] sm:$0xf]  ;;  %v3103_v52 = vsel %vm5169_vm3, %v3098_v34, %v3102_v11  ;;  %v3130_v11 = vrot.slane %v3128_v17, 4 }
 0x15f   : > { %v1339_v20 = vpop.f32.mrf.mxu2  ;;  %v5816_v2 = vadd.f32 %v2277_v48, %v1684_v4  ;;  %v4947_v48 = vrot.slane %v4931_v24, 9  ;;  %v4705_v4 = vld [vmem:[%s5157_s27 + $0x18] sm:$0xe]  ;;  %v3764_v58 = vrot.slane %v3762_v35, 4 }
 0x160   : > { %v1398_v28 = vadd.f32 %v1339_v20, %v987_v23  ;;  %v989_v23 = vadd.f32 %v988_v5, %v5574_v29  ;;  %v3765_v20 = vrot.slane %v4868_v9, 5  ;;  %v5015_v24 = vld [vmem:[%s5157_s27 + $0x18] sm:$0xff]  ;;  %v3476_v5 = vunpack.c.l.b16 %v3103_v52 }
 0x161   : > { %4638 = vmatmul.msk.bf16.gmra.mxu3 %vm669_vm4, %v5014_v60  ;;  %6596 = vst [vmem:[#allocation3_spill] sm:$0xff] %v5816_v2  ;;  %v2430_v60 = vrot.slane %v5064_v7, 5  ;;  %v5831_v7 = vrot.slane %v3124_v14, 5  ;;  %v3763_v2 = vsel %vm5343_vm7, %v4947_v48, %v3762_v35  ;;  %v3134_v35 = vshll.u32 %v5837_v38, 16 }
 0x162   : > { %v3508_v48 = vpack.c.b16 %v3477_v61, %v3476_v5  ;;  %v5066_v5 = vld [vmem:[%s5157_s27 + $0x28] sm:$0xf] }
 0x163   : > { %v2280_v27 = vpop.f32.mrf.mxu0  ;;  %v2432_v62 = vrot.slane %v2430_v60, 4  ;;  %v2437_v61 = vrot.slane %v5066_v5, 5 }
 0x164   : > { %v1626_v50 = vpop.f32.mrf.mxu3  ;;  %v991_v53 = vpop.f32.mrf.mxu1 }
 0x165   : > { %v1685_v16 = vadd.f32 %v1626_v50, %v1398_v28  ;;  %v3117_v28 = vrot.slane %v3115_v3, 4  ;;  %v3120_v50 = vrot.slane %v3118_v8, 5  ;;  %v2434_v17 = vsel %vm5343_vm7, %v2432_v62, %v2433_v19  ;;  %v5856_v62 = vld [vmem:[%s5157_s27 + $0x34] sm:$0xf] }
 0x166   : > { %4703 = vmatmul.msk.bf16.gmra.mxu0 %vm669_vm4, %v2184_v21  ;;  %v4721_v21 = vrot.slane %v4705_v4, 9  ;;  %v992_v4 = vadd.f32 %v991_v53, %v5456_v37 }
 0x167   : > { %v1341_v56 = vpop.f32.mrf.mxu2  ;;  %4737 = vmatmul.msk.bf16.vlgmr.msra.gmra.mxu1 %vm669_vm4, %v5784_v44  ;;  %v5834_v29 = vadd.f32 %v2280_v27, %v1685_v16  ;;  %v3766_v44 = vsel %vm5343_vm7, %v3764_v58, %v3765_v20  ;;  %v3121_v3 = vor.u32 %v3120_v50, %v3117_v28  ;;  %v3131_v16 = vor.u32 %v3130_v11, %v5831_v7  ;;  %v4932_v11 = vld [vmem:[%s5157_s27 + $0x24] sm:$0xe] }
 0x168   : > { %v1399_v34 = vadd.f32 %v1341_v56, %v989_v23  ;;  %v2431_v27 = vsel %vm5343_vm7, %v4721_v21, %v2430_v60  ;;  %v3874_v23 = vunpack.c.l.b16 %v3763_v2  ;;  %v3875_v41 = vunpack.c.l.b16 %v3766_v44 }
 0x169   : > { %v2537_v20 = vunpack.c.l.b16 %v2431_v27  ;;  %v2538_v60 = vunpack.c.l.b16 %v2434_v17  ;;  %v3122_v28 = vrot.slane %v3121_v3, 4  ;;  %v3132_v19 = vrot.slane %v3131_v16, 4 }
 0x16a   : > { %v3136_v50 = vrot.slane %v3134_v35, 5  ;;  %v3769_v21 = vrot.slane %v5811_v30, 5  ;;  %v4948_v17 = vrot.slane %v4932_v11, 9  ;;  %v4706_v30 = vld [vmem:[%s5157_s27 + $0x24] sm:$0xe] }
 0x16b   : > { %v2282_v9 = vpop.f32.mrf.mxu0  ;;  %v2568_v53 = vpack.c.b16 %v2538_v60, %v2537_v20 }
 0x16c   : > { %v1628_v8 = vpop.f32.mrf.mxu3  ;;  %4850 = vmatmul.msk.bf16.vlgmr.msra.gmra.mxu2 %vm669_vm4, %v5015_v24  ;;  %v993_v14 = vpop.f32.mrf.mxu1  ;;  %v4872_v24 = vld [vmem:[%s5157_s27 + $0x30] sm:$0xf]  ;;  %v3137_v27 = vsel %vm5169_vm3, %v3132_v19, %v3136_v50  ;;  %v5016_v50 = vld [vmem:[%s5157_s27 + $0x24] sm:$0xff] }
 0x16d   : > { %v1686_v52 = vadd.f32 %v1628_v8, %v1399_v34  ;;  %v3906_v34 = vpack.c.b16 %v3875_v41, %v3874_v23  ;;  %v3127_v8 = vsel %vm5169_vm3, %v3122_v28, %v5831_v7  ;;  %v3139_v16 = vshrl.u32 %v4872_v24, 16  ;;  %v5067_v41 = vld [vmem:[%s5157_s27 + $0x2c] sm:$0x1] }
 0x16e   : > { %v3771_v23 = vrot.slane %v3769_v21, 4  ;;  %v3772_v7 = vrot.slane %v5837_v38, 5  ;;  %v3478_v60 = vunpack.c.l.b16 %v3127_v8  ;;  %v2439_v28 = vrot.slane %v2437_v61, 4 }
 0x16f   : > { %v1344_v58 = vpop.f32.mrf.mxu2  ;;  %v5858_v37 = vadd.f32 %v2282_v9, %v1686_v52  ;;  %v3142_v9 = vshll.u32 %v4872_v24, 16  ;;  %v3148_v52 = vshll.u32 %v5856_v62, 16  ;;  %v3479_v11 = vunpack.c.l.b16 %v3137_v27 }
 0x170   : > { %v1400_v56 = vadd.f32 %v1344_v58, %v992_v4  ;;  %v994_v4 = vadd.f32 %v993_v14, %v5477_v63  ;;  %v2440_v58 = vrot.slane %v5067_v41, 5  ;;  %v3770_v24 = vsel %vm5343_vm7, %v4948_v17, %v3769_v21 }
 0x171   : > { %4915 = vmatmul.msk.bf16.vlgmr.msra.gmra.mxu3 %vm669_vm4, %v3508_v48  ;;  %v3152_v48 = vshrl.u32 %v5856_v62, 16  ;;  %v3141_v63 = vrot.slane %v3139_v16, 4  ;;  %v3144_v14 = vrot.slane %v3142_v9, 5  ;;  %v5879_v38 = vrot.slane %v3148_v52, 5 }
 0x172   : > { %v2441_v27 = vsel %vm5343_vm7, %v2439_v28, %v2440_v58  ;;  %v3876_v17 = vunpack.c.l.b16 %v3770_v24  ;;  %v4933_v24 = vld [vmem:[%s5157_s27 + $0x30] sm:$0xe] }
 0x173   : > { %v2285_v2 = vpop.f32.mrf.mxu0  ;;  %v3154_v5 = vrot.slane %v3152_v48, 4  ;;  %v3145_v52 = vor.u32 %v3144_v14, %v3141_v63 }
 0x174   : > { %v1631_v44 = vpop.f32.mrf.mxu3  ;;  %v996_v3 = vpop.f32.mrf.mxu1 }
 0x175   : > { %v1687_v35 = vadd.f32 %v1631_v44, %v1400_v56  ;;  %v4722_v56 = vrot.slane %v4706_v30, 9  ;;  %v5888_v30 = vld [vmem:[%s5157_s27 + $0x38] sm:$0x1]  ;;  %v3155_v48 = vor.u32 %v3154_v5, %v5879_v38  ;;  %v3146_v28 = vrot.slane %v3145_v52, 4 }
 0x176   : > { %4964 = vmatmul.msk.bf16.vlgmr.msra.gmra.mxu0 %vm669_vm4, %v3906_v34 }
 0x177   : > { %v1346_v20 = vpop.f32.mrf.mxu2  ;;  %4738 = vmatmul.msk.bf16.gmra.mxu1 %vm669_vm4, %v2568_v53  ;;  %v5877_v34 = vadd.f32 %v2285_v2, %v1687_v35  ;;  %v3773_v53 = vsel %vm5343_vm7, %v3771_v23, %v3772_v7  ;;  %v2438_v8 = vsel %vm5343_vm7, %v4722_v56, %v2437_v61  ;;  %v3509_v2 = vpack.c.b16 %v3479_v11, %v3478_v60  ;;  %v5896_v56 = vld [vmem:[%s5157_s27 + $0x40] sm:$0xf] }
 0x178   : > { %v1401_v19 = vadd.f32 %v1346_v20, %v994_v4  ;;  %v3877_v9 = vunpack.c.l.b16 %v3773_v53  ;;  %v997_v61 = vadd.f32 %v996_v3, %v5494_v22  ;;  %v2539_v4 = vunpack.c.l.b16 %v2438_v8  ;;  %v4875_v20 = vld [vmem:[%s5157_s27 + $0x3c] sm:$0xf] }
 0x179   : > { %v2540_v23 = vunpack.c.l.b16 %v2441_v27  ;;  %v3158_v7 = vshll.u32 %v5888_v30, 16  ;;  %v3776_v22 = vrot.slane %v5856_v62, 5  ;;  %v3163_v14 = vshrl.u32 %v4875_v20, 16 }
 0x17a   : > { %v3907_v60 = vpack.c.b16 %v3877_v9, %v3876_v17  ;;  %v3166_v5 = vshll.u32 %v4875_v20, 16  ;;  %v3172_v53 = vshll.u32 %v5896_v56, 16  ;;  %v3176_v8 = vshrl.u32 %v5896_v56, 16  ;;  %v5069_v9 = vld [vmem:[%s5157_s27 + $0x38] sm:$0x1] }
 0x17b   : > { %v2287_v44 = vpop.f32.mrf.mxu0  ;;  %v3160_v11 = vrot.slane %v3158_v7, 5  ;;  %v2447_v52 = vrot.slane %v5069_v9, 5  ;;  %v3779_v62 = vrot.slane %v5888_v30, 5  ;;  %v3778_v7 = vrot.slane %v3776_v22, 4  ;;  %v5923_v9 = vld [vmem:[%s5157_s27 + $0x44] sm:$0x1] }
 0x17c   : > { %v1633_v21 = vpop.f32.mrf.mxu3  ;;  %4851 = vmatmul.msk.bf16.gmra.mxu2 %vm669_vm4, %v5016_v50  ;;  %v998_v16 = vpop.f32.mrf.mxu1  ;;  %v2569_v50 = vpack.c.b16 %v2540_v23, %v2539_v4  ;;  %v3151_v4 = vsel %vm5169_vm3, %v3146_v28, %v5879_v38  ;;  %v3168_v20 = vrot.slane %v3166_v5, 5  ;;  %v5917_v30 = vrot.slane %v3172_v53, 5 }
 0x17d   : > { %v1688_v35 = vadd.f32 %v1633_v21, %v1401_v19  ;;  %v3156_v19 = vrot.slane %v3155_v48, 4  ;;  %v3480_v38 = vunpack.c.l.b16 %v3151_v4 }
 0x17f   : > { %v1349_v41 = vpop.f32.mrf.mxu2  ;;  %v5901_v3 = vadd.f32 %v2287_v44, %v1688_v35  ;;  %v4707_v44 = vld [vmem:[%s5157_s27 + $0x30] sm:$0xe]  ;;  %v999_v35 = vadd.f32 %v998_v16, %v5515_v55  ;;  %v3161_v23 = vsel %vm5169_vm3, %v3156_v19, %v3160_v11 }
 0x180   : > { %v1402_v58 = vadd.f32 %v1349_v41, %v997_v61  ;;  %v4949_v61 = vrot.slane %v4933_v24, 9  ;;  %v3178_v24 = vrot.slane %v3176_v8, 4  ;;  %v4723_v55 = vrot.slane %v4707_v44, 9 }
 0x181   : > { %4916 = vmatmul.msk.bf16.gmra.mxu3 %vm669_vm4, %v3509_v2  ;;  %v5068_v2 = vld [vmem:[%s5157_s27 + $0x34] sm:$0xf]  ;;  %v3481_v28 = vunpack.c.l.b16 %v3161_v23 }
 0x182   : > { %v2444_v17 = vrot.slane %v5068_v2, 5  ;;  %v3777_v11 = vsel %vm5343_vm7, %v4949_v61, %v3776_v22  ;;  %v3182_v22 = vshll.u32 %v5923_v9, 16 }
 0x183   : > { %v2290_v63 = vpop.f32.mrf.mxu0  ;;  %v3510_v44 = vpack.c.b16 %v3481_v28, %v3480_v38  ;;  %v5070_v28 = vld [vmem:[%s5157_s27 + $0x40] sm:$0xf] }
 0x184   : > { %v1636_v27 = vpop.f32.mrf.mxu3  ;;  %v1001_v21 = vpop.f32.mrf.mxu1  ;;  %v2446_v16 = vrot.slane %v2444_v17, 4 }
 0x185   : > { %v1689_v48 = vadd.f32 %v1636_v27, %v1402_v58  ;;  %v3165_v58 = vrot.slane %v3163_v14, 4  ;;  %v5017_v27 = vld [vmem:[%s5157_s27 + $0x30] sm:$0xff] }
 0x186   : > { %4965 = vmatmul.msk.bf16.gmra.mxu0 %vm669_vm4, %v3907_v60  ;;  %v2448_v8 = vsel %vm5343_vm7, %v2446_v16, %v2447_v52  ;;  %v5942_v16 = vld [vmem:[%s5157_s27 + $0x4c] sm:$0xf] }
 0x187   : > { %v1351_v41 = vpop.f32.mrf.mxu2  ;;  %4739 = vmatmul.msk.bf16.gmra.mxu1 %vm669_vm4, %v2569_v50  ;;  %v5920_v2 = vadd.f32 %v2290_v63, %v1689_v48  ;;  %v3780_v50 = vsel %vm5343_vm7, %v3778_v7, %v3779_v62  ;;  %v3169_v14 = vor.u32 %v3168_v20, %v3165_v58  ;;  %v2445_v63 = vsel %vm5343_vm7, %v4723_v55, %v2444_v17 }
 0x188   : > { %v1403_v60 = vadd.f32 %v1351_v41, %v999_v35  ;;  %v3179_v48 = vor.u32 %v3178_v24, %v5917_v30  ;;  %v1002_v62 = vadd.f32 %v1001_v21, %v5538_v26  ;;  %v3878_v35 = vunpack.c.l.b16 %v3777_v11  ;;  %v4934_v24 = vld [vmem:[%s5157_s27 + $0x3c] sm:$0xe] }
 0x189   : > { %v3879_v4 = vunpack.c.l.b16 %v3780_v50  ;;  %v2541_v7 = vunpack.c.l.b16 %v2445_v63  ;;  %v2542_v17 = vunpack.c.l.b16 %v2448_v8  ;;  %v3170_v58 = vrot.slane %v3169_v14, 4 }
 0x18a   : > { %v3180_v52 = vrot.slane %v3179_v48, 4  ;;  %v3184_v20 = vrot.slane %v3182_v22, 5  ;;  %v3783_v55 = vrot.slane %v5896_v56, 5  ;;  %v2451_v11 = vrot.slane %v5070_v28, 5  ;;  %v4708_v56 = vld [vmem:[%s5157_s27 + $0x3c] sm:$0xe] }
 0x18b   : > { %v2292_v19 = vpop.f32.mrf.mxu0  ;;  %v2570_v38 = vpack.c.b16 %v2542_v17, %v2541_v7  ;;  %v4950_v8 = vrot.slane %v4934_v24, 9 }
 0x18c   : > { %v1638_v5 = vpop.f32.mrf.mxu3  ;;  %4852 = vmatmul.msk.bf16.gmra.mxu2 %vm669_vm4, %v5017_v27  ;;  %v1003_v53 = vpop.f32.mrf.mxu1  ;;  %v4878_v27 = vld [vmem:[%s5157_s27 + $0x48] sm:$0xf]  ;;  %v3185_v63 = vsel %vm5169_vm3, %v3180_v52, %v3184_v20  ;;  %v5018_v20 = vld [vmem:[%s5157_s27 + $0x3c] sm:$0xff] }
 0x18d   : > { %v1690_v61 = vadd.f32 %v1638_v5, %v1403_v60  ;;  %v3908_v60 = vpack.c.b16 %v3879_v4, %v3878_v35  ;;  %v3175_v5 = vsel %vm5169_vm3, %v3170_v58, %v5917_v30  ;;  %v3187_v48 = vshrl.u32 %v4878_v27, 16  ;;  %v5071_v4 = vld [vmem:[%s5157_s27 + $0x44] sm:$0x1] }
 0x18e   : > { %v3785_v35 = vrot.slane %v3783_v55, 4  ;;  %v3786_v30 = vrot.slane %v5923_v9, 5  ;;  %v3482_v17 = vunpack.c.l.b16 %v3175_v5  ;;  %v2453_v58 = vrot.slane %v2451_v11, 4 }
 0x18f   : > { %v1354_v23 = vpop.f32.mrf.mxu2  ;;  %v5944_v26 = vadd.f32 %v2292_v19, %v1690_v61  ;;  %v3190_v19 = vshll.u32 %v4878_v27, 16  ;;  %v3196_v61 = vshll.u32 %v5942_v16, 16  ;;  %v3483_v24 = vunpack.c.l.b16 %v3185_v63 }
 0x190   : > { %v1404_v41 = vadd.f32 %v1354_v23, %v1002_v62  ;;  %v1004_v62 = vadd.f32 %v1003_v53, %v5556_v43  ;;  %v2454_v23 = vrot.slane %v5071_v4, 5  ;;  %v3784_v27 = vsel %vm5343_vm7, %v4950_v8, %v3783_v55 }
 0x191   : > { %4917 = vmatmul.msk.bf16.gmra.mxu3 %vm669_vm4, %v3510_v44  ;;  %v3200_v44 = vshrl.u32 %v5942_v16, 16  ;;  %v3189_v43 = vrot.slane %v3187_v48, 4  ;;  %v3192_v53 = vrot.slane %v3190_v19, 5  ;;  %v5965_v9 = vrot.slane %v3196_v61, 5 }
 0x192   : > { %v2455_v63 = vsel %vm5343_vm7, %v2453_v58, %v2454_v23  ;;  %v3880_v8 = vunpack.c.l.b16 %v3784_v27  ;;  %v4935_v27 = vld [vmem:[%s5157_s27 + $0x48] sm:$0xe] }
 0x193   : > { %v2295_v21 = vpop.f32.mrf.mxu0  ;;  %v3202_v28 = vrot.slane %v3200_v44, 4  ;;  %v3193_v61 = vor.u32 %v3192_v53, %v3189_v43 }
 0x194   : > { %v1641_v50 = vpop.f32.mrf.mxu3  ;;  %v1006_v14 = vpop.f32.mrf.mxu1 }
 0x195   : > { %v1691_v22 = vadd.f32 %v1641_v50, %v1404_v41  ;;  %v4724_v41 = vrot.slane %v4708_v56, 9  ;;  %v5974_v56 = vld [vmem:[%s5157_s27 + $0x50] sm:$0x1]  ;;  %v3203_v44 = vor.u32 %v3202_v28, %v5965_v9  ;;  %v3194_v58 = vrot.slane %v3193_v61, 4 }
 0x196   : > { %4966 = vmatmul.msk.bf16.gmra.mxu0 %vm669_vm4, %v3908_v60 }
 0x197   : > { %v1356_v7 = vpop.f32.mrf.mxu2  ;;  %4740 = vmatmul.msk.bf16.gmra.mxu1 %vm669_vm4, %v2570_v38  ;;  %v5963_v60 = vadd.f32 %v2295_v21, %v1691_v22  ;;  %v3787_v38 = vsel %vm5343_vm7, %v3785_v35, %v3786_v30  ;;  %v2452_v5 = vsel %vm5343_vm7, %v4724_v41, %v2451_v11  ;;  %v3511_v21 = vpack.c.b16 %v3483_v24, %v3482_v17  ;;  %v5982_v41 = vld [vmem:[%s5157_s27 + $0x58] sm:$0xf] }
 0x198   : > { %v1405_v52 = vadd.f32 %v1356_v7, %v1004_v62  ;;  %v3881_v19 = vunpack.c.l.b16 %v3787_v38  ;;  %v1007_v11 = vadd.f32 %v1006_v14, %v5577_v40  ;;  %v2543_v62 = vunpack.c.l.b16 %v2452_v5  ;;  %v4881_v7 = vld [vmem:[%s5157_s27 + $0x54] sm:$0xf] }
 0x199   : > { %v2544_v35 = vunpack.c.l.b16 %v2455_v63  ;;  %v3206_v30 = vshll.u32 %v5974_v56, 16  ;;  %v3790_v40 = vrot.slane %v5942_v16, 5  ;;  %v3211_v53 = vshrl.u32 %v4881_v7, 16 }
 0x19a   : > { %v3909_v17 = vpack.c.b16 %v3881_v19, %v3880_v8  ;;  %v3214_v28 = vshll.u32 %v4881_v7, 16  ;;  %v3220_v38 = vshll.u32 %v5982_v41, 16  ;;  %v3224_v5 = vshrl.u32 %v5982_v41, 16  ;;  %v5073_v19 = vld [vmem:[%s5157_s27 + $0x50] sm:$0x1] }
 0x19b   : > { %v2297_v50 = vpop.f32.mrf.mxu0  ;;  %v3208_v24 = vrot.slane %v3206_v30, 5  ;;  %v2461_v61 = vrot.slane %v5073_v19, 5  ;;  %v3793_v16 = vrot.slane %v5974_v56, 5  ;;  %v3792_v30 = vrot.slane %v3790_v40, 4  ;;  %v6009_v19 = vld [vmem:[%s5157_s27 + $0x5c] sm:$0x1] }
 0x19c   : > { %v1643_v55 = vpop.f32.mrf.mxu3  ;;  %4853 = vmatmul.msk.bf16.gmra.mxu2 %vm669_vm4, %v5018_v20  ;;  %v1008_v48 = vpop.f32.mrf.mxu1  ;;  %v2571_v20 = vpack.c.b16 %v2544_v35, %v2543_v62  ;;  %v3199_v62 = vsel %vm5169_vm3, %v3194_v58, %v5965_v9  ;;  %v3216_v7 = vrot.slane %v3214_v28, 5  ;;  %v6003_v56 = vrot.slane %v3220_v38, 5 }
 0x19d   : > { %v1692_v22 = vadd.f32 %v1643_v55, %v1405_v52  ;;  %v3204_v52 = vrot.slane %v3203_v44, 4  ;;  %v3484_v9 = vunpack.c.l.b16 %v3199_v62 }
 0x19f   : > { %v1359_v4 = vpop.f32.mrf.mxu2  ;;  %v5987_v14 = vadd.f32 %v2297_v50, %v1692_v22  ;;  %v4709_v50 = vld [vmem:[%s5157_s27 + $0x48] sm:$0xe]  ;;  %v1009_v22 = vadd.f32 %v1008_v48, %v5592_v10  ;;  %v3209_v35 = vsel %vm5169_vm3, %v3204_v52, %v3208_v24 }
 0x1a0   : > { %v1406_v23 = vadd.f32 %v1359_v4, %v1007_v11  ;;  %v4951_v11 = vrot.slane %v4935_v27, 9  ;;  %v3226_v27 = vrot.slane %v3224_v5, 4  ;;  %v4725_v10 = vrot.slane %v4709_v50, 9 }
 0x1a1   : > { %4918 = vmatmul.msk.bf16.gmra.mxu3 %vm669_vm4, %v3511_v21  ;;  %v5072_v21 = vld [vmem:[%s5157_s27 + $0x4c] sm:$0xf]  ;;  %v3485_v58 = vunpack.c.l.b16 %v3209_v35 }
 0x1a2   : > { %v2458_v8 = vrot.slane %v5072_v21, 5  ;;  %v3791_v24 = vsel %vm5343_vm7, %v4951_v11, %v3790_v40  ;;  %v3230_v40 = vshll.u32 %v6009_v19, 16 }
 0x1a3   : > { %v2300_v43 = vpop.f32.mrf.mxu0  ;;  %v3512_v50 = vpack.c.b16 %v3485_v58, %v3484_v9  ;;  %v5074_v58 = vld [vmem:[%s5157_s27 + $0x58] sm:$0xf] }
 0x1a4   : > { %v1646_v63 = vpop.f32.mrf.mxu3  ;;  %v1011_v55 = vpop.f32.mrf.mxu1  ;;  %v2460_v48 = vrot.slane %v2458_v8, 4 }
 0x1a5   : > { %v1693_v44 = vadd.f32 %v1646_v63, %v1406_v23  ;;  %v3213_v23 = vrot.slane %v3211_v53, 4  ;;  %v5019_v63 = vld [vmem:[%s5157_s27 + $0x48] sm:$0xff] }
 0x1a6   : > { %4967 = vmatmul.msk.bf16.gmra.mxu0 %vm669_vm4, %v3909_v17  ;;  %v2462_v5 = vsel %vm5343_vm7, %v2460_v48, %v2461_v61  ;;  %v6028_v48 = vld [vmem:[%s5157_s27 + $0x64] sm:$0xf] }
 0x1a7   : > { %v1361_v4 = vpop.f32.mrf.mxu2  ;;  %4741 = vmatmul.msk.bf16.gmra.mxu1 %vm669_vm4, %v2571_v20  ;;  %v6006_v21 = vadd.f32 %v2300_v43, %v1693_v44  ;;  %v3794_v20 = vsel %vm5343_vm7, %v3792_v30, %v3793_v16  ;;  %v3217_v53 = vor.u32 %v3216_v7, %v3213_v23  ;;  %v2459_v43 = vsel %vm5343_vm7, %v4725_v10, %v2458_v8 }
 0x1a8   : > { %v1407_v17 = vadd.f32 %v1361_v4, %v1009_v22  ;;  %v3227_v44 = vor.u32 %v3226_v27, %v6003_v56  ;;  %v1012_v16 = vadd.f32 %v1011_v55, %v5468_v49  ;;  %v3882_v22 = vunpack.c.l.b16 %v3791_v24  ;;  %v4936_v27 = vld [vmem:[%s5157_s27 + $0x54] sm:$0xe] }
 0x1a9   : > { %v3883_v62 = vunpack.c.l.b16 %v3794_v20  ;;  %v2545_v30 = vunpack.c.l.b16 %v2459_v43  ;;  %v2546_v8 = vunpack.c.l.b16 %v2462_v5  ;;  %v3218_v23 = vrot.slane %v3217_v53, 4 }
 0x1aa   : > { %v3228_v61 = vrot.slane %v3227_v44, 4  ;;  %v3232_v7 = vrot.slane %v3230_v40, 5  ;;  %v3797_v10 = vrot.slane %v5982_v41, 5  ;;  %v2465_v24 = vrot.slane %v5074_v58, 5  ;;  %v4710_v41 = vld [vmem:[%s5157_s27 + $0x54] sm:$0xe] }
 0x1ab   : > { %v2302_v52 = vpop.f32.mrf.mxu0  ;;  %v2572_v9 = vpack.c.b16 %v2546_v8, %v2545_v30  ;;  %v4952_v5 = vrot.slane %v4936_v27, 9 }
 0x1ac   : > { %v1648_v28 = vpop.f32.mrf.mxu3  ;;  %4854 = vmatmul.msk.bf16.gmra.mxu2 %vm669_vm4, %v5019_v63  ;;  %v1013_v38 = vpop.f32.mrf.mxu1  ;;  %v4884_v63 = vld [vmem:[%s5157_s27 + $0x60] sm:$0xf]  ;;  %v3233_v43 = vsel %vm5169_vm3, %v3228_v61, %v3232_v7  ;;  %v5020_v7 = vld [vmem:[%s5157_s27 + $0x54] sm:$0xff] }
 0x1ad   : > { %v1694_v11 = vadd.f32 %v1648_v28, %v1407_v17  ;;  %v3910_v17 = vpack.c.b16 %v3883_v62, %v3882_v22  ;;  %v3223_v28 = vsel %vm5169_vm3, %v3218_v23, %v6003_v56  ;;  %v3235_v44 = vshrl.u32 %v4884_v63, 16  ;;  %v5075_v62 = vld [vmem:[%s5157_s27 + $0x5c] sm:$0x1] }
 0x1ae   : > { %v3799_v22 = vrot.slane %v3797_v10, 4  ;;  %v3800_v56 = vrot.slane %v6009_v19, 5  ;;  %v3486_v8 = vunpack.c.l.b16 %v3223_v28  ;;  %v2467_v23 = vrot.slane %v2465_v24, 4 }
 0x1af   : > { %v1364_v35 = vpop.f32.mrf.mxu2  ;;  %v6030_v49 = vadd.f32 %v2302_v52, %v1694_v11  ;;  %v3238_v52 = vshll.u32 %v4884_v63, 16  ;;  %v3244_v11 = vshll.u32 %v6028_v48, 16  ;;  %v3487_v27 = vunpack.c.l.b16 %v3233_v43 }
 0x1b0   : > { %v1408_v4 = vadd.f32 %v1364_v35, %v1012_v16  ;;  %v1014_v16 = vadd.f32 %v1013_v38, %v5487_v0  ;;  %v2468_v35 = vrot.slane %v5075_v62, 5  ;;  %v3798_v63 = vsel %vm5343_vm7, %v4952_v5, %v3797_v10 }
 0x1b1   : > { %4919 = vmatmul.msk.bf16.gmra.mxu3 %vm669_vm4, %v3512_v50  ;;  %v3248_v50 = vshrl.u32 %v6028_v48, 16  ;;  %v3237_v0 = vrot.slane %v3235_v44, 4  ;;  %v3240_v38 = vrot.slane %v3238_v52, 5  ;;  %v6051_v19 = vrot.slane %v3244_v11, 5 }
 0x1b2   : > { %v2469_v43 = vsel %vm5343_vm7, %v2467_v23, %v2468_v35  ;;  %v3884_v5 = vunpack.c.l.b16 %v3798_v63  ;;  %v4937_v63 = vld [vmem:[%s5157_s27 + $0x60] sm:$0xe] }
 0x1b3   : > { %v2305_v55 = vpop.f32.mrf.mxu0  ;;  %v3250_v58 = vrot.slane %v3248_v50, 4  ;;  %v3241_v11 = vor.u32 %v3240_v38, %v3237_v0 }
 0x1b4   : > { %v1651_v20 = vpop.f32.mrf.mxu3  ;;  %v1016_v53 = vpop.f32.mrf.mxu1 }
 0x1b5   : > { %v1695_v40 = vadd.f32 %v1651_v20, %v1408_v4  ;;  %v4726_v4 = vrot.slane %v4710_v41, 9  ;;  %v6060_v41 = vld [vmem:[%s5157_s27 + $0x68] sm:$0x1]  ;;  %v3251_v50 = vor.u32 %v3250_v58, %v6051_v19  ;;  %v3242_v23 = vrot.slane %v3241_v11, 4 }
 0x1b6   : > { %4968 = vmatmul.msk.bf16.gmra.mxu0 %vm669_vm4, %v3910_v17 }
 0x1b7   : > { %v1366_v30 = vpop.f32.mrf.mxu2  ;;  %4742 = vmatmul.msk.bf16.gmra.mxu1 %vm669_vm4, %v2572_v9  ;;  %v6049_v17 = vadd.f32 %v2305_v55, %v1695_v40  ;;  %v3801_v9 = vsel %vm5343_vm7, %v3799_v22, %v3800_v56  ;;  %v2466_v28 = vsel %vm5343_vm7, %v4726_v4, %v2465_v24  ;;  %v3513_v55 = vpack.c.b16 %v3487_v27, %v3486_v8  ;;  %v6068_v4 = vld [vmem:[%s5157_s27 + $0x70] sm:$0xf] }
 0x1b8   : > { %v1409_v61 = vadd.f32 %v1366_v30, %v1014_v16  ;;  %v3885_v52 = vunpack.c.l.b16 %v3801_v9  ;;  %v1017_v24 = vadd.f32 %v1016_v53, %v5508_v39  ;;  %v2547_v16 = vunpack.c.l.b16 %v2466_v28  ;;  %v4887_v30 = vld [vmem:[%s5157_s27 + $0x6c] sm:$0xf] }
 0x1b9   : > { %v2548_v22 = vunpack.c.l.b16 %v2469_v43  ;;  %v3254_v56 = vshll.u32 %v6060_v41, 16  ;;  %v3804_v39 = vrot.slane %v6028_v48, 5  ;;  %v3259_v38 = vshrl.u32 %v4887_v30, 16 }
 0x1ba   : > { %v3911_v8 = vpack.c.b16 %v3885_v52, %v3884_v5  ;;  %v3262_v58 = vshll.u32 %v4887_v30, 16  ;;  %v3268_v9 = vshll.u32 %v6068_v4, 16  ;;  %v3272_v28 = vshrl.u32 %v6068_v4, 16  ;;  %v5077_v52 = vld [vmem:[%s5157_s27 + $0x68] sm:$0x1] }
 0x1bb   : > { %v2307_v20 = vpop.f32.mrf.mxu0  ;;  %v3256_v27 = vrot.slane %v3254_v56, 5  ;;  %v2475_v11 = vrot.slane %v5077_v52, 5  ;;  %v3807_v48 = vrot.slane %v6060_v41, 5  ;;  %v3806_v56 = vrot.slane %v3804_v39, 4 }
 0x1bc   : > { %v1653_v10 = vpop.f32.mrf.mxu3  ;;  %4855 = vmatmul.msk.bf16.gmra.mxu2 %vm669_vm4, %v5020_v7  ;;  %v1018_v44 = vpop.f32.mrf.mxu1  ;;  %v2573_v7 = vpack.c.b16 %v2548_v22, %v2547_v16  ;;  %v3247_v16 = vsel %vm5169_vm3, %v3242_v23, %v6051_v19  ;;  %v3264_v30 = vrot.slane %v3262_v58, 5  ;;  %v3270_v41 = vrot.slane %v3268_v9, 5  ;;  %v4889_v23 = vld [vmem:[%s5157_s27 + $0x74] sm:$0x1] }
 0x1bd   : > { %v1696_v40 = vadd.f32 %v1653_v10, %v1409_v61  ;;  %v3252_v61 = vrot.slane %v3251_v50, 4  ;;  %v3488_v52 = vunpack.c.l.b16 %v3247_v16 }
 0x1bf   : > { %v1369_v62 = vpop.f32.mrf.mxu2  ;;  %v6073_v53 = vadd.f32 %v2307_v20, %v1696_v40  ;;  %v4711_v20 = vld [vmem:[%s5157_s27 + $0x60] sm:$0xe]  ;;  %v1019_v40 = vadd.f32 %v1018_v44, %v5527_v6  ;;  %v3257_v22 = vsel %vm5169_vm3, %v3252_v61, %v3256_v27 }
 0x1c0   : > { %v1410_v35 = vadd.f32 %v1369_v62, %v1017_v24  ;;  %v4953_v24 = vrot.slane %v4937_v63, 9  ;;  %v3274_v63 = vrot.slane %v3272_v28, 4  ;;  %v3489_v19 = vunpack.c.l.b16 %v3257_v22 }
 0x1c1   : > { %4920 = vmatmul.msk.bf16.gmra.mxu3 %vm669_vm4, %v3513_v55  ;;  %6597 = vst [vmem:[#allocation4_spill] sm:$0xff] %v6073_v53  ;;  %v5076_v55 = vld [vmem:[%s5157_s27 + $0x64] sm:$0xf] }
 0x1c2   : > { %v2472_v5 = vrot.slane %v5076_v55, 5  ;;  %v4727_v55 = vrot.slane %v4711_v20, 9  ;;  %v3805_v61 = vsel %vm5343_vm7, %v4953_v24, %v3804_v39  ;;  %v3275_v28 = vor.u32 %v3274_v63, %v3270_v41  ;;  %v4890_v63 = vld [vmem:[%s5157_s27 + $0x78] sm:$0xf] }
 0x1c3   : > { %v2310_v0 = vpop.f32.mrf.mxu0  ;;  %v3514_v39 = vpack.c.b16 %v3489_v19, %v3488_v52 }
 0x1c4   : > { %v1656_v43 = vpop.f32.mrf.mxu3  ;;  %v1021_v10 = vpop.f32.mrf.mxu1  ;;  %v2474_v6 = vrot.slane %v2472_v5, 4 }
 0x1c5   : > { %v1697_v50 = vadd.f32 %v1656_v43, %v1410_v35  ;;  %v3261_v35 = vrot.slane %v3259_v38, 4  ;;  %v1022_v24 = vadd.f32 %v1021_v10, %v5546_v45  ;;  %v6108_v10 = vld [vmem:[%s5157_s27 + $0x7c] sm:$0xf] }
 0x1c6   : > { %4969 = vmatmul.msk.bf16.gmra.mxu0 %vm669_vm4, %v3911_v8  ;;  %v5021_v8 = vld [vmem:[%s5157_s27 + $0x60] sm:$0xff]  ;;  %v2476_v9 = vsel %vm5343_vm7, %v2474_v6, %v2475_v11 }
 0x1c7   : > { %v1371_v62 = vpop.f32.mrf.mxu2  ;;  %4743 = vmatmul.msk.bf16.gmra.mxu1 %vm669_vm4, %v2573_v7  ;;  %v6090_v44 = vadd.f32 %v2310_v0, %v1697_v50  ;;  %v3808_v7 = vsel %vm5343_vm7, %v3806_v56, %v3807_v48  ;;  %v3265_v27 = vor.u32 %v3264_v30, %v3261_v35  ;;  %v2473_v0 = vsel %vm5343_vm7, %v4727_v55, %v2472_v5  ;;  %v4938_v35 = vld [vmem:[%s5157_s27 + $0x6c] sm:$0xe] }
 0x1c8   : > { %v1411_v43 = vadd.f32 %v1371_v62, %v1019_v40  ;;  %v3278_v50 = vshll.u32 %v4889_v23, 16  ;;  %v3886_v48 = vunpack.c.l.b16 %v3805_v61  ;;  %v3887_v40 = vunpack.c.l.b16 %v3808_v7 }
 0x1c9   : > { %v2549_v22 = vunpack.c.l.b16 %v2473_v0  ;;  %v2550_v56 = vunpack.c.l.b16 %v2476_v9  ;;  %v3266_v62 = vrot.slane %v3265_v27, 4  ;;  %v3811_v5 = vrot.slane %v6068_v4, 5  ;;  %v4712_v0 = vld [vmem:[%s5157_s27 + $0x6c] sm:$0xe]  ;;  %v5078_v9 = vld [vmem:[%s5157_s27 + $0x70] sm:$0xf] }
 0x1ca   : > { %v3280_v11 = vrot.slane %v3278_v50, 5  ;;  %v4954_v45 = vrot.slane %v4938_v35, 9  ;;  %v3814_v61 = vrot.slane %v4889_v23, 5  ;;  %v3283_v50 = vshrl.u32 %v4890_v63, 16  ;;  %v5022_v35 = vld [vmem:[%s5157_s27 + $0x6c] sm:$0xff] }
 0x1cb   : > { %v2312_v53 = vpop.f32.mrf.mxu0  ;;  %v2574_v52 = vpack.c.b16 %v2550_v56, %v2549_v22  ;;  %v3271_v19 = vsel %vm5169_vm3, %v3266_v62, %v3270_v41  ;;  %v3813_v4 = vrot.slane %v3811_v5, 4  ;;  %v4728_v56 = vrot.slane %v4712_v0, 9 }
 0x1cc   : > { %v1658_v38 = vpop.f32.mrf.mxu3  ;;  %4856 = vmatmul.msk.bf16.gmra.mxu2 %vm669_vm4, %v5021_v8  ;;  %v1023_v58 = vpop.f32.mrf.mxu1  ;;  %v3276_v8 = vrot.slane %v3275_v28, 4  ;;  %v2479_v28 = vrot.slane %v5078_v9, 5  ;;  %v3490_v23 = vunpack.c.l.b16 %v3271_v19  ;;  %v4892_v19 = vld [vmem:[%s5157_s27 + $0x80] sm:$0x1] }
 0x1cd   : > { %v1698_v20 = vadd.f32 %v1658_v38, %v1411_v43  ;;  %v3912_v43 = vpack.c.b16 %v3887_v40, %v3886_v48  ;;  %v1024_v41 = vadd.f32 %v1023_v58, %v5569_v12  ;;  %v3815_v22 = vsel %vm5343_vm7, %v3813_v4, %v3814_v61 }
 0x1ce   : > { %v3281_v38 = vsel %vm5169_vm3, %v3276_v8, %v3280_v11  ;;  %v5079_v8 = vld [vmem:[%s5157_s27 + $0x74] sm:$0x1]  ;;  %v3285_v12 = vrot.slane %v3283_v50, 4  ;;  %v3889_v61 = vunpack.c.l.b16 %v3815_v22 }
 0x1cf   : > { %v1374_v16 = vpop.f32.mrf.mxu2  ;;  %v6110_v55 = vadd.f32 %v2312_v53, %v1698_v20  ;;  %v3286_v53 = vshll.u32 %v4890_v63, 16  ;;  %v3292_v20 = vshll.u32 %v6108_v10, 16  ;;  %v3491_v40 = vunpack.c.l.b16 %v3281_v38 }
 0x1d0   : > { %v1412_v30 = vadd.f32 %v1374_v16, %v1022_v24  ;;  %v3296_v24 = vshrl.u32 %v6108_v10, 16  ;;  %v3812_v16 = vsel %vm5343_vm7, %v4954_v45, %v3811_v5  ;;  %v2482_v11 = vrot.slane %v5079_v8, 5 }
 0x1d1   : > { %4921 = vmatmul.msk.bf16.gmra.mxu3 %vm669_vm4, %v3514_v39  ;;  %v3288_v58 = vrot.slane %v3286_v53, 5  ;;  %v3888_v5 = vunpack.c.l.b16 %v3812_v16  ;;  %v3515_v4 = vpack.c.b16 %v3491_v40, %v3490_v23  ;;  %v3302_v53 = vshll.u32 %v4892_v19, 16  ;;  %v4893_v16 = vld [vmem:[%s5157_s27 + $0x84] sm:$0xf] }
 0x1d3   : > { %v2315_v6 = vpop.f32.mrf.mxu0  ;;  %v3289_v50 = vor.u32 %v3288_v58, %v3285_v12  ;;  %v3913_v22 = vpack.c.b16 %v3889_v61, %v3888_v5 }
 0x1d4   : > { %v1661_v7 = vpop.f32.mrf.mxu3  ;;  %v1026_v27 = vpop.f32.mrf.mxu1 }
 0x1d5   : > { %v1699_v39 = vadd.f32 %v1661_v7, %v1412_v30  ;;  %v2481_v30 = vrot.slane %v2479_v28, 4 }
 0x1d6   : > { %4970 = vmatmul.msk.bf16.gmra.mxu0 %vm669_vm4, %v3912_v43  ;;  %v6131_v43 = vrot.slane %v3292_v20, 5  ;;  %v1027_v20 = vadd.f32 %v1026_v27, %v5588_v59  ;;  %v3821_v27 = vrot.slane %v4892_v19, 5 }
 0x1d7   : > { %v1376_v48 = vpop.f32.mrf.mxu2  ;;  %4744 = vmatmul.msk.bf16.gmra.mxu1 %vm669_vm4, %v2574_v52  ;;  %v6129_v63 = vadd.f32 %v2315_v6, %v1699_v39  ;;  %v3298_v52 = vrot.slane %v3296_v24, 4  ;;  %v2480_v6 = vsel %vm5343_vm7, %v4728_v56, %v2479_v28  ;;  %v2483_v0 = vsel %vm5343_vm7, %v2481_v30, %v2482_v11  ;;  %v4939_v24 = vld [vmem:[%s5157_s27 + $0x78] sm:$0xe]  ;;  %v6145_v28 = vld [vmem:[%s5157_s27 + $0x88] sm:$0xf] }
 0x1d8   : > { %v1413_v62 = vadd.f32 %v1376_v48, %v1024_v41  ;;  %v3818_v41 = vrot.slane %v6108_v10, 5  ;;  %v2551_v48 = vunpack.c.l.b16 %v2480_v6  ;;  %v2552_v40 = vunpack.c.l.b16 %v2483_v0  ;;  %v4713_v6 = vld [vmem:[%s5157_s27 + $0x78] sm:$0xe]  ;;  %v5080_v0 = vld [vmem:[%s5157_s27 + $0x7c] sm:$0xf] }
 0x1d9   : > { %v3299_v39 = vor.u32 %v3298_v52, %v6131_v43  ;;  %v3290_v56 = vrot.slane %v3289_v50, 4  ;;  %v3304_v30 = vrot.slane %v3302_v53, 5  ;;  %v4955_v8 = vrot.slane %v4939_v24, 9 }
 0x1da   : > { %v3820_v59 = vrot.slane %v3818_v41, 4  ;;  %v3307_v11 = vshrl.u32 %v4893_v16, 16  ;;  %v2575_v58 = vpack.c.b16 %v2552_v40, %v2551_v48  ;;  %v3310_v52 = vshll.u32 %v4893_v16, 16 }
 0x1db   : > { %v2317_v7 = vpop.f32.mrf.mxu0  ;;  %v3316_v5 = vshll.u32 %v6145_v28, 16  ;;  %v2486_v50 = vrot.slane %v5080_v0, 5  ;;  %v3295_v19 = vsel %vm5169_vm3, %v3290_v56, %v6131_v43  ;;  %v3819_v53 = vsel %vm5343_vm7, %v4955_v8, %v3818_v41  ;;  %v4895_v8 = vld [vmem:[%s5157_s27 + $0x8c] sm:$0x1] }
 0x1dc   : > { %v1663_v45 = vpop.f32.mrf.mxu3  ;;  %4857 = vmatmul.msk.bf16.gmra.mxu2 %vm669_vm4, %v5022_v35  ;;  %v1028_v38 = vpop.f32.mrf.mxu1  ;;  %v3309_v24 = vrot.slane %v3307_v11, 4  ;;  %v4729_v43 = vrot.slane %v4713_v6, 9  ;;  %v3312_v48 = vrot.slane %v3310_v52, 5  ;;  %v3492_v41 = vunpack.c.l.b16 %v3295_v19  ;;  %v4940_v19 = vld [vmem:[%s5157_s27 + $0x84] sm:$0xe] }
 0x1dd   : > { %v1700_v9 = vadd.f32 %v1663_v45, %v1413_v62  ;;  %v3300_v62 = vrot.slane %v3299_v39, 4  ;;  %v3320_v45 = vshrl.u32 %v6145_v28, 16  ;;  %v6166_v40 = vrot.slane %v3316_v5, 5 }
 0x1de   : > { %v2488_v56 = vrot.slane %v2486_v50, 4  ;;  %v2487_v5 = vsel %vm5343_vm7, %v4729_v43, %v2486_v50  ;;  %v6184_v50 = vld [vmem:[%s5157_s27 + $0x94] sm:$0xf] }
 0x1df   : > { %v1379_v23 = vpop.f32.mrf.mxu2  ;;  %v6148_v10 = vadd.f32 %v2317_v7, %v1700_v9  ;;  %v3305_v7 = vsel %vm5169_vm3, %v3300_v62, %v3304_v30  ;;  %v1029_v9 = vadd.f32 %v1028_v38, %v5605_v32  ;;  %v3322_v16 = vrot.slane %v3320_v45, 4  ;;  %v5081_v32 = vld [vmem:[%s5157_s27 + $0x80] sm:$0x1] }
 0x1e0   : > { %v1414_v35 = vadd.f32 %v1379_v23, %v1027_v20  ;;  %v3822_v20 = vsel %vm5343_vm7, %v3820_v59, %v3821_v27  ;;  %v2489_v38 = vrot.slane %v5081_v32, 5  ;;  %v3493_v30 = vunpack.c.l.b16 %v3305_v7  ;;  %v4896_v7 = vld [vmem:[%s5157_s27 + $0x90] sm:$0xf] }
 0x1e1   : > { %4922 = vmatmul.msk.bf16.gmra.mxu3 %vm669_vm4, %v3515_v4  ;;  %v3890_v27 = vunpack.c.l.b16 %v3819_v53  ;;  %v3891_v11 = vunpack.c.l.b16 %v3822_v20  ;;  %v3313_v45 = vor.u32 %v3312_v48, %v3309_v24  ;;  %v2553_v20 = vunpack.c.l.b16 %v2487_v5 }
 0x1e2   : > { %v3516_v0 = vpack.c.b16 %v3493_v30, %v3492_v41  ;;  %v3331_v32 = vshrl.u32 %v4896_v7, 16 }
 0x1e3   : > { %v2320_v12 = vpop.f32.mrf.mxu0  ;;  %v3914_v43 = vpack.c.b16 %v3891_v11, %v3890_v27  ;;  %v3828_v11 = vrot.slane %v4895_v8, 5 }
 0x1e4   : > { %v1666_v61 = vpop.f32.mrf.mxu3  ;;  %v2643_v4 = vpop.f32.mrf.mxu1 }
 0x1e5   : > { %v1701_v39 = vadd.f32 %v1666_v61, %v1414_v35  ;;  %v3323_v61 = vor.u32 %v3322_v16, %v6166_v40 }
 0x1e6   : > { %4971 = vmatmul.msk.bf16.gmra.mxu0 %vm669_vm4, %v3913_v22  ;;  %v5023_v22 = vld [vmem:[%s5157_s27 + $0x78] sm:$0xff] }
 0x1e7   : > { %v1381_v23 = vpop.f32.mrf.mxu2  ;;  %4745 = vmatmul.msk.bf16.gmra.mxu1 %vm669_vm4, %v2575_v58  ;;  %v6170_v62 = vadd.f32 %v2320_v12, %v1701_v39  ;;  %v2490_v12 = vsel %vm5343_vm7, %v2488_v56, %v2489_v38  ;;  %v3326_v39 = vshll.u32 %v4895_v8, 16  ;;  %v3314_v56 = vrot.slane %v3313_v45, 4  ;;  %v5082_v45 = vld [vmem:[%s5157_s27 + $0x88] sm:$0xf] }
 0x1e8   : > { %v1415_v35 = vadd.f32 %v1381_v23, %v1029_v9  ;;  %v2723_v9 = vadd.f32 %v2643_v4, %v5622_v46  ;;  %v2554_v23 = vunpack.c.l.b16 %v2490_v12  ;;  %v3324_v24 = vrot.slane %v3323_v61, 4  ;;  %v4714_v12 = vld [vmem:[%s5157_s27 + $0x84] sm:$0xe] }
 0x1e9   : > { %v3328_v16 = vrot.slane %v3326_v39, 5  ;;  %v3334_v46 = vshll.u32 %v4896_v7, 16  ;;  %v3340_v4 = vshll.u32 %v6184_v50, 16  ;;  %v3344_v38 = vshrl.u32 %v6184_v50, 16 }
 0x1ea   : > { %v2576_v30 = vpack.c.b16 %v2554_v23, %v2553_v20  ;;  %v2493_v61 = vrot.slane %v5082_v45, 5  ;;  %v3319_v39 = vsel %vm5169_vm3, %v3314_v56, %v6166_v40  ;;  %v3333_v8 = vrot.slane %v3331_v32, 4 }
 0x1eb   : > { %v2322_v59 = vpop.f32.mrf.mxu0  ;;  %v6207_v7 = vrot.slane %v3340_v4, 5  ;;  %v3346_v40 = vrot.slane %v3344_v38, 4 }
 0x1ec   : > { %v1668_v58 = vpop.f32.mrf.mxu3  ;;  %4858 = vmatmul.msk.bf16.gmra.mxu2 %vm669_vm4, %v5023_v22  ;;  %v2645_v52 = vpop.f32.mrf.mxu1  ;;  %v3825_v22 = vrot.slane %v6145_v28, 5  ;;  %v2495_v56 = vrot.slane %v2493_v61, 4 }
 0x1ed   : > { %v1702_v6 = vadd.f32 %v1668_v58, %v1415_v35  ;;  %v4956_v35 = vrot.slane %v4940_v19, 9  ;;  %v3336_v19 = vrot.slane %v3334_v46, 5  ;;  %v6218_v46 = vld [vmem:[%s5157_s27 + $0x98] sm:$0x1]  ;;  %v3347_v38 = vor.u32 %v3346_v40, %v6207_v7 }
 0x1ee   : > { %v3827_v27 = vrot.slane %v3825_v22, 4 }
 0x1ef   : > { %v2930_v53 = vpop.f32.mrf.mxu2  ;;  %v6189_v41 = vadd.f32 %v2322_v59, %v1702_v6  ;;  %v3329_v59 = vsel %vm5169_vm3, %v3324_v24, %v3328_v16  ;;  %v3826_v6 = vsel %vm5343_vm7, %v4956_v35, %v3825_v22  ;;  %v4730_v22 = vrot.slane %v4714_v12, 9  ;;  %v5083_v24 = vld [vmem:[%s5157_s27 + $0x8c] sm:$0x1] }
 0x1f0   : > { %v3010_v48 = vadd.f32 %v2930_v53, %v2723_v9  ;;  %v2724_v53 = vadd.f32 %v2645_v52, %v5635_v42  ;;  %v3829_v23 = vsel %vm5343_vm7, %v3827_v27, %v3828_v11  ;;  %v3494_v35 = vunpack.c.l.b16 %v3319_v39  ;;  %v4899_v39 = vld [vmem:[%s5157_s27 + $0x9c] sm:$0xf] }
 0x1f1   : > { %4923 = vmatmul.msk.bf16.gmra.mxu3 %vm669_vm4, %v3516_v0  ;;  %v3495_v32 = vunpack.c.l.b16 %v3329_v59  ;;  %v3892_v42 = vunpack.c.l.b16 %v3826_v6  ;;  %v3893_v52 = vunpack.c.l.b16 %v3829_v23  ;;  %v3337_v4 = vor.u32 %v3336_v19, %v3333_v8 }
 0x1f2   : > { %v3350_v12 = vshll.u32 %v6218_v46, 16  ;;  %v3348_v19 = vrot.slane %v3347_v38, 4 }
 0x1f3   : > { %v3982_v28 = vpop.f32.mrf.mxu0  ;;  %v3915_v59 = vpack.c.b16 %v3893_v52, %v3892_v42  ;;  %v3338_v8 = vrot.slane %v3337_v4, 4  ;;  %v3835_v4 = vrot.slane %v6218_v46, 5 }
 0x1f4   : > { %v3584_v58 = vpop.f32.mrf.mxu3  ;;  %v2648_v5 = vpop.f32.mrf.mxu1 }
 0x1f5   : > { %v3664_v0 = vadd.f32 %v3584_v58, %v3010_v48  ;;  %v2496_v48 = vrot.slane %v5083_v24, 5  ;;  %v3355_v24 = vshrl.u32 %v4899_v39, 16 }
 0x1f6   : > { %4972 = vmatmul.msk.bf16.gmra.mxu0 %vm669_vm4, %v3914_v43  ;;  %v5024_v43 = vld [vmem:[%s5157_s27 + $0x84] sm:$0xff] }
 0x1f7   : > { %v4062_v9 = vadd.f32 %v3982_v28, %v3664_v0  ;;  %v2932_v20 = vpop.f32.mrf.mxu2  ;;  %4746 = vmatmul.msk.bf16.gmra.mxu1 %vm669_vm4, %v2576_v30  ;;  %v2494_v30 = vsel %vm5343_vm7, %v4730_v22, %v2493_v61  ;;  %v2497_v58 = vsel %vm5343_vm7, %v2495_v56, %v2496_v48  ;;  %v3517_v0 = vpack.c.b16 %v3495_v32, %v3494_v35  ;;  %v4941_v22 = vld [vmem:[%s5157_s27 + $0x90] sm:$0xe] }
 0x1f8   : > { %v3011_v16 = vadd.f32 %v2932_v20, %v2724_v53  ;;  %v2555_v6 = vunpack.c.l.b16 %v2494_v30  ;;  %v2725_v53 = vadd.f32 %v2648_v5, %v5648_v15  ;;  %v2556_v23 = vunpack.c.l.b16 %v2497_v58  ;;  %v6237_v15 = vld [vmem:[%s5157_s27 + $0xa0] sm:$0xf] }
 0x1f9   : > { %4094 = vst.msk [vmem:[%s6205_s14] sm:$0xff] %vm669_vm4, %v4062_v9  ;;  %v4197_v40 = vmul.f32 %v4062_v9, %v4062_v9  ;;  %v3832_v56 = vrot.slane %v6184_v50, 5  ;;  %v3358_v48 = vshll.u32 %v4899_v39, 16  ;;  %v3343_v50 = vsel %vm5169_vm3, %v3338_v8, %v6207_v7 }
 0x1fa   : > { %v4957_v52 = vrot.slane %v4941_v22, 9  ;;  %v2577_v30 = vpack.c.b16 %v2556_v23, %v2555_v6  ;;  %v3368_v7 = vshrl.u32 %v6237_v15, 16  ;;  %v3496_v23 = vunpack.c.l.b16 %v3343_v50 }
 0x1fb   : > { %v3984_v28 = vpop.f32.mrf.mxu0  ;;  %v3834_v39 = vrot.slane %v3832_v56, 4 }
 0x1fc   : > { %v3586_v27 = vpop.f32.mrf.mxu3  ;;  %4859 = vmatmul.msk.bf16.gmra.mxu2 %vm669_vm4, %v5024_v43  ;;  %v2650_v11 = vpop.f32.mrf.mxu1  ;;  %v3352_v43 = vrot.slane %v3350_v12, 5  ;;  %v3833_v22 = vsel %vm5343_vm7, %v4957_v52, %v3832_v56  ;;  %v6264_v52 = vld [vmem:[%s5157_s27 + $0xa4] sm:$0x1] }
 0x1fd   : > { %v3665_v45 = vadd.f32 %v3586_v27, %v3011_v16  ;;  %v4126_v16 = vsel %vm669_vm4, %v4062_v9, 0.0  ;;  %v4229_v9 = vsel %vm669_vm4, %v4197_v40, 0.0  ;;  %v5084_v27 = vld [vmem:[%s5157_s27 + $0x94] sm:$0xf]  ;;  %v3357_v40 = vrot.slane %v3355_v24, 4 }
 0x1fe   : > { %v2500_v58 = vrot.slane %v5084_v27, 5  ;;  %v3353_v8 = vsel %vm5169_vm3, %v3348_v19, %v3352_v43  ;;  %v2726_v6 = vadd.f32 %v2650_v11, %v5661_v13  ;;  %v5025_v43 = vld [vmem:[%s5157_s27 + $0x90] sm:$0xff]  ;;  %v3370_v13 = vrot.slane %v3368_v7, 4 }
 0x1ff   : > { %v4063_v61 = vadd.f32 %v3984_v28, %v3665_v45  ;;  %v2935_v20 = vpop.f32.mrf.mxu2  ;;  %v3497_v24 = vunpack.c.l.b16 %v3353_v8 }
 0x200   : > { %v3012_v42 = vadd.f32 %v2935_v20, %v2725_v53  ;;  %v3364_v53 = vshll.u32 %v6237_v15, 16  ;;  %v3360_v20 = vrot.slane %v3358_v48, 5 }
 0x201   : > { %4095 = vst.msk [vmem:[%s6205_s14 + $0x8] sm:$0xff] %vm669_vm4, %v4063_v61  ;;  %v4127_v35 = vsel %vm669_vm4, %v4063_v61, 0.0  ;;  %v4198_v32 = vmul.f32 %v4063_v61, %v4063_v61  ;;  %4924 = vmatmul.msk.bf16.gmra.mxu3 %vm669_vm4, %v3517_v0  ;;  %v4715_v61 = vld [vmem:[%s5157_s27 + $0x90] sm:$0xe] }
 0x202   : > { %v4128_v5 = vadd.f32 %v4127_v35, %v4126_v16  ;;  %v3366_v48 = vrot.slane %v3364_v53, 5 }
 0x203   : > { %v4230_v38 = vsel %vm669_vm4, %v4198_v32, 0.0  ;;  %v3987_v28 = vpop.f32.mrf.mxu0  ;;  %v4731_v32 = vrot.slane %v4715_v61, 9 }
 0x204   : > { %v4231_v12 = vadd.f32 %v4230_v38, %v4229_v9  ;;  %v3589_v45 = vpop.f32.mrf.mxu3  ;;  %v2653_v0 = vpop.f32.mrf.mxu1  ;;  %v5085_v9 = vld [vmem:[%s5157_s27 + $0x98] sm:$0x1]  ;;  %v3361_v38 = vor.u32 %v3360_v20, %v3357_v40  ;;  %v3371_v8 = vor.u32 %v3370_v13, %v3366_v48  ;;  %v3518_v20 = vpack.c.b16 %v3497_v24, %v3496_v23 }
 0x205   : > { %v3666_v46 = vadd.f32 %v3589_v45, %v3012_v42  ;;  %v2502_v42 = vrot.slane %v2500_v58, 4  ;;  %v2503_v19 = vrot.slane %v5085_v9, 5  ;;  %v3894_v45 = vunpack.c.l.b16 %v3833_v22  ;;  %v4942_v22 = vld [vmem:[%s5157_s27 + $0x9c] sm:$0xe]  ;;  %v4902_v9 = vld [vmem:[%s5157_s27 + $0xa8] sm:$0xf] }
 0x206   : > { %4973 = vmatmul.msk.bf16.gmra.mxu0 %vm669_vm4, %v3915_v59  ;;  %v3836_v59 = vsel %vm5343_vm7, %v3834_v39, %v3835_v4  ;;  %v2501_v4 = vsel %vm5343_vm7, %v4731_v32, %v2500_v58  ;;  %v4958_v13 = vrot.slane %v4942_v22, 9 }
 0x207   : > { %v4064_v16 = vadd.f32 %v3987_v28, %v3666_v46  ;;  %v2937_v35 = vpop.f32.mrf.mxu2  ;;  %4747 = vmatmul.msk.bf16.gmra.mxu1 %vm669_vm4, %v2577_v30  ;;  %v2504_v39 = vsel %vm5343_vm7, %v2502_v42, %v2503_v19  ;;  %v3895_v7 = vunpack.c.l.b16 %v3836_v59  ;;  %v2557_v58 = vunpack.c.l.b16 %v2501_v4 }
 0x208   : > { %v3013_v50 = vadd.f32 %v2937_v35, %v2726_v6  ;;  %v3362_v6 = vrot.slane %v3361_v38, 4  ;;  %v3839_v42 = vrot.slane %v6237_v15, 5  ;;  %v3382_v38 = vshll.u32 %v4902_v9, 16 }
 0x209   : > { %4096 = vst.msk [vmem:[%s6205_s14 + $0x10] sm:$0xff] %vm669_vm4, %v4064_v16  ;;  %v4129_v11 = vsel %vm669_vm4, %v4064_v16, 0.0  ;;  %v4199_v56 = vmul.f32 %v4064_v16, %v4064_v16  ;;  %v2558_v16 = vunpack.c.l.b16 %v2504_v39  ;;  %v3916_v19 = vpack.c.b16 %v3895_v7, %v3894_v45 }
 0x20a   : > { %v4130_v28 = vadd.f32 %v4129_v11, %v4128_v5  ;;  %v3374_v5 = vshll.u32 %v6264_v52, 16  ;;  %v6278_v11 = vld [vmem:[%s5157_s27 + $0xac] sm:$0xf]  ;;  %v3841_v45 = vrot.slane %v3839_v42, 4  ;;  %v3842_v4 = vrot.slane %v6264_v52, 5 }
 0x20b   : > { %v4232_v30 = vsel %vm669_vm4, %v4199_v56, 0.0  ;;  %v3989_v27 = vpop.f32.mrf.mxu0  ;;  %v3388_v39 = vshll.u32 %v6278_v11, 16 }
 0x20c   : > { %v4233_v61 = vadd.f32 %v4232_v30, %v4231_v12  ;;  %v3591_v53 = vpop.f32.mrf.mxu3  ;;  %4860 = vmatmul.msk.bf16.gmra.mxu2 %vm669_vm4, %v5025_v43  ;;  %v2655_v46 = vpop.f32.mrf.mxu1  ;;  %v2727_v12 = vadd.f32 %v2653_v0, %v5674_v57  ;;  %v3372_v43 = vrot.slane %v3371_v8, 4  ;;  %v3376_v59 = vrot.slane %v3374_v5, 5  ;;  %v5086_v5 = vld [vmem:[%s5157_s27 + $0xa0] sm:$0xf] }
 0x20d   : > { %v3667_v40 = vadd.f32 %v3591_v53, %v3013_v50  ;;  %v3367_v57 = vsel %vm5169_vm3, %v3362_v6, %v3366_v48  ;;  %v2578_v0 = vpack.c.b16 %v2558_v16, %v2557_v58  ;;  %v3379_v50 = vshrl.u32 %v4902_v9, 16  ;;  %v4716_v6 = vld [vmem:[%s5157_s27 + $0x9c] sm:$0xe] }
 0x20e   : > { %v3392_v48 = vshrl.u32 %v6278_v11, 16  ;;  %v3498_v52 = vunpack.c.l.b16 %v3367_v57  ;;  %v3384_v58 = vrot.slane %v3382_v38, 5  ;;  %v3843_v9 = vsel %vm5343_vm7, %v3841_v45, %v3842_v4 }
 0x20f   : > { %v4065_v35 = vadd.f32 %v3989_v27, %v3667_v40  ;;  %v2940_v32 = vpop.f32.mrf.mxu2  ;;  %v2507_v40 = vrot.slane %v5086_v5, 5  ;;  %v3381_v22 = vrot.slane %v3379_v50, 4  ;;  %v3897_v38 = vunpack.c.l.b16 %v3843_v9 }
 0x210   : > { %v3014_v56 = vadd.f32 %v2940_v32, %v2727_v12  ;;  %v5026_v32 = vld [vmem:[%s5157_s27 + $0x9c] sm:$0xff] }
 0x211   : > { %4097 = vst.msk [vmem:[%s6205_s14 + $0x18] sm:$0xff] %vm669_vm4, %v4065_v35  ;;  %v4131_v23 = vsel %vm669_vm4, %v4065_v35, 0.0  ;;  %v4200_v24 = vmul.f32 %v4065_v35, %v4065_v35  ;;  %4925 = vmatmul.msk.bf16.gmra.mxu3 %vm669_vm4, %v3518_v20  ;;  %v3377_v20 = vsel %vm5169_vm3, %v3372_v43, %v3376_v59  ;;  %v2728_v35 = vadd.f32 %v2655_v46, %v5687_v54 }
 0x212   : > { %v4132_v15 = vadd.f32 %v4131_v23, %v4130_v28  ;;  %v6302_v43 = vrot.slane %v3388_v39, 5  ;;  %v2509_v59 = vrot.slane %v2507_v40, 4  ;;  %v5087_v23 = vld [vmem:[%s5157_s27 + $0xa4] sm:$0x1]  ;;  %v3499_v57 = vunpack.c.l.b16 %v3377_v20 }
 0x213   : > { %v4234_v30 = vsel %vm669_vm4, %v4200_v24, 0.0  ;;  %v3992_v27 = vpop.f32.mrf.mxu0  ;;  %v2510_v24 = vrot.slane %v5087_v23, 5  ;;  %v6324_v23 = vld [vmem:[%s5157_s27 + $0xb8] sm:$0xf] }
 0x214   : > { %v4235_v53 = vadd.f32 %v4234_v30, %v4233_v61  ;;  %v3594_v7 = vpop.f32.mrf.mxu3  ;;  %v2658_v8 = vpop.f32.mrf.mxu1  ;;  %v3840_v61 = vsel %vm5343_vm7, %v4958_v13, %v3839_v42  ;;  %v6306_v42 = vld [vmem:[%s5157_s27 + $0xb0] sm:$0x1]  ;;  %v3394_v13 = vrot.slane %v3392_v48, 4  ;;  %v3385_v30 = vor.u32 %v3384_v58, %v3381_v22 }
 0x215   : > { %v3668_v28 = vadd.f32 %v3594_v7, %v3014_v56  ;;  %v3896_v50 = vunpack.c.l.b16 %v3840_v61  ;;  %v3398_v4 = vshll.u32 %v6306_v42, 16  ;;  %v4905_v61 = vld [vmem:[%s5157_s27 + $0xb4] sm:$0xf] }
 0x216   : > { %4974 = vmatmul.msk.bf16.gmra.mxu0 %vm669_vm4, %v3916_v19  ;;  %v4732_v19 = vrot.slane %v4716_v6, 9  ;;  %v3519_v6 = vpack.c.b16 %v3499_v57, %v3498_v52  ;;  %v3386_v58 = vrot.slane %v3385_v30, 4  ;;  %v3849_v57 = vrot.slane %v6306_v42, 5 }
 0x217   : > { %v4066_v16 = vadd.f32 %v3992_v27, %v3668_v28  ;;  %v2942_v12 = vpop.f32.mrf.mxu2  ;;  %4748 = vmatmul.msk.bf16.gmra.mxu1 %vm669_vm4, %v2578_v0  ;;  %v3395_v28 = vor.u32 %v3394_v13, %v6302_v43  ;;  %v3917_v22 = vpack.c.b16 %v3897_v38, %v3896_v50  ;;  %v3406_v13 = vshll.u32 %v4905_v61, 16 }
 0x218   : > { %v3015_v56 = vadd.f32 %v2942_v12, %v2728_v35  ;;  %v2508_v48 = vsel %vm5343_vm7, %v4732_v19, %v2507_v40  ;;  %v2729_v12 = vadd.f32 %v2658_v8, %v5700_v33  ;;  %v3391_v8 = vsel %vm5169_vm3, %v3386_v58, %v6302_v43 }
 0x219   : > { %4098 = vst.msk [vmem:[%s6205_s14 + $0x20] sm:$0xff] %vm669_vm4, %v4066_v16  ;;  %v4133_v54 = vsel %vm669_vm4, %v4066_v16, 0.0  ;;  %v4201_v46 = vmul.f32 %v4066_v16, %v4066_v16  ;;  %v3846_v16 = vrot.slane %v6278_v11, 5  ;;  %v2559_v40 = vunpack.c.l.b16 %v2508_v48 }
 0x21a   : > { %v4134_v0 = vadd.f32 %v4133_v54, %v4132_v15  ;;  %v2511_v15 = vsel %vm5343_vm7, %v2509_v59, %v2510_v24  ;;  %v3396_v19 = vrot.slane %v3395_v28, 4  ;;  %v3400_v59 = vrot.slane %v3398_v4, 5 }
 0x21b   : > { %v4236_v27 = vsel %vm669_vm4, %v4201_v46, 0.0  ;;  %v3994_v45 = vpop.f32.mrf.mxu0  ;;  %v2560_v9 = vunpack.c.l.b16 %v2511_v15  ;;  %v3403_v24 = vshrl.u32 %v4905_v61, 16  ;;  %v3408_v43 = vrot.slane %v3406_v13, 5  ;;  %v6353_v13 = vld [vmem:[%s5157_s27 + $0xbc] sm:$0x1] }
 0x21c   : > { %v4237_v39 = vadd.f32 %v4236_v27, %v4235_v53  ;;  %v3596_v7 = vpop.f32.mrf.mxu3  ;;  %4861 = vmatmul.msk.bf16.gmra.mxu2 %vm669_vm4, %v5026_v32  ;;  %v2660_v5 = vpop.f32.mrf.mxu1  ;;  %v4943_v53 = vld [vmem:[%s5157_s27 + $0xa8] sm:$0xe]  ;;  %v3412_v27 = vshll.u32 %v6324_v23, 16  ;;  %v3401_v42 = vsel %vm5169_vm3, %v3396_v19, %v3400_v59  ;;  %v3500_v61 = vunpack.c.l.b16 %v3391_v8  ;;  %v5089_v59 = vld [vmem:[%s5157_s27 + $0xb0] sm:$0x1] }
 0x21d   : > { %v3669_v20 = vadd.f32 %v3596_v7, %v3015_v56  ;;  %v4959_v46 = vrot.slane %v4943_v53, 9  ;;  %v3848_v56 = vrot.slane %v3846_v16, 4  ;;  %v2579_v30 = vpack.c.b16 %v2560_v9, %v2559_v40  ;;  %v5027_v40 = vld [vmem:[%s5157_s27 + $0xa8] sm:$0xff] }
 0x21e   : > { %v3405_v28 = vrot.slane %v3403_v24, 4  ;;  %v2517_v24 = vrot.slane %v5089_v59, 5 }
 0x21f   : > { %v4067_v35 = vadd.f32 %v3994_v45, %v3669_v20  ;;  %v2945_v32 = vpop.f32.mrf.mxu2  ;;  %v3416_v45 = vshrl.u32 %v6324_v23, 16  ;;  %v3850_v58 = vsel %vm5343_vm7, %v3848_v56, %v3849_v57 }
 0x220   : > { %v3016_v11 = vadd.f32 %v2945_v32, %v2729_v12  ;;  %v6348_v32 = vrot.slane %v3412_v27, 5  ;;  %v3899_v57 = vunpack.c.l.b16 %v3850_v58 }
 0x221   : > { %4099 = vst.msk [vmem:[%s6205_s14 + $0x28] sm:$0xff] %vm669_vm4, %v4067_v35  ;;  %v4135_v52 = vsel %vm669_vm4, %v4067_v35, 0.0  ;;  %v4202_v54 = vmul.f32 %v4067_v35, %v4067_v35  ;;  %4926 = vmatmul.msk.bf16.gmra.mxu3 %vm669_vm4, %v3519_v6  ;;  %v4717_v6 = vld [vmem:[%s5157_s27 + $0xa8] sm:$0xe]  ;;  %v2730_v35 = vadd.f32 %v2660_v5, %v5713_v31  ;;  %v3501_v5 = vunpack.c.l.b16 %v3401_v42 }
 0x222   : > { %v4136_v33 = vadd.f32 %v4135_v52, %v4134_v0  ;;  %v5088_v0 = vld [vmem:[%s5157_s27 + $0xac] sm:$0xf]  ;;  %v4733_v9 = vrot.slane %v4717_v6, 9 }
 0x223   : > { %v4238_v50 = vsel %vm669_vm4, %v4202_v54, 0.0  ;;  %v3997_v38 = vpop.f32.mrf.mxu0  ;;  %v2514_v15 = vrot.slane %v5088_v0, 5 }
 0x224   : > { %v4239_v4 = vadd.f32 %v4238_v50, %v4237_v39  ;;  %v3599_v7 = vpop.f32.mrf.mxu3  ;;  %v2663_v48 = vpop.f32.mrf.mxu1  ;;  %v3847_v39 = vsel %vm5343_vm7, %v4959_v46, %v3846_v16  ;;  %v3409_v16 = vor.u32 %v3408_v43, %v3405_v28  ;;  %v3520_v43 = vpack.c.b16 %v3501_v5, %v3500_v61 }
 0x225   : > { %v3670_v20 = vadd.f32 %v3599_v7, %v3016_v11  ;;  %v2516_v19 = vrot.slane %v2514_v15, 4  ;;  %v3898_v46 = vunpack.c.l.b16 %v3847_v39  ;;  %v2515_v7 = vsel %vm5343_vm7, %v4733_v9, %v2514_v15 }
 0x226   : > { %4975 = vmatmul.msk.bf16.gmra.mxu0 %vm669_vm4, %v3917_v22  ;;  %v3418_v22 = vrot.slane %v3416_v45, 4  ;;  %v3410_v0 = vrot.slane %v3409_v16, 4  ;;  %v2731_v42 = vadd.f32 %v2663_v48, %v5726_v1  ;;  %v2561_v39 = vunpack.c.l.b16 %v2515_v7  ;;  %v4718_v7 = vld [vmem:[%s5157_s27 + $0xb4] sm:$0xe] }
 0x227   : > { %v4068_v53 = vadd.f32 %v3997_v38, %v3670_v20  ;;  %v2947_v12 = vpop.f32.mrf.mxu2  ;;  %4749 = vmatmul.msk.bf16.gmra.mxu1 %vm669_vm4, %v2579_v30  ;;  %v3422_v38 = vshll.u32 %v6353_v13, 16  ;;  %v4908_v20 = vld [vmem:[%s5157_s27 + $0xc0] sm:$0xf] }
 0x228   : > { %v3017_v31 = vadd.f32 %v2947_v12, %v2730_v35  ;;  %v3419_v50 = vor.u32 %v3418_v22, %v6348_v32  ;;  %v3918_v35 = vpack.c.b16 %v3899_v57, %v3898_v46  ;;  %v3415_v15 = vsel %vm5169_vm3, %v3410_v0, %v6348_v32 }
 0x229   : > { %4100 = vst.msk [vmem:[%s6205_s14 + $0x30] sm:$0xff] %vm669_vm4, %v4068_v53  ;;  %v4137_v52 = vsel %vm669_vm4, %v4068_v53, 0.0  ;;  %v4203_v54 = vmul.f32 %v4068_v53, %v4068_v53  ;;  %v6369_v53 = vld [vmem:[%s5157_s27 + $0xc4] sm:$0xf]  ;;  %v3424_v22 = vrot.slane %v3422_v38, 5  ;;  %v3427_v48 = vshrl.u32 %v4908_v20, 16 }
 0x22a   : > { %v4138_v11 = vadd.f32 %v4137_v52, %v4136_v33  ;;  %v2518_v33 = vsel %vm5343_vm7, %v2516_v19, %v2517_v24  ;;  %v3420_v12 = vrot.slane %v3419_v50, 4  ;;  %v4944_v19 = vld [vmem:[%s5157_s27 + $0xb4] sm:$0xe]  ;;  %v3430_v59 = vshll.u32 %v4908_v20, 16 }
 0x22b   : > { %v4240_v8 = vsel %vm669_vm4, %v4203_v54, 0.0  ;;  %v3999_v56 = vpop.f32.mrf.mxu0  ;;  %v2562_v58 = vunpack.c.l.b16 %v2518_v33  ;;  %v3436_v24 = vshll.u32 %v6369_v53, 16  ;;  %v3440_v32 = vshrl.u32 %v6369_v53, 16 }
 0x22c   : > { %v4241_v30 = vadd.f32 %v4240_v8, %v4239_v4  ;;  %v3601_v27 = vpop.f32.mrf.mxu3  ;;  %4862 = vmatmul.msk.bf16.gmra.mxu2 %vm669_vm4, %v5027_v40  ;;  %v2665_v45 = vpop.f32.mrf.mxu1  ;;  %v3502_v38 = vunpack.c.l.b16 %v3415_v15  ;;  %v3429_v33 = vrot.slane %v3427_v48, 4  ;;  %v3432_v0 = vrot.slane %v3430_v59, 5 }
 0x22d   : > { %v3671_v28 = vadd.f32 %v3601_v27, %v3017_v31  ;;  %v2580_v54 = vpack.c.b16 %v2562_v58, %v2561_v39  ;;  %v3853_v31 = vrot.slane %v6324_v23, 5  ;;  %v4960_v27 = vrot.slane %v4944_v19, 9  ;;  %v5028_v39 = vld [vmem:[%s5157_s27 + $0xb4] sm:$0xff] }
 0x22e   : > { %v6388_v23 = vrot.slane %v3436_v24, 5  ;;  %v3433_v48 = vor.u32 %v3432_v0, %v3429_v33  ;;  %v6598_v0 = vld [vmem:[#allocation2_spill] sm:$0xff] }
 0x22f   : > { %v4069_v6 = vadd.f32 %v3999_v56, %v3671_v28  ;;  %v2950_v4 = vpop.f32.mrf.mxu2  ;;  %v5090_v56 = vld [vmem:[%s5157_s27 + $0xb8] sm:$0xf] }
 0x230   : > { %v3018_v1 = vadd.f32 %v2950_v4, %v2731_v42  ;;  %v2521_v57 = vrot.slane %v5090_v56, 5  ;;  %v3856_v42 = vrot.slane %v6353_v13, 5  ;;  %v6394_v4 = vld [vmem:[%s5157_s27 + $0xc8] sm:$0x1] }
 0x231   : > { %4101 = vst.msk [vmem:[%s6205_s14 + $0x38] sm:$0xff] %vm669_vm4, %v4069_v6  ;;  %v4139_v61 = vsel %vm669_vm4, %v4069_v6, 0.0  ;;  %v4204_v40 = vmul.f32 %v4069_v6, %v4069_v6  ;;  %4927 = vmatmul.msk.bf16.gmra.mxu3 %vm669_vm4, %v3520_v43  ;;  %v2732_v43 = vadd.f32 %v2665_v45, %v5740_v25  ;;  %v3855_v6 = vrot.slane %v3853_v31, 4 }
 0x232   : > { %v4140_v9 = vadd.f32 %v4139_v61, %v4138_v11  ;;  %v3425_v11 = vsel %vm5169_vm3, %v3420_v12, %v3424_v22  ;;  %v2523_v15 = vrot.slane %v2521_v57, 4  ;;  %v5091_v12 = vld [vmem:[%s5157_s27 + $0xbc] sm:$0x1]  ;;  %v3854_v45 = vsel %vm5343_vm7, %v4960_v27, %v3853_v31 }
 0x233   : > { %v4242_v16 = vsel %vm669_vm4, %v4204_v40, 0.0  ;;  %v4002_v52 = vpop.f32.mrf.mxu0  ;;  %v3503_v58 = vunpack.c.l.b16 %v3425_v11  ;;  %v2524_v22 = vrot.slane %v5091_v12, 5  ;;  %v3446_v19 = vshll.u32 %v6394_v4, 16 }
 0x234   : > { %v4243_v5 = vadd.f32 %v4242_v16, %v4241_v30  ;;  %v3604_v46 = vpop.f32.mrf.mxu3  ;;  %v2668_v8 = vpop.f32.mrf.mxu1  ;;  %v3442_v30 = vrot.slane %v3440_v32, 4  ;;  %v3857_v32 = vsel %vm5343_vm7, %v3855_v6, %v3856_v42  ;;  %v3434_v27 = vrot.slane %v3433_v48, 4  ;;  %v4911_v42 = vld [vmem:[%s5157_s27 + $0xcc] sm:$0xf] }
 0x235   : > { %v3672_v50 = vadd.f32 %v3604_v46, %v3018_v1  ;;  %v2525_v31 = vsel %vm5343_vm7, %v2523_v15, %v2524_v22  ;;  %v3521_v56 = vpack.c.b16 %v3503_v58, %v3502_v38  ;;  %v3901_v11 = vunpack.c.l.b16 %v3857_v32  ;;  %v4719_v32 = vld [vmem:[%s5157_s27 + $0xc0] sm:$0xe] }
 0x236   : > { %4976 = vmatmul.msk.bf16.gmra.mxu0 %vm669_vm4, %v3918_v35  ;;  %v4734_v35 = vrot.slane %v4718_v7, 9  ;;  %v3443_v13 = vor.u32 %v3442_v30, %v6388_v23  ;;  %v2733_v30 = vadd.f32 %v2668_v8, %v6598_v0  ;;  %v3860_v8 = vrot.slane %v6369_v53, 5  ;;  %v5093_v0 = vld [vmem:[%s5157_s27 + $0xc8] sm:$0x1] }
 0x237   : > { %v4070_v28 = vadd.f32 %v4002_v52, %v3672_v50  ;;  %v2952_v20 = vpop.f32.mrf.mxu2  ;;  %4750 = vmatmul.msk.bf16.gmra.mxu1 %vm669_vm4, %v2580_v54  ;;  %v3900_v50 = vunpack.c.l.b16 %v3854_v45 }
 0x238   : > { %v3019_v25 = vadd.f32 %v2952_v20, %v2732_v43  ;;  %v3444_v7 = vrot.slane %v3443_v13, 4  ;;  %v2564_v20 = vunpack.c.l.b16 %v2525_v31  ;;  %v5092_v13 = vld [vmem:[%s5157_s27 + $0xc4] sm:$0xf] }
 0x239   : > { %4102 = vst.msk [vmem:[%s6205_s14 + $0x40] sm:$0xff] %vm669_vm4, %v4070_v28  ;;  %v4141_v61 = vsel %vm669_vm4, %v4070_v28, 0.0  ;;  %v4205_v40 = vmul.f32 %v4070_v28, %v4070_v28  ;;  %v3919_v58 = vpack.c.b16 %v3901_v11, %v3900_v50  ;;  %v3862_v11 = vrot.slane %v3860_v8, 4 }
 0x23a   : > { %v4142_v1 = vadd.f32 %v4141_v61, %v4140_v9  ;;  %v2522_v9 = vsel %vm5343_vm7, %v4734_v35, %v2521_v57  ;;  %v4945_v35 = vld [vmem:[%s5157_s27 + $0xc0] sm:$0xe]  ;;  %v3439_v61 = vsel %vm5169_vm3, %v3434_v27, %v6388_v23  ;;  %v3863_v27 = vrot.slane %v6394_v4, 5 }
 0x23b   : > { %v4244_v59 = vsel %vm669_vm4, %v4205_v40, 0.0  ;;  %v4004_v24 = vpop.f32.mrf.mxu0  ;;  %v2563_v43 = vunpack.c.l.b16 %v2522_v9  ;;  %v3504_v23 = vunpack.c.l.b16 %v3439_v61 }
 0x23c   : > { %v4245_v16 = vadd.f32 %v4244_v59, %v4243_v5  ;;  %v3606_v52 = vpop.f32.mrf.mxu3  ;;  %4863 = vmatmul.msk.bf16.gmra.mxu2 %vm669_vm4, %v5028_v39  ;;  %v2670_v54 = vpop.f32.mrf.mxu1  ;;  %v3448_v5 = vrot.slane %v3446_v19, 5  ;;  %v2528_v19 = vrot.slane %v5092_v13, 5  ;;  %v3451_v59 = vshrl.u32 %v4911_v42, 16 }
 0x23d   : > { %v3673_v46 = vadd.f32 %v3606_v52, %v3019_v25  ;;  %v2581_v22 = vpack.c.b16 %v2564_v20, %v2563_v43  ;;  %v6428_v25 = vld [vmem:[%s5157_s27 + $0xd0] sm:$0xf]  ;;  %v3454_v52 = vshll.u32 %v4911_v42, 16 }
 0x23e   : > { %v3449_v40 = vsel %vm5169_vm3, %v3444_v7, %v3448_v5  ;;  %v3460_v31 = vshll.u32 %v6428_v25, 16  ;;  %v5029_v7 = vld [vmem:[%s5157_s27 + $0xc0] sm:$0xff]  ;;  %v4735_v5 = vrot.slane %v4719_v32, 9 }
 0x23f   : > { %v4071_v33 = vadd.f32 %v4004_v24, %v3673_v46  ;;  %v2955_v28 = vpop.f32.mrf.mxu2  ;;  %v4961_v24 = vrot.slane %v4945_v35, 9  ;;  %v3505_v9 = vunpack.c.l.b16 %v3449_v40  ;;  %v3864_v35 = vsel %vm5343_vm7, %v3862_v11, %v3863_v27 }
 0x240   : > { %v3020_v38 = vadd.f32 %v2955_v28, %v2733_v30  ;;  %v2531_v30 = vrot.slane %v5093_v0, 5  ;;  %v3453_v28 = vrot.slane %v3451_v59, 4  ;;  %v3867_v0 = vrot.slane %v6428_v25, 5 }
 0x241   : > { %4103 = vst.msk [vmem:[%s6205_s14 + $0x48] sm:$0xff] %vm669_vm4, %v4071_v33  ;;  %v4143_v57 = vsel %vm669_vm4, %v4071_v33, 0.0  ;;  %v4206_v6 = vmul.f32 %v4071_v33, %v4071_v33  ;;  %4928 = vmatmul.msk.bf16.gmra.mxu3 %vm669_vm4, %v3521_v56  ;;  %v2734_v56 = vadd.f32 %v2670_v54, %v5787_v47  ;;  %v2530_v33 = vrot.slane %v2528_v19, 4 }
 0x242   : > { %v4144_v39 = vadd.f32 %v4143_v57, %v4142_v1  ;;  %v3456_v47 = vrot.slane %v3454_v52, 5  ;;  %v3522_v13 = vpack.c.b16 %v3505_v9, %v3504_v23 }
 0x243   : > { %v4246_v15 = vsel %vm669_vm4, %v4206_v6, 0.0  ;;  %v4007_v12 = vpop.f32.mrf.mxu0  ;;  %v3462_v6 = vrot.slane %v3460_v31, 5  ;;  %v2532_v40 = vsel %vm5343_vm7, %v2530_v33, %v2531_v30  ;;  %v4946_v33 = vld [vmem:[%s5157_s27 + $0xcc] sm:$0xe] }
 0x244   : > { %v4247_v45 = vadd.f32 %v4246_v15, %v4245_v16  ;;  %v3609_v1 = vpop.f32.mrf.mxu3  ;;  %v2673_v48 = vpop.f32.mrf.mxu1  ;;  %v3464_v16 = vshrl.u32 %v6428_v25, 16  ;;  %v4913_v15 = vld [vmem:[%s5157_s27 + $0xd4] sm:$0x1]  ;;  %v3457_v59 = vor.u32 %v3456_v47, %v3453_v28  ;;  %v3869_v25 = vrot.slane %v3867_v0, 4 }
 0x245   : > { %v3674_v53 = vadd.f32 %v3609_v1, %v3020_v38  ;;  %v3470_v32 = vshll.u32 %v4913_v15, 16 }
 0x246   : > { %4977 = vmatmul.msk.bf16.gmra.mxu0 %vm669_vm4, %v3919_v58  ;;  %v3466_v38 = vrot.slane %v3464_v16, 4  ;;  %v3861_v58 = vsel %vm5343_vm7, %v4961_v24, %v3860_v8  ;;  %v3458_v9 = vrot.slane %v3457_v59, 4 }
 0x247   : > { %v4072_v46 = vadd.f32 %v4007_v12, %v3674_v53  ;;  %v2957_v50 = vpop.f32.mrf.mxu2  ;;  %4751 = vmatmul.msk.bf16.gmra.mxu1 %vm669_vm4, %v2581_v22  ;;  %v3902_v8 = vunpack.c.l.b16 %v3861_v58  ;;  %v3903_v53 = vunpack.c.l.b16 %v3864_v35  ;;  %v3870_v35 = vrot.slane %v4913_v15, 5 }
 0x248   : > { %v3021_v57 = vadd.f32 %v2957_v50, %v2734_v56  ;;  %v3467_v24 = vor.u32 %v3466_v38, %v3462_v6 }
 0x249   : > { %4104 = vst.msk [vmem:[%s6205_s14 + $0x50] sm:$0xff] %vm669_vm4, %v4072_v46  ;;  %v4145_v43 = vsel %vm669_vm4, %v4072_v46, 0.0  ;;  %v4207_v20 = vmul.f32 %v4072_v46, %v4072_v46  ;;  %v2566_v46 = vunpack.c.l.b16 %v2532_v40  ;;  %v3920_v11 = vpack.c.b16 %v3903_v53, %v3902_v8 }
 0x24a   : > { %v4146_v54 = vadd.f32 %v4145_v43, %v4144_v39  ;;  %v2529_v39 = vsel %vm5343_vm7, %v4735_v5, %v2528_v19  ;;  %v3468_v27 = vrot.slane %v3467_v24, 4  ;;  %v3871_v15 = vsel %vm5343_vm7, %v3869_v25, %v3870_v35 }
 0x24b   : > { %v4248_v42 = vsel %vm669_vm4, %v4207_v20, 0.0  ;;  %v4009_v4 = vpop.f32.mrf.mxu0  ;;  %v2565_v16 = vunpack.c.l.b16 %v2529_v39 }
 0x24c   : > { %v4249_v12 = vadd.f32 %v4248_v42, %v4247_v45  ;;  %v3611_v22 = vpop.f32.mrf.mxu3  ;;  %4864 = vmatmul.msk.bf16.gmra.mxu2 %vm669_vm4, %v5029_v7  ;;  %v2675_v61 = vpop.f32.mrf.mxu1  ;;  %v2735_v45 = vadd.f32 %v2673_v48, %v5798_v51  ;;  %v3472_v7 = vrot.slane %v3470_v32, 5  ;;  %v6599_v42 = vld [vmem:[#allocation3_spill] sm:$0xff] }
 0x24d   : > { %v3675_v1 = vadd.f32 %v3611_v22, %v3021_v57  ;;  %v2582_v48 = vpack.c.b16 %v2566_v46, %v2565_v16  ;;  %v3463_v57 = vsel %vm5169_vm3, %v3458_v9, %v3462_v6 }
 0x24e   : > { %v3473_v47 = vsel %vm5169_vm3, %v3468_v27, %v3472_v7  ;;  %v3506_v22 = vunpack.c.l.b16 %v3463_v57 }
 0x24f   : > { %v4073_v52 = vadd.f32 %v4009_v4, %v3675_v1  ;;  %v2960_v31 = vpop.f32.mrf.mxu2  ;;  %v2736_v4 = vadd.f32 %v2675_v61, %v6599_v42  ;;  %v3507_v1 = vunpack.c.l.b16 %v3473_v47 }
 0x250   : > { %v3022_v23 = vadd.f32 %v2960_v31, %v2735_v45  ;;  %v3905_v31 = vunpack.c.l.b16 %v3871_v15 }
 0x251   : > { %4105 = vst.msk [vmem:[%s6205_s14 + $0x58] sm:$0xff] %vm669_vm4, %v4073_v52  ;;  %v4147_v19 = vsel %vm669_vm4, %v4073_v52, 0.0  ;;  %v4208_v56 = vmul.f32 %v4073_v52, %v4073_v52  ;;  %4929 = vmatmul.msk.bf16.gmra.mxu3 %vm669_vm4, %v3522_v13  ;;  %v3523_v52 = vpack.c.b16 %v3507_v1, %v3506_v22 }
 0x252   : > { %v4148_v50 = vadd.f32 %v4147_v19, %v4146_v54  ;;  %v4962_v54 = vrot.slane %v4946_v33, 9 }
 0x253   : > { %v4250_v5 = vsel %vm669_vm4, %v4208_v56, 0.0  ;;  %v4012_v51 = vpop.f32.mrf.mxu0 }
 0x254   : > { %v4251_v30 = vadd.f32 %v4250_v5, %v4249_v12  ;;  %v3614_v28 = vpop.f32.mrf.mxu3  ;;  %v2678_v43 = vpop.f32.mrf.mxu1  ;;  %v5030_v12 = vld [vmem:[%s5157_s27 + $0xcc] sm:$0xff]  ;;  %v3868_v61 = vsel %vm5343_vm7, %v4962_v54, %v3867_v0 }
 0x255   : > { %v3676_v20 = vadd.f32 %v3614_v28, %v3022_v23  ;;  %v3904_v45 = vunpack.c.l.b16 %v3868_v61  ;;  %v2737_v46 = vadd.f32 %v2678_v43, %v5834_v29 }
 0x256   : > { %4978 = vmatmul.msk.bf16.gmra.mxu0 %vm669_vm4, %v3920_v11 }
 0x257   : > { %v4074_v38 = vadd.f32 %v4012_v51, %v3676_v20  ;;  %v2962_v58 = vpop.f32.mrf.mxu2  ;;  %4752 = vmatmul.msk.bf16.gmra.mxu1 %vm669_vm4, %v2582_v48 }
 0x258   : > { %v3023_v40 = vadd.f32 %v2962_v58, %v2736_v4 }
 0x259   : > { %4106 = vst.msk [vmem:[%s6205_s14 + $0x60] sm:$0xff] %vm669_vm4, %v4074_v38  ;;  %v4149_v6 = vsel %vm669_vm4, %v4074_v38, 0.0  ;;  %v4209_v39 = vmul.f32 %v4074_v38, %v4074_v38 }
 0x25a   : > { %v4150_v36 = vadd.f32 %v4149_v6, %v4148_v50  ;;  %v3921_v50 = vpack.c.b16 %v3905_v31, %v3904_v45 }
 0x25b   : > { %v4252_v13 = vsel %vm669_vm4, %v4209_v39, 0.0  ;;  %v4014_v59 = vpop.f32.mrf.mxu0 }
 0x25c   : > { %v4253_v8 = vadd.f32 %v4252_v13, %v4251_v30  ;;  %v3616_v53 = vpop.f32.mrf.mxu3  ;;  %4865 = vmatmul.msk.bf16.gmra.mxu2 %vm669_vm4, %v5030_v12  ;;  %v2680_v24 = vpop.f32.mrf.mxu1 }
 0x25d   : > { %v3677_v32 = vadd.f32 %v3616_v53, %v3023_v40  ;;  %v2738_v33 = vadd.f32 %v2680_v24, %v5858_v37 }
 0x25f   : > { %v4075_v16 = vadd.f32 %v4014_v59, %v3677_v32  ;;  %v2965_v19 = vpop.f32.mrf.mxu2 }
 0x260   : > { %v3024_v23 = vadd.f32 %v2965_v19, %v2737_v46 }
 0x261   : > { %4107 = vst.msk [vmem:[%s6205_s14 + $0x68] sm:$0xff] %vm669_vm4, %v4075_v16  ;;  %v4151_v56 = vsel %vm669_vm4, %v4075_v16, 0.0  ;;  %v4210_v18 = vmul.f32 %v4075_v16, %v4075_v16  ;;  %4930 = vmatmul.msk.bf16.gmra.mxu3 %vm669_vm4, %v3523_v52 }
 0x262   : > { %v4152_v9 = vadd.f32 %v4151_v56, %v4150_v36 }
 0x263   : > { %v4254_v11 = vsel %vm669_vm4, %v4210_v18, 0.0  ;;  %v4017_v27 = vpop.f32.mrf.mxu0 }
 0x264   : > { %v4255_v7 = vadd.f32 %v4254_v11, %v4253_v8  ;;  %v3619_v5 = vpop.f32.mrf.mxu3  ;;  %v2683_v51 = vpop.f32.mrf.mxu1 }
 0x265   : > { %v3678_v48 = vadd.f32 %v3619_v5, %v3024_v23  ;;  %v2739_v25 = vadd.f32 %v2683_v51, %v5877_v34 }
 0x266   : > { %4979 = vmatmul.msk.bf16.gmra.mxu0 %vm669_vm4, %v3921_v50 }
 0x267   : > { %v4076_v29 = vadd.f32 %v4017_v27, %v3678_v48  ;;  %v2967_v0 = vpop.f32.mrf.mxu2 }
 0x268   : > { %v3025_v43 = vadd.f32 %v2967_v0, %v2738_v33 }
 0x269   : > { %4108 = vst.msk [vmem:[%s6205_s14 + $0x70] sm:$0xff] %vm669_vm4, %v4076_v29  ;;  %v4153_v30 = vsel %vm669_vm4, %v4076_v29, 0.0  ;;  %v4211_v28 = vmul.f32 %v4076_v29, %v4076_v29 }
 0x26a   : > { %v4154_v20 = vadd.f32 %v4153_v30, %v4152_v9 }
 0x26b   : > { %v4256_v57 = vsel %vm669_vm4, %v4211_v28, 0.0  ;;  %v4019_v47 = vpop.f32.mrf.mxu0 }
 0x26c   : > { %v4257_v54 = vadd.f32 %v4256_v57, %v4255_v7  ;;  %v3621_v38 = vpop.f32.mrf.mxu3  ;;  %v2685_v42 = vpop.f32.mrf.mxu1 }
 0x26d   : > { %v3679_v4 = vadd.f32 %v3621_v38, %v3025_v43  ;;  %v2740_v15 = vadd.f32 %v2685_v42, %v5901_v3 }
 0x26f   : > { %v4077_v58 = vadd.f32 %v4019_v47, %v3679_v4  ;;  %v2970_v37 = vpop.f32.mrf.mxu2 }
 0x270   : > { %v3026_v22 = vadd.f32 %v2970_v37, %v2739_v25 }
 0x271   : > { %4109 = vst.msk [vmem:[%s6205_s14 + $0x78] sm:$0xff] %vm669_vm4, %v4077_v58  ;;  %v4155_v35 = vsel %vm669_vm4, %v4077_v58, 0.0  ;;  %v4212_v12 = vmul.f32 %v4077_v58, %v4077_v58 }
 0x272   : > { %v4156_v6 = vadd.f32 %v4155_v35, %v4154_v20 }
 0x273   : > { %v4258_v39 = vsel %vm669_vm4, %v4212_v12, 0.0  ;;  %v4022_v40 = vpop.f32.mrf.mxu0 }
 0x274   : > { %v4259_v1 = vadd.f32 %v4258_v39, %v4257_v54  ;;  %v3624_v36 = vpop.f32.mrf.mxu3  ;;  %v2688_v13 = vpop.f32.mrf.mxu1 }
 0x275   : > { %v3680_v59 = vadd.f32 %v3624_v36, %v3026_v22  ;;  %v2741_v18 = vadd.f32 %v2688_v13, %v5920_v2 }
 0x277   : > { %v4078_v61 = vadd.f32 %v4022_v40, %v3680_v59  ;;  %v2972_v34 = vpop.f32.mrf.mxu2 }
 0x278   : > { %v3027_v24 = vadd.f32 %v2972_v34, %v2740_v15 }
 0x279   : > { %4110 = vst.msk [vmem:[%s6205_s14 + $0x80] sm:$0xff] %vm669_vm4, %v4078_v61  ;;  %v4157_v8 = vsel %vm669_vm4, %v4078_v61, 0.0  ;;  %v4213_v53 = vmul.f32 %v4078_v61, %v4078_v61 }
 0x27a   : > { %v4158_v32 = vadd.f32 %v4157_v8, %v4156_v6 }
 0x27b   : > { %v4260_v52 = vsel %vm669_vm4, %v4213_v53, 0.0  ;;  %v4024_v45 = vpop.f32.mrf.mxu0 }
 0x27c   : > { %v4261_v31 = vadd.f32 %v4260_v52, %v4259_v1  ;;  %v3626_v16 = vpop.f32.mrf.mxu3  ;;  %v2690_v46 = vpop.f32.mrf.mxu1 }
 0x27d   : > { %v3681_v19 = vadd.f32 %v3626_v16, %v3027_v24  ;;  %v2742_v0 = vadd.f32 %v2690_v46, %v5944_v26 }
 0x27f   : > { %v4079_v56 = vadd.f32 %v4024_v45, %v3681_v19  ;;  %v2975_v3 = vpop.f32.mrf.mxu2 }
 0x280   : > { %v3028_v50 = vadd.f32 %v2975_v3, %v2741_v18 }
 0x281   : > { %4111 = vst.msk [vmem:[%s6205_s14 + $0x88] sm:$0xff] %vm669_vm4, %v4079_v56  ;;  %v4159_v23 = vsel %vm669_vm4, %v4079_v56, 0.0  ;;  %v4214_v9 = vmul.f32 %v4079_v56, %v4079_v56 }
 0x282   : > { %v4160_v11 = vadd.f32 %v4159_v23, %v4158_v32 }
 0x283   : > { %v4262_v27 = vsel %vm669_vm4, %v4214_v9, 0.0  ;;  %v4027_v7 = vpop.f32.mrf.mxu0 }
 0x284   : > { %v4263_v5 = vadd.f32 %v4262_v27, %v4261_v31  ;;  %v3629_v51 = vpop.f32.mrf.mxu3  ;;  %v2693_v48 = vpop.f32.mrf.mxu1 }
 0x285   : > { %v3682_v29 = vadd.f32 %v3629_v51, %v3028_v50  ;;  %v2743_v25 = vadd.f32 %v2693_v48, %v5963_v60 }
 0x287   : > { %v4080_v33 = vadd.f32 %v4027_v7, %v3682_v29  ;;  %v2977_v2 = vpop.f32.mrf.mxu2 }
 0x288   : > { %v3029_v43 = vadd.f32 %v2977_v2, %v2742_v0 }
 0x289   : > { %4112 = vst.msk [vmem:[%s6205_s14 + $0x90] sm:$0xff] %vm669_vm4, %v4080_v33  ;;  %v4161_v30 = vsel %vm669_vm4, %v4080_v33, 0.0  ;;  %v4215_v28 = vmul.f32 %v4080_v33, %v4080_v33 }
 0x28a   : > { %v4162_v20 = vadd.f32 %v4161_v30, %v4160_v11 }
 0x28b   : > { %v4264_v57 = vsel %vm669_vm4, %v4215_v28, 0.0  ;;  %v4029_v47 = vpop.f32.mrf.mxu0 }
 0x28c   : > { %v4265_v54 = vadd.f32 %v4264_v57, %v4263_v5  ;;  %v3631_v38 = vpop.f32.mrf.mxu3  ;;  %v2695_v42 = vpop.f32.mrf.mxu1 }
 0x28d   : > { %v3683_v4 = vadd.f32 %v3631_v38, %v3029_v43  ;;  %v2744_v61 = vadd.f32 %v2695_v42, %v5987_v14 }
 0x28f   : > { %v4081_v58 = vadd.f32 %v4029_v47, %v3683_v4  ;;  %v2980_v26 = vpop.f32.mrf.mxu2 }
 0x290   : > { %v3030_v12 = vadd.f32 %v2980_v26, %v2743_v25 }
 0x291   : > { %4113 = vst.msk [vmem:[%s6205_s14 + $0x98] sm:$0xff] %vm669_vm4, %v4081_v58  ;;  %v4163_v37 = vsel %vm669_vm4, %v4081_v58, 0.0  ;;  %v4216_v35 = vmul.f32 %v4081_v58, %v4081_v58 }
 0x292   : > { %v4164_v22 = vadd.f32 %v4163_v37, %v4162_v20 }
 0x293   : > { %v4266_v6 = vsel %vm669_vm4, %v4216_v35, 0.0  ;;  %v4032_v39 = vpop.f32.mrf.mxu0 }
 0x294   : > { %v4267_v40 = vadd.f32 %v4266_v6, %v4265_v54  ;;  %v3634_v1 = vpop.f32.mrf.mxu3  ;;  %v2698_v36 = vpop.f32.mrf.mxu1 }
 0x295   : > { %v3684_v13 = vadd.f32 %v3634_v1, %v3030_v12  ;;  %v2745_v19 = vadd.f32 %v2698_v36, %v6006_v21 }
 0x297   : > { %v4082_v59 = vadd.f32 %v4032_v39, %v3684_v13  ;;  %v2982_v60 = vpop.f32.mrf.mxu2 }
 0x298   : > { %v3031_v8 = vadd.f32 %v2982_v60, %v2744_v61 }
 0x299   : > { %4114 = vst.msk [vmem:[%s6205_s14 + $0xa0] sm:$0xff] %vm669_vm4, %v4082_v59  ;;  %v4165_v15 = vsel %vm669_vm4, %v4082_v59, 0.0  ;;  %v4217_v34 = vmul.f32 %v4082_v59, %v4082_v59 }
 0x29a   : > { %v4166_v53 = vadd.f32 %v4165_v15, %v4164_v22 }
 0x29b   : > { %v4268_v24 = vsel %vm669_vm4, %v4217_v34, 0.0  ;;  %v4034_v32 = vpop.f32.mrf.mxu0 }
 0x29c   : > { %v4269_v52 = vadd.f32 %v4268_v24, %v4267_v40  ;;  %v3636_v45 = vpop.f32.mrf.mxu3  ;;  %v2700_v31 = vpop.f32.mrf.mxu1  ;;  %v6600_v40 = vld [vmem:[#allocation4_spill] sm:$0xff] }
 0x29d   : > { %v3685_v16 = vadd.f32 %v3636_v45, %v3031_v8  ;;  %v2746_v48 = vadd.f32 %v2700_v31, %v6030_v49 }
 0x29f   : > { %v4083_v46 = vadd.f32 %v4034_v32, %v3685_v16  ;;  %v2985_v14 = vpop.f32.mrf.mxu2 }
 0x2a0   : > { %v3032_v3 = vadd.f32 %v2985_v14, %v2745_v19 }
 0x2a1   : > { %4115 = vst.msk [vmem:[%s6205_s14 + $0xa8] sm:$0xff] %vm669_vm4, %v4083_v46  ;;  %v4167_v56 = vsel %vm669_vm4, %v4083_v46, 0.0  ;;  %v4218_v18 = vmul.f32 %v4083_v46, %v4083_v46 }
 0x2a2   : > { %v4168_v23 = vadd.f32 %v4167_v56, %v4166_v53 }
 0x2a3   : > { %v4270_v9 = vsel %vm669_vm4, %v4218_v18, 0.0  ;;  %v4037_v50 = vpop.f32.mrf.mxu0 }
 0x2a4   : > { %v4271_v11 = vadd.f32 %v4270_v9, %v4269_v52  ;;  %v3639_v27 = vpop.f32.mrf.mxu3  ;;  %v2703_v7 = vpop.f32.mrf.mxu1 }
 0x2a5   : > { %v3686_v5 = vadd.f32 %v3639_v27, %v3032_v3  ;;  %v2747_v38 = vadd.f32 %v2703_v7, %v6049_v17 }
 0x2a7   : > { %v4084_v51 = vadd.f32 %v4037_v50, %v3686_v5  ;;  %v2987_v21 = vpop.f32.mrf.mxu2 }
 0x2a8   : > { %v3033_v0 = vadd.f32 %v2987_v21, %v2746_v48 }
 0x2a9   : > { %4116 = vst.msk [vmem:[%s6205_s14 + $0xb0] sm:$0xff] %vm669_vm4, %v4084_v51  ;;  %v4169_v29 = vsel %vm669_vm4, %v4084_v51, 0.0  ;;  %v4219_v33 = vmul.f32 %v4084_v51, %v4084_v51 }
 0x2aa   : > { %v4170_v2 = vadd.f32 %v4169_v29, %v4168_v23 }
 0x2ab   : > { %v4272_v30 = vsel %vm669_vm4, %v4219_v33, 0.0  ;;  %v4039_v28 = vpop.f32.mrf.mxu0 }
 0x2ac   : > { %v4273_v43 = vadd.f32 %v4272_v30, %v4271_v11  ;;  %v3641_v20 = vpop.f32.mrf.mxu3  ;;  %v2705_v57 = vpop.f32.mrf.mxu1 }
 0x2ad   : > { %v3687_v47 = vadd.f32 %v3641_v20, %v3033_v0  ;;  %v2748_v1 = vadd.f32 %v2705_v57, %v6600_v40 }
 0x2af   : > { %v4085_v54 = vadd.f32 %v4039_v28, %v3687_v47  ;;  %v2990_v49 = vpop.f32.mrf.mxu2 }
 0x2b0   : > { %v3034_v58 = vadd.f32 %v2990_v49, %v2747_v38 }
 0x2b1   : > { %4117 = vst.msk [vmem:[%s6205_s14 + $0xb8] sm:$0xff] %vm669_vm4, %v4085_v54  ;;  %v4171_v42 = vsel %vm669_vm4, %v4085_v54, 0.0  ;;  %v4220_v4 = vmul.f32 %v4085_v54, %v4085_v54 }
 0x2b2   : > { %v4172_v25 = vadd.f32 %v4171_v42, %v4170_v2 }
 0x2b3   : > { %v4274_v26 = vsel %vm669_vm4, %v4220_v4, 0.0  ;;  %v4042_v37 = vpop.f32.mrf.mxu0 }
 0x2b4   : > { %v4275_v35 = vadd.f32 %v4274_v26, %v4273_v43  ;;  %v3644_v12 = vpop.f32.mrf.mxu3  ;;  %v2708_v22 = vpop.f32.mrf.mxu1 }
 0x2b5   : > { %v3688_v6 = vadd.f32 %v3644_v12, %v3034_v58  ;;  %v2749_v52 = vadd.f32 %v2708_v22, %v6090_v44 }
 0x2b7   : > { %v4086_v39 = vadd.f32 %v4042_v37, %v3688_v6  ;;  %v2992_v17 = vpop.f32.mrf.mxu2 }
 0x2b8   : > { %v3035_v59 = vadd.f32 %v2992_v17, %v2748_v1 }
 0x2b9   : > { %4118 = vst.msk [vmem:[%s6205_s14 + $0xc0] sm:$0xff] %vm669_vm4, %v4086_v39  ;;  %v4173_v36 = vsel %vm669_vm4, %v4086_v39, 0.0  ;;  %v4221_v13 = vmul.f32 %v4086_v39, %v4086_v39 }
 0x2ba   : > { %v4174_v61 = vadd.f32 %v4173_v36, %v4172_v25 }
 0x2bb   : > { %v4276_v60 = vsel %vm669_vm4, %v4221_v13, 0.0  ;;  %v4044_v15 = vpop.f32.mrf.mxu0 }
 0x2bc   : > { %v4277_v34 = vadd.f32 %v4276_v60, %v4275_v35  ;;  %v3646_v8 = vpop.f32.mrf.mxu3  ;;  %v2710_v53 = vpop.f32.mrf.mxu1 }
 0x2bd   : > { %v3689_v24 = vadd.f32 %v3646_v8, %v3035_v59  ;;  %v2750_v11 = vadd.f32 %v2710_v53, %v6110_v55  ;;  %v5102_v8 = vmov 0.0  }
 0x2be   : > { %4300 = vst.msk [vmem:[%s6569_s18 + $0x2] sm:$0x3f] %vm4299_vm8, %v5102_v8 }
 0x2bf   : > { %v4087_v32 = vadd.f32 %v4044_v15, %v3689_v24  ;;  %v2995_v45 = vpop.f32.mrf.mxu2 }
 0x2c0   : > { %v3036_v46 = vadd.f32 %v2995_v45, %v2749_v52 }
 0x2c1   : > { %4119 = vst.msk [vmem:[%s6205_s14 + $0xc8] sm:$0xff] %vm669_vm4, %v4087_v32  ;;  %v4175_v31 = vsel %vm669_vm4, %v4087_v32, 0.0  ;;  %v4222_v16 = vmul.f32 %v4087_v32, %v4087_v32 }
 0x2c2   : > { %v4176_v19 = vadd.f32 %v4175_v31, %v4174_v61 }
 0x2c3   : > { %v4278_v14 = vsel %vm669_vm4, %v4222_v16, 0.0  ;;  %v4047_v56 = vpop.f32.mrf.mxu0 }
 0x2c4   : > { %v4279_v18 = vadd.f32 %v4278_v14, %v4277_v34  ;;  %v3649_v3 = vpop.f32.mrf.mxu3  ;;  %v2713_v9 = vpop.f32.mrf.mxu1 }
 0x2c5   : > { %v3690_v23 = vadd.f32 %v3649_v3, %v3036_v46  ;;  %v2751_v30 = vadd.f32 %v2713_v9, %v6129_v63 }
 0x2c7   : > { %v4088_v50 = vadd.f32 %v4047_v56, %v3690_v23  ;;  %v2997_v44 = vpop.f32.mrf.mxu2 }
 0x2c8   : > { %v3037_v5 = vadd.f32 %v2997_v44, %v2750_v11 }
 0x2c9   : > { %4120 = vst.msk [vmem:[%s6205_s14 + $0xd0] sm:$0xff] %vm669_vm4, %v4088_v50  ;;  %v4177_v27 = vsel %vm669_vm4, %v4088_v50, 0.0  ;;  %v4223_v7 = vmul.f32 %v4088_v50, %v4088_v50 }
 0x2ca   : > { %v4178_v51 = vadd.f32 %v4177_v27, %v4176_v19 }
 0x2cb   : > { %v4280_v48 = vsel %vm669_vm4, %v4223_v7, 0.0  ;;  %v4049_v21 = vpop.f32.mrf.mxu0 }
 0x2cc   : > { %v4281_v29 = vadd.f32 %v4280_v48, %v4279_v18  ;;  %v3651_v33 = vpop.f32.mrf.mxu3  ;;  %v2715_v28 = vpop.f32.mrf.mxu1 }
 0x2cd   : > { %v3691_v0 = vadd.f32 %v3651_v33, %v3037_v5  ;;  %v2752_v25 = vadd.f32 %v2715_v28, %v6148_v10 }
 0x2cf   : > { %v4089_v2 = vadd.f32 %v4049_v21, %v3691_v0  ;;  %v3000_v55 = vpop.f32.mrf.mxu2 }
 0x2d0   : > { %v3038_v57 = vadd.f32 %v3000_v55, %v2751_v30 }
 0x2d1   : > { %4121 = vst.msk [vmem:[%s6205_s14 + $0xd8] sm:$0xff] %vm669_vm4, %v4089_v2  ;;  %v4179_v43 = vsel %vm669_vm4, %v4089_v2, 0.0  ;;  %v4224_v20 = vmul.f32 %v4089_v2, %v4089_v2 }
 0x2d2   : > { %v4180_v47 = vadd.f32 %v4179_v43, %v4178_v51 }
 0x2d3   : > { %v4282_v54 = vsel %vm669_vm4, %v4224_v20, 0.0  ;;  %v4052_v38 = vpop.f32.mrf.mxu0 }
 0x2d4   : > { %v4283_v49 = vadd.f32 %v4282_v54, %v4281_v29  ;;  %v3654_v42 = vpop.f32.mrf.mxu3  ;;  %v2718_v12 = vpop.f32.mrf.mxu1 }
 0x2d5   : > { %v3692_v4 = vadd.f32 %v3654_v42, %v3038_v57  ;;  %v2753_v10 = vadd.f32 %v2718_v12, %v6170_v62 }
 0x2d7   : > { %v4090_v58 = vadd.f32 %v4052_v38, %v3692_v4  ;;  %v3002_v63 = vpop.f32.mrf.mxu2 }
 0x2d8   : > { %v3039_v35 = vadd.f32 %v3002_v63, %v2752_v25 }
 0x2d9   : > { %4122 = vst.msk [vmem:[%s6205_s14 + $0xe0] sm:$0xff] %vm669_vm4, %v4090_v58  ;;  %v4181_v26 = vsel %vm669_vm4, %v4090_v58, 0.0  ;;  %v4225_v37 = vmul.f32 %v4090_v58, %v4090_v58 }
 0x2da   : > { %v4182_v22 = vadd.f32 %v4181_v26, %v4180_v47 }
 0x2db   : > { %v4284_v6 = vsel %vm669_vm4, %v4225_v37, 0.0  ;;  %v4054_v39 = vpop.f32.mrf.mxu0 }
 0x2dc   : > { %v4285_v40 = vadd.f32 %v4284_v6, %v4283_v49  ;;  %v3656_v1 = vpop.f32.mrf.mxu3  ;;  %v2720_v62 = vpop.f32.mrf.mxu1 }
 0x2dd   : > { %v3693_v17 = vadd.f32 %v3656_v1, %v3039_v35  ;;  %v2754_v31 = vadd.f32 %v2720_v62, %v6189_v41 }
 0x2df   : > { %v4091_v36 = vadd.f32 %v4054_v39, %v3693_v17  ;;  %v3005_v13 = vpop.f32.mrf.mxu2 }
 0x2e0   : > { %v3040_v60 = vadd.f32 %v3005_v13, %v2753_v10 }
 0x2e1   : > { %4123 = vst.msk [vmem:[%s6205_s14 + $0xe8] sm:$0xff] %vm669_vm4, %v4091_v36  ;;  %v4183_v59 = vsel %vm669_vm4, %v4091_v36, 0.0  ;;  %v4226_v61 = vmul.f32 %v4091_v36, %v4091_v36 }
 0x2e2   : > { %v4184_v15 = vadd.f32 %v4183_v59, %v4182_v22 }
 0x2e3   : > { %v4286_v34 = vsel %vm669_vm4, %v4226_v61, 0.0  ;;  %v4057_v24 = vpop.f32.mrf.mxu0 }
 0x2e4   : > { %v4287_v53 = vadd.f32 %v4286_v34, %v4285_v40  ;;  %v3659_v32 = vpop.f32.mrf.mxu3 }
 0x2e5   : > { %v3694_v52 = vadd.f32 %v3659_v32, %v3040_v60 }
 0x2e7   : > { %v4092_v45 = vadd.f32 %v4057_v24, %v3694_v52  ;;  %v3007_v16 = vpop.f32.mrf.mxu2 }
 0x2e8   : > { %v3041_v14 = vadd.f32 %v3007_v16, %v2754_v31 }
 0x2e9   : > { %4124 = vst.msk [vmem:[%s6205_s14 + $0xf0] sm:$0xff] %vm669_vm4, %v4092_v45  ;;  %v4185_v46 = vsel %vm669_vm4, %v4092_v45, 0.0  ;;  %v4227_v19 = vmul.f32 %v4092_v45, %v4092_v45 }
 0x2ea   : > { %v4186_v56 = vadd.f32 %v4185_v46, %v4184_v15 }
 0x2eb   : > { %v4288_v18 = vsel %vm669_vm4, %v4227_v19, 0.0  ;;  %v4059_v50 = vpop.f32.mrf.mxu0 }
 0x2ec   : > { %v4289_v3 = vadd.f32 %v4288_v18, %v4287_v53  ;;  %v3661_v23 = vpop.f32.mrf.mxu3 }
 0x2ed   : > { %v3695_v9 = vadd.f32 %v3661_v23, %v3041_v14 }
 0x2ef   : > { %v4093_v11 = vadd.f32 %v4059_v50, %v3695_v9 }
 0x2f1   : > { %4125 = vst.msk [vmem:[%s6205_s14 + $0xf8] sm:$0xff] %vm669_vm4, %v4093_v11  ;;  %v4187_v44 = vsel %vm669_vm4, %v4093_v11, 0.0  ;;  %v4228_v41 = vmul.f32 %v4093_v11, %v4093_v11 }
 0x2f2   : > { %v4188_v27 = vadd.f32 %v4187_v44, %v4186_v56 }
 0x2f3   : > { %v4290_v7 = vsel %vm669_vm4, %v4228_v41, 0.0 }
 0x2f4   : > { %v4189_v5 = vrot.slane %v4188_v27, 4  ;;  %v4291_v51 = vadd.f32 %v4290_v7, %v4289_v3 }
 0x2f6   : > { %v4190_v48 = vadd.f32 %v4189_v5, %v4188_v27  ;;  %v4292_v21 = vrot.slane %v4291_v51, 4 }
 0x2f8   : > { %v4191_v29 = vrot.slane %v4190_v48, 2  ;;  %v4293_v33 = vadd.f32 %v4292_v21, %v4291_v51 }
 0x2fa   : > { %v4192_v0 = vadd.f32 %v4191_v29, %v4190_v48  ;;  %v4294_v2 = vrot.slane %v4293_v33, 2 }
 0x2fc   : > { %v4193_v30 = vrot.slane %v4192_v0, 1  ;;  %v4295_v55 = vadd.f32 %v4294_v2, %v4293_v33 }
 0x2fe   : > { %v4194_v28 = vadd.f32 %v4193_v30, %v4192_v0  ;;  %v4296_v43 = vrot.slane %v4295_v55, 1 }
 0x300   : > { %4196 = vst.msk [vmem:[%s6569_s18] sm:$0x1] %vm4195_vm9, %v4194_v28  ;;  %v4297_v20 = vadd.f32 %v4296_v43, %v4295_v55 }
 0x302   : > { %4298 = vst.msk [vmem:[%s6569_s18 + $0x1] sm:$0x1] %vm4195_vm9, %v4297_v20 }
 0x303 PF: > { %s14_s12 = sadd.s32 1, %s5100_s12  }
 0x304   : > { %p11_p4 = scmp.ge.s32.totalorder %s14_s12, 4  }
 0x306   :  { %13 = sbr.rel (!%p11_p4) target bundleno = 1 (0x1), region = 80 }

</bundles_post_ra>
